<compile_context>
chip_gen: v7x
topology: tpu7x:2x2x1
jax: 0.10.0
libtpu: 0.0.40
codegen_flags: <defaults>
</compile_context>

<pallas_src>
import functools

import jax
import jax.numpy as jnp
import numpy as np
from jax.experimental import pallas as pl
from jax.experimental.pallas import tpu as pltpu

EPS = 1e-5  # PyTorch BatchNorm1d default eps

# (Cin, Cout, maxpool-after-this-block)  -- Cin of the first layer = input_dim
LAYER_PLAN = [
    (None, 64, False),
    (64, 128, True),
    (128, 256, False),
    (256, 512, True),
    (512, 256, False),
    (256, 128, True),
    (128, 64, False),
]


def _round_up(c, m=128):
    return ((c + m - 1) // m) * m


def _make_plan(input_dim, L):
    """Static per-layer plan: (L_in, Cin_padded, Cout_padded, L_out, pool)."""
    plan = []
    cin, l_in = input_dim, L
    for (_cin, cout, pool) in LAYER_PLAN:
        l_out = l_in // 2 if pool else l_in
        plan.append((l_in, _round_up(cin), _round_up(cout), l_out, pool))
        cin, l_in = cout, l_out
    return plan


def _encoder_kernel(plan, x_ref, *refs):
    """Fully fused hourglass encoder for ONE batch element.

    refs layout: [w_0..w_6, shift_0..shift_6, alpha_0..alpha_6, o_ref,
                  buf_a, buf_b]
      w_i:     (3, Cin_p, Cout_p)   conv taps, BN scale folded in
      shift_i: (1, Cout_p)          folded conv-bias + BN shift
      alpha_i: (1, Cout_p)          PReLU slope
      x_ref:   (1, L, Cin_p0)       channel-padded input
      o_ref:   (1, L_final, Cout_p_last)
      buf_*:   (L + 2, Cmax) f32    ping-pong activation scratch (VMEM)
    """
    nl = len(plan)
    w_refs = refs[0:nl]
    s_refs = refs[nl:2 * nl]
    a_refs = refs[2 * nl:3 * nl]
    o_ref = refs[3 * nl]
    bufs = (refs[3 * nl + 1], refs[3 * nl + 2])

    # Zero both ping-pong buffers once per batch element: this provides the
    # conv halo rows and the zero padding of the lane (channel) axis.
    bufs[0][...] = jnp.zeros_like(bufs[0])
    bufs[1][...] = jnp.zeros_like(bufs[1])

    # Stage the input at row 1 (rows 0 / L+1 are the zero halo).
    L0, cin_p0 = plan[0][0], plan[0][1]
    bufs[0][1:L0 + 1, 0:cin_p0] = x_ref[0]

    src = 0
    for i, (L_in, cin_p, cout_p, L_out, pool) in enumerate(plan):
        xb = bufs[src]
        # Conv1d(k=3, pad=1): three MXU matmuls over tap-shifted row windows
        # of the zero-haloed VMEM buffer.  K = Cin_p >= 128 for every layer.
        acc = jnp.dot(xb[0:L_in, 0:cin_p], w_refs[i][0],
                      preferred_element_type=jnp.float32)
        acc = acc + jnp.dot(xb[1:L_in + 1, 0:cin_p], w_refs[i][1],
                            preferred_element_type=jnp.float32)
        acc = acc + jnp.dot(xb[2:L_in + 2, 0:cin_p], w_refs[i][2],
                            preferred_element_type=jnp.float32)
        # BN scale already folded into w; epilogue = shift + PReLU.
        y = acc + s_refs[i][...]
        y = jnp.where(y >= 0.0, y, a_refs[i][...] * y)
        if pool:  # MaxPool1d(kernel=2, stride=2)
            y = y.reshape(L_in // 2, 2, cout_p).max(axis=1)

        if i == nl - 1:
            o_ref[0] = y.astype(o_ref.dtype)
        else:
            dst = bufs[1 - src]
            dst[1:L_out + 1, 0:cout_p] = y
            # Re-zero the bottom halo row (it may hold stale rows written by
            # an earlier, longer layer that used this buffer).
            dst[L_out + 1:L_out + 2, 0:cout_p] = jnp.zeros(
                (1, cout_p), jnp.float32)
            src = 1 - src


def encoder_forward(params, x_ncl):
    """x_ncl: (N, C_in, L) like PyTorch Conv1d. Returns (N, 64, L // 8)."""
    N, cin, L = x_ncl.shape
    assert L % 8 == 0, "sequence length must be divisible by 8 (3 maxpools)"

    plan = _make_plan(cin, L)
    cmax = max(max(p[1], p[2]) for p in plan)
    cin_p0 = plan[0][1]
    l_final = plan[-1][3]
    cout_p_last = plan[-1][2]
    cout_last = LAYER_PLAN[-1][1]

    # Channels-last + one-time zero-pad of the (tiny) input channel axis so
    # the kernel only ever sees lane-dense (multiple-of-128) channel dims.
    x = jnp.transpose(x_ncl, (0, 2, 1))                       # (N, L, Cin)
    x = jnp.pad(x, ((0, 0), (0, 0), (0, cin_p0 - cin)))       # (N, L, Cin_p0)

    ws = [p["w"] for p in params]
    shifts = [p["shift"] for p in params]
    alphas = [p["alpha"] for p in params]

    w_specs = [pl.BlockSpec(w.shape, lambda n: (0, 0, 0)) for w in ws]
    v_specs = [pl.BlockSpec(v.shape, lambda n: (0, 0))
               for v in (shifts + alphas)]

    flops = 2 * N * sum(p[0] * 3 * p[1] * p[2] for p in plan)
    bytes_accessed = 4 * (int(x.size) + N * l_final * cout_p_last
                          + sum(int(w.size) for w in ws)
                          + sum(int(v.size) for v in (shifts + alphas)))

    kernel = functools.partial(_encoder_kernel, plan)
    out = pl.pallas_call(
        kernel,
        out_shape=jax.ShapeDtypeStruct((N, l_final, cout_p_last), jnp.float32),
        grid=(N,),
        in_specs=[pl.BlockSpec((1, L, cin_p0), lambda n: (n, 0, 0))]
                 + w_specs + v_specs,
        out_specs=pl.BlockSpec((1, l_final, cout_p_last),
                               lambda n: (n, 0, 0)),
        scratch_shapes=[pltpu.VMEM((L + 2, cmax), jnp.float32),
                        pltpu.VMEM((L + 2, cmax), jnp.float32)],
        compiler_params=pltpu.CompilerParams(
            dimension_semantics=("parallel",),
            vmem_limit_bytes=48 * 1024 * 1024),
        cost_estimate=pl.CostEstimate(flops=flops, transcendentals=0,
                                      bytes_accessed=bytes_accessed),
    )(x, *ws, *shifts, *alphas)

    out = out[:, :, :cout_last]          # drop the zero-padded channels
    return jnp.transpose(out, (0, 2, 1))  # back to NCL


def init_params(key, input_dim):
    """Deterministic synthetic parameters (shapes follow the nn.Module)."""
    params = []
    cin = input_dim
    for (_cin, cout, pool) in LAYER_PLAN:
        k_w, k_b, k_g, k_beta, key = jax.random.split(key, 5)
        fan_in = cin * 3
        bound = 1.0 / np.sqrt(fan_in)
        w = jax.random.uniform(k_w, (cout, cin, 3), jnp.float32, -bound, bound)
        b = jax.random.uniform(k_b, (cout,), jnp.float32, -bound, bound)
        gamma = 1.0 + 0.1 * jax.random.normal(k_g, (cout,), jnp.float32)
        beta = 0.1 * jax.random.normal(k_beta, (cout,), jnp.float32)
        running_mean = jnp.zeros((cout,), jnp.float32)
        running_var = jnp.ones((cout,), jnp.float32)
        alpha = jnp.full((cout,), 0.25, jnp.float32)  # PReLU default init

        # Fold conv bias + eval BatchNorm: scale goes into the weights,
        # the remaining per-channel shift stays in the epilogue.
        scale = gamma / jnp.sqrt(running_var + EPS)
        shift = scale * (b - running_mean) + beta
        w_taps = jnp.transpose(w, (2, 1, 0)) * scale[None, None, :]  # (3,Ci,Co)

        # Zero-pad channel dims to multiples of 128 (lane-dense, MXU friendly).
        cin_p, cout_p = _round_up(cin), _round_up(cout)
        w_pad = jnp.zeros((3, cin_p, cout_p), jnp.float32)
        w_pad = w_pad.at[:, :cin, :cout].set(w_taps)
        shift_pad = jnp.zeros((1, cout_p), jnp.float32).at[0, :cout].set(shift)
        alpha_pad = jnp.zeros((1, cout_p), jnp.float32).at[0, :cout].set(alpha)

        params.append(dict(
            w=w_pad, shift=shift_pad, alpha=alpha_pad, pool=pool,
            # unpadded copies for the pure-JAX reference
            ref_w=w_taps, ref_shift=shift, ref_alpha=alpha))
        cin = cout
    return params


def reference_forward(params, x_ncl):
    """Pure-JAX reference (unpadded params) for correctness checking."""
    x = jnp.transpose(x_ncl, (0, 2, 1))
    for p in params:
        N, L, _ = x.shape
        xp = jnp.pad(x, ((0, 0), (1, 1), (0, 0)))
        y = sum(jnp.einsum("nlc,cd->nld", xp[:, k:k + L, :], p["ref_w"][k])
                for k in range(3))
        y = y + p["ref_shift"][None, None, :]
        y = jnp.where(y >= 0.0, y, p["ref_alpha"][None, None, :] * y)
        if p["pool"]:
            y = y.reshape(N, L // 2, 2, -1).max(axis=2)
        x = y
    return jnp.transpose(x, (0, 2, 1))


if __name__ == "__main__":
    key = jax.random.PRNGKey(0)
    N, input_dim, L = 2, 16, 32
    k_x, k_p = jax.random.split(key)
    x = jax.random.normal(k_x, (N, input_dim, L), jnp.float32)  # NCL like torch
    params = init_params(k_p, input_dim)

    out = jax.block_until_ready(encoder_forward(params, x))
    assert out.shape == (N, 64, L // 8), out.shape

    ref = reference_forward(params, x)
    np.testing.assert_allclose(np.asarray(out), np.asarray(ref),
                               rtol=2e-3, atol=2e-3)
    print("KERNEL_OK")
</pallas_src>

<mosaic_0001>
module attributes {stable_mosaic.version = 11 : i64} {
  func.func @_encoder_kernel(%arg0: i32, %arg1: memref<1x32x128xf32, #tpu.memory_space<vmem>>, %arg2: memref<3x128x128xf32, #tpu.memory_space<vmem>>, %arg3: memref<3x128x128xf32, #tpu.memory_space<vmem>>, %arg4: memref<3x128x256xf32, #tpu.memory_space<vmem>>, %arg5: memref<3x256x512xf32, #tpu.memory_space<vmem>>, %arg6: memref<3x512x256xf32, #tpu.memory_space<vmem>>, %arg7: memref<3x256x128xf32, #tpu.memory_space<vmem>>, %arg8: memref<3x128x128xf32, #tpu.memory_space<vmem>>, %arg9: memref<1x128xf32, #tpu.memory_space<vmem>>, %arg10: memref<1x128xf32, #tpu.memory_space<vmem>>, %arg11: memref<1x256xf32, #tpu.memory_space<vmem>>, %arg12: memref<1x512xf32, #tpu.memory_space<vmem>>, %arg13: memref<1x256xf32, #tpu.memory_space<vmem>>, %arg14: memref<1x128xf32, #tpu.memory_space<vmem>>, %arg15: memref<1x128xf32, #tpu.memory_space<vmem>>, %arg16: memref<1x128xf32, #tpu.memory_space<vmem>>, %arg17: memref<1x128xf32, #tpu.memory_space<vmem>>, %arg18: memref<1x256xf32, #tpu.memory_space<vmem>>, %arg19: memref<1x512xf32, #tpu.memory_space<vmem>>, %arg20: memref<1x256xf32, #tpu.memory_space<vmem>>, %arg21: memref<1x128xf32, #tpu.memory_space<vmem>>, %arg22: memref<1x128xf32, #tpu.memory_space<vmem>>, %arg23: memref<1x4x128xf32, #tpu.memory_space<vmem>>, %arg24: memref<34x512xf32, #tpu.memory_space<vmem>>, %arg25: memref<34x512xf32, #tpu.memory_space<vmem>>) attributes {dimension_semantics = [#tpu.dimension_semantics<parallel>], iteration_bounds = array<i64: 2>, scalar_prefetch = 0 : i64, scratch_operands = 2 : i64, tpu.core_type = #tpu.core_type<tc>, window_params = [{transform_indices = @transform_0, window_bounds = array<i64: 1, 32, 128>}, {pipeline_mode = #tpu.pipeline_mode<synchronous>, transform_indices = @transform_1, window_bounds = array<i64: 3, 128, 128>}, {pipeline_mode = #tpu.pipeline_mode<synchronous>, transform_indices = @transform_2, window_bounds = array<i64: 3, 128, 128>}, {pipeline_mode = #tpu.pipeline_mode<synchronous>, transform_indices = @transform_3, window_bounds = array<i64: 3, 128, 256>}, {pipeline_mode = #tpu.pipeline_mode<synchronous>, transform_indices = @transform_4, window_bounds = array<i64: 3, 256, 512>}, {pipeline_mode = #tpu.pipeline_mode<synchronous>, transform_indices = @transform_5, window_bounds = array<i64: 3, 512, 256>}, {pipeline_mode = #tpu.pipeline_mode<synchronous>, transform_indices = @transform_6, window_bounds = array<i64: 3, 256, 128>}, {pipeline_mode = #tpu.pipeline_mode<synchronous>, transform_indices = @transform_7, window_bounds = array<i64: 3, 128, 128>}, {pipeline_mode = #tpu.pipeline_mode<synchronous>, transform_indices = @transform_8, window_bounds = array<i64: 1, 128>}, {pipeline_mode = #tpu.pipeline_mode<synchronous>, transform_indices = @transform_9, window_bounds = array<i64: 1, 128>}, {pipeline_mode = #tpu.pipeline_mode<synchronous>, transform_indices = @transform_10, window_bounds = array<i64: 1, 256>}, {pipeline_mode = #tpu.pipeline_mode<synchronous>, transform_indices = @transform_11, window_bounds = array<i64: 1, 512>}, {pipeline_mode = #tpu.pipeline_mode<synchronous>, transform_indices = @transform_12, window_bounds = array<i64: 1, 256>}, {pipeline_mode = #tpu.pipeline_mode<synchronous>, transform_indices = @transform_13, window_bounds = array<i64: 1, 128>}, {pipeline_mode = #tpu.pipeline_mode<synchronous>, transform_indices = @transform_14, window_bounds = array<i64: 1, 128>}, {pipeline_mode = #tpu.pipeline_mode<synchronous>, transform_indices = @transform_15, window_bounds = array<i64: 1, 128>}, {pipeline_mode = #tpu.pipeline_mode<synchronous>, transform_indices = @transform_16, window_bounds = array<i64: 1, 128>}, {pipeline_mode = #tpu.pipeline_mode<synchronous>, transform_indices = @transform_17, window_bounds = array<i64: 1, 256>}, {pipeline_mode = #tpu.pipeline_mode<synchronous>, transform_indices = @transform_18, window_bounds = array<i64: 1, 512>}, {pipeline_mode = #tpu.pipeline_mode<synchronous>, transform_indices = @transform_19, window_bounds = array<i64: 1, 256>}, {pipeline_mode = #tpu.pipeline_mode<synchronous>, transform_indices = @transform_20, window_bounds = array<i64: 1, 128>}, {pipeline_mode = #tpu.pipeline_mode<synchronous>, transform_indices = @transform_21, window_bounds = array<i64: 1, 128>}, {transform_indices = @transform_22, window_bounds = array<i64: 1, 4, 128>}]} {
    %cst = arith.constant 0.000000e+00 : f32
    %0 = vector.broadcast %cst : f32 to vector<34x512xf32>
    %c0 = arith.constant 0 : index
    %c0_0 = arith.constant 0 : index
    %1 = vector.load %arg24[%c0, %c0_0] : memref<34x512xf32, #tpu.memory_space<vmem>>, vector<34x512xf32>
    tpu.vector_store %arg24[%c0, %c0_0], %0 {strides = array<i32>} : memref<34x512xf32, #tpu.memory_space<vmem>>, vector<34x512xf32>,
    %cst_1 = arith.constant 0.000000e+00 : f32
    %2 = vector.broadcast %cst_1 : f32 to vector<34x512xf32>
    %c0_2 = arith.constant 0 : index
    %c0_3 = arith.constant 0 : index
    %3 = vector.load %arg25[%c0_2, %c0_3] : memref<34x512xf32, #tpu.memory_space<vmem>>, vector<34x512xf32>
    tpu.vector_store %arg25[%c0_2, %c0_3], %2 {strides = array<i32>} : memref<34x512xf32, #tpu.memory_space<vmem>>, vector<34x512xf32>,
    %c0_4 = arith.constant 0 : index
    %c0_5 = arith.constant 0 : index
    %c0_6 = arith.constant 0 : index
    %4 = vector.load %arg1[%c0_4, %c0_5, %c0_6] : memref<1x32x128xf32, #tpu.memory_space<vmem>>, vector<1x32x128xf32>
    %5 = vector.shape_cast %4 : vector<1x32x128xf32> to vector<32x128xf32>
    %c1 = arith.constant 1 : index
    %c0_7 = arith.constant 0 : index
    %6 = vector.load %arg24[%c1, %c0_7] : memref<34x512xf32, #tpu.memory_space<vmem>>, vector<32x128xf32>
    tpu.vector_store %arg24[%c1, %c0_7], %5 {strides = array<i32>} : memref<34x512xf32, #tpu.memory_space<vmem>>, vector<32x128xf32>,
    %c0_8 = arith.constant 0 : index
    %c0_9 = arith.constant 0 : index
    %7 = vector.load %arg24[%c0_8, %c0_9] : memref<34x512xf32, #tpu.memory_space<vmem>>, vector<32x128xf32>
    %c0_10 = arith.constant 0 : index
    %c0_11 = arith.constant 0 : index
    %c0_12 = arith.constant 0 : index
    %8 = vector.load %arg2[%c0_10, %c0_11, %c0_12] : memref<3x128x128xf32, #tpu.memory_space<vmem>>, vector<1x128x128xf32>
    %9 = vector.shape_cast %8 : vector<1x128x128xf32> to vector<128x128xf32>
    %cst_13 = arith.constant dense<0.000000e+00> : vector<32x128xf32>
    %10 = tpu.matmul %7, %9, %cst_13 {dimension_numbers = #tpu.dot_dimension_numbers<[1], [0], [0], [1], [0, 0, 1, 1], [], []>} : vector<32x128xf32>, vector<128x128xf32>, vector<32x128xf32> -> vector<32x128xf32>
    %c1_14 = arith.constant 1 : index
    %c0_15 = arith.constant 0 : index
    %11 = vector.load %arg24[%c1_14, %c0_15] : memref<34x512xf32, #tpu.memory_space<vmem>>, vector<32x128xf32>
    %c1_16 = arith.constant 1 : index
    %c0_17 = arith.constant 0 : index
    %c0_18 = arith.constant 0 : index
    %12 = vector.load %arg2[%c1_16, %c0_17, %c0_18] : memref<3x128x128xf32, #tpu.memory_space<vmem>>, vector<1x128x128xf32>
    %13 = vector.shape_cast %12 : vector<1x128x128xf32> to vector<128x128xf32>
    %cst_19 = arith.constant dense<0.000000e+00> : vector<32x128xf32>
    %14 = tpu.matmul %11, %13, %cst_19 {dimension_numbers = #tpu.dot_dimension_numbers<[1], [0], [0], [1], [0, 0, 1, 1], [], []>} : vector<32x128xf32>, vector<128x128xf32>, vector<32x128xf32> -> vector<32x128xf32>
    %15 = arith.addf %10, %14 : vector<32x128xf32>
    %c2 = arith.constant 2 : index
    %c0_20 = arith.constant 0 : index
    %16 = vector.load %arg24[%c2, %c0_20] : memref<34x512xf32, #tpu.memory_space<vmem>>, vector<32x128xf32>
    %c2_21 = arith.constant 2 : index
    %c0_22 = arith.constant 0 : index
    %c0_23 = arith.constant 0 : index
    %17 = vector.load %arg2[%c2_21, %c0_22, %c0_23] : memref<3x128x128xf32, #tpu.memory_space<vmem>>, vector<1x128x128xf32>
    %18 = vector.shape_cast %17 : vector<1x128x128xf32> to vector<128x128xf32>
    %cst_24 = arith.constant dense<0.000000e+00> : vector<32x128xf32>
    %19 = tpu.matmul %16, %18, %cst_24 {dimension_numbers = #tpu.dot_dimension_numbers<[1], [0], [0], [1], [0, 0, 1, 1], [], []>} : vector<32x128xf32>, vector<128x128xf32>, vector<32x128xf32> -> vector<32x128xf32>
    %20 = arith.addf %15, %19 : vector<32x128xf32>
    %c0_25 = arith.constant 0 : index
    %c0_26 = arith.constant 0 : index
    %21 = vector.load %arg9[%c0_25, %c0_26] : memref<1x128xf32, #tpu.memory_space<vmem>>, vector<1x128xf32>
    %22 = vector.broadcast %21 : vector<1x128xf32> to vector<32x128xf32>
    %23 = arith.addf %20, %22 : vector<32x128xf32>
    %cst_27 = arith.constant 0.000000e+00 : f32
    %24 = vector.broadcast %cst_27 : f32 to vector<32x128xf32>
    %25 = arith.cmpf oge, %23, %24 : vector<32x128xf32>
    %c0_28 = arith.constant 0 : index
    %c0_29 = arith.constant 0 : index
    %26 = vector.load %arg16[%c0_28, %c0_29] : memref<1x128xf32, #tpu.memory_space<vmem>>, vector<1x128xf32>
    %27 = vector.broadcast %26 : vector<1x128xf32> to vector<32x128xf32>
    %28 = arith.mulf %27, %23 : vector<32x128xf32>
    %29 = arith.select %25, %23, %28 : vector<32x128xi1>, vector<32x128xf32>
    %c1_30 = arith.constant 1 : index
    %c0_31 = arith.constant 0 : index
    %30 = vector.load %arg25[%c1_30, %c0_31] : memref<34x512xf32, #tpu.memory_space<vmem>>, vector<32x128xf32>
    tpu.vector_store %arg25[%c1_30, %c0_31], %29 {strides = array<i32>} : memref<34x512xf32, #tpu.memory_space<vmem>>, vector<32x128xf32>,
    %cst_32 = arith.constant 0.000000e+00 : f32
    %31 = vector.broadcast %cst_32 : f32 to vector<1x128xf32>
    %c33 = arith.constant 33 : index
    %c0_33 = arith.constant 0 : index
    %32 = vector.load %arg25[%c33, %c0_33] : memref<34x512xf32, #tpu.memory_space<vmem>>, vector<1x128xf32>
    tpu.vector_store %arg25[%c33, %c0_33], %31 {strides = array<i32>} : memref<34x512xf32, #tpu.memory_space<vmem>>, vector<1x128xf32>,
    %c0_34 = arith.constant 0 : index
    %c0_35 = arith.constant 0 : index
    %33 = vector.load %arg25[%c0_34, %c0_35] : memref<34x512xf32, #tpu.memory_space<vmem>>, vector<32x128xf32>
    %c0_36 = arith.constant 0 : index
    %c0_37 = arith.constant 0 : index
    %c0_38 = arith.constant 0 : index
    %34 = vector.load %arg3[%c0_36, %c0_37, %c0_38] : memref<3x128x128xf32, #tpu.memory_space<vmem>>, vector<1x128x128xf32>
    %35 = vector.shape_cast %34 : vector<1x128x128xf32> to vector<128x128xf32>
    %cst_39 = arith.constant dense<0.000000e+00> : vector<32x128xf32>
    %36 = tpu.matmul %33, %35, %cst_39 {dimension_numbers = #tpu.dot_dimension_numbers<[1], [0], [0], [1], [0, 0, 1, 1], [], []>} : vector<32x128xf32>, vector<128x128xf32>, vector<32x128xf32> -> vector<32x128xf32>
    %c1_40 = arith.constant 1 : index
    %c0_41 = arith.constant 0 : index
    %37 = vector.load %arg25[%c1_40, %c0_41] : memref<34x512xf32, #tpu.memory_space<vmem>>, vector<32x128xf32>
    %c1_42 = arith.constant 1 : index
    %c0_43 = arith.constant 0 : index
    %c0_44 = arith.constant 0 : index
    %38 = vector.load %arg3[%c1_42, %c0_43, %c0_44] : memref<3x128x128xf32, #tpu.memory_space<vmem>>, vector<1x128x128xf32>
    %39 = vector.shape_cast %38 : vector<1x128x128xf32> to vector<128x128xf32>
    %cst_45 = arith.constant dense<0.000000e+00> : vector<32x128xf32>
    %40 = tpu.matmul %37, %39, %cst_45 {dimension_numbers = #tpu.dot_dimension_numbers<[1], [0], [0], [1], [0, 0, 1, 1], [], []>} : vector<32x128xf32>, vector<128x128xf32>, vector<32x128xf32> -> vector<32x128xf32>
    %41 = arith.addf %36, %40 : vector<32x128xf32>
    %c2_46 = arith.constant 2 : index
    %c0_47 = arith.constant 0 : index
    %42 = vector.load %arg25[%c2_46, %c0_47] : memref<34x512xf32, #tpu.memory_space<vmem>>, vector<32x128xf32>
    %c2_48 = arith.constant 2 : index
    %c0_49 = arith.constant 0 : index
    %c0_50 = arith.constant 0 : index
    %43 = vector.load %arg3[%c2_48, %c0_49, %c0_50] : memref<3x128x128xf32, #tpu.memory_space<vmem>>, vector<1x128x128xf32>
    %44 = vector.shape_cast %43 : vector<1x128x128xf32> to vector<128x128xf32>
    %cst_51 = arith.constant dense<0.000000e+00> : vector<32x128xf32>
    %45 = tpu.matmul %42, %44, %cst_51 {dimension_numbers = #tpu.dot_dimension_numbers<[1], [0], [0], [1], [0, 0, 1, 1], [], []>} : vector<32x128xf32>, vector<128x128xf32>, vector<32x128xf32> -> vector<32x128xf32>
    %46 = arith.addf %41, %45 : vector<32x128xf32>
    %c0_52 = arith.constant 0 : index
    %c0_53 = arith.constant 0 : index
    %47 = vector.load %arg10[%c0_52, %c0_53] : memref<1x128xf32, #tpu.memory_space<vmem>>, vector<1x128xf32>
    %48 = vector.broadcast %47 : vector<1x128xf32> to vector<32x128xf32>
    %49 = arith.addf %46, %48 : vector<32x128xf32>
    %cst_54 = arith.constant 0.000000e+00 : f32
    %50 = vector.broadcast %cst_54 : f32 to vector<32x128xf32>
    %51 = arith.cmpf oge, %49, %50 : vector<32x128xf32>
    %c0_55 = arith.constant 0 : index
    %c0_56 = arith.constant 0 : index
    %52 = vector.load %arg17[%c0_55, %c0_56] : memref<1x128xf32, #tpu.memory_space<vmem>>, vector<1x128xf32>
    %53 = vector.broadcast %52 : vector<1x128xf32> to vector<32x128xf32>
    %54 = arith.mulf %53, %49 : vector<32x128xf32>
    %55 = arith.select %51, %49, %54 : vector<32x128xi1>, vector<32x128xf32>
    %56 = vector.shape_cast %55 : vector<32x128xf32> to vector<16x2x128xf32>
    %cst_57 = arith.constant dense<0xFF800000> : vector<16x128xf32>
    %57 = vector.multi_reduction <maximumf>, %56, %cst_57 [1] : vector<16x2x128xf32> to vector<16x128xf32>
    %c1_58 = arith.constant 1 : index
    %c0_59 = arith.constant 0 : index
    %58 = vector.load %arg24[%c1_58, %c0_59] : memref<34x512xf32, #tpu.memory_space<vmem>>, vector<16x128xf32>
    tpu.vector_store %arg24[%c1_58, %c0_59], %57 {strides = array<i32>} : memref<34x512xf32, #tpu.memory_space<vmem>>, vector<16x128xf32>,
    %cst_60 = arith.constant 0.000000e+00 : f32
    %59 = vector.broadcast %cst_60 : f32 to vector<1x128xf32>
    %c17 = arith.constant 17 : index
    %c0_61 = arith.constant 0 : index
    %60 = vector.load %arg24[%c17, %c0_61] : memref<34x512xf32, #tpu.memory_space<vmem>>, vector<1x128xf32>
    tpu.vector_store %arg24[%c17, %c0_61], %59 {strides = array<i32>} : memref<34x512xf32, #tpu.memory_space<vmem>>, vector<1x128xf32>,
    %c0_62 = arith.constant 0 : index
    %c0_63 = arith.constant 0 : index
    %61 = vector.load %arg24[%c0_62, %c0_63] : memref<34x512xf32, #tpu.memory_space<vmem>>, vector<16x128xf32>
    %c0_64 = arith.constant 0 : index
    %c0_65 = arith.constant 0 : index
    %c0_66 = arith.constant 0 : index
    %62 = vector.load %arg4[%c0_64, %c0_65, %c0_66] : memref<3x128x256xf32, #tpu.memory_space<vmem>>, vector<1x128x256xf32>
    %63 = vector.shape_cast %62 : vector<1x128x256xf32> to vector<128x256xf32>
    %cst_67 = arith.constant dense<0.000000e+00> : vector<16x256xf32>
    %64 = tpu.matmul %61, %63, %cst_67 {dimension_numbers = #tpu.dot_dimension_numbers<[1], [0], [0], [1], [0, 0, 1, 1], [], []>} : vector<16x128xf32>, vector<128x256xf32>, vector<16x256xf32> -> vector<16x256xf32>
    %c1_68 = arith.constant 1 : index
    %c0_69 = arith.constant 0 : index
    %65 = vector.load %arg24[%c1_68, %c0_69] : memref<34x512xf32, #tpu.memory_space<vmem>>, vector<16x128xf32>
    %c1_70 = arith.constant 1 : index
    %c0_71 = arith.constant 0 : index
    %c0_72 = arith.constant 0 : index
    %66 = vector.load %arg4[%c1_70, %c0_71, %c0_72] : memref<3x128x256xf32, #tpu.memory_space<vmem>>, vector<1x128x256xf32>
    %67 = vector.shape_cast %66 : vector<1x128x256xf32> to vector<128x256xf32>
    %cst_73 = arith.constant dense<0.000000e+00> : vector<16x256xf32>
    %68 = tpu.matmul %65, %67, %cst_73 {dimension_numbers = #tpu.dot_dimension_numbers<[1], [0], [0], [1], [0, 0, 1, 1], [], []>} : vector<16x128xf32>, vector<128x256xf32>, vector<16x256xf32> -> vector<16x256xf32>
    %69 = arith.addf %64, %68 : vector<16x256xf32>
    %c2_74 = arith.constant 2 : index
    %c0_75 = arith.constant 0 : index
    %70 = vector.load %arg24[%c2_74, %c0_75] : memref<34x512xf32, #tpu.memory_space<vmem>>, vector<16x128xf32>
    %c2_76 = arith.constant 2 : index
    %c0_77 = arith.constant 0 : index
    %c0_78 = arith.constant 0 : index
    %71 = vector.load %arg4[%c2_76, %c0_77, %c0_78] : memref<3x128x256xf32, #tpu.memory_space<vmem>>, vector<1x128x256xf32>
    %72 = vector.shape_cast %71 : vector<1x128x256xf32> to vector<128x256xf32>
    %cst_79 = arith.constant dense<0.000000e+00> : vector<16x256xf32>
    %73 = tpu.matmul %70, %72, %cst_79 {dimension_numbers = #tpu.dot_dimension_numbers<[1], [0], [0], [1], [0, 0, 1, 1], [], []>} : vector<16x128xf32>, vector<128x256xf32>, vector<16x256xf32> -> vector<16x256xf32>
    %74 = arith.addf %69, %73 : vector<16x256xf32>
    %c0_80 = arith.constant 0 : index
    %c0_81 = arith.constant 0 : index
    %75 = vector.load %arg11[%c0_80, %c0_81] : memref<1x256xf32, #tpu.memory_space<vmem>>, vector<1x256xf32>
    %76 = vector.broadcast %75 : vector<1x256xf32> to vector<16x256xf32>
    %77 = arith.addf %74, %76 : vector<16x256xf32>
    %cst_82 = arith.constant 0.000000e+00 : f32
    %78 = vector.broadcast %cst_82 : f32 to vector<16x256xf32>
    %79 = arith.cmpf oge, %77, %78 : vector<16x256xf32>
    %c0_83 = arith.constant 0 : index
    %c0_84 = arith.constant 0 : index
    %80 = vector.load %arg18[%c0_83, %c0_84] : memref<1x256xf32, #tpu.memory_space<vmem>>, vector<1x256xf32>
    %81 = vector.broadcast %80 : vector<1x256xf32> to vector<16x256xf32>
    %82 = arith.mulf %81, %77 : vector<16x256xf32>
    %83 = arith.select %79, %77, %82 : vector<16x256xi1>, vector<16x256xf32>
    %c1_85 = arith.constant 1 : index
    %c0_86 = arith.constant 0 : index
    %84 = vector.load %arg25[%c1_85, %c0_86] : memref<34x512xf32, #tpu.memory_space<vmem>>, vector<16x256xf32>
    tpu.vector_store %arg25[%c1_85, %c0_86], %83 {strides = array<i32>} : memref<34x512xf32, #tpu.memory_space<vmem>>, vector<16x256xf32>,
    %cst_87 = arith.constant 0.000000e+00 : f32
    %85 = vector.broadcast %cst_87 : f32 to vector<1x256xf32>
    %c17_88 = arith.constant 17 : index
    %c0_89 = arith.constant 0 : index
    %86 = vector.load %arg25[%c17_88, %c0_89] : memref<34x512xf32, #tpu.memory_space<vmem>>, vector<1x256xf32>
    tpu.vector_store %arg25[%c17_88, %c0_89], %85 {strides = array<i32>} : memref<34x512xf32, #tpu.memory_space<vmem>>, vector<1x256xf32>,
    %c0_90 = arith.constant 0 : index
    %c0_91 = arith.constant 0 : index
    %87 = vector.load %arg25[%c0_90, %c0_91] : memref<34x512xf32, #tpu.memory_space<vmem>>, vector<16x256xf32>
    %c0_92 = arith.constant 0 : index
    %c0_93 = arith.constant 0 : index
    %c0_94 = arith.constant 0 : index
    %88 = vector.load %arg5[%c0_92, %c0_93, %c0_94] : memref<3x256x512xf32, #tpu.memory_space<vmem>>, vector<1x256x512xf32>
    %89 = vector.shape_cast %88 : vector<1x256x512xf32> to vector<256x512xf32>
    %cst_95 = arith.constant dense<0.000000e+00> : vector<16x512xf32>
    %90 = tpu.matmul %87, %89, %cst_95 {dimension_numbers = #tpu.dot_dimension_numbers<[1], [0], [0], [1], [0, 0, 1, 1], [], []>} : vector<16x256xf32>, vector<256x512xf32>, vector<16x512xf32> -> vector<16x512xf32>
    %c1_96 = arith.constant 1 : index
    %c0_97 = arith.constant 0 : index
    %91 = vector.load %arg25[%c1_96, %c0_97] : memref<34x512xf32, #tpu.memory_space<vmem>>, vector<16x256xf32>
    %c1_98 = arith.constant 1 : index
    %c0_99 = arith.constant 0 : index
    %c0_100 = arith.constant 0 : index
    %92 = vector.load %arg5[%c1_98, %c0_99, %c0_100] : memref<3x256x512xf32, #tpu.memory_space<vmem>>, vector<1x256x512xf32>
    %93 = vector.shape_cast %92 : vector<1x256x512xf32> to vector<256x512xf32>
    %cst_101 = arith.constant dense<0.000000e+00> : vector<16x512xf32>
    %94 = tpu.matmul %91, %93, %cst_101 {dimension_numbers = #tpu.dot_dimension_numbers<[1], [0], [0], [1], [0, 0, 1, 1], [], []>} : vector<16x256xf32>, vector<256x512xf32>, vector<16x512xf32> -> vector<16x512xf32>
    %95 = arith.addf %90, %94 : vector<16x512xf32>
    %c2_102 = arith.constant 2 : index
    %c0_103 = arith.constant 0 : index
    %96 = vector.load %arg25[%c2_102, %c0_103] : memref<34x512xf32, #tpu.memory_space<vmem>>, vector<16x256xf32>
    %c2_104 = arith.constant 2 : index
    %c0_105 = arith.constant 0 : index
    %c0_106 = arith.constant 0 : index
    %97 = vector.load %arg5[%c2_104, %c0_105, %c0_106] : memref<3x256x512xf32, #tpu.memory_space<vmem>>, vector<1x256x512xf32>
    %98 = vector.shape_cast %97 : vector<1x256x512xf32> to vector<256x512xf32>
    %cst_107 = arith.constant dense<0.000000e+00> : vector<16x512xf32>
    %99 = tpu.matmul %96, %98, %cst_107 {dimension_numbers = #tpu.dot_dimension_numbers<[1], [0], [0], [1], [0, 0, 1, 1], [], []>} : vector<16x256xf32>, vector<256x512xf32>, vector<16x512xf32> -> vector<16x512xf32>
    %100 = arith.addf %95, %99 : vector<16x512xf32>
    %c0_108 = arith.constant 0 : index
    %c0_109 = arith.constant 0 : index
    %101 = vector.load %arg12[%c0_108, %c0_109] : memref<1x512xf32, #tpu.memory_space<vmem>>, vector<1x512xf32>
    %102 = vector.broadcast %101 : vector<1x512xf32> to vector<16x512xf32>
    %103 = arith.addf %100, %102 : vector<16x512xf32>
    %cst_110 = arith.constant 0.000000e+00 : f32
    %104 = vector.broadcast %cst_110 : f32 to vector<16x512xf32>
    %105 = arith.cmpf oge, %103, %104 : vector<16x512xf32>
    %c0_111 = arith.constant 0 : index
    %c0_112 = arith.constant 0 : index
    %106 = vector.load %arg19[%c0_111, %c0_112] : memref<1x512xf32, #tpu.memory_space<vmem>>, vector<1x512xf32>
    %107 = vector.broadcast %106 : vector<1x512xf32> to vector<16x512xf32>
    %108 = arith.mulf %107, %103 : vector<16x512xf32>
    %109 = arith.select %105, %103, %108 : vector<16x512xi1>, vector<16x512xf32>
    %110 = vector.shape_cast %109 : vector<16x512xf32> to vector<8x2x512xf32>
    %cst_113 = arith.constant dense<0xFF800000> : vector<8x512xf32>
    %111 = vector.multi_reduction <maximumf>, %110, %cst_113 [1] : vector<8x2x512xf32> to vector<8x512xf32>
    %c1_114 = arith.constant 1 : index
    %c0_115 = arith.constant 0 : index
    %112 = vector.load %arg24[%c1_114, %c0_115] : memref<34x512xf32, #tpu.memory_space<vmem>>, vector<8x512xf32>
    tpu.vector_store %arg24[%c1_114, %c0_115], %111 {strides = array<i32>} : memref<34x512xf32, #tpu.memory_space<vmem>>, vector<8x512xf32>,
    %cst_116 = arith.constant 0.000000e+00 : f32
    %113 = vector.broadcast %cst_116 : f32 to vector<1x512xf32>
    %c9 = arith.constant 9 : index
    %c0_117 = arith.constant 0 : index
    %114 = vector.load %arg24[%c9, %c0_117] : memref<34x512xf32, #tpu.memory_space<vmem>>, vector<1x512xf32>
    tpu.vector_store %arg24[%c9, %c0_117], %113 {strides = array<i32>} : memref<34x512xf32, #tpu.memory_space<vmem>>, vector<1x512xf32>,
    %c0_118 = arith.constant 0 : index
    %c0_119 = arith.constant 0 : index
    %115 = vector.load %arg24[%c0_118, %c0_119] : memref<34x512xf32, #tpu.memory_space<vmem>>, vector<8x512xf32>
    %c0_120 = arith.constant 0 : index
    %c0_121 = arith.constant 0 : index
    %c0_122 = arith.constant 0 : index
    %116 = vector.load %arg6[%c0_120, %c0_121, %c0_122] : memref<3x512x256xf32, #tpu.memory_space<vmem>>, vector<1x512x256xf32>
    %117 = vector.shape_cast %116 : vector<1x512x256xf32> to vector<512x256xf32>
    %cst_123 = arith.constant dense<0.000000e+00> : vector<8x256xf32>
    %118 = tpu.matmul %115, %117, %cst_123 {dimension_numbers = #tpu.dot_dimension_numbers<[1], [0], [0], [1], [0, 0, 1, 1], [], []>} : vector<8x512xf32>, vector<512x256xf32>, vector<8x256xf32> -> vector<8x256xf32>
    %c1_124 = arith.constant 1 : index
    %c0_125 = arith.constant 0 : index
    %119 = vector.load %arg24[%c1_124, %c0_125] : memref<34x512xf32, #tpu.memory_space<vmem>>, vector<8x512xf32>
    %c1_126 = arith.constant 1 : index
    %c0_127 = arith.constant 0 : index
    %c0_128 = arith.constant 0 : index
    %120 = vector.load %arg6[%c1_126, %c0_127, %c0_128] : memref<3x512x256xf32, #tpu.memory_space<vmem>>, vector<1x512x256xf32>
    %121 = vector.shape_cast %120 : vector<1x512x256xf32> to vector<512x256xf32>
    %cst_129 = arith.constant dense<0.000000e+00> : vector<8x256xf32>
    %122 = tpu.matmul %119, %121, %cst_129 {dimension_numbers = #tpu.dot_dimension_numbers<[1], [0], [0], [1], [0, 0, 1, 1], [], []>} : vector<8x512xf32>, vector<512x256xf32>, vector<8x256xf32> -> vector<8x256xf32>
    %123 = arith.addf %118, %122 : vector<8x256xf32>
    %c2_130 = arith.constant 2 : index
    %c0_131 = arith.constant 0 : index
    %124 = vector.load %arg24[%c2_130, %c0_131] : memref<34x512xf32, #tpu.memory_space<vmem>>, vector<8x512xf32>
    %c2_132 = arith.constant 2 : index
    %c0_133 = arith.constant 0 : index
    %c0_134 = arith.constant 0 : index
    %125 = vector.load %arg6[%c2_132, %c0_133, %c0_134] : memref<3x512x256xf32, #tpu.memory_space<vmem>>, vector<1x512x256xf32>
    %126 = vector.shape_cast %125 : vector<1x512x256xf32> to vector<512x256xf32>
    %cst_135 = arith.constant dense<0.000000e+00> : vector<8x256xf32>
    %127 = tpu.matmul %124, %126, %cst_135 {dimension_numbers = #tpu.dot_dimension_numbers<[1], [0], [0], [1], [0, 0, 1, 1], [], []>} : vector<8x512xf32>, vector<512x256xf32>, vector<8x256xf32> -> vector<8x256xf32>
    %128 = arith.addf %123, %127 : vector<8x256xf32>
    %c0_136 = arith.constant 0 : index
    %c0_137 = arith.constant 0 : index
    %129 = vector.load %arg13[%c0_136, %c0_137] : memref<1x256xf32, #tpu.memory_space<vmem>>, vector<1x256xf32>
    %130 = vector.broadcast %129 : vector<1x256xf32> to vector<8x256xf32>
    %131 = arith.addf %128, %130 : vector<8x256xf32>
    %cst_138 = arith.constant 0.000000e+00 : f32
    %132 = vector.broadcast %cst_138 : f32 to vector<8x256xf32>
    %133 = arith.cmpf oge, %131, %132 : vector<8x256xf32>
    %c0_139 = arith.constant 0 : index
    %c0_140 = arith.constant 0 : index
    %134 = vector.load %arg20[%c0_139, %c0_140] : memref<1x256xf32, #tpu.memory_space<vmem>>, vector<1x256xf32>
    %135 = vector.broadcast %134 : vector<1x256xf32> to vector<8x256xf32>
    %136 = arith.mulf %135, %131 : vector<8x256xf32>
    %137 = arith.select %133, %131, %136 : vector<8x256xi1>, vector<8x256xf32>
    %c1_141 = arith.constant 1 : index
    %c0_142 = arith.constant 0 : index
    %138 = vector.load %arg25[%c1_141, %c0_142] : memref<34x512xf32, #tpu.memory_space<vmem>>, vector<8x256xf32>
    tpu.vector_store %arg25[%c1_141, %c0_142], %137 {strides = array<i32>} : memref<34x512xf32, #tpu.memory_space<vmem>>, vector<8x256xf32>,
    %cst_143 = arith.constant 0.000000e+00 : f32
    %139 = vector.broadcast %cst_143 : f32 to vector<1x256xf32>
    %c9_144 = arith.constant 9 : index
    %c0_145 = arith.constant 0 : index
    %140 = vector.load %arg25[%c9_144, %c0_145] : memref<34x512xf32, #tpu.memory_space<vmem>>, vector<1x256xf32>
    tpu.vector_store %arg25[%c9_144, %c0_145], %139 {strides = array<i32>} : memref<34x512xf32, #tpu.memory_space<vmem>>, vector<1x256xf32>,
    %c0_146 = arith.constant 0 : index
    %c0_147 = arith.constant 0 : index
    %141 = vector.load %arg25[%c0_146, %c0_147] : memref<34x512xf32, #tpu.memory_space<vmem>>, vector<8x256xf32>
    %c0_148 = arith.constant 0 : index
    %c0_149 = arith.constant 0 : index
    %c0_150 = arith.constant 0 : index
    %142 = vector.load %arg7[%c0_148, %c0_149, %c0_150] : memref<3x256x128xf32, #tpu.memory_space<vmem>>, vector<1x256x128xf32>
    %143 = vector.shape_cast %142 : vector<1x256x128xf32> to vector<256x128xf32>
    %cst_151 = arith.constant dense<0.000000e+00> : vector<8x128xf32>
    %144 = tpu.matmul %141, %143, %cst_151 {dimension_numbers = #tpu.dot_dimension_numbers<[1], [0], [0], [1], [0, 0, 1, 1], [], []>} : vector<8x256xf32>, vector<256x128xf32>, vector<8x128xf32> -> vector<8x128xf32>
    %c1_152 = arith.constant 1 : index
    %c0_153 = arith.constant 0 : index
    %145 = vector.load %arg25[%c1_152, %c0_153] : memref<34x512xf32, #tpu.memory_space<vmem>>, vector<8x256xf32>
    %c1_154 = arith.constant 1 : index
    %c0_155 = arith.constant 0 : index
    %c0_156 = arith.constant 0 : index
    %146 = vector.load %arg7[%c1_154, %c0_155, %c0_156] : memref<3x256x128xf32, #tpu.memory_space<vmem>>, vector<1x256x128xf32>
    %147 = vector.shape_cast %146 : vector<1x256x128xf32> to vector<256x128xf32>
    %cst_157 = arith.constant dense<0.000000e+00> : vector<8x128xf32>
    %148 = tpu.matmul %145, %147, %cst_157 {dimension_numbers = #tpu.dot_dimension_numbers<[1], [0], [0], [1], [0, 0, 1, 1], [], []>} : vector<8x256xf32>, vector<256x128xf32>, vector<8x128xf32> -> vector<8x128xf32>
    %149 = arith.addf %144, %148 : vector<8x128xf32>
    %c2_158 = arith.constant 2 : index
    %c0_159 = arith.constant 0 : index
    %150 = vector.load %arg25[%c2_158, %c0_159] : memref<34x512xf32, #tpu.memory_space<vmem>>, vector<8x256xf32>
    %c2_160 = arith.constant 2 : index
    %c0_161 = arith.constant 0 : index
    %c0_162 = arith.constant 0 : index
    %151 = vector.load %arg7[%c2_160, %c0_161, %c0_162] : memref<3x256x128xf32, #tpu.memory_space<vmem>>, vector<1x256x128xf32>
    %152 = vector.shape_cast %151 : vector<1x256x128xf32> to vector<256x128xf32>
    %cst_163 = arith.constant dense<0.000000e+00> : vector<8x128xf32>
    %153 = tpu.matmul %150, %152, %cst_163 {dimension_numbers = #tpu.dot_dimension_numbers<[1], [0], [0], [1], [0, 0, 1, 1], [], []>} : vector<8x256xf32>, vector<256x128xf32>, vector<8x128xf32> -> vector<8x128xf32>
    %154 = arith.addf %149, %153 : vector<8x128xf32>
    %c0_164 = arith.constant 0 : index
    %c0_165 = arith.constant 0 : index
    %155 = vector.load %arg14[%c0_164, %c0_165] : memref<1x128xf32, #tpu.memory_space<vmem>>, vector<1x128xf32>
    %156 = vector.broadcast %155 : vector<1x128xf32> to vector<8x128xf32>
    %157 = arith.addf %154, %156 : vector<8x128xf32>
    %cst_166 = arith.constant 0.000000e+00 : f32
    %158 = vector.broadcast %cst_166 : f32 to vector<8x128xf32>
    %159 = arith.cmpf oge, %157, %158 : vector<8x128xf32>
    %c0_167 = arith.constant 0 : index
    %c0_168 = arith.constant 0 : index
    %160 = vector.load %arg21[%c0_167, %c0_168] : memref<1x128xf32, #tpu.memory_space<vmem>>, vector<1x128xf32>
    %161 = vector.broadcast %160 : vector<1x128xf32> to vector<8x128xf32>
    %162 = arith.mulf %161, %157 : vector<8x128xf32>
    %163 = arith.select %159, %157, %162 : vector<8x128xi1>, vector<8x128xf32>
    %164 = vector.shape_cast %163 : vector<8x128xf32> to vector<4x2x128xf32>
    %cst_169 = arith.constant dense<0xFF800000> : vector<4x128xf32>
    %165 = vector.multi_reduction <maximumf>, %164, %cst_169 [1] : vector<4x2x128xf32> to vector<4x128xf32>
    %c1_170 = arith.constant 1 : index
    %c0_171 = arith.constant 0 : index
    %166 = vector.load %arg24[%c1_170, %c0_171] : memref<34x512xf32, #tpu.memory_space<vmem>>, vector<4x128xf32>
    tpu.vector_store %arg24[%c1_170, %c0_171], %165 {strides = array<i32>} : memref<34x512xf32, #tpu.memory_space<vmem>>, vector<4x128xf32>,
    %cst_172 = arith.constant 0.000000e+00 : f32
    %167 = vector.broadcast %cst_172 : f32 to vector<1x128xf32>
    %c5 = arith.constant 5 : index
    %c0_173 = arith.constant 0 : index
    %168 = vector.load %arg24[%c5, %c0_173] : memref<34x512xf32, #tpu.memory_space<vmem>>, vector<1x128xf32>
    tpu.vector_store %arg24[%c5, %c0_173], %167 {strides = array<i32>} : memref<34x512xf32, #tpu.memory_space<vmem>>, vector<1x128xf32>,
    %c0_174 = arith.constant 0 : index
    %c0_175 = arith.constant 0 : index
    %169 = vector.load %arg24[%c0_174, %c0_175] : memref<34x512xf32, #tpu.memory_space<vmem>>, vector<4x128xf32>
    %c0_176 = arith.constant 0 : index
    %c0_177 = arith.constant 0 : index
    %c0_178 = arith.constant 0 : index
    %170 = vector.load %arg8[%c0_176, %c0_177, %c0_178] : memref<3x128x128xf32, #tpu.memory_space<vmem>>, vector<1x128x128xf32>
    %171 = vector.shape_cast %170 : vector<1x128x128xf32> to vector<128x128xf32>
    %cst_179 = arith.constant dense<0.000000e+00> : vector<4x128xf32>
    %172 = tpu.matmul %169, %171, %cst_179 {dimension_numbers = #tpu.dot_dimension_numbers<[1], [0], [0], [1], [0, 0, 1, 1], [], []>} : vector<4x128xf32>, vector<128x128xf32>, vector<4x128xf32> -> vector<4x128xf32>
    %c1_180 = arith.constant 1 : index
    %c0_181 = arith.constant 0 : index
    %173 = vector.load %arg24[%c1_180, %c0_181] : memref<34x512xf32, #tpu.memory_space<vmem>>, vector<4x128xf32>
    %c1_182 = arith.constant 1 : index
    %c0_183 = arith.constant 0 : index
    %c0_184 = arith.constant 0 : index
    %174 = vector.load %arg8[%c1_182, %c0_183, %c0_184] : memref<3x128x128xf32, #tpu.memory_space<vmem>>, vector<1x128x128xf32>
    %175 = vector.shape_cast %174 : vector<1x128x128xf32> to vector<128x128xf32>
    %cst_185 = arith.constant dense<0.000000e+00> : vector<4x128xf32>
    %176 = tpu.matmul %173, %175, %cst_185 {dimension_numbers = #tpu.dot_dimension_numbers<[1], [0], [0], [1], [0, 0, 1, 1], [], []>} : vector<4x128xf32>, vector<128x128xf32>, vector<4x128xf32> -> vector<4x128xf32>
    %177 = arith.addf %172, %176 : vector<4x128xf32>
    %c2_186 = arith.constant 2 : index
    %c0_187 = arith.constant 0 : index
    %178 = vector.load %arg24[%c2_186, %c0_187] : memref<34x512xf32, #tpu.memory_space<vmem>>, vector<4x128xf32>
    %c2_188 = arith.constant 2 : index
    %c0_189 = arith.constant 0 : index
    %c0_190 = arith.constant 0 : index
    %179 = vector.load %arg8[%c2_188, %c0_189, %c0_190] : memref<3x128x128xf32, #tpu.memory_space<vmem>>, vector<1x128x128xf32>
    %180 = vector.shape_cast %179 : vector<1x128x128xf32> to vector<128x128xf32>
    %cst_191 = arith.constant dense<0.000000e+00> : vector<4x128xf32>
    %181 = tpu.matmul %178, %180, %cst_191 {dimension_numbers = #tpu.dot_dimension_numbers<[1], [0], [0], [1], [0, 0, 1, 1], [], []>} : vector<4x128xf32>, vector<128x128xf32>, vector<4x128xf32> -> vector<4x128xf32>
    %182 = arith.addf %177, %181 : vector<4x128xf32>
    %c0_192 = arith.constant 0 : index
    %c0_193 = arith.constant 0 : index
    %183 = vector.load %arg15[%c0_192, %c0_193] : memref<1x128xf32, #tpu.memory_space<vmem>>, vector<1x128xf32>
    %184 = vector.broadcast %183 : vector<1x128xf32> to vector<4x128xf32>
    %185 = arith.addf %182, %184 : vector<4x128xf32>
    %cst_194 = arith.constant 0.000000e+00 : f32
    %186 = vector.broadcast %cst_194 : f32 to vector<4x128xf32>
    %187 = arith.cmpf oge, %185, %186 : vector<4x128xf32>
    %c0_195 = arith.constant 0 : index
    %c0_196 = arith.constant 0 : index
    %188 = vector.load %arg22[%c0_195, %c0_196] : memref<1x128xf32, #tpu.memory_space<vmem>>, vector<1x128xf32>
    %189 = vector.broadcast %188 : vector<1x128xf32> to vector<4x128xf32>
    %190 = arith.mulf %189, %185 : vector<4x128xf32>
    %191 = arith.select %187, %185, %190 : vector<4x128xi1>, vector<4x128xf32>
    %c0_197 = arith.constant 0 : index
    %c0_198 = arith.constant 0 : index
    %c0_199 = arith.constant 0 : index
    %192 = vector.load %arg23[%c0_197, %c0_198, %c0_199] : memref<1x4x128xf32, #tpu.memory_space<vmem>>, vector<1x4x128xf32>
    %193 = vector.shape_cast %192 : vector<1x4x128xf32> to vector<4x128xf32>
    %194 = vector.shape_cast %191 : vector<4x128xf32> to vector<1x4x128xf32>
    tpu.vector_store %arg23[%c0_197, %c0_198, %c0_199], %194 {strides = array<i32>} : memref<1x4x128xf32, #tpu.memory_space<vmem>>, vector<1x4x128xf32>,
    return
  }
  func.func @transform_0(%arg0: i32) -> (i32, i32, i32) {
    %c0_i32 = arith.constant 0 : i32
    %c0_i32_0 = arith.constant 0 : i32
    %c0_i32_1 = arith.constant 0 : i32
    return %arg0, %c0_i32, %c0_i32_0 : i32, i32, i32
  }
  func.func @transform_1(%arg0: i32) -> (i32, i32, i32) {
    %c0_i32 = arith.constant 0 : i32
    %c0_i32_0 = arith.constant 0 : i32
    %c0_i32_1 = arith.constant 0 : i32
    %c0_i32_2 = arith.constant 0 : i32
    return %c0_i32, %c0_i32_0, %c0_i32_1 : i32, i32, i32
  }
  func.func @transform_2(%arg0: i32) -> (i32, i32, i32) {
    %c0_i32 = arith.constant 0 : i32
    %c0_i32_0 = arith.constant 0 : i32
    %c0_i32_1 = arith.constant 0 : i32
    %c0_i32_2 = arith.constant 0 : i32
    return %c0_i32, %c0_i32_0, %c0_i32_1 : i32, i32, i32
  }
  func.func @transform_3(%arg0: i32) -> (i32, i32, i32) {
    %c0_i32 = arith.constant 0 : i32
    %c0_i32_0 = arith.constant 0 : i32
    %c0_i32_1 = arith.constant 0 : i32
    %c0_i32_2 = arith.constant 0 : i32
    return %c0_i32, %c0_i32_0, %c0_i32_1 : i32, i32, i32
  }
  func.func @transform_4(%arg0: i32) -> (i32, i32, i32) {
    %c0_i32 = arith.constant 0 : i32
    %c0_i32_0 = arith.constant 0 : i32
    %c0_i32_1 = arith.constant 0 : i32
    %c0_i32_2 = arith.constant 0 : i32
    return %c0_i32, %c0_i32_0, %c0_i32_1 : i32, i32, i32
  }
  func.func @transform_5(%arg0: i32) -> (i32, i32, i32) {
    %c0_i32 = arith.constant 0 : i32
    %c0_i32_0 = arith.constant 0 : i32
    %c0_i32_1 = arith.constant 0 : i32
    %c0_i32_2 = arith.constant 0 : i32
    return %c0_i32, %c0_i32_0, %c0_i32_1 : i32, i32, i32
  }
  func.func @transform_6(%arg0: i32) -> (i32, i32, i32) {
    %c0_i32 = arith.constant 0 : i32
    %c0_i32_0 = arith.constant 0 : i32
    %c0_i32_1 = arith.constant 0 : i32
    %c0_i32_2 = arith.constant 0 : i32
    return %c0_i32, %c0_i32_0, %c0_i32_1 : i32, i32, i32
  }
  func.func @transform_7(%arg0: i32) -> (i32, i32, i32) {
    %c0_i32 = arith.constant 0 : i32
    %c0_i32_0 = arith.constant 0 : i32
    %c0_i32_1 = arith.constant 0 : i32
    %c0_i32_2 = arith.constant 0 : i32
    return %c0_i32, %c0_i32_0, %c0_i32_1 : i32, i32, i32
  }
  func.func @transform_8(%arg0: i32) -> (i32, i32) {
    %c0_i32 = arith.constant 0 : i32
    %c0_i32_0 = arith.constant 0 : i32
    %c0_i32_1 = arith.constant 0 : i32
    return %c0_i32, %c0_i32_0 : i32, i32
  }
  func.func @transform_9(%arg0: i32) -> (i32, i32) {
    %c0_i32 = arith.constant 0 : i32
    %c0_i32_0 = arith.constant 0 : i32
    %c0_i32_1 = arith.constant 0 : i32
    return %c0_i32, %c0_i32_0 : i32, i32
  }
  func.func @transform_10(%arg0: i32) -> (i32, i32) {
    %c0_i32 = arith.constant 0 : i32
    %c0_i32_0 = arith.constant 0 : i32
    %c0_i32_1 = arith.constant 0 : i32
    return %c0_i32, %c0_i32_0 : i32, i32
  }
  func.func @transform_11(%arg0: i32) -> (i32, i32) {
    %c0_i32 = arith.constant 0 : i32
    %c0_i32_0 = arith.constant 0 : i32
    %c0_i32_1 = arith.constant 0 : i32
    return %c0_i32, %c0_i32_0 : i32, i32
  }
  func.func @transform_12(%arg0: i32) -> (i32, i32) {
    %c0_i32 = arith.constant 0 : i32
    %c0_i32_0 = arith.constant 0 : i32
    %c0_i32_1 = arith.constant 0 : i32
    return %c0_i32, %c0_i32_0 : i32, i32
  }
  func.func @transform_13(%arg0: i32) -> (i32, i32) {
    %c0_i32 = arith.constant 0 : i32
    %c0_i32_0 = arith.constant 0 : i32
    %c0_i32_1 = arith.constant 0 : i32
    return %c0_i32, %c0_i32_0 : i32, i32
  }
  func.func @transform_14(%arg0: i32) -> (i32, i32) {
    %c0_i32 = arith.constant 0 : i32
    %c0_i32_0 = arith.constant 0 : i32
    %c0_i32_1 = arith.constant 0 : i32
    return %c0_i32, %c0_i32_0 : i32, i32
  }
  func.func @transform_15(%arg0: i32) -> (i32, i32) {
    %c0_i32 = arith.constant 0 : i32
    %c0_i32_0 = arith.constant 0 : i32
    %c0_i32_1 = arith.constant 0 : i32
    return %c0_i32, %c0_i32_0 : i32, i32
  }
  func.func @transform_16(%arg0: i32) -> (i32, i32) {
    %c0_i32 = arith.constant 0 : i32
    %c0_i32_0 = arith.constant 0 : i32
    %c0_i32_1 = arith.constant 0 : i32
    return %c0_i32, %c0_i32_0 : i32, i32
  }
  func.func @transform_17(%arg0: i32) -> (i32, i32) {
    %c0_i32 = arith.constant 0 : i32
    %c0_i32_0 = arith.constant 0 : i32
    %c0_i32_1 = arith.constant 0 : i32
    return %c0_i32, %c0_i32_0 : i32, i32
  }
  func.func @transform_18(%arg0: i32) -> (i32, i32) {
    %c0_i32 = arith.constant 0 : i32
    %c0_i32_0 = arith.constant 0 : i32
    %c0_i32_1 = arith.constant 0 : i32
    return %c0_i32, %c0_i32_0 : i32, i32
  }
  func.func @transform_19(%arg0: i32) -> (i32, i32) {
    %c0_i32 = arith.constant 0 : i32
    %c0_i32_0 = arith.constant 0 : i32
    %c0_i32_1 = arith.constant 0 : i32
    return %c0_i32, %c0_i32_0 : i32, i32
  }
  func.func @transform_20(%arg0: i32) -> (i32, i32) {
    %c0_i32 = arith.constant 0 : i32
    %c0_i32_0 = arith.constant 0 : i32
    %c0_i32_1 = arith.constant 0 : i32
    return %c0_i32, %c0_i32_0 : i32, i32
  }
  func.func @transform_21(%arg0: i32) -> (i32, i32) {
    %c0_i32 = arith.constant 0 : i32
    %c0_i32_0 = arith.constant 0 : i32
    %c0_i32_1 = arith.constant 0 : i32
    return %c0_i32, %c0_i32_0 : i32, i32
  }
  func.func @transform_22(%arg0: i32) -> (i32, i32, i32) {
    %c0_i32 = arith.constant 0 : i32
    %c0_i32_0 = arith.constant 0 : i32
    %c0_i32_1 = arith.constant 0 : i32
    return %arg0, %c0_i32, %c0_i32_0 : i32, i32, i32
  }
}

</mosaic_0001>

<bundles_post_ra>
// kernel: tpu_custom_call.1
= control target key start
LH: loop header
LB: loop body
LE: loop exit
PB: predicated region body
PF: predicated region fallthrough
CT: control target
= control target key end

     0   :  { %s10340_s0 = inlined_call_operand.hbm [shape: f32[2,32,128], index: 0, kind: input, shape index: {}]   ;;  %s10341_s1 = inlined_call_operand.hbm [shape: f32[3,128,128], index: 1, kind: input, shape index: {}]   ;;  %s10342_s2 = inlined_call_operand.hbm [shape: f32[3,128,128], index: 2, kind: input, shape index: {}]   ;;  %s10343_s3 = inlined_call_operand.hbm [shape: f32[3,128,256], index: 3, kind: input, shape index: {}]   ;;  %s10344_s4 = inlined_call_operand.hbm [shape: f32[3,256,512], index: 4, kind: input, shape index: {}]   ;;  %s10345_s5 = inlined_call_operand.hbm [shape: f32[3,512,256], index: 5, kind: input, shape index: {}]   ;;  %s10346_s6 = inlined_call_operand.hbm [shape: f32[3,256,128], index: 6, kind: input, shape index: {}]   ;;  %s10347_s7 = inlined_call_operand.hbm [shape: f32[3,128,128], index: 7, kind: input, shape index: {}]   ;;  %s10348_s8 = inlined_call_operand.hbm [shape: f32[1,128], index: 8, kind: input, shape index: {}]   ;;  %s10349_s9 = inlined_call_operand.hbm [shape: f32[1,128], index: 9, kind: input, shape index: {}]   ;;  %s10350_s10 = inlined_call_operand.hbm [shape: f32[1,256], index: 10, kind: input, shape index: {}]   ;;  %s10351_s11 = inlined_call_operand.hbm [shape: f32[1,512], index: 11, kind: input, shape index: {}]   ;;  %s10352_s12 = inlined_call_operand.hbm [shape: f32[1,256], index: 12, kind: input, shape index: {}]   ;;  %s10353_s13 = inlined_call_operand.hbm [shape: f32[1,128], index: 13, kind: input, shape index: {}]   ;;  %s10354_s14 = inlined_call_operand.hbm [shape: f32[1,128], index: 14, kind: input, shape index: {}]   ;;  %s10355_s15 = inlined_call_operand.hbm [shape: f32[1,128], index: 15, kind: input, shape index: {}]   ;;  %s10356_s16 = inlined_call_operand.hbm [shape: f32[1,128], index: 16, kind: input, shape index: {}]   ;;  %s10357_s17 = inlined_call_operand.hbm [shape: f32[1,256], index: 17, kind: input, shape index: {}]   ;;  %s10358_s18 = inlined_call_operand.hbm [shape: f32[1,512], index: 18, kind: input, shape index: {}]   ;;  %s10359_s19 = inlined_call_operand.hbm [shape: f32[1,256], index: 19, kind: input, shape index: {}]   ;;  %s10360_s20 = inlined_call_operand.hbm [shape: f32[1,128], index: 20, kind: input, shape index: {}]   ;;  %s10361_s21 = inlined_call_operand.hbm [shape: f32[1,128], index: 21, kind: input, shape index: {}]   ;;  %s10362_s22 = inlined_call_operand.hbm [shape: f32[2,4,128], index: 22, kind: output, shape index: {}]  }
   0x1   :  { %10392 = sst [smem:[#allocation59_spill]] %s10340_s0 }
   0x2   :  { %10393 = sst [smem:[#allocation60_spill]] %s10341_s1 }
   0x3   :  { %10394 = sst [smem:[#allocation61_spill]] %s10342_s2 }
   0x4   :  { %10395 = sst [smem:[#allocation62_spill]] %s10343_s3 }
   0x5   :  { %10396 = sst [smem:[#allocation63_spill]] %s10344_s4 }
   0x6   :  { %10397 = sst [smem:[#allocation64_spill]] %s10345_s5 }
   0x7   :  { %10398 = sst [smem:[#allocation65_spill]] %s10346_s6 }
   0x8   :  { %10399 = sst [smem:[#allocation66_spill]] %s10347_s7 }
   0x9   :  { %10400 = sst [smem:[#allocation67_spill]] %s10348_s8 }
   0xa   :  { %10401 = sst [smem:[#allocation68_spill]] %s10349_s9 }
   0xb   :  { %10402 = sst [smem:[#allocation69_spill]] %s10350_s10 }
   0xc   :  { %10403 = sst [smem:[#allocation70_spill]] %s10351_s11 }
   0xd   :  { %10404 = sst [smem:[#allocation71_spill]] %s10352_s12 }
   0xe   :  { %10405 = sst [smem:[#allocation72_spill]] %s10358_s18 }
   0xf   :  { %10406 = sst [smem:[#allocation73_spill]] %s10360_s20 }
  0x10   :  { %10407 = sst [smem:[#allocation74_spill]] %s10361_s21 }
  0x11   :  { %10408 = sst [smem:[#allocation75_spill]] %s10362_s22 }
  0x12   :  { %27 = vsyncpa [#allocation5], 0 }
  0x13   :  { %29 = vsyncpa [#allocation5 + $0x1], 0 }
  0x14   :  { %30 = vsyncpa [#allocation8], 0 }
  0x15   :  { %31 = vsyncpa [#allocation11], 0 }
  0x16   :  { %32 = vsyncpa [#allocation14], 0 }
  0x17   :  { %33 = vsyncpa [#allocation17], 0 }
  0x18   :  { %34 = vsyncpa [#allocation20], 0 }
  0x19   :  { %35 = vsyncpa [#allocation23], 0 }
  0x1a   :  { %36 = vsyncpa [#allocation26], 0 }
  0x1b   :  { %37 = vsyncpa [#allocation29], 0 }
  0x1c   :  { %38 = vsyncpa [#allocation32], 0 }
  0x1d   :  { %39 = vsyncpa [#allocation35], 0 }
  0x1e   :  { %40 = vsyncpa [#allocation38], 0 }
  0x1f   :  { %41 = vsyncpa [#allocation6], 0 }
  0x20   :  { %43 = vsyncpa [#allocation6 + $0x1], 0  ;;  %s9055_s3 = smov 0   ;;  %s9057_s28 = smov 0  }
  0x21   :  { %s9059_s29 = smov 0   ;;  %s9061_s30 = smov 0  }
  0x22 LB: > { %10409 = sst [smem:[#allocation53_spill]] %s8893_s3  ;;  %s8907_s4 = smov [#allocation7]   ;;  %s8905_s30 = sphi %s9061_s30, %s9540_s30   ;;  %s8901_s29 = sphi %s9059_s29, %s9552_s29   ;;  %s8897_s28 = sphi %s9057_s28, %s10483_s28   ;;  %s8893_s3 = sphi %s9055_s3, %s10482_s3  }
  0x23   : > { %10410 = sst [smem:[#allocation54_spill]] %s8897_s28  ;;  %s559_s0 = sshll.u32 %s8907_s4, 4  ;;  %s9081_s0 = int_to_ptr.vmem [resolvable:$true] %s559_s0 }
  0x24   : > { %10411 = sst [smem:[#allocation55_spill]] %s8901_s29  ;;  %s9076_s23 = sadd.s32 4294967295, %s8905_s30  }
  0x25   : > { %10412 = sst [smem:[#allocation56_spill]] %s8905_s30  ;;  %p5953_p0 = scmp.ge.s32.totalorder %s8905_s30, 1 }
  0x26   : > { %10413 = sst [smem:[#allocation57_spill]] %s9076_s23  ;;  %p10384_p1 = scmp.eq.s32.totalorder %s9076_s23, 0 }
  0x27   : > { %p547_p2 = scmp.lt.s32.totalorder %s8905_s30, 3  ;;  %s8908_s5 = smov [#allocation10]  }
  0x28   : > { %s585_s24 = sshll.u32 %s8908_s5, 4  ;;  %s8909_s25 = smov [#allocation13]   ;;  %s9096_s24 = int_to_ptr.vmem [resolvable:$true] %s585_s24 }
  0x29   : > { %p9083_p3 = pnand %p5953_p0, %p547_p2  ;;  %s9098_s26 = sshll.u32 %s8909_s25, 4  ;;  %s612_s26 = int_to_ptr.vmem [resolvable:$true] %s9098_s26 }
  0x2a   : > { %s10417_s4 = sld [smem:[#allocation60_spill]] }
  0x2b   : > { %s10414_s1 = scalar_select %p9083_p3, 1, 0 }
  0x2c   : > { %p7995_p5 = pneg %p9083_p3 }
  0x2d   : > { %10415 = sst [smem:[#allocation58_spill]] %s10414_s1 }
  0x2e   : > { %p9092_p6 = pnand %p7995_p5, %p10384_p1 }
  0x30   : > { %s8177_s22 = scalar_lea.hbm %s10417_s4, 6144  ;;  %p9108_p8 = pneg %p9092_p6 }
  0x31   : > { %p8178_p7 = scmp.ne.s32.totalorder %s10417_s4, %s8177_s22  ;;  %p8184_p11 = scmp.lt.u32.totalorder %s8177_s22, %s10417_s4 }
  0x33   : > { %p8180_p9 = pnand %p9108_p8, %p8178_p7 }
  0x35   : > { %p8181_p10 = pneg %p8180_p9 }
  0x37   : > { %p8186_p12 = pnand %p8184_p11, %p8181_p10 }
  0x39   : > { %8189 = shalt.err (!%p8186_p12)
}
  0x3a   : > { %s8190_s3 = scalar_lea.vmem %s9081_s0, 6144  ;;  %p8198_p5 = scmp.lt.s32.totalorder %s9081_s0, %s9081_s0 }
  0x3b   : > { %p8191_p13 = scmp.ne.s32.totalorder %s9081_s0, %s8190_s3  ;;  %p8199_p4 = scmp.lt.s32.totalorder %s8190_s3, %s8190_s3 }
  0x3d   : > { %p8193_p0 = pnand %p8191_p13, %p9108_p8  ;;  %p8200_p7 = por %p8199_p4, %p8198_p5 }
  0x3f   : > { %p8194_p2 = pneg %p8193_p0 }
  0x41   : > { %p8201_p9 = pnand %p8200_p7, %p8194_p2 }
  0x43   : > { %8204 = shalt.err (!%p8201_p9)
}
  0x44   : > { %s10382_s1 = smov 128   ;;  %s10386_s22 = smov 8  }
  0x45   : > { %7998 = dma.hbm_to_vmem [thread:$0]  (!%p9092_p6), %s10417_s4, 6144, %s9081_s0, [#allocation8], %s10382_s1, %s10382_s1, %s10386_s22  }
  0x46   : > { %s10419_s28 = sld [smem:[#allocation62_spill]] }
  0x4c   : > { %s10420_s21 = smov %s10419_s28  ;;  %s8205_s3 = scalar_lea.hbm %s10419_s28, 12288 }
  0x4d   : > { %p8206_p4 = scmp.ne.s32.totalorder %s10420_s21, %s8205_s3  ;;  %p8212_p12 = scmp.lt.u32.totalorder %s8205_s3, %s10420_s21 }
  0x4f   : > { %p8208_p10 = pnand %p8206_p4, %p9108_p8 }
  0x51   : > { %p8209_p11 = pneg %p8208_p10 }
  0x53   : > { %p8214_p13 = pnand %p8212_p12, %p8209_p11 }
  0x55   : > { %8217 = shalt.err (!%p8214_p13)
}
  0x56   : > { %s8218_s0 = scalar_lea.vmem %s9096_s24, 12288  ;;  %p8226_p7 = scmp.lt.s32.totalorder %s9096_s24, %s9096_s24 }
  0x57   : > { %p8219_p0 = scmp.ne.s32.totalorder %s9096_s24, %s8218_s0  ;;  %p8227_p9 = scmp.lt.s32.totalorder %s8218_s0, %s8218_s0 }
  0x59   : > { %p8221_p2 = pnand %p8219_p0, %p9108_p8  ;;  %p8228_p4 = por %p8227_p9, %p8226_p7 }
  0x5b   : > { %p8222_p5 = pneg %p8221_p2 }
  0x5d   : > { %p8229_p10 = pnand %p8228_p4, %p8222_p5 }
  0x5f   : > { %8232 = shalt.err (!%p8229_p10)
}
  0x60   : > { %s8912_s28 = smov 256   ;;  %s8913_s18 = smov 16  }
  0x61   : > { %8004 = dma.hbm_to_vmem [thread:$0]  (!%p9092_p6), %s10420_s21, 12288, %s9096_s24, [#allocation11], %s8912_s28, %s8912_s28, %s8913_s18  }
  0x62   : > { %s10421_s2 = sld [smem:[#allocation64_spill]] }
  0x68   : > { %s8233_s27 = scalar_lea.hbm %s10421_s2, 49152 }
  0x69   : > { %p8234_p11 = scmp.ne.s32.totalorder %s10421_s2, %s8233_s27  ;;  %p8240_p0 = scmp.lt.u32.totalorder %s8233_s27, %s10421_s2 }
  0x6b   : > { %p8236_p12 = pnand %p8234_p11, %p9108_p8 }
  0x6d   : > { %p8237_p13 = pneg %p8236_p12 }
  0x6f   : > { %p8242_p2 = pnand %p8240_p0, %p8237_p13 }
  0x71   : > { %8245 = shalt.err (!%p8242_p2)
}
  0x72   : > { %s8246_s20 = scalar_lea.vmem %s612_s26, 49152  ;;  %p8254_p4 = scmp.lt.s32.totalorder %s612_s26, %s612_s26 }
  0x73   : > { %p8247_p5 = scmp.ne.s32.totalorder %s612_s26, %s8246_s20  ;;  %p8255_p10 = scmp.lt.s32.totalorder %s8246_s20, %s8246_s20 }
  0x75   : > { %p8249_p7 = pnand %p8247_p5, %p9108_p8  ;;  %p8256_p1 = por %p8255_p10, %p8254_p4 }
  0x77   : > { %p8250_p9 = pneg %p8249_p7 }
  0x79   : > { %p8257_p3 = pnand %p8256_p1, %p8250_p9 }
  0x7b   : > { %8260 = shalt.err (!%p8257_p3)
}
  0x7c   : > { %8010 = dma.hbm_to_vmem [thread:$0]  (!%p9092_p6), %s10421_s2, 49152, %s612_s26, [#allocation14], %s8912_s28, %s8912_s28, %s8913_s18  }
  0x7d   : > { %s8914_s1 = smov [#allocation16]   ;;  %s8915_s23 = smov [#allocation19]  }
  0x7e   : > { %s637_s30 = sshll.u32 %s8914_s1, 4  ;;  %s662_s27 = sshll.u32 %s8915_s23, 4  ;;  %s638_s30 = int_to_ptr.vmem [resolvable:$true] %s637_s30  ;;  %s663_s27 = int_to_ptr.vmem [resolvable:$true] %s662_s27 }
  0x7f   : > { %s10422_s7 = sld [smem:[#allocation66_spill]] }
  0x85   : > { %s8261_s0 = scalar_lea.hbm %s10422_s7, 6144 }
  0x86   : > { %p8262_p1 = scmp.ne.s32.totalorder %s10422_s7, %s8261_s0  ;;  %p8268_p12 = scmp.lt.u32.totalorder %s8261_s0, %s10422_s7 }
  0x88   : > { %p8264_p3 = pnand %p8262_p1, %p9108_p8 }
  0x8a   : > { %p8265_p11 = pneg %p8264_p3 }
  0x8c   : > { %p8270_p13 = pnand %p8268_p12, %p8265_p11 }
  0x8e   : > { %8273 = shalt.err (!%p8270_p13)
}
  0x8f   : > { %s8274_s26 = scalar_lea.vmem %s638_s30, 6144  ;;  %p8282_p7 = scmp.lt.s32.totalorder %s638_s30, %s638_s30 }
  0x90   : > { %p8275_p0 = scmp.ne.s32.totalorder %s638_s30, %s8274_s26  ;;  %p8283_p9 = scmp.lt.s32.totalorder %s8274_s26, %s8274_s26 }
  0x92   : > { %p8277_p2 = pnand %p8275_p0, %p9108_p8  ;;  %p8284_p4 = por %p8283_p9, %p8282_p7 }
  0x94   : > { %p8278_p5 = pneg %p8277_p2 }
  0x96   : > { %p8285_p10 = pnand %p8284_p4, %p8278_p5 }
  0x98   : > { %8288 = shalt.err (!%p8285_p10)
}
  0x99   : > { %s10423_s22 = smov 8   ;;  %s10424_s28 = smov 128  }
  0x9a   : > { %8016 = dma.hbm_to_vmem [thread:$0]  (!%p9092_p6), %s10422_s7, 6144, %s638_s30, [#allocation17], %s10424_s28, %s10424_s28, %s10423_s22  }
  0x9b   : > { %s10425_s9 = sld [smem:[#allocation68_spill]] }
  0xa1   : > { %s8289_s23 = scalar_lea.hbm %s10425_s9, 16 }
  0xa2   : > { %p8290_p1 = scmp.ne.s32.totalorder %s10425_s9, %s8289_s23  ;;  %p8296_p12 = scmp.lt.u32.totalorder %s8289_s23, %s10425_s9 }
  0xa4   : > { %p8292_p3 = pnand %p8290_p1, %p9108_p8 }
  0xa6   : > { %p8293_p11 = pneg %p8292_p3 }
  0xa8   : > { %p8298_p13 = pnand %p8296_p12, %p8293_p11 }
  0xaa   : > { %8301 = shalt.err (!%p8298_p13)
}
  0xab   : > { %s8302_s24 = scalar_lea.vmem %s663_s27, 16  ;;  %s8309_s30 = scalar_lea.vmem %s663_s27, 32 }
  0xac   : > { %p8303_p0 = scmp.ne.s32.totalorder %s663_s27, %s8302_s24  ;;  %p8310_p7 = scmp.lt.s32.totalorder %s663_s27, %s663_s27 }
  0xad   : > { %p8311_p9 = scmp.lt.s32.totalorder %s8309_s30, %s8302_s24 }
  0xae   : > { %p8305_p2 = pnand %p8303_p0, %p9108_p8 }
  0xaf   : > { %p8312_p4 = por %p8311_p9, %p8310_p7 }
  0xb0   : > { %p8306_p5 = pneg %p8305_p2 }
  0xb2   : > { %p8313_p10 = pnand %p8312_p4, %p8306_p5 }
  0xb4   : > { %8316 = shalt.err (!%p8313_p10)
}
  0xb5   : > { %8022 = dma.hbm_to_vmem [thread:$0]  (!%p9092_p6), %s10425_s9, 16, %s663_s27, [#allocation20]  }
  0xb6   : > { %s8916_s18 = smov [#allocation22]   ;;  %s8917_s1 = smov [#allocation25]  }
  0xb7   : > { %s684_s29 = sshll.u32 %s8916_s18, 4  ;;  %s706_s23 = sshll.u32 %s8917_s1, 4  ;;  %s685_s29 = int_to_ptr.vmem [resolvable:$true] %s684_s29  ;;  %s707_s23 = int_to_ptr.vmem [resolvable:$true] %s706_s23 }
  0xb8   : > { %s10426_s11 = sld [smem:[#allocation70_spill]] }
  0xbe   : > { %s8317_s0 = scalar_lea.hbm %s10426_s11, 64 }
  0xbf   : > { %p8318_p1 = scmp.ne.s32.totalorder %s10426_s11, %s8317_s0  ;;  %p8324_p12 = scmp.lt.u32.totalorder %s8317_s0, %s10426_s11 }
  0xc1   : > { %p8320_p3 = pnand %p8318_p1, %p9108_p8 }
  0xc3   : > { %p8321_p11 = pneg %p8320_p3 }
  0xc5   : > { %p8326_p13 = pnand %p8324_p12, %p8321_p11 }
  0xc7   : > { %8329 = shalt.err (!%p8326_p13)
}
  0xc8   : > { %s8330_s27 = scalar_lea.vmem %s685_s29, 64  ;;  %p8338_p7 = scmp.lt.s32.totalorder %s685_s29, %s685_s29 }
  0xc9   : > { %p8331_p0 = scmp.ne.s32.totalorder %s685_s29, %s8330_s27  ;;  %p8339_p9 = scmp.lt.s32.totalorder %s8330_s27, %s8330_s27 }
  0xcb   : > { %p8333_p2 = pnand %p8331_p0, %p9108_p8  ;;  %p8340_p4 = por %p8339_p9, %p8338_p7 }
  0xcd   : > { %p8334_p5 = pneg %p8333_p2 }
  0xcf   : > { %p8341_p10 = pnand %p8340_p4, %p8334_p5 }
  0xd1   : > { %8344 = shalt.err (!%p8341_p10)
}
  0xd2   : > { %8028 = dma.hbm_to_vmem [thread:$0]  (!%p9092_p6), %s10426_s11, 64, %s685_s29, [#allocation23]  }
  0xd3   : > { %s8345_s3 = scalar_lea.hbm %s10353_s13, 16 }
  0xd4   : > { %p8346_p1 = scmp.ne.s32.totalorder %s10353_s13, %s8345_s3  ;;  %p8352_p12 = scmp.lt.u32.totalorder %s8345_s3, %s10353_s13 }
  0xd6   : > { %p8348_p3 = pnand %p8346_p1, %p9108_p8 }
  0xd8   : > { %p8349_p11 = pneg %p8348_p3 }
  0xda   : > { %p8354_p13 = pnand %p8352_p12, %p8349_p11 }
  0xdc   : > { %8357 = shalt.err (!%p8354_p13)
}
  0xdd   : > { %s8358_s26 = scalar_lea.vmem %s707_s23, 16  ;;  %s8365_s29 = scalar_lea.vmem %s707_s23, 32 }
  0xde   : > { %p8359_p0 = scmp.ne.s32.totalorder %s707_s23, %s8358_s26  ;;  %p8366_p7 = scmp.lt.s32.totalorder %s707_s23, %s707_s23 }
  0xdf   : > { %p8367_p9 = scmp.lt.s32.totalorder %s8365_s29, %s8358_s26 }
  0xe0   : > { %p8361_p2 = pnand %p8359_p0, %p9108_p8 }
  0xe1   : > { %p8368_p4 = por %p8367_p9, %p8366_p7 }
  0xe2   : > { %p8362_p5 = pneg %p8361_p2 }
  0xe4   : > { %p8369_p10 = pnand %p8368_p4, %p8362_p5 }
  0xe6   : > { %8372 = shalt.err (!%p8369_p10)
}
  0xe7   : > { %8034 = dma.hbm_to_vmem [thread:$0]  (!%p9092_p6), %s10353_s13, 16, %s707_s23, [#allocation26]  }
  0xe8   : > { %s8918_s18 = smov [#allocation28]   ;;  %s8919_s25 = smov [#allocation31]  }
  0xe9   : > { %s728_s1 = sshll.u32 %s8918_s18, 4  ;;  %s750_s3 = sshll.u32 %s8919_s25, 4  ;;  %s729_s1 = int_to_ptr.vmem [resolvable:$true] %s728_s1  ;;  %s751_s3 = int_to_ptr.vmem [resolvable:$true] %s750_s3 }
  0xea   : > { %s8373_s24 = scalar_lea.hbm %s10355_s15, 16 }
  0xeb   : > { %p8374_p1 = scmp.ne.s32.totalorder %s10355_s15, %s8373_s24  ;;  %p8380_p12 = scmp.lt.u32.totalorder %s8373_s24, %s10355_s15 }
  0xed   : > { %p8376_p3 = pnand %p8374_p1, %p9108_p8 }
  0xef   : > { %p8377_p11 = pneg %p8376_p3 }
  0xf1   : > { %p8382_p13 = pnand %p8380_p12, %p8377_p11 }
  0xf3   : > { %8385 = shalt.err (!%p8382_p13)
}
  0xf4   : > { %s8386_s23 = scalar_lea.vmem %s729_s1, 16  ;;  %s8393_s4 = scalar_lea.vmem %s729_s1, 32 }
  0xf5   : > { %p8387_p0 = scmp.ne.s32.totalorder %s729_s1, %s8386_s23  ;;  %p8394_p7 = scmp.lt.s32.totalorder %s729_s1, %s729_s1 }
  0xf6   : > { %p8395_p9 = scmp.lt.s32.totalorder %s8393_s4, %s8386_s23 }
  0xf7   : > { %p8389_p2 = pnand %p8387_p0, %p9108_p8 }
  0xf8   : > { %p8396_p4 = por %p8395_p9, %p8394_p7 }
  0xf9   : > { %p8390_p5 = pneg %p8389_p2 }
  0xfb   : > { %p8397_p10 = pnand %p8396_p4, %p8390_p5 }
  0xfd   : > { %8400 = shalt.err (!%p8397_p10)
}
  0xfe   : > { %8040 = dma.hbm_to_vmem [thread:$0]  (!%p9092_p6), %s10355_s15, 16, %s729_s1, [#allocation29]  }
  0xff   : > { %s8401_s24 = scalar_lea.hbm %s10357_s17, 32 }
 0x100   : > { %p8402_p1 = scmp.ne.s32.totalorder %s10357_s17, %s8401_s24  ;;  %p8408_p12 = scmp.lt.u32.totalorder %s8401_s24, %s10357_s17 }
 0x102   : > { %p8404_p3 = pnand %p8402_p1, %p9108_p8 }
 0x104   : > { %p8405_p11 = pneg %p8404_p3 }
 0x106   : > { %p8410_p13 = pnand %p8408_p12, %p8405_p11 }
 0x108   : > { %8413 = shalt.err (!%p8410_p13)
}
 0x109   : > { %s8414_s23 = scalar_lea.vmem %s751_s3, 32  ;;  %p8422_p7 = scmp.lt.s32.totalorder %s751_s3, %s751_s3 }
 0x10a   : > { %p8415_p0 = scmp.ne.s32.totalorder %s751_s3, %s8414_s23  ;;  %p8423_p9 = scmp.lt.s32.totalorder %s8414_s23, %s8414_s23 }
 0x10c   : > { %p8417_p2 = pnand %p8415_p0, %p9108_p8  ;;  %p8424_p4 = por %p8423_p9, %p8422_p7 }
 0x10e   : > { %p8418_p5 = pneg %p8417_p2 }
 0x110   : > { %p8425_p10 = pnand %p8424_p4, %p8418_p5 }
 0x112   : > { %8428 = shalt.err (!%p8425_p10)
}
 0x113   : > { %8046 = dma.hbm_to_vmem [thread:$0]  (!%p9092_p6), %s10357_s17, 32, %s751_s3, [#allocation32]  }
 0x114   : > { %s8920_s18 = smov [#allocation34]   ;;  %s8921_s0 = smov [#allocation9]  }
 0x115   : > { %s772_s25 = sshll.u32 %s8920_s18, 4  ;;  %s572_s20 = sshll.u32 %s8921_s0, 4  ;;  %s773_s25 = int_to_ptr.vmem [resolvable:$true] %s772_s25  ;;  %s573_s20 = int_to_ptr.vmem [resolvable:$true] %s572_s20 }
 0x116   : > { %s8429_s26 = scalar_lea.hbm %s10359_s19, 32 }
 0x117   : > { %p8430_p1 = scmp.ne.s32.totalorder %s10359_s19, %s8429_s26  ;;  %p8436_p12 = scmp.lt.u32.totalorder %s8429_s26, %s10359_s19 }
 0x119   : > { %p8432_p3 = pnand %p8430_p1, %p9108_p8 }
 0x11b   : > { %p8433_p11 = pneg %p8432_p3 }
 0x11d   : > { %p8438_p13 = pnand %p8436_p12, %p8433_p11 }
 0x11f   : > { %8441 = shalt.err (!%p8438_p13)
}
 0x120   : > { %s8442_s3 = scalar_lea.vmem %s773_s25, 32  ;;  %p8450_p7 = scmp.lt.s32.totalorder %s773_s25, %s773_s25 }
 0x121   : > { %p8443_p0 = scmp.ne.s32.totalorder %s773_s25, %s8442_s3  ;;  %p8451_p9 = scmp.lt.s32.totalorder %s8442_s3, %s8442_s3 }
 0x123   : > { %p8445_p2 = pnand %p8443_p0, %p9108_p8  ;;  %p8452_p4 = por %p8451_p9, %p8450_p7 }
 0x125   : > { %p8446_p5 = pneg %p8445_p2 }
 0x127   : > { %p8453_p10 = pnand %p8452_p4, %p8446_p5 }
 0x129   : > { %8456 = shalt.err (!%p8453_p10)
}
 0x12a   : > { %8052 = dma.hbm_to_vmem [thread:$0]  (!%p9092_p6), %s10359_s19, 32, %s773_s25, [#allocation35]  }
 0x12b   : > { %s10427_s30 = sld [smem:[#allocation61_spill]] }
 0x131   : > { %s10428_s26 = smov %s10427_s30  ;;  %s8457_s29 = scalar_lea.hbm %s10427_s30, 6144 }
 0x132   : > { %p8458_p1 = scmp.ne.s32.totalorder %s10428_s26, %s8457_s29  ;;  %p8464_p12 = scmp.lt.u32.totalorder %s8457_s29, %s10428_s26 }
 0x134   : > { %p8460_p3 = pnand %p8458_p1, %p9108_p8 }
 0x136   : > { %p8461_p11 = pneg %p8460_p3 }
 0x138   : > { %p8466_p13 = pnand %p8464_p12, %p8461_p11 }
 0x13a   : > { %8469 = shalt.err (!%p8466_p13)
}
 0x13b   : > { %s8470_s4 = scalar_lea.vmem %s573_s20, 6144  ;;  %p8478_p7 = scmp.lt.s32.totalorder %s573_s20, %s573_s20 }
 0x13c   : > { %p8471_p0 = scmp.ne.s32.totalorder %s573_s20, %s8470_s4  ;;  %p8479_p9 = scmp.lt.s32.totalorder %s8470_s4, %s8470_s4 }
 0x13e   : > { %p8473_p2 = pnand %p8471_p0, %p9108_p8  ;;  %p8480_p4 = por %p8479_p9, %p8478_p7 }
 0x140   : > { %p8474_p5 = pneg %p8473_p2 }
 0x142   : > { %p8481_p10 = pnand %p8480_p4, %p8474_p5 }
 0x144   : > { %8484 = shalt.err (!%p8481_p10)
}
 0x145   : > { %8001 = dma.hbm_to_vmem [thread:$0]  (!%p9092_p6), %s10428_s26, 6144, %s573_s20, [#allocation8], %s10424_s28, %s10424_s28, %s10423_s22  }
 0x146   : > { %s8922_s0 = smov [#allocation12]   ;;  %s10429_s27 = sld [smem:[#allocation63_spill]] }
 0x147   : > { %s598_s24 = sshll.u32 %s8922_s0, 4  ;;  %s599_s24 = int_to_ptr.vmem [resolvable:$true] %s598_s24 }
 0x14c   : > { %s8485_s23 = scalar_lea.hbm %s10429_s27, 49152 }
 0x14d   : > { %p8486_p1 = scmp.ne.s32.totalorder %s10429_s27, %s8485_s23  ;;  %p8492_p12 = scmp.lt.u32.totalorder %s8485_s23, %s10429_s27 }
 0x14f   : > { %p8488_p3 = pnand %p8486_p1, %p9108_p8 }
 0x151   : > { %p8489_p11 = pneg %p8488_p3 }
 0x153   : > { %p8494_p13 = pnand %p8492_p12, %p8489_p11 }
 0x155   : > { %8497 = shalt.err (!%p8494_p13)
}
 0x156   : > { %s8498_s20 = scalar_lea.vmem %s599_s24, 49152  ;;  %p8506_p7 = scmp.lt.s32.totalorder %s599_s24, %s599_s24 }
 0x157   : > { %p8499_p0 = scmp.ne.s32.totalorder %s599_s24, %s8498_s20  ;;  %p8507_p9 = scmp.lt.s32.totalorder %s8498_s20, %s8498_s20 }
 0x159   : > { %p8501_p2 = pnand %p8499_p0, %p9108_p8  ;;  %p8508_p4 = por %p8507_p9, %p8506_p7 }
 0x15b   : > { %p8502_p5 = pneg %p8501_p2 }
 0x15d   : > { %p8509_p10 = pnand %p8508_p4, %p8502_p5 }
 0x15f   : > { %8512 = shalt.err (!%p8509_p10)
}
 0x160   : > { %s8923_s25 = smov 512   ;;  %s8924_s18 = smov 32  }
 0x161   : > { %8007 = dma.hbm_to_vmem [thread:$0]  (!%p9092_p6), %s10429_s27, 49152, %s599_s24, [#allocation11], %s8923_s25, %s8923_s25, %s8924_s18  }
 0x162   : > { %s8925_s30 = smov [#allocation15]   ;;  %s8926_s23 = smov [#allocation18]  }
 0x163   : > { %s624_s29 = sshll.u32 %s8925_s30, 4  ;;  %s651_s1 = sshll.u32 %s8926_s23, 4  ;;  %s625_s29 = int_to_ptr.vmem [resolvable:$true] %s624_s29  ;;  %s9342_s1 = int_to_ptr.vmem [resolvable:$true] %s651_s1 }
 0x164   : > { %s10430_s20 = sld [smem:[#allocation65_spill]] }
 0x16a   : > { %s8513_s7 = scalar_lea.hbm %s10430_s20, 12288 }
 0x16b   : > { %p8514_p1 = scmp.ne.s32.totalorder %s10430_s20, %s8513_s7  ;;  %p8520_p12 = scmp.lt.u32.totalorder %s8513_s7, %s10430_s20 }
 0x16d   : > { %p8516_p3 = pnand %p8514_p1, %p9108_p8 }
 0x16f   : > { %p8517_p11 = pneg %p8516_p3 }
 0x171   : > { %p8522_p13 = pnand %p8520_p12, %p8517_p11 }
 0x173   : > { %8525 = shalt.err (!%p8522_p13)
}
 0x174   : > { %s8526_s25 = scalar_lea.vmem %s625_s29, 12288  ;;  %p8534_p7 = scmp.lt.s32.totalorder %s625_s29, %s625_s29 }
 0x175   : > { %p8527_p0 = scmp.ne.s32.totalorder %s625_s29, %s8526_s25  ;;  %p8535_p9 = scmp.lt.s32.totalorder %s8526_s25, %s8526_s25 }
 0x177   : > { %p8529_p2 = pnand %p8527_p0, %p9108_p8  ;;  %p8536_p4 = por %p8535_p9, %p8534_p7 }
 0x179   : > { %p8530_p5 = pneg %p8529_p2 }
 0x17b   : > { %p8537_p10 = pnand %p8536_p4, %p8530_p5 }
 0x17d   : > { %8540 = shalt.err (!%p8537_p10)
}
 0x17e   : > { %8013 = dma.hbm_to_vmem [thread:$0]  (!%p9092_p6), %s10430_s20, 12288, %s625_s29, [#allocation14], %s10424_s28, %s10424_s28, %s10423_s22  }
 0x17f   : > { %s10431_s8 = sld [smem:[#allocation67_spill]] }
 0x185   : > { %s8541_s0 = scalar_lea.hbm %s10431_s8, 16 }
 0x186   : > { %p8542_p1 = scmp.ne.s32.totalorder %s10431_s8, %s8541_s0  ;;  %p8548_p12 = scmp.lt.u32.totalorder %s8541_s0, %s10431_s8 }
 0x188   : > { %p8544_p3 = pnand %p8542_p1, %p9108_p8 }
 0x18a   : > { %p8545_p11 = pneg %p8544_p3 }
 0x18c   : > { %p8550_p13 = pnand %p8548_p12, %p8545_p11 }
 0x18e   : > { %8553 = shalt.err (!%p8550_p13)
}
 0x18f   : > { %s8554_s29 = scalar_lea.vmem %s9342_s1, 16  ;;  %s8561_s2 = scalar_lea.vmem %s9342_s1, 32 }
 0x190   : > { %p8555_p0 = scmp.ne.s32.totalorder %s9342_s1, %s8554_s29  ;;  %p8562_p7 = scmp.lt.s32.totalorder %s9342_s1, %s9342_s1 }
 0x191   : > { %p8563_p9 = scmp.lt.s32.totalorder %s8561_s2, %s8554_s29 }
 0x192   : > { %p8557_p2 = pnand %p8555_p0, %p9108_p8 }
 0x193   : > { %p8564_p4 = por %p8563_p9, %p8562_p7 }
 0x194   : > { %p8558_p5 = pneg %p8557_p2 }
 0x196   : > { %p8565_p10 = pnand %p8564_p4, %p8558_p5 }
 0x198   : > { %8568 = shalt.err (!%p8565_p10)
}
 0x199   : > { %8019 = dma.hbm_to_vmem [thread:$0]  (!%p9092_p6), %s10431_s8, 16, %s9342_s1, [#allocation17]  }
 0x19a   : > { %s8927_s9 = smov [#allocation21]   ;;  %s8928_s11 = smov [#allocation24]  }
 0x19b   : > { %s673_s7 = sshll.u32 %s8927_s9, 4  ;;  %s695_s18 = sshll.u32 %s8928_s11, 4  ;;  %s674_s7 = int_to_ptr.vmem [resolvable:$true] %s673_s7  ;;  %s9389_s18 = int_to_ptr.vmem [resolvable:$true] %s695_s18 }
 0x19c   : > { %s10432_s10 = sld [smem:[#allocation69_spill]] }
 0x1a2   : > { %s8569_s23 = scalar_lea.hbm %s10432_s10, 32 }
 0x1a3   : > { %p8570_p1 = scmp.ne.s32.totalorder %s10432_s10, %s8569_s23  ;;  %p8576_p12 = scmp.lt.u32.totalorder %s8569_s23, %s10432_s10 }
 0x1a5   : > { %p8572_p3 = pnand %p8570_p1, %p9108_p8 }
 0x1a7   : > { %p8573_p11 = pneg %p8572_p3 }
 0x1a9   : > { %p8578_p13 = pnand %p8576_p12, %p8573_p11 }
 0x1ab   : > { %8581 = shalt.err (!%p8578_p13)
}
 0x1ac   : > { %s8582_s2 = scalar_lea.vmem %s674_s7, 32  ;;  %p8590_p7 = scmp.lt.s32.totalorder %s674_s7, %s674_s7 }
 0x1ad   : > { %p8583_p0 = scmp.ne.s32.totalorder %s674_s7, %s8582_s2  ;;  %p8591_p9 = scmp.lt.s32.totalorder %s8582_s2, %s8582_s2 }
 0x1af   : > { %p8585_p2 = pnand %p8583_p0, %p9108_p8  ;;  %p8592_p4 = por %p8591_p9, %p8590_p7 }
 0x1b1   : > { %p8586_p5 = pneg %p8585_p2 }
 0x1b3   : > { %p8593_p10 = pnand %p8592_p4, %p8586_p5 }
 0x1b5   : > { %8596 = shalt.err (!%p8593_p10)
}
 0x1b6   : > { %8025 = dma.hbm_to_vmem [thread:$0]  (!%p9092_p6), %s10432_s10, 32, %s674_s7, [#allocation20]  }
 0x1b7   : > { %s10433_s12 = sld [smem:[#allocation71_spill]] }
 0x1bd   : > { %s8597_s0 = scalar_lea.hbm %s10433_s12, 32 }
 0x1be   : > { %p8598_p1 = scmp.ne.s32.totalorder %s10433_s12, %s8597_s0  ;;  %p8604_p12 = scmp.lt.u32.totalorder %s8597_s0, %s10433_s12 }
 0x1c0   : > { %p8600_p3 = pnand %p8598_p1, %p9108_p8 }
 0x1c2   : > { %p8601_p11 = pneg %p8600_p3 }
 0x1c4   : > { %p8606_p13 = pnand %p8604_p12, %p8601_p11 }
 0x1c6   : > { %8609 = shalt.err (!%p8606_p13)
}
 0x1c7   : > { %s8610_s7 = scalar_lea.vmem %s9389_s18, 32  ;;  %p8618_p7 = scmp.lt.s32.totalorder %s9389_s18, %s9389_s18 }
 0x1c8   : > { %p8611_p0 = scmp.ne.s32.totalorder %s9389_s18, %s8610_s7  ;;  %p8619_p9 = scmp.lt.s32.totalorder %s8610_s7, %s8610_s7 }
 0x1ca   : > { %p8613_p2 = pnand %p8611_p0, %p9108_p8  ;;  %p8620_p4 = por %p8619_p9, %p8618_p7 }
 0x1cc   : > { %p8614_p5 = pneg %p8613_p2 }
 0x1ce   : > { %p8621_p10 = pnand %p8620_p4, %p8614_p5 }
 0x1d0   : > { %8624 = shalt.err (!%p8621_p10)
}
 0x1d1   : > { %8031 = dma.hbm_to_vmem [thread:$0]  (!%p9092_p6), %s10433_s12, 32, %s9389_s18, [#allocation23]  }
 0x1d2   : > { %s8929_s2 = smov [#allocation27]   ;;  %s8930_s25 = smov [#allocation30]  }
 0x1d3   : > { %s717_s24 = sshll.u32 %s8929_s2, 4  ;;  %s739_s9 = sshll.u32 %s8930_s25, 4  ;;  %s718_s24 = int_to_ptr.vmem [resolvable:$true] %s717_s24  ;;  %s9432_s9 = int_to_ptr.vmem [resolvable:$true] %s739_s9 }
 0x1d4   : > { %s8625_s30 = scalar_lea.hbm %s10354_s14, 16 }
 0x1d5   : > { %p8626_p1 = scmp.ne.s32.totalorder %s10354_s14, %s8625_s30  ;;  %p8632_p12 = scmp.lt.u32.totalorder %s8625_s30, %s10354_s14 }
 0x1d7   : > { %p8628_p3 = pnand %p8626_p1, %p9108_p8 }
 0x1d9   : > { %p8629_p11 = pneg %p8628_p3 }
 0x1db   : > { %p8634_p13 = pnand %p8632_p12, %p8629_p11 }
 0x1dd   : > { %8637 = shalt.err (!%p8634_p13)
}
 0x1de   : > { %s8638_s7 = scalar_lea.vmem %s718_s24, 16  ;;  %s8645_s29 = scalar_lea.vmem %s718_s24, 32 }
 0x1df   : > { %p8639_p0 = scmp.ne.s32.totalorder %s718_s24, %s8638_s7  ;;  %p8646_p7 = scmp.lt.s32.totalorder %s718_s24, %s718_s24 }
 0x1e0   : > { %p8647_p9 = scmp.lt.s32.totalorder %s8645_s29, %s8638_s7 }
 0x1e1   : > { %p8641_p2 = pnand %p8639_p0, %p9108_p8 }
 0x1e2   : > { %p8648_p4 = por %p8647_p9, %p8646_p7 }
 0x1e3   : > { %p8642_p5 = pneg %p8641_p2 }
 0x1e5   : > { %p8649_p10 = pnand %p8648_p4, %p8642_p5 }
 0x1e7   : > { %8652 = shalt.err (!%p8649_p10)
}
 0x1e8   : > { %8037 = dma.hbm_to_vmem [thread:$0]  (!%p9092_p6), %s10354_s14, 16, %s718_s24, [#allocation26]  }
 0x1e9   : > { %s8653_s0 = scalar_lea.hbm %s10356_s16, 16 }
 0x1ea   : > { %p8654_p1 = scmp.ne.s32.totalorder %s10356_s16, %s8653_s0  ;;  %p8660_p12 = scmp.lt.u32.totalorder %s8653_s0, %s10356_s16 }
 0x1ec   : > { %p8656_p3 = pnand %p8654_p1, %p9108_p8 }
 0x1ee   : > { %p8657_p11 = pneg %p8656_p3 }
 0x1f0   : > { %p8662_p13 = pnand %p8660_p12, %p8657_p11 }
 0x1f2   : > { %8665 = shalt.err (!%p8662_p13)
}
 0x1f3   : > { %s8666_s24 = scalar_lea.vmem %s9432_s9, 16  ;;  %s8673_s18 = scalar_lea.vmem %s9432_s9, 32 }
 0x1f4   : > { %p8667_p0 = scmp.ne.s32.totalorder %s9432_s9, %s8666_s24  ;;  %p8674_p7 = scmp.lt.s32.totalorder %s9432_s9, %s9432_s9 }
 0x1f5   : > { %p8675_p9 = scmp.lt.s32.totalorder %s8673_s18, %s8666_s24 }
 0x1f6   : > { %p8669_p2 = pnand %p8667_p0, %p9108_p8 }
 0x1f7   : > { %p8676_p4 = por %p8675_p9, %p8674_p7 }
 0x1f8   : > { %p8670_p5 = pneg %p8669_p2 }
 0x1fa   : > { %p8677_p10 = pnand %p8676_p4, %p8670_p5 }
 0x1fc   : > { %8680 = shalt.err (!%p8677_p10)
}
 0x1fd   : > { %8043 = dma.hbm_to_vmem [thread:$0]  (!%p9092_p6), %s10356_s16, 16, %s9432_s9, [#allocation29]  }
 0x1fe   : > { %s8931_s1 = smov [#allocation33]   ;;  %s8932_s25 = smov [#allocation36]  }
 0x1ff   : > { %s761_s2 = sshll.u32 %s8931_s1, 4  ;;  %s783_s11 = sshll.u32 %s8932_s25, 4  ;;  %s762_s2 = int_to_ptr.vmem [resolvable:$true] %s761_s2  ;;  %s9476_s11 = int_to_ptr.vmem [resolvable:$true] %s783_s11 }
 0x200   : > { %s10434_s23 = sld [smem:[#allocation72_spill]] }
 0x206   : > { %s8681_s3 = scalar_lea.hbm %s10434_s23, 64 }
 0x207   : > { %p8682_p1 = scmp.ne.s32.totalorder %s10434_s23, %s8681_s3  ;;  %p8688_p12 = scmp.lt.u32.totalorder %s8681_s3, %s10434_s23 }
 0x209   : > { %p8684_p3 = pnand %p8682_p1, %p9108_p8 }
 0x20b   : > { %p8685_p11 = pneg %p8684_p3 }
 0x20d   : > { %p8690_p13 = pnand %p8688_p12, %p8685_p11 }
 0x20f   : > { %8693 = shalt.err (!%p8690_p13)
}
 0x210   : > { %s8694_s7 = scalar_lea.vmem %s762_s2, 64  ;;  %p8702_p7 = scmp.lt.s32.totalorder %s762_s2, %s762_s2 }
 0x211   : > { %p8695_p0 = scmp.ne.s32.totalorder %s762_s2, %s8694_s7  ;;  %p8703_p9 = scmp.lt.s32.totalorder %s8694_s7, %s8694_s7 }
 0x213   : > { %p8697_p2 = pnand %p8695_p0, %p9108_p8  ;;  %p8704_p4 = por %p8703_p9, %p8702_p7 }
 0x215   : > { %p8698_p5 = pneg %p8697_p2 }
 0x217   : > { %p8705_p10 = pnand %p8704_p4, %p8698_p5 }
 0x219   : > { %8708 = shalt.err (!%p8705_p10)
}
 0x21a   : > { %8049 = dma.hbm_to_vmem [thread:$0]  (!%p9092_p6), %s10434_s23, 64, %s762_s2, [#allocation32]  }
 0x21b   : > { %s10435_s30 = sld [smem:[#allocation73_spill]] }
 0x221   : > { %s10436_s4 = smov %s10435_s30  ;;  %s8709_s3 = scalar_lea.hbm %s10435_s30, 16 }
 0x222   : > { %p8710_p1 = scmp.ne.s32.totalorder %s10436_s4, %s8709_s3  ;;  %p8716_p12 = scmp.lt.u32.totalorder %s8709_s3, %s10436_s4 }
 0x224   : > { %p8712_p3 = pnand %p8710_p1, %p9108_p8 }
 0x226   : > { %p8713_p11 = pneg %p8712_p3 }
 0x228   : > { %p8718_p13 = pnand %p8716_p12, %p8713_p11 }
 0x22a   : > { %8721 = shalt.err (!%p8718_p13)
}
 0x22b   : > { %s8722_s2 = scalar_lea.vmem %s9476_s11, 16  ;;  %s8729_s29 = scalar_lea.vmem %s9476_s11, 32 }
 0x22c   : > { %p8723_p0 = scmp.ne.s32.totalorder %s9476_s11, %s8722_s2  ;;  %p8730_p7 = scmp.lt.s32.totalorder %s9476_s11, %s9476_s11 }
 0x22d   : > { %p8731_p9 = scmp.lt.s32.totalorder %s8729_s29, %s8722_s2 }
 0x22e   : > { %p8725_p2 = pnand %p8723_p0, %p9108_p8 }
 0x22f   : > { %p8732_p4 = por %p8731_p9, %p8730_p7 }
 0x230   : > { %p8726_p5 = pneg %p8725_p2 }
 0x232   : > { %p8733_p10 = pnand %p8732_p4, %p8726_p5 }
 0x234   : > { %8736 = shalt.err (!%p8733_p10)
}
 0x235   : > { %8055 = dma.hbm_to_vmem [thread:$0]  (!%p9092_p6), %s10436_s4, 16, %s9476_s11, [#allocation35]  }
 0x236   : > { %s8933_s0 = smov [#allocation37]   ;;  %s10437_s18 = sld [smem:[#allocation74_spill]] }
 0x237   : > { %s794_s30 = sshll.u32 %s8933_s0, 4  ;;  %s795_s30 = int_to_ptr.vmem [resolvable:$true] %s794_s30 }
 0x23c   : > { %s8737_s9 = scalar_lea.hbm %s10437_s18, 16 }
 0x23d   : > { %p8738_p1 = scmp.ne.s32.totalorder %s10437_s18, %s8737_s9  ;;  %p8744_p12 = scmp.lt.u32.totalorder %s8737_s9, %s10437_s18 }
 0x23f   : > { %p8740_p3 = pnand %p8738_p1, %p9108_p8 }
 0x241   : > { %p8741_p11 = pneg %p8740_p3 }
 0x243   : > { %p8746_p13 = pnand %p8744_p12, %p8741_p11 }
 0x245   : > { %8749 = shalt.err (!%p8746_p13)
}
 0x246   : > { %s8750_s11 = scalar_lea.vmem %s795_s30, 16  ;;  %s8757_s1 = scalar_lea.vmem %s795_s30, 32 }
 0x247   : > { %p8751_p0 = scmp.ne.s32.totalorder %s795_s30, %s8750_s11  ;;  %p8758_p7 = scmp.lt.s32.totalorder %s795_s30, %s795_s30 }
 0x248   : > { %p8759_p9 = scmp.lt.s32.totalorder %s8757_s1, %s8750_s11 }
 0x249   : > { %p8753_p2 = pnand %p8751_p0, %p9108_p8 }
 0x24a   : > { %p8760_p4 = por %p8759_p9, %p8758_p7 }
 0x24b   : > { %p8754_p5 = pneg %p8753_p2 }
 0x24d   : > { %p8761_p10 = pnand %p8760_p4, %p8754_p5 }
 0x24f   : > { %8764 = shalt.err (!%p8761_p10)
}
 0x250   : > { %s10438_s8 = sld [smem:[#allocation56_spill]]  ;;  %s10439_s3 = sld [smem:[#allocation55_spill]] }
 0x251   : > { %s10440_s24 = sld [smem:[#allocation54_spill]]  ;;  %s10441_s5 = sld [smem:[#allocation53_spill]] }
 0x252   : > { %s10442_s9 = sld [smem:[#allocation57_spill]] }
 0x253   : > { %8058 = dma.hbm_to_vmem [thread:$0]  (!%p9092_p6), %s10437_s18, 16, %s795_s30, [#allocation38]  }
 0x256   : > { %s5952_s7 = sadd.s32 4294967294, %s10438_s8   ;;  %s9540_s30 = sadd.s32 1, %s10438_s8  }
 0x257   : > { %s56_s6 = sadd.s32 1, %s10439_s3  ;;  %s53_s2 = ssub.s32 %s10438_s8, %s9540_s30 }
 0x258   : > { %p63_p8 = scmp.ne.s32.totalorder %s10439_s3, %s10440_s24  ;;  %p54_p1 = scmp.eq.s32.totalorder %s53_s2, 0 }
 0x259   : > { %p64_p3 = scmp.eq.s32.totalorder %s10438_s8, 0  ;;  %p69_p11 = scmp.ne.s32.totalorder %s10440_s24, %s10441_s5 }
 0x25a   : > { %p534_p12 = scmp.eq.s32.totalorder %s10442_s9, 1  ;;  %p10443_p0 = scmp.eq.s32.totalorder %s10442_s9, 0 }
 0x25b   : > { %s9552_s29 = scalar_select %p54_p1, %s10439_s3, %s56_s6  }
 0x25c   : > { %p65_p13 = por %p64_p3, %p63_p8  ;;  %p9556_p2 = por %p10443_p0, %p69_p11 }
 0x25d   : > { %p9560_p6 = por %p534_p12, %p63_p8  ;;  %p540_p5 = scmp.eq.s32.totalorder %s5952_s7, 1 }
 0x25e   : > { %p8088_p7 = scmp.lt.s32.totalorder %s10438_s8, 2  ;;  %s805_s25 = sand.u32 1, %s10439_s3  }
 0x25f   : > { %s10445_s1 = scalar_select %p9560_p6, 1, 0 }
 0x260   : > { %p9566_p9 = por %p540_p5, %p69_p11  ;;  %s5976_s24 = sshll.u32 %s805_s25, 5 }
 0x261   : > { %s6023_s5 = sshll.u32 %s10438_s8, 9  ;;  %s10447_s9 = sld [smem:[#allocation59_spill]] }
 0x262   : > { %s10446_s0 = scalar_select %p9566_p9, 1, 0 }
 0x263   : > { %s809_s10 = scalar_lea.vmem [#allocation4], %s5976_s24  ;;  %p9576_p4 = pnand %p8088_p7, %p65_p13 }
 0x264   : > { %s816_s12 = sshll.u32 %s809_s10, 4  ;;  %s9582_s8 = scalar_lea.sflag [#allocation5], %s805_s25  ;;  %s9580_s12 = int_to_ptr.vmem [resolvable:$true] %s816_s12 }
 0x265   : > { %p8767_p8 = pneg %p9576_p4 }
 0x267   : > { %s9574_s4 = scalar_lea.hbm %s10447_s9, %s6023_s5  ;;  %s8770_s5 = scalar_lea.hbm %s10447_s9, 1024 }
 0x268   : > { %s8765_s3 = scalar_lea.hbm %s9574_s4, 512  ;;  %p8771_p11 = scmp.lt.u32.totalorder %s9574_s4, %s10447_s9 }
 0x269   : > { %p8766_p10 = scmp.ne.s32.totalorder %s9574_s4, %s8765_s3  ;;  %p8772_p12 = scmp.lt.u32.totalorder %s8770_s5, %s8765_s3 }
 0x26a   : > { %p8774_p0 = scmp.lt.u32.totalorder %s8765_s3, %s9574_s4 }
 0x26b   : > { %p8768_p1 = pnand %p8767_p8, %p8766_p10  ;;  %p8773_p13 = por %p8772_p12, %p8771_p11 }
 0x26d   : > { %p8769_p3 = pneg %p8768_p1  ;;  %p8775_p5 = por %p8774_p0, %p8773_p13 }
 0x26f   : > { %p8776_p7 = pnand %p8775_p5, %p8769_p3 }
 0x271   : > { %8779 = shalt.err (!%p8776_p7)
}
 0x272   : > { %s8780_s25 = scalar_lea.vmem %s9580_s12, 512  ;;  %s8934_s24 = smov [#allocation4]  }
 0x273   : > { %p8781_p10 = scmp.ne.s32.totalorder %s9580_s12, %s8780_s25  ;;  %s8785_s10 = sshll.u32 %s8934_s24, 4  ;;  %s8786_s10 = int_to_ptr.vmem [resolvable:$false] %s8785_s10 }
 0x274   : > { %s8787_s6 = scalar_lea.vmem %s8786_s10, 1024  ;;  %p8788_p6 = scmp.lt.s32.totalorder %s9580_s12, %s8786_s10 }
 0x275   : > { %p8783_p1 = pnand %p8781_p10, %p8767_p8  ;;  %p8789_p11 = scmp.lt.s32.totalorder %s8787_s6, %s8780_s25 }
 0x277   : > { %p8784_p9 = pneg %p8783_p1  ;;  %p8790_p12 = por %p8789_p11, %p8788_p6 }
 0x279   : > { %p8791_p13 = pnand %p8790_p12, %p8784_p9 }
 0x27b   : > { %8794 = shalt.err (!%p8791_p13)
}
 0x27c   : > { %8062 = dma.hbm_to_vmem [thread:$0]  (!%p9576_p4), %s9574_s4, 512, %s9580_s12, %s9582_s8, %s10424_s28, %s10424_s28, %s10423_s22  }
 0x27d   : > { %s10449_s3 = sld [smem:[#allocation58_spill]] }
 0x283   : > { %p10450_p8 = scmp.ne.s32.totalorder %s10449_s3, 0 }
 0x284   : > { %s10451_s5 = sld [smem:[#allocation54_spill]] (!%p10450_p8) }
 0x285   : > { %828 = sbr.rel (%p10450_p8) target bundleno = 3414 (0xd56), region = 108 }
 0x28a   : > { %s9616_s2 = sand.u32 (!%p10450_p8), 1, %s10451_s5  }
 0x28b   : > { %s5980_s25 = sshll.u32 (!%p10450_p8), %s9616_s2, 5  ;;  %s831_s24 = scalar_lea.sflag (!%p10450_p8), [#allocation5], %s9616_s2 }
 0x28c   : > { %s9620_s10 = scalar_lea.vmem [#allocation4], %s5980_s25 }
 0x28d   : > { %8840 = dma.done.wait (%p9556_p2), %s831_s24, 512  }
 0x28e   : > { %8842 = vsyncadd (%p9556_p2), %s831_s24, 4294966784  ;;  %s10452_s7 = sld [smem:[#allocation57_spill]] }
 0x294   : > { %p10453_p6 = scmp.eq.s32.totalorder %s10452_s7, 0 }
 0x296   : > { %8844 = dma.done.wait (%p10453_p6), [#allocation8], 12288   ;;  %p10454_p9 = pmov %p10453_p6 }
 0x297   : > { %p10455_p4 = pmov %p10453_p6 }
 0x298   : > { %8846 = vsyncadd (%p10454_p9), [#allocation8], 4294955008 }
 0x299   : > { %8848 = dma.done.wait (%p10455_p4), [#allocation11], 61440   ;;  %p10456_p3 = pmov %p10455_p4 }
 0x29b   : > { %8850 = vsyncadd (%p10456_p3), [#allocation11], 4294905856  ;;  %p10457_p0 = pmov %p10456_p3 }
 0x29d   : > { %8852 = dma.done.wait (%p10457_p0), [#allocation14], 61440   ;;  %p10458_p5 = pmov %p10457_p0 }
 0x29e   : > { %p10459_p2 = pmov %p10457_p0 }
 0x29f   : > { %8854 = vsyncadd (%p10458_p5), [#allocation14], 4294905856 }
 0x2a0   : > { %8856 = dma.done.wait (%p10459_p2), [#allocation17], 6160   ;;  %p10460_p7 = pmov %p10457_p0 }
 0x2a1   : > { %p10461_p10 = pmov %p10457_p0 }
 0x2a2   : > { %8858 = vsyncadd (%p10460_p7), [#allocation17], 4294961136 }
 0x2a3   : > { %8860 = dma.done.wait (%p10461_p10), [#allocation20], 48   ;;  %p10462_p1 = pmov %p10457_p0 }
 0x2a4   : > { %p10463_p11 = pmov %p10457_p0 }
 0x2a5   : > { %8862 = vsyncadd (%p10462_p1), [#allocation20], 4294967248 }
 0x2a6   : > { %8864 = dma.done.wait (%p10463_p11), [#allocation23], 96   ;;  %p10464_p12 = pmov %p10457_p0 }
 0x2a7   : > { %p10465_p13 = pmov %p10457_p0 }
 0x2a8   : > { %8866 = vsyncadd (%p10464_p12), [#allocation23], 4294967200 }
 0x2a9   : > { %8868 = dma.done.wait (%p10465_p13), [#allocation26], 32   ;;  %p10466_p8 = pmov %p10457_p0 }
 0x2aa   : > { %p10467_p6 = pmov %p10457_p0 }
 0x2ab   : > { %8870 = vsyncadd (%p10466_p8), [#allocation26], 4294967264 }
 0x2ac   : > { %8872 = dma.done.wait (%p10467_p6), [#allocation29], 32   ;;  %p10468_p9 = pmov %p10457_p0 }
 0x2ad   : > { %p10469_p4 = pmov %p10457_p0 }
 0x2ae   : > { %8874 = vsyncadd (%p10468_p9), [#allocation29], 4294967264 }
 0x2af   : > { %8876 = dma.done.wait (%p10469_p4), [#allocation32], 96   ;;  %p10470_p3 = pmov %p10457_p0 }
 0x2b1   : > { %8878 = vsyncadd (%p10470_p3), [#allocation32], 4294967200 }
 0x2b2   : > { %8880 = dma.done.wait (%p10457_p0), [#allocation35], 48   ;;  %p10471_p5 = pmov %p10457_p0 }
 0x2b3   : > { %p10472_p2 = pmov %p10457_p0 }
 0x2b4   : > { %8882 = vsyncadd (%p10471_p5), [#allocation35], 4294967248 }
 0x2b5   : > { %8884 = dma.done.wait (%p10472_p2), [#allocation38], 16   ;;  %p10473_p7 = pmov %p10457_p0 }
 0x2b6   : > { %v8935_v0 = vmov 0.0   ;;  %v1068_v1 = vld [vmem:[#allocation7 + $0x80] sm:$0xff]  ;;  %v1069_v2 = vld [vmem:[#allocation7 + $0x88] sm:$0xff]  ;;  %v1070_v3 = vld [vmem:[#allocation7 + $0x90] sm:$0xff]  ;;  %vm1027_vm0 = vcmask 1040384   ;;  %vm1294_vm1 = vcmask 1045504  }
 0x2b7   : > { %8886 = vsyncadd (%p10473_p7), [#allocation38], 4294967280  ;;  %988 = vst [vmem:[#allocation2 + $0x48] sm:$0xff] %v8935_v0  ;;  %v6633_v4 = vpack.c.bf16 %v1069_v2, %v1068_v1  ;;  %v1071_v5 = vld [vmem:[#allocation7 + $0x98] sm:$0xff]  ;;  %v1072_v7 = vld [vmem:[#allocation7 + $0xa0] sm:$0xff]  ;;  %vm1089_vm2 = vcmask 1046528  }
 0x2b8   : > { %979 = vst [vmem:[#allocation2] sm:$0xff] %v8935_v0  ;;  %980 = vst [vmem:[#allocation2 + $0x8] sm:$0xff] %v8935_v0  ;;  %v6637_v6 = vpack.c.bf16 %v1071_v5, %v1070_v3  ;;  %v1073_v8 = vld [vmem:[#allocation7 + $0xa8] sm:$0xff]  ;;  %v1019_v10 = vld [vmem:[%s9620_s10] sm:$0xff]  ;;  %vm1917_vm7 = vcmask 1041408   ;;  %vm2046_vm10 = vcmask 1042434  }
 0x2b9   : > { %981 = vst [vmem:[#allocation2 + $0x10] sm:$0xff] %v8935_v0  ;;  %982 = vst [vmem:[#allocation2 + $0x18] sm:$0xff] %v8935_v0  ;;  %6634 = vmatprep.subr.bf16.mxu0 %v6633_v4  ;;  %v6641_v9 = vpack.c.bf16 %v1073_v8, %v1072_v7  ;;  %v1020_v11 = vld [vmem:[%s9620_s10 + $0x8] sm:$0xff]  ;;  %v1074_v12 = vld [vmem:[#allocation7 + $0xb0] sm:$0xff]  ;;  %v1028_v14 = vrot.slane %v1019_v10, 7  ;;  %vm2048_vm11 = vcmask 1043459  }
 0x2ba   : > { %984 = vst [vmem:[#allocation2 + $0x28] sm:$0xff] %v8935_v0  ;;  %985 = vst [vmem:[#allocation2 + $0x30] sm:$0xff] %v8935_v0  ;;  %6636 = vmatpush3.bf16.msra.mxu0 %v6633_v4  ;;  %v1075_v13 = vld [vmem:[#allocation7 + $0xb8] sm:$0xff]  ;;  %v1029_v15 = vrot.slane %v1020_v11, 7  ;;  %v1021_v16 = vld [vmem:[%s9620_s10 + $0x10] sm:$0xff]  ;;  %vm2050_vm12 = vcmask 1044484  }
 0x2bb   : > { %986 = vst [vmem:[#allocation2 + $0x38] sm:$0xff] %v8935_v0  ;;  %995 = vst [vmem:[#allocation2 + $0x80] sm:$0x3] %v8935_v0  ;;  %6638 = vmatprep.subr.bf16.mxu0 %v6637_v6  ;;  %v1022_v17 = vld [vmem:[%s9620_s10 + $0x18] sm:$0xff]  ;;  %v1031_v18 = vrot.slane %v1021_v16, 7  ;;  %v6645_v20 = vpack.c.bf16 %v1075_v13, %v1074_v12  ;;  %v1076_v22 = vld [vmem:[#allocation7 + $0xc0] sm:$0xff] }
 0x2bc   : > { %999 = vst [vmem:[#allocation3] sm:$0xff] %v8935_v0  ;;  %1000 = vst [vmem:[#allocation3 + $0x8] sm:$0xff] %v8935_v0  ;;  %v1033_v19 = vrot.slane %v1022_v17, 7  ;;  %v1077_v23 = vld [vmem:[#allocation7 + $0xc8] sm:$0xff]  ;;  %v9696_v25 = vsel %vm1027_vm0, %v1028_v14, %v1029_v15  ;;  %v1078_v30 = vld [vmem:[#allocation7 + $0xd0] sm:$0xff]  ;;  %vm2052_vm14 = vcmask 1045509  }
 0x2bd   : > { %1008 = vst [vmem:[#allocation3 + $0x48] sm:$0xff] %v8935_v0  ;;  %1015 = vst [vmem:[#allocation3 + $0x80] sm:$0x3] %v8935_v0  ;;  %v9689_v21 = vsel %vm1027_vm0, %v1029_v15, %v1031_v18  ;;  %v6649_v28 = vpack.c.bf16 %v1077_v23, %v1076_v22  ;;  %v1079_v31 = vld [vmem:[#allocation7 + $0xd8] sm:$0xff]  ;;  %v1091_v32 = vrot.slane %v9696_v25, 1  ;;  %v1080_v36 = vld [vmem:[#allocation7 + $0xe0] sm:$0xff] }
 0x2be   : > { %1448 = vst [vmem:[#allocation3 + $0x81] sm:$0x1] %v8935_v0  ;;  %6640 = vmatpush3.bf16.msra.mxu0 %v6637_v6  ;;  %1040 = vst [vmem:[#allocation2] sm:$0xfe] %v1028_v14  ;;  %v9692_v24 = vsel %vm1027_vm0, %v1031_v18, %v1033_v19  ;;  %v1298_v26 = vrot.slane %v9689_v21, 2  ;;  %v6653_v35 = vpack.c.bf16 %v1079_v31, %v1078_v30  ;;  %v1081_v37 = vld [vmem:[#allocation7 + $0xe8] sm:$0xff] }
 0x2bf   : > { %6642 = vmatprep.subr.bf16.mxu0 %v6641_v9  ;;  %1042 = vst [vmem:[#allocation2 + $0x40] sm:$0xff] %v9689_v21  ;;  %1044 = vst [vmem:[#allocation2 + $0x80] sm:$0x1] %v1033_v19  ;;  %v1300_v27 = vrot.slane %v9692_v24, 2  ;;  %v1472_v39 = vld [vmem:[#allocation9 + $0x80] sm:$0xff]  ;;  %v1473_v40 = vld [vmem:[#allocation9 + $0x88] sm:$0xff]  ;;  %v6657_v44 = vpack.c.bf16 %v1081_v37, %v1080_v36 }
 0x2c0   : > { %2072 = vst [vmem:[#allocation2 + $0x41] sm:$0x1] %v8935_v0  ;;  %v1474_v41 = vld [vmem:[#allocation9 + $0x90] sm:$0xff]  ;;  %v6729_v42 = vpack.c.bf16 %v1473_v40, %v1472_v39  ;;  %v1475_v43 = vld [vmem:[#allocation9 + $0x98] sm:$0xff]  ;;  %v1049_v49 = vld [vmem:[#allocation7] sm:$0xff]  ;;  %v1093_v51 = vrot.slane %v9689_v21, 1 }
 0x2c1   : > { %v9706_v29 = vsel %vm1294_vm1, %v1298_v26, %v1300_v27  ;;  %v6733_v45 = vpack.c.bf16 %v1475_v43, %v1474_v41  ;;  %v1082_v46 = vld [vmem:[#allocation7 + $0xf0] sm:$0xff]  ;;  %v1083_v47 = vld [vmem:[#allocation7 + $0xf8] sm:$0xff]  ;;  %v1050_v50 = vld [vmem:[#allocation7 + $0x8] sm:$0xff]  ;;  %v1095_v53 = vrot.slane %v9692_v24, 1  ;;  %vm2054_vm15 = vcmask 1046534   ;;  %s6002_s12 = sshll.u32 %s9616_s2, 2 }
 0x2c2   : > { %6644 = vmatpush3.bf16.msra.mxu0 %v6641_v9  ;;  %6730 = vmatprep.subr.bf16.mxu1 %v6729_v42  ;;  %v6661_v48 = vpack.c.bf16 %v1083_v47, %v1082_v46  ;;  %v6665_v52 = vpack.c.bf16 %v1050_v50, %v1049_v49  ;;  %v1051_v55 = vld [vmem:[#allocation7 + $0x10] sm:$0xff]  ;;  %v1052_v56 = vld [vmem:[#allocation7 + $0x18] sm:$0xff]  ;;  %v1094_v57 = vsel %vm1089_vm2, %v1091_v32, %v1093_v51  ;;  %v1053_v61 = vld [vmem:[#allocation7 + $0x20] sm:$0xff]  ;;  %s6020_s22 = sshll.u32 %s10452_s7, 6  ;;  %s978_s28 = scalar_lea.vmem [#allocation39], %s6002_s12 }
 0x2c3   : > { %6646 = vmatprep.subr.bf16.mxu0 %v6645_v20  ;;  %6732 = vmatpush3.bf16.msra.mxu1 %v6729_v42  ;;  %v6669_v59 = vpack.c.bf16 %v1052_v56, %v1051_v55  ;;  %v1096_v60 = vsel %vm1089_vm2, %v1093_v51, %v1095_v53  ;;  %v1054_v62 = vld [vmem:[#allocation7 + $0x28] sm:$0xff]  ;;  %v1055_v3 = vld [vmem:[#allocation7 + $0x30] sm:$0xff]  ;;  %v1056_v4 = vld [vmem:[#allocation7 + $0x38] sm:$0xff]  ;;  %s5682_s4 = sshll.u32 %s978_s28, 4  ;;  %s10476_s6 = sld [smem:[#allocation75_spill]]  ;;  %s10298_s4 = int_to_ptr.vmem [resolvable:$true] %s5682_s4 }
 0x2c4   : > { %6734 = vmatprep.subr.bf16.mxu1 %v6733_v45  ;;  %v6673_v1 = vpack.c.bf16 %v1054_v62, %v1053_v61  ;;  %v6677_v5 = vpack.c.bf16 %v1056_v4, %v1055_v3  ;;  %v1057_v6 = vld [vmem:[#allocation7 + $0x40] sm:$0xff]  ;;  %v1058_v7 = vld [vmem:[#allocation7 + $0x48] sm:$0xff]  ;;  %v1059_v9 = vld [vmem:[#allocation7 + $0x50] sm:$0xff]  ;;  %s5669_s5 = scalar_lea.sflag [#allocation6], %s9616_s2  ;;  %s8795_s25 = scalar_lea.vmem %s10298_s4, 64 }
 0x2c5   : > { %v1065_v33 = vld [vmem:[#allocation2] sm:$0xfe]  ;;  %v6681_v8 = vpack.c.bf16 %v1058_v7, %v1057_v6  ;;  %v1060_v10 = vld [vmem:[#allocation7 + $0x58] sm:$0xff]  ;;  %v1062_v13 = vld [vmem:[#allocation7 + $0x68] sm:$0xff]  ;;  %p8796_p10 = scmp.ne.s32.totalorder %s10298_s4, %s8795_s25  ;;  %p10477_p1 = scmp.ne.s32.totalorder %s10445_s1, 0 }
 0x2c6   : > { %6648 = vmatpush3.bf16.msra.mxu0 %v6645_v20  ;;  %v1090_v34 = vrot.slane %v1065_v33, 1  ;;  %v1066_v54 = vld [vmem:[#allocation2 + $0x80] sm:$0x1]  ;;  %v6685_v11 = vpack.c.bf16 %v1060_v10, %v1059_v9  ;;  %v1063_v15 = vld [vmem:[#allocation7 + $0x70] sm:$0xff]  ;;  %v1064_v16 = vld [vmem:[#allocation7 + $0x78] sm:$0xff]  ;;  %s8939_s24 = smov [#allocation39]  }
 0x2c7   : > { %6650 = vmatprep.subr.bf16.mxu0 %v6649_v28  ;;  %6736 = vmatpush3.bf16.msra.mxu1 %v6733_v45  ;;  %v1097_v58 = vrot.slane %v1066_v54, 1  ;;  %v1045_v2 = vld [vmem:[#allocation2] sm:$0xff]  ;;  %v6693_v17 = vpack.c.bf16 %v1064_v16, %v1063_v15  ;;  %v1277_v19 = vld [vmem:[#allocation7 + $0x108] sm:$0xff]  ;;  %v1278_v22 = vld [vmem:[#allocation7 + $0x110] sm:$0xff]  ;;  %p8797_p11 = pnand %p8796_p10, %p10477_p1  ;;  %s8799_s10 = sshll.u32 %s8939_s24, 4  ;;  %s8800_s10 = int_to_ptr.vmem [resolvable:$false] %s8799_s10 }
 0x2c8   : > { %v1092_v38 = vsel %vm1089_vm2, %v1090_v34, %v1091_v32  ;;  %v1061_v12 = vld [vmem:[#allocation7 + $0x60] sm:$0xff]  ;;  %v1279_v23 = vld [vmem:[#allocation7 + $0x118] sm:$0xff]  ;;  %v1296_v32 = vrot.slane %v9696_v25, 2  ;;  %v1281_v34 = vld [vmem:[#allocation7 + $0x128] sm:$0xff]  ;;  %s8801_s7 = scalar_lea.vmem %s8800_s10, 128  ;;  %p8802_p13 = scmp.lt.s32.totalorder %s10298_s4, %s8800_s10 }
 0x2c9   : > { %6332 = vmatprep.mubr.f32.mxu0 %v1092_v38  ;;  %v1098_v63 = vsel %vm1089_vm2, %v1095_v53, %v1097_v58  ;;  %v6689_v14 = vpack.c.bf16 %v1062_v13, %v1061_v12  ;;  %v1276_v18 = vld [vmem:[#allocation7 + $0x100] sm:$0xff]  ;;  %v6701_v30 = vpack.c.bf16 %v1279_v23, %v1278_v22  ;;  %v1282_v37 = vld [vmem:[#allocation7 + $0x130] sm:$0xff]  ;;  %v1283_v38 = vld [vmem:[#allocation7 + $0x138] sm:$0xff]  ;;  %s10296_s3 = scalar_lea.hbm %s10476_s6, %s6020_s22  ;;  %p8798_p12 = pneg %p8797_p11 }
 0x2ca   : > { %6652 = vmatpush3.bf16.msra.mxu0 %v6649_v28  ;;  %v6697_v20 = vpack.c.bf16 %v1277_v19, %v1276_v18  ;;  %v1273_v28 = vld [vmem:[#allocation2] sm:$0xfc]  ;;  %v6709_v39 = vpack.c.bf16 %v1283_v38, %v1282_v37  ;;  %v1285_v41 = vld [vmem:[#allocation7 + $0x148] sm:$0xff]  ;;  %v1286_v42 = vld [vmem:[#allocation7 + $0x150] sm:$0xff]  ;;  %p8803_p8 = scmp.lt.s32.totalorder %s8801_s7, %s8795_s25 }
 0x2cb   : > { %6654 = vmatprep.subr.bf16.mxu0 %v6653_v35  ;;  %v1295_v31 = vrot.slane %v1273_v28, 2  ;;  %v1280_v33 = vld [vmem:[#allocation7 + $0x120] sm:$0xff]  ;;  %v1287_v43 = vld [vmem:[#allocation7 + $0x158] sm:$0xff]  ;;  %v1289_v46 = vld [vmem:[#allocation7 + $0x168] sm:$0xff] }
 0x2cc   : > { %v1284_v40 = vld [vmem:[#allocation7 + $0x140] sm:$0xff]  ;;  %v1291_v49 = vld [vmem:[#allocation7 + $0x178] sm:$0xff]  ;;  %v1477_v56 = vld [vmem:[#allocation9 + $0xa8] sm:$0xff]  ;;  %p8804_p6 = por %p8803_p8, %p8802_p13 }
 0x2cd   : > { %v1297_v36 = vsel %vm1294_vm1, %v1295_v31, %v1296_v32  ;;  %v1288_v45 = vld [vmem:[#allocation7 + $0x160] sm:$0xff]  ;;  %v1478_v58 = vld [vmem:[#allocation9 + $0xb0] sm:$0xff]  ;;  %v1485_v62 = vld [vmem:[#allocation9 + $0xe8] sm:$0xff] }
 0x2ce   : > { %6656 = vmatpush3.bf16.msra.mxu0 %v6653_v35  ;;  %v6705_v35 = vpack.c.bf16 %v1281_v34, %v1280_v33  ;;  %v6721_v47 = vpack.c.bf16 %v1289_v46, %v1288_v45  ;;  %v1274_v51 = vld [vmem:[#allocation2 + $0x80] sm:$0x3]  ;;  %v6004_v9 = vld [vmem:[#allocation28] ss:$0 sm:$0xff]  ;;  %p8805_p9 = pnand %p8804_p6, %p8798_p12 }
 0x2cf   : > { %6658 = vmatprep.subr.bf16.mxu0 %v6657_v44  ;;  %v1302_v53 = vrot.slane %v1274_v51, 2  ;;  %v1476_v55 = vld [vmem:[#allocation9 + $0xa0] sm:$0xff]  ;;  %v1455_v46 = vld [vmem:[#allocation9 + $0x10] sm:$0xff] }
 0x2d0   : > { %v1453_v4 = vld [vmem:[#allocation9] sm:$0xff] }
 0x2d1   : > { %v1303_v54 = vsel %vm1294_vm1, %v1300_v27, %v1302_v53  ;;  %v1483_v27 = vld [vmem:[#allocation9 + $0xd8] sm:$0xff]  ;;  %v6003_v7 = vld [vmem:[#allocation18] ss:$0 sm:$0xff] }
 0x2d2   : > { %6660 = vmatpush3.bf16.msra.mxu0 %v6657_v44  ;;  %v6717_v44 = vpack.c.bf16 %v1287_v43, %v1286_v42 }
 0x2d3   : > { %6662 = vmatprep.subr.bf16.mxu0 %v6661_v48 }
 0x2d6   : > { %6664 = vmatpush3.bf16.msra.mxu0 %v6661_v48  ;;  %v1290_v48 = vld [vmem:[#allocation7 + $0x170] sm:$0xff] }
 0x2d7   : > { %6666 = vmatprep.subr.bf16.mxu0 %v6665_v52  ;;  %v6725_v50 = vpack.c.bf16 %v1291_v49, %v1290_v48 }
 0x2d9   : > { %6333 = vmatmul.mubr.f32.vlgmr.msra.gmra.mrb[0].mxu0 %v1094_v57  ;;  %v6737_v57 = vpack.c.bf16 %v1477_v56, %v1476_v55  ;;  %v1457_v55 = vld [vmem:[#allocation9 + $0x20] sm:$0xff]  ;;  %v1458_v56 = vld [vmem:[#allocation9 + $0x28] sm:$0xff] }
 0x2da   : > { %6668 = vmatpush3.bf16.msra.mxu0 %v6665_v52  ;;  %6335 = vmatprep.mubr.f32.mxu0 %v1096_v60  ;;  %v1299_v52 = vsel %vm1294_vm1, %v1296_v32, %v1298_v26  ;;  %v1480_v26 = vld [vmem:[#allocation9 + $0xc0] sm:$0xff]  ;;  %v1481_v60 = vld [vmem:[#allocation9 + $0xc8] sm:$0xff] }
 0x2db   : > { %6670 = vmatprep.subr.bf16.mxu0 %v6669_v59  ;;  %6738 = vmatprep.subr.bf16.mxu1 %v6737_v57 }
 0x2dc   : > { %6740 = vmatpush3.bf16.msra.mxu1 %v6737_v57  ;;  %v6769_v57 = vpack.c.bf16 %v1458_v56, %v1457_v55  ;;  %v2118_v56 = vld [vmem:[#allocation10 + $0x140] sm:$0xff] }
 0x2dd   : > { %6336 = vmatmul.mubr.f32.gmra.mrb[2].mxu0 %v1098_v63 }
 0x2de   : > { %6672 = vmatpush3.bf16.msra.mxu0 %v6669_v59  ;;  %6370 = vmatprep.mubr.f32.mxu0 %v1045_v2  ;;  %v1487_v2 = vld [vmem:[#allocation9 + $0xf8] sm:$0xff] }
 0x2df   : > { %6674 = vmatprep.subr.bf16.mxu0 %v6673_v1 }
 0x2e2   : > { %6676 = vmatpush3.bf16.msra.mxu0 %v6673_v1  ;;  %v1486_v1 = vld [vmem:[#allocation9 + $0xf0] sm:$0xff] }
 0x2e3   : > { %6678 = vmatprep.subr.bf16.mxu0 %v6677_v5  ;;  %v6757_v3 = vpack.c.bf16 %v1487_v2, %v1486_v1  ;;  %v1466_v1 = vld [vmem:[#allocation9 + $0x68] sm:$0xff] }
 0x2e6   : > { %6680 = vmatpush3.bf16.msra.mxu0 %v6677_v5  ;;  %v1454_v5 = vld [vmem:[#allocation9 + $0x8] sm:$0xff] }
 0x2e7   : > { %6682 = vmatprep.subr.bf16.mxu0 %v6681_v8  ;;  %v6761_v6 = vpack.c.bf16 %v1454_v5, %v1453_v4  ;;  %v1468_v4 = vld [vmem:[#allocation9 + $0x78] sm:$0xff] }
 0x2ea   : > { %6684 = vmatpush3.bf16.msra.mxu0 %v6681_v8 }
 0x2eb   : > { %6686 = vmatprep.subr.bf16.mxu0 %v6685_v11 }
 0x2ee   : > { %6688 = vmatpush3.bf16.msra.mxu0 %v6685_v11 }
 0x2ef   : > { %6690 = vmatprep.subr.bf16.mxu0 %v6689_v14 }
 0x2f2   : > { %6692 = vmatpush3.bf16.msra.mxu0 %v6689_v14 }
 0x2f3   : > { %6694 = vmatprep.subr.bf16.mxu0 %v6693_v17 }
 0x2f6   : > { %6696 = vmatpush3.bf16.msra.mxu0 %v6693_v17 }
 0x2f7   : > { %6698 = vmatprep.subr.bf16.mxu0 %v6697_v20 }
 0x2f9   : > { %6371 = vmatmul.mubr.f32.vlgmr.msra.gmra.mrb[0].mxu0 %v9696_v25  ;;  %v6713_v25 = vpack.c.bf16 %v1285_v41, %v1284_v40 }
 0x2fa   : > { %6700 = vmatpush3.bf16.msra.mxu0 %v6697_v20  ;;  %6373 = vmatprep.mubr.f32.mxu0 %v9689_v21  ;;  %v1479_v21 = vld [vmem:[#allocation9 + $0xb8] sm:$0xff] }
 0x2fb   : > { %6702 = vmatprep.subr.bf16.mxu0 %v6701_v30  ;;  %v6741_v59 = vpack.c.bf16 %v1479_v21, %v1478_v58  ;;  %v1459_v21 = vld [vmem:[#allocation9 + $0x30] sm:$0xff] }
 0x2fd   : > { %6374 = vmatmul.mubr.f32.gmra.mrb[2].mxu0 %v9692_v24  ;;  %6742 = vmatprep.subr.bf16.mxu1 %v6741_v59  ;;  %v1482_v24 = vld [vmem:[#allocation9 + $0xd0] sm:$0xff] }
 0x2fe   : > { %6704 = vmatpush3.bf16.msra.mxu0 %v6701_v30  ;;  %6408 = vmatprep.mubr.f32.mxu0 %v1297_v36  ;;  %v6749_v61 = vpack.c.bf16 %v1483_v27, %v1482_v24  ;;  %v1462_v24 = vld [vmem:[#allocation9 + $0x48] sm:$0xff] }
 0x2ff   : > { %6706 = vmatprep.subr.bf16.mxu0 %v6705_v35  ;;  %6744 = vmatpush3.bf16.msra.mxu1 %v6741_v59  ;;  %v1460_v59 = vld [vmem:[#allocation9 + $0x38] sm:$0xff] }
 0x302   : > { %6708 = vmatpush3.bf16.msra.mxu0 %v6705_v35 }
 0x303   : > { %6710 = vmatprep.subr.bf16.mxu0 %v6709_v39 }
 0x306   : > { %6712 = vmatpush3.bf16.msra.mxu0 %v6709_v39 }
 0x307   : > { %6714 = vmatprep.subr.bf16.mxu0 %v6713_v25 }
 0x30a   : > { %6716 = vmatpush3.bf16.msra.mxu0 %v6713_v25 }
 0x30b   : > { %6718 = vmatprep.subr.bf16.mxu0 %v6717_v44 }
 0x30e   : > { %6720 = vmatpush3.bf16.msra.mxu0 %v6717_v44 }
 0x30f   : > { %6722 = vmatprep.subr.bf16.mxu0 %v6721_v47 }
 0x312   : > { %6724 = vmatpush3.bf16.msra.mxu0 %v6721_v47  ;;  %v1456_v47 = vld [vmem:[#allocation9 + $0x18] sm:$0xff] }
 0x313   : > { %6726 = vmatprep.subr.bf16.mxu0 %v6725_v50 }
 0x316   : > { %6728 = vmatpush3.bf16.msra.mxu0 %v6725_v50 }
 0x319   : > { %6409 = vmatmul.mubr.f32.vlgmr.msra.gmra.mrb[0].mxu0 %v1299_v52  ;;  %v6765_v52 = vpack.c.bf16 %v1456_v47, %v1455_v46  ;;  %v2110_v46 = vld [vmem:[#allocation10 + $0x100] sm:$0xff]  ;;  %v2112_v47 = vld [vmem:[#allocation10 + $0x110] sm:$0xff] }
 0x31a   : > { %6411 = vmatprep.mubr.f32.mxu0 %v9706_v29  ;;  %v6745_v29 = vpack.c.bf16 %v1481_v60, %v1480_v26  ;;  %v6773_v60 = vpack.c.bf16 %v1460_v59, %v1459_v21  ;;  %v2123_v21 = vld [vmem:[#allocation10 + $0x168] sm:$0xff]  ;;  %v2125_v59 = vld [vmem:[#allocation10 + $0x178] sm:$0xff] }
 0x31c   : > { %6746 = vmatprep.subr.bf16.mxu1 %v6745_v29 }
 0x31d   : > { %6412 = vmatmul.mubr.f32.gmra.mrb[2].mxu0 %v1303_v54  ;;  %6748 = vmatpush3.bf16.msra.mxu1 %v6745_v29  ;;  %v1461_v29 = vld [vmem:[#allocation9 + $0x40] sm:$0xff] }
 0x31e   : > { %2216 = vmatprep.mubr.f32.mxu0 %v8935_v0  ;;  %6750 = vmatprep.subr.bf16.mxu1 %v6749_v61  ;;  %v1484_v0 = vld [vmem:[#allocation9 + $0xe0] sm:$0xff]  ;;  %v6777_v27 = vpack.c.bf16 %v1462_v24, %v1461_v29  ;;  %v2124_v29 = vld [vmem:[#allocation10 + $0x170] sm:$0xff] }
 0x31f   : > { %v6753_v63 = vpack.c.bf16 %v1485_v62, %v1484_v0  ;;  %v1464_v0 = vld [vmem:[#allocation9 + $0x58] sm:$0xff] }
 0x321   : > { %6752 = vmatpush3.bf16.msra.mxu1 %v6749_v61  ;;  %v1463_v61 = vld [vmem:[#allocation9 + $0x50] sm:$0xff] }
 0x322   : > { %6754 = vmatprep.subr.bf16.mxu1 %v6753_v63  ;;  %v6781_v62 = vpack.c.bf16 %v1464_v0, %v1463_v61  ;;  %v2129_v61 = vld [vmem:[#allocation10 + $0x198] sm:$0xff] }
 0x325   : > { %6756 = vmatpush3.bf16.msra.mxu1 %v6753_v63  ;;  %v1465_v63 = vld [vmem:[#allocation9 + $0x60] sm:$0xff] }
 0x326   : > { %6758 = vmatprep.subr.bf16.mxu1 %v6757_v3  ;;  %v6785_v2 = vpack.c.bf16 %v1466_v1, %v1465_v63  ;;  %v2128_v63 = vld [vmem:[#allocation10 + $0x190] sm:$0xff] }
 0x329   : > { %6760 = vmatpush3.bf16.msra.mxu1 %v6757_v3  ;;  %v1467_v3 = vld [vmem:[#allocation9 + $0x70] sm:$0xff] }
 0x32a   : > { %6762 = vmatprep.subr.bf16.mxu1 %v6761_v6  ;;  %v6789_v5 = vpack.c.bf16 %v1468_v4, %v1467_v3  ;;  %v2133_v3 = vld [vmem:[#allocation10 + $0x1b8] sm:$0xff] }
 0x3ec   : > { %v6410_v8 = vpop.f32.mrb[0].mxu0 }
 0x3ed   : > { %v1405_v10 = vadd.f32 %v6410_v8, %v6003_v7  ;;  %v1374_v11 = vpop.f32.mrb[1].mxu0 }
 0x3ee   : > { %v1404_v12 = vadd.f32 %v6003_v7, %v1374_v11 }
 0x3ef   : > { %vm1409_vm3 = vcmp.ge.f32.partialorder %v1405_v10, 0.0  ;;  %v1420_v13 = vmul.f32 %v6004_v9, %v1405_v10 }
 0x3f0   : > { %vm1408_vm4 = vcmp.ge.f32.partialorder %v1404_v12, 0.0  ;;  %v1419_v14 = vmul.f32 %v6004_v9, %v1404_v12  ;;  %v6413_v15 = vpop.f32.mrb[2].mxu0 }
 0x3f1   : > { %v1424_v16 = vsel %vm1409_vm3, %v1405_v10, %v1420_v13  ;;  %v1407_v17 = vadd.f32 %v6413_v15, %v6003_v7  ;;  %v1384_v18 = vpop.f32.mrb[3].mxu0  ;;  %v1682_v10 = vld [vmem:[#allocation9 + $0x118] sm:$0xff]  ;;  %v1683_v13 = vld [vmem:[#allocation9 + $0x120] sm:$0xff] }
 0x3f2   : > { %v1432_v19 = vrot.slane %v1424_v16, 7  ;;  %v1423_v20 = vsel %vm1408_vm4, %v1404_v12, %v1419_v14  ;;  %v1406_v22 = vadd.f32 %v6003_v7, %v1384_v18  ;;  %v1680_v7 = vld [vmem:[#allocation9 + $0x108] sm:$0xff]  ;;  %v1686_v18 = vld [vmem:[#allocation9 + $0x138] sm:$0xff]  ;;  %vm2056_vm4 = vcmask 1047559  }
 0x3f3   : > { %v1431_v23 = vrot.slane %v1423_v20, 7  ;;  %vm1411_vm5 = vcmp.ge.f32.partialorder %v1407_v17, 0.0  ;;  %v1422_v28 = vmul.f32 %v6004_v9, %v1407_v17  ;;  %v1684_v14 = vld [vmem:[#allocation9 + $0x128] sm:$0xff] }
 0x3f4   : > { %vm1410_vm6 = vcmp.ge.f32.partialorder %v1406_v22, 0.0  ;;  %v1421_v30 = vmul.f32 %v6004_v9, %v1406_v22  ;;  %v1681_v9 = vld [vmem:[#allocation9 + $0x110] sm:$0xff]  ;;  %v6801_v16 = vpack.c.bf16 %v1684_v14, %v1683_v13  ;;  %v2139_v14 = vld [vmem:[#allocation10 + $0x1e8] sm:$0xff] }
 0x3f5   : > { %v9729_v31 = vsel %vm1027_vm0, %v1431_v23, %v1432_v19  ;;  %1443 = vst [vmem:[#allocation3] sm:$0xfe] %v1431_v23  ;;  %v1426_v32 = vsel %vm1411_vm5, %v1407_v17, %v1422_v28  ;;  %v6797_v12 = vpack.c.bf16 %v1682_v10, %v1681_v9  ;;  %v1685_v17 = vld [vmem:[#allocation9 + $0x130] sm:$0xff]  ;;  %v1688_v23 = vld [vmem:[#allocation9 + $0x148] sm:$0xff]  ;;  %v2137_v9 = vld [vmem:[#allocation10 + $0x1d8] sm:$0xff]  ;;  %vm2058_vm5 = vcmask 1041409  }
 0x3f6   : > { %v1436_v33 = vrot.slane %v1426_v32, 7  ;;  %v1425_v34 = vsel %vm1410_vm6, %v1406_v22, %v1421_v30  ;;  %v1494_v38 = vrot.slane %v9729_v31, 1  ;;  %v1698_v39 = vrot.slane %v9729_v31, 2  ;;  %v1687_v22 = vld [vmem:[#allocation9 + $0x140] sm:$0xff]  ;;  %v1689_v30 = vld [vmem:[#allocation9 + $0x150] sm:$0xff]  ;;  %v1690_v32 = vld [vmem:[#allocation9 + $0x158] sm:$0xff] }
 0x3f7   : > { %v1434_v35 = vrot.slane %v1425_v34, 7  ;;  %v6805_v20 = vpack.c.bf16 %v1686_v18, %v1685_v17  ;;  %v6809_v28 = vpack.c.bf16 %v1688_v23, %v1687_v22  ;;  %v1691_v34 = vld [vmem:[#allocation9 + $0x160] sm:$0xff]  ;;  %v2140_v18 = vld [vmem:[#allocation10 + $0x1f0] sm:$0xff]  ;;  %v2078_v22 = vld [vmem:[#allocation10 + $0x18] sm:$0xff] }
 0x3f8   : > { %1447 = vst [vmem:[#allocation3 + $0x80] sm:$0x1] %v1436_v33  ;;  %v2138_v17 = vld [vmem:[#allocation10 + $0x1e0] sm:$0xff] }
 0x3f9   : > { %v9732_v36 = vsel %vm1027_vm0, %v1432_v19, %v1434_v35  ;;  %v9735_v37 = vsel %vm1027_vm0, %v1434_v35, %v1436_v33  ;;  %v6813_v33 = vpack.c.bf16 %v1690_v32, %v1689_v30  ;;  %v1692_v35 = vld [vmem:[#allocation9 + $0x168] sm:$0xff]  ;;  %v1837_v32 = vlaneseq }
 0x3fa   : > { %1445 = vst [vmem:[#allocation3 + $0x40] sm:$0xff] %v9732_v36  ;;  %v1496_v40 = vrot.slane %v9732_v36, 1  ;;  %v1498_v41 = vrot.slane %v9735_v37, 1  ;;  %v1700_v25 = vrot.slane %v9732_v36, 2  ;;  %v1702_v42 = vrot.slane %v9735_v37, 2 }
 0x3fb   : > { %vm9902_vm6 = vcmp.lt.s32.totalorder %v1837_v32, 256 }
 0x3fc   : > { %v1469_v43 = vld [vmem:[#allocation3] sm:$0xfe]  ;;  %v1497_v44 = vsel %vm1089_vm2, %v1494_v38, %v1496_v40  ;;  %v1499_v45 = vsel %vm1089_vm2, %v1496_v40, %v1498_v41  ;;  %v9749_v48 = vsel %vm1294_vm1, %v1698_v39, %v1700_v25  ;;  %v9754_v49 = vsel %vm1294_vm1, %v1700_v25, %v1702_v42 }
 0x3fd   : > { %v1493_v50 = vrot.slane %v1469_v43, 1  ;;  %v1449_v26 = vld [vmem:[#allocation3] sm:$0xff]  ;;  %v2111_v43 = vld [vmem:[#allocation10 + $0x108] sm:$0xff] }
 0x3fe   : > { %v1676_v11 = vld [vmem:[#allocation3] sm:$0xfc] }
 0x3ff   : > { %v1495_v51 = vsel %vm1089_vm2, %v1493_v50, %v1494_v38  ;;  %v1470_v53 = vld [vmem:[#allocation3 + $0x80] sm:$0x1]  ;;  %v1697_v15 = vrot.slane %v1676_v11, 2  ;;  %v1694_v38 = vld [vmem:[#allocation9 + $0x178] sm:$0xff]  ;;  %v6827_v50 = vpack.c.bf16 %v2112_v47, %v2110_v46 }
 0x400   : > { %6446 = vmatprep.mubr.f32.mxu1 %v1495_v51  ;;  %v1500_v54 = vrot.slane %v1470_v53, 1  ;;  %v1677_v40 = vld [vmem:[#allocation3 + $0x80] sm:$0x3]  ;;  %v2115_v51 = vld [vmem:[#allocation10 + $0x128] sm:$0xff] }
 0x401   : > { %6447 = vmatmul.mubr.f32.vlgmr.msra.gmra.mrb[0].mxu1 %v1497_v44  ;;  %v1699_v19 = vsel %vm1294_vm1, %v1697_v15, %v1698_v39  ;;  %v2113_v44 = vld [vmem:[#allocation10 + $0x118] sm:$0xff]  ;;  %v2134_v11 = vld [vmem:[#allocation10 + $0x1c0] sm:$0xff] }
 0x402   : > { %6764 = vmatpush3.bf16.msra.mxu1 %v6761_v6  ;;  %6449 = vmatprep.mubr.f32.mxu1 %v1499_v45  ;;  %v1501_v58 = vsel %vm1089_vm2, %v1498_v41, %v1500_v54  ;;  %v1679_v6 = vld [vmem:[#allocation9 + $0x100] sm:$0xff]  ;;  %v1704_v41 = vrot.slane %v1677_v40, 2  ;;  %v6825_v45 = vpack.c.bf16 %v2113_v44, %v2111_v43  ;;  %v2141_v15 = vld [vmem:[#allocation10 + $0x1f8] sm:$0xff]  ;;  %v2650_v40 = vld [vmem:[#allocation12 + $0x468] sm:$0xff]  ;;  %v9774_v43 = vshrl.u32 %v1837_v32, 7 }
 0x403   : > { %6766 = vmatprep.subr.bf16.mxu1 %v6765_v52  ;;  %v6793_v8 = vpack.c.bf16 %v1680_v7, %v1679_v6  ;;  %v2114_v54 = vld [vmem:[#allocation10 + $0x120] sm:$0xff]  ;;  %v2132_v6 = vld [vmem:[#allocation10 + $0x1b0] sm:$0xff] }
 0x404   : > { %v1705_v25 = vsel %vm1294_vm1, %v1702_v42, %v1704_v41  ;;  %6826 = vmatprep.subr.bf16.mxu0 %v6825_v45  ;;  %v9771_v41 = vld [vmem:[#allocation30] ss:$0 sm:$0xff]  ;;  %v2645_v46 = vld [vmem:[#allocation12 + $0x440] sm:$0xff] }
 0x405   : > { %6450 = vmatmul.mubr.f32.gmra.mrb[2].mxu1 %v1501_v58  ;;  %6828 = vmatpush1.bf16.msra.mxu0 %v6827_v50  ;;  %v2649_v47 = vld [vmem:[#allocation12 + $0x460] sm:$0xff]  ;;  %v2654_v50 = vld [vmem:[#allocation12 + $0x488] sm:$0xff] }
 0x406   : > { %6768 = vmatpush3.bf16.msra.mxu1 %v6765_v52  ;;  %6484 = vmatprep.mubr.f32.mxu1 %v1449_v26  ;;  %v2117_v52 = vld [vmem:[#allocation10 + $0x138] sm:$0xff]  ;;  %v6837_v26 = vpack.c.bf16 %v2125_v59, %v2123_v21  ;;  %v9779_v21 = vld [vmem:[#allocation12 + $0x508] sm:$0xff] }
 0x407   : > { %6770 = vmatprep.subr.bf16.mxu1 %v6769_v57  ;;  %v6829_v53 = vpack.c.bf16 %v2117_v52, %v2115_v51  ;;  %v2658_v51 = vld [vmem:[#allocation12 + $0x4a8] sm:$0xff]  ;;  %v2653_v52 = vld [vmem:[#allocation12 + $0x480] sm:$0xff] }
 0x408   : > { %v9781_v59 = vld [vmem:[#allocation12 + $0x528] sm:$0xff] }
 0x409   : > { %6830 = vmatprep.subr.bf16.mxu0 %v6829_v53  ;;  %v2657_v53 = vld [vmem:[#allocation12 + $0x4a0] sm:$0xff] }
 0x40a   : > { %6772 = vmatpush3.bf16.msra.mxu1 %v6769_v57  ;;  %v2120_v57 = vld [vmem:[#allocation10 + $0x150] sm:$0xff] }
 0x40b   : > { %6774 = vmatprep.subr.bf16.mxu1 %v6773_v60  ;;  %v6835_v58 = vpack.c.bf16 %v2120_v57, %v2118_v56  ;;  %v6929_v57 = vpack.c.bf16 %v2658_v51, %v2654_v50 }
 0x40e   : > { %6776 = vmatpush3.bf16.msra.mxu1 %v6773_v60  ;;  %v2122_v60 = vld [vmem:[#allocation10 + $0x160] sm:$0xff] }
 0x40f   : > { %6778 = vmatprep.subr.bf16.mxu1 %v6777_v27  ;;  %v6839_v24 = vpack.c.bf16 %v2124_v29, %v2122_v60  ;;  %v9787_v29 = vld [vmem:[#allocation12 + $0x500] sm:$0xff] }
 0x412   : > { %6780 = vmatpush3.bf16.msra.mxu1 %v6777_v27  ;;  %v2127_v27 = vld [vmem:[#allocation10 + $0x188] sm:$0xff] }
 0x413   : > { %6782 = vmatprep.subr.bf16.mxu1 %v6781_v62  ;;  %v6841_v0 = vpack.c.bf16 %v2129_v61, %v2127_v27  ;;  %v9791_v27 = vld [vmem:[#allocation12 + $0x548] sm:$0xff] }
 0x416   : > { %6784 = vmatpush3.bf16.msra.mxu1 %v6781_v62  ;;  %v2126_v62 = vld [vmem:[#allocation10 + $0x180] sm:$0xff] }
 0x417   : > { %6786 = vmatprep.subr.bf16.mxu1 %v6785_v2  ;;  %v6843_v1 = vpack.c.bf16 %v2128_v63, %v2126_v62  ;;  %v9794_v63 = vld [vmem:[#allocation12 + $0x568] sm:$0xff] }
 0x41a   : > { %6788 = vmatpush3.bf16.msra.mxu1 %v6785_v2  ;;  %v2131_v2 = vld [vmem:[#allocation10 + $0x1a8] sm:$0xff] }
 0x41b   : > { %6790 = vmatprep.subr.bf16.mxu1 %v6789_v5  ;;  %v6845_v4 = vpack.c.bf16 %v2133_v3, %v2131_v2  ;;  %v9798_v2 = vld [vmem:[#allocation12 + $0x560] sm:$0xff] }
 0x41e   : > { %6792 = vmatpush3.bf16.msra.mxu1 %v6789_v5  ;;  %v2130_v5 = vld [vmem:[#allocation10 + $0x1a0] sm:$0xff] }
 0x41f   : > { %6794 = vmatprep.subr.bf16.mxu1 %v6793_v8  ;;  %v6847_v7 = vpack.c.bf16 %v2132_v6, %v2130_v5  ;;  %v6937_v6 = vpack.c.bf16 %v9781_v59, %v9779_v21 }
 0x421   : > { %6485 = vmatmul.mubr.f32.vlgmr.msra.gmra.mrb[0].mxu1 %v9729_v31  ;;  %v6817_v31 = vpack.c.bf16 %v1692_v35, %v1691_v34  ;;  %v2638_v34 = vld [vmem:[#allocation12 + $0x408] sm:$0xff] }
 0x422   : > { %6487 = vmatprep.mubr.f32.mxu1 %v9732_v36  ;;  %6796 = vmatpush3.bf16.msra.mxu1 %v6793_v8  ;;  %v1693_v36 = vld [vmem:[#allocation9 + $0x170] sm:$0xff]  ;;  %v2135_v8 = vld [vmem:[#allocation10 + $0x1c8] sm:$0xff] }
 0x423   : > { %6798 = vmatprep.subr.bf16.mxu1 %v6797_v12  ;;  %v6821_v39 = vpack.c.bf16 %v1694_v38, %v1693_v36  ;;  %v6849_v10 = vpack.c.bf16 %v2137_v9, %v2135_v8  ;;  %v2642_v35 = vld [vmem:[#allocation12 + $0x428] sm:$0xff]  ;;  %v2641_v38 = vld [vmem:[#allocation12 + $0x420] sm:$0xff] }
 0x424   : > { %v6921_v36 = vpack.c.bf16 %v2642_v35, %v2638_v34  ;;  %v9806_v8 = vld [vmem:[#allocation12 + $0x5a8] sm:$0xff] }
 0x425   : > { %6488 = vmatmul.mubr.f32.gmra.mrb[2].mxu1 %v9735_v37  ;;  %v2119_v37 = vld [vmem:[#allocation10 + $0x148] sm:$0xff] }
 0x426   : > { %6800 = vmatpush3.bf16.msra.mxu1 %v6797_v12  ;;  %6522 = vmatprep.mubr.f32.mxu1 %v1699_v19  ;;  %v2136_v12 = vld [vmem:[#allocation10 + $0x1d0] sm:$0xff]  ;;  %v2076_v19 = vld [vmem:[#allocation10 + $0x8] sm:$0xff] }
 0x427   : > { %6802 = vmatprep.subr.bf16.mxu1 %v6801_v16  ;;  %v6851_v13 = vpack.c.bf16 %v2136_v12, %v2134_v11  ;;  %v6857_v23 = vpack.c.bf16 %v2078_v22, %v2076_v19 }
 0x42a   : > { %6804 = vmatpush3.bf16.msra.mxu1 %v6801_v16  ;;  %v6853_v16 = vpack.c.bf16 %v2141_v15, %v2139_v14 }
 0x42b   : > { %6806 = vmatprep.subr.bf16.mxu1 %v6805_v20 }
 0x42e   : > { %6808 = vmatpush3.bf16.msra.mxu1 %v6805_v20  ;;  %v6855_v20 = vpack.c.bf16 %v2140_v18, %v2138_v17 }
 0x42f   : > { %6810 = vmatprep.subr.bf16.mxu1 %v6809_v28 }
 0x432   : > { %6812 = vmatpush3.bf16.msra.mxu1 %v6809_v28  ;;  %v8936_v28 = vmov 1983009808  }
 0x433   : > { %6814 = vmatprep.subr.bf16.mxu1 %v6813_v33  ;;  %v1835_v30 = vunpack.c.l.s4 %v8936_v28 }
 0x436   : > { %6816 = vmatpush3.bf16.msra.mxu1 %v6813_v33  ;;  %v9769_v33 = vld [vmem:[#allocation19] ss:$0 sm:$0xff] }
 0x437   : > { %6818 = vmatprep.subr.bf16.mxu1 %v6817_v31 }
 0x43a   : > { %6820 = vmatpush3.bf16.msra.mxu1 %v6817_v31  ;;  %v2637_v31 = vld [vmem:[#allocation12 + $0x400] sm:$0xff] }
 0x43b   : > { %6822 = vmatprep.subr.bf16.mxu1 %v6821_v39  ;;  %v6923_v44 = vpack.c.bf16 %v2641_v38, %v2637_v31 }
 0x43e   : > { %6824 = vmatpush3.bf16.msra.mxu1 %v6821_v39  ;;  %v2646_v39 = vld [vmem:[#allocation12 + $0x448] sm:$0xff] }
 0x43f   : > { %v6925_v45 = vpack.c.bf16 %v2650_v40, %v2646_v39  ;;  %6922 = vmatprep.subr.bf16.mxu1 %v6921_v36 }
 0x441   : > { %6523 = vmatmul.mubr.f32.vlgmr.msra.gmra.mrb[0].mxu1 %v9749_v48  ;;  %v2116_v48 = vld [vmem:[#allocation10 + $0x130] sm:$0xff] }
 0x442   : > { %6525 = vmatprep.mubr.f32.mxu1 %v9754_v49  ;;  %v6831_v55 = vpack.c.bf16 %v2116_v48, %v2114_v54  ;;  %v2121_v49 = vld [vmem:[#allocation10 + $0x158] sm:$0xff]  ;;  %6924 = vmatpush1.bf16.msra.mxu1 %v6923_v44  ;;  %v6927_v48 = vpack.c.bf16 %v2649_v47, %v2645_v46 }
 0x443   : > { %v6833_v42 = vpack.c.bf16 %v2121_v49, %v2119_v37  ;;  %v2666_v37 = vld [vmem:[#allocation12 + $0x4e8] sm:$0xff]  ;;  %v9776_v49 = vld [vmem:[#allocation12 + $0x4c0] sm:$0xff]  ;;  %6926 = vmatprep.subr.bf16.mxu1 %v6925_v45 }
 0x444   : > { %6832 = vmatpush1.bf16.msra.mxu0 %v6831_v55  ;;  %v2662_v55 = vld [vmem:[#allocation12 + $0x4c8] sm:$0xff] }
 0x445   : > { %6526 = vmatmul.mubr.f32.gmra.mrb[2].mxu1 %v1705_v25  ;;  %6834 = vmatprep.subr.bf16.mxu0 %v6833_v42  ;;  %v1836_v25 = vunpack.c.0.s8 %v1835_v30  ;;  %v6933_v62 = vpack.c.bf16 %v2666_v37, %v2662_v55 }
 0x446   : > { %6928 = vmatpush1.bf16.msra.mxu1 %v6927_v48 }
 0x447   : > { %6930 = vmatprep.subr.bf16.mxu1 %v6929_v57 }
 0x448   : > { %6836 = vmatpush1.bf16.msra.mxu0 %v6835_v58  ;;  %v2665_v58 = vld [vmem:[#allocation12 + $0x4e0] sm:$0xff] }
 0x449   : > { %6838 = vmatprep.subr.bf16.mxu0 %v6837_v26  ;;  %v9784_v26 = vsub.s32 %v1836_v25, %v9774_v43  ;;  %v6935_v5 = vpack.c.bf16 %v2665_v58, %v9776_v49 }
 0x44c   : > { %6840 = vmatpush1.bf16.msra.mxu0 %v6839_v24  ;;  %v9789_v24 = vld [vmem:[#allocation12 + $0x520] sm:$0xff] }
 0x44d   : > { %6842 = vmatprep.subr.bf16.mxu0 %v6841_v0  ;;  %v6931_v0 = vpack.c.bf16 %v2657_v53, %v2653_v52  ;;  %v6939_v12 = vpack.c.bf16 %v9789_v24, %v9787_v29 }
 0x44f   : > { %6932 = vmatpush1.bf16.msra.mxu1 %v6931_v0 }
 0x450   : > { %6844 = vmatpush1.bf16.msra.mxu0 %v6843_v1  ;;  %v9796_v1 = vld [vmem:[#allocation12 + $0x540] sm:$0xff]  ;;  %6934 = vmatprep.subr.bf16.mxu1 %v6933_v62 }
 0x451   : > { %6846 = vmatprep.subr.bf16.mxu0 %v6845_v4  ;;  %v6943_v17 = vpack.c.bf16 %v9798_v2, %v9796_v1  ;;  %v2694_v2 = vld [vmem:[#allocation12 + $0x5c8] sm:$0xff] }
 0x453   : > { %6936 = vmatpush1.bf16.msra.mxu1 %v6935_v5 }
 0x454   : > { %6848 = vmatpush1.bf16.msra.mxu0 %v6847_v7  ;;  %v9804_v7 = vld [vmem:[#allocation12 + $0x588] sm:$0xff]  ;;  %6938 = vmatprep.subr.bf16.mxu1 %v6937_v6 }
 0x455   : > { %6850 = vmatprep.subr.bf16.mxu0 %v6849_v10  ;;  %v6945_v22 = vpack.c.bf16 %v9806_v8, %v9804_v7 }
 0x457   : > { %6940 = vmatpush1.bf16.msra.mxu1 %v6939_v12 }
 0x458   : > { %6852 = vmatpush1.bf16.msra.mxu0 %v6851_v13  ;;  %v6941_v13 = vpack.c.bf16 %v9794_v63, %v9791_v27 }
 0x459   : > { %6854 = vmatprep.subr.bf16.mxu0 %v6853_v16 }
 0x45a   : > { %6942 = vmatprep.subr.bf16.mxu1 %v6941_v13  ;;  %v2685_v13 = vld [vmem:[#allocation12 + $0x580] sm:$0xff] }
 0x45b   : > { %6944 = vmatpush1.bf16.msra.mxu1 %v6943_v17  ;;  %v2698_v17 = vld [vmem:[#allocation12 + $0x5e8] sm:$0xff] }
 0x45c   : > { %6856 = vmatpush1.bf16.msra.mxu0 %v6855_v20  ;;  %6946 = vmatprep.subr.bf16.mxu1 %v6945_v22 }
 0x45d   : > { %6858 = vmatprep.subr.bf16.mxu0 %v6857_v23 }
 0x514   : > { %v6524_v54 = vpop.f32.mrb[0].mxu1 }
 0x515   : > { %v1807_v42 = vadd.f32 %v6524_v54, %v9769_v33  ;;  %v1776_v56 = vpop.f32.mrb[1].mxu1 }
 0x516   : > { %v1806_v60 = vadd.f32 %v9769_v33, %v1776_v56 }
 0x517   : > { %vm1811_vm8 = vcmp.ge.f32.partialorder %v1807_v42, 0.0  ;;  %v1822_v61 = vmul.f32 %v9771_v41, %v1807_v42 }
 0x518   : > { %vm1810_vm9 = vcmp.ge.f32.partialorder %v1806_v60, 0.0  ;;  %v1821_v3 = vmul.f32 %v9771_v41, %v1806_v60  ;;  %v6527_v4 = vpop.f32.mrb[2].mxu1 }
 0x519   : > { %v1826_v9 = vsel %vm1811_vm8, %v1807_v42, %v1822_v61  ;;  %v9809_v10 = vadd.f32 %v6527_v4, %v9769_v33  ;;  %v1786_v11 = vpop.f32.mrb[3].mxu1 }
 0x51a   : > { %v1850_v14 = vcombine.high %v1826_v9, %v1826_v9  ;;  %v1857_v15 = vrot.slane %v1826_v9, %v9784_v26  ;;  %v1825_v16 = vsel %vm1810_vm9, %v1806_v60, %v1821_v3  ;;  %v9821_v20 = vadd.f32 %v9769_v33, %v1786_v11 }
 0x51b   : > { %v1833_v18 = vcombine.high %v1825_v16, %v1825_v16  ;;  %v1840_v19 = vrot.slane %v1825_v16, %v9784_v26  ;;  %v9829_v34 = vmul.f32 %v9771_v41, %v9809_v10  ;;  %vm1813_vm13 = vcmp.ge.f32.partialorder %v9809_v10, 0.0  ;;  %v2689_v16 = vld [vmem:[#allocation12 + $0x5a0] sm:$0xff] }
 0x51c   : > { %v1864_v23 = vrot.slane %v1850_v14, %v9784_v26  ;;  %v1865_v28 = vcombine.high %v1857_v15, %v1857_v15  ;;  %v1946_v30 = vsel %vm1917_vm7, %v1857_v15, -inf  ;;  %vm1812_vm3 = vcmp.ge.f32.partialorder %v9821_v20, 0.0 }
 0x51d   : > { %v1947_v35 = vrot.slane %v1946_v30, 4  ;;  %v1847_v31 = vrot.slane %v1833_v18, %v9784_v26  ;;  %v1848_v36 = vcombine.high %v1840_v19, %v1840_v19  ;;  %v1918_v33 = vsel %vm1917_vm7, %v1840_v19, -inf }
 0x51e   : > { %v1866_v38 = vcombine.high %v1864_v23, %v1864_v23  ;;  %v1953_v39 = vsel %vm1917_vm7, %v1865_v28, -inf  ;;  %v1960_v40 = vsel %vm1917_vm7, %v1864_v23, -inf  ;;  %v1919_v25 = vrot.slane %v1918_v33, 4 }
 0x51f   : > { %v1948_v44 = vmax.f32 %v1946_v30, %v1947_v35  ;;  %v1954_v45 = vrot.slane %v1953_v39, 4  ;;  %v1961_v46 = vrot.slane %v1960_v40, 4  ;;  %v1849_v47 = vcombine.high %v1847_v31, %v1847_v31 }
 0x520   : > { %v1967_v50 = vsel %vm1917_vm7, %v1866_v38, -inf  ;;  %v1920_v51 = vmax.f32 %v1918_v33, %v1919_v25  ;;  %v1925_v52 = vsel %vm1917_vm7, %v1848_v36, -inf  ;;  %v1932_v53 = vsel %vm1917_vm7, %v1847_v31, -inf }
 0x521   : > { %v1949_v54 = vrot.slane %v1948_v44, 2  ;;  %v1955_v48 = vmax.f32 %v1953_v39, %v1954_v45  ;;  %v1962_v55 = vmax.f32 %v1960_v40, %v1961_v46  ;;  %v1968_v37 = vrot.slane %v1967_v50, 4 }
 0x522   : > { %v1921_v49 = vrot.slane %v1920_v51, 2  ;;  %v1926_v42 = vrot.slane %v1925_v52, 4  ;;  %v1933_v56 = vrot.slane %v1932_v53, 4  ;;  %v1939_v57 = vsel %vm1917_vm7, %v1849_v47, -inf }
 0x523   : > { %v1950_v58 = vmax.f32 %v1948_v44, %v1949_v54  ;;  %v1956_v21 = vrot.slane %v1955_v48, 2  ;;  %v1963_v59 = vrot.slane %v1962_v55, 2  ;;  %v1969_v60 = vmax.f32 %v1967_v50, %v1968_v37 }
 0x524   : > { %v1922_v29 = vmax.f32 %v1920_v51, %v1921_v49  ;;  %v1927_v24 = vmax.f32 %v1925_v52, %v1926_v42  ;;  %v1934_v27 = vmax.f32 %v1932_v53, %v1933_v56  ;;  %v1940_v61 = vrot.slane %v1939_v57, 4 }
 0x525   : > { %v1951_v0 = vrot.slane %v1950_v58, 1  ;;  %v1957_v62 = vmax.f32 %v1955_v48, %v1956_v21  ;;  %v1964_v63 = vmax.f32 %v1962_v55, %v1963_v59  ;;  %v1970_v3 = vrot.slane %v1969_v60, 2 }
 0x526   : > { %v1928_v4 = vrot.slane %v1927_v24, 2  ;;  %v1935_v5 = vrot.slane %v1934_v27, 2  ;;  %v1941_v6 = vmax.f32 %v1939_v57, %v1940_v61  ;;  %v1923_v9 = vrot.slane %v1922_v29, 1 }
 0x527   : > { %v1952_v11 = vmax.f32 %v1950_v58, %v1951_v0  ;;  %v1958_v18 = vrot.slane %v1957_v62, 1  ;;  %v1965_v19 = vrot.slane %v1964_v63, 1  ;;  %v9844_v23 = vmax.f32 %v1969_v60, %v1970_v3 }
 0x528   : > { %v1929_v14 = vmax.f32 %v1927_v24, %v1928_v4  ;;  %v1936_v15 = vmax.f32 %v1934_v27, %v1935_v5  ;;  %v1942_v12 = vrot.slane %v1941_v6, 2  ;;  %v1828_v28 = vsel %vm1813_vm13, %v9809_v10, %v9829_v34 }
 0x529   : > { %v1884_v1 = vcombine.high %v1828_v28, %v1828_v28  ;;  %v1924_v36 = vmax.f32 %v1922_v29, %v1923_v9  ;;  %v1891_v33 = vrot.slane %v1828_v28, %v9784_v26  ;;  %v1823_v38 = vmul.f32 %v9771_v41, %v9821_v20 }
 0x52a   : > { %v1930_v30 = vrot.slane %v1929_v14, 1  ;;  %v1937_v35 = vrot.slane %v1936_v15, 1  ;;  %v1943_v31 = vmax.f32 %v1941_v6, %v1942_v12  ;;  %v6947_v39 = vpack.c.bf16 %v2689_v16, %v2685_v13  ;;  %v2693_v13 = vld [vmem:[#allocation12 + $0x5c0] sm:$0xff] }
 0x52b   : > { %v1898_v34 = vrot.slane %v1884_v1, %v9784_v26  ;;  %v1899_v7 = vcombine.high %v1891_v33, %v1891_v33  ;;  %v2002_v8 = vsel %vm1917_vm7, %v1891_v33, -inf  ;;  %v1827_v22 = vsel %vm1812_vm3, %v9821_v20, %v1823_v38  ;;  %v2697_v16 = vld [vmem:[#allocation12 + $0x5e0] sm:$0xff] }
 0x52c   : > { %v1931_v40 = vmax.f32 %v1929_v14, %v1930_v30  ;;  %v1938_v25 = vmax.f32 %v1936_v15, %v1937_v35  ;;  %v1944_v10 = vrot.slane %v1943_v31, 1  ;;  %6948 = vmatpush1.bf16.msra.mxu1 %v6947_v39  ;;  %v6949_v44 = vpack.c.bf16 %v2698_v17, %v2694_v2  ;;  %v2702_v30 = vld [vmem:[#allocation12 + $0x608] sm:$0xff]  ;;  %v2705_v33 = vld [vmem:[#allocation12 + $0x620] sm:$0xff] }
 0x52d   : > { %v1900_v47 = vcombine.high %v1898_v34, %v1898_v34  ;;  %v2003_v41 = vrot.slane %v2002_v8, 4  ;;  %v2009_v51 = vsel %vm1917_vm7, %v1899_v7, -inf  ;;  %v2016_v52 = vsel %vm1917_vm7, %v1898_v34, -inf  ;;  %v2706_v17 = vld [vmem:[#allocation12 + $0x628] sm:$0xff] }
 0x52e   : > { %v1945_v45 = vmax.f32 %v1943_v31, %v1944_v10  ;;  %v2047_v46 = vsel %vm2046_vm10, %v1931_v40, %v1924_v36  ;;  %v1867_v53 = vcombine.high %v1827_v22, %v1827_v22  ;;  %6950 = vmatprep.subr.bf16.mxu1 %v6949_v44  ;;  %v1959_v54 = vmax.f32 %v1957_v62, %v1958_v18  ;;  %v2701_v36 = vld [vmem:[#allocation12 + $0x600] sm:$0xff] }
 0x52f   : > { %v2049_v50 = vsel %vm2048_vm11, %v1938_v25, %v2047_v46  ;;  %v1966_v48 = vmax.f32 %v1964_v63, %v1965_v19  ;;  %v2010_v20 = vrot.slane %v2009_v51, 4  ;;  %v2023_v49 = vsel %vm1917_vm7, %v1900_v47, -inf }
 0x530   : > { %v2051_v55 = vsel %vm2050_vm12, %v1945_v45, %v2049_v50  ;;  %v1874_v42 = vrot.slane %v1827_v22, %v9784_v26  ;;  %v1881_v56 = vrot.slane %v1867_v53, %v9784_v26  ;;  %v2004_v58 = vmax.f32 %v2002_v8, %v2003_v41  ;;  %v2710_v22 = vld [vmem:[#allocation12 + $0x648] sm:$0xff]  ;;  %v2709_v53 = vld [vmem:[#allocation12 + $0x640] sm:$0xff] }
 0x531   : > { %v2053_v37 = vsel %vm2052_vm14, %v1952_v11, %v2051_v55  ;;  %v2017_v21 = vrot.slane %v2016_v52, 4  ;;  %v2024_v60 = vrot.slane %v2023_v49, 4  ;;  %v1972_v27 = vrot.slane %v9844_v23, 1 }
 0x532   : > { %v2055_v57 = vsel %vm2054_vm15, %v1959_v54, %v2053_v37  ;;  %v1882_v29 = vcombine.high %v1874_v42, %v1874_v42  ;;  %v1883_v24 = vcombine.high %v1881_v56, %v1881_v56  ;;  %v2011_v61 = vmax.f32 %v2009_v51, %v2010_v20  ;;  %v2713_v54 = vld [vmem:[#allocation12 + $0x660] sm:$0xff] }
 0x533   : > { %v2057_v59 = vsel %vm2056_vm4, %v1966_v48, %v2055_v57  ;;  %v1974_v0 = vsel %vm1917_vm7, %v1874_v42, -inf  ;;  %v2025_v62 = vmax.f32 %v2023_v49, %v2024_v60  ;;  %v1988_v4 = vsel %vm1917_vm7, %v1881_v56, -inf }
 0x534   : > { %2069 = vst [vmem:[#allocation2] sm:$0xfe] %v2057_v59  ;;  %v1975_v63 = vrot.slane %v1974_v0, 4  ;;  %v1981_v3 = vsel %vm1917_vm7, %v1882_v29, -inf  ;;  %v2005_v5 = vrot.slane %v2004_v58, 2  ;;  %v2018_v6 = vmax.f32 %v2016_v52, %v2017_v21 }
 0x535   : > { %v1982_v9 = vrot.slane %v1981_v3, 4  ;;  %v2026_v11 = vrot.slane %v2025_v62, 2  ;;  %v1989_v15 = vrot.slane %v1988_v4, 4  ;;  %v1995_v12 = vsel %vm1917_vm7, %v1883_v24, -inf }
 0x536   : > { %v1976_v14 = vmax.f32 %v1974_v0, %v1975_v63  ;;  %v1973_v18 = vmax.f32 %v9844_v23, %v1972_v27  ;;  %v2012_v19 = vrot.slane %v2011_v61, 2  ;;  %v1996_v2 = vrot.slane %v1995_v12, 4  ;;  %v2714_v23 = vld [vmem:[#allocation12 + $0x668] sm:$0xff] }
 0x537   : > { %v1983_v28 = vmax.f32 %v1981_v3, %v1982_v9  ;;  %v2027_v35 = vmax.f32 %v2025_v62, %v2026_v11  ;;  %v1990_v1 = vmax.f32 %v1988_v4, %v1989_v15  ;;  %v2006_v38 = vmax.f32 %v2004_v58, %v2005_v5  ;;  %v2075_v9 = vld [vmem:[#allocation10] sm:$0xff]  ;;  %v2077_v11 = vld [vmem:[#allocation10 + $0x10] sm:$0xff] }
 0x538   : > { %v1977_v31 = vrot.slane %v1976_v14, 2  ;;  %v2019_v39 = vrot.slane %v2018_v6, 2  ;;  %v6951_v25 = vpack.c.bf16 %v2697_v16, %v2693_v13  ;;  %v1997_v8 = vmax.f32 %v1995_v12, %v1996_v2  ;;  %v2080_v12 = vld [vmem:[#allocation10 + $0x28] sm:$0xff]  ;;  %v2082_v13 = vld [vmem:[#allocation10 + $0x38] sm:$0xff] }
 0x539   : > { %v1984_v40 = vrot.slane %v1983_v28, 2  ;;  %v2028_v10 = vrot.slane %v2027_v35, 1  ;;  %v1991_v7 = vrot.slane %v1990_v1, 2  ;;  %v2013_v44 = vmax.f32 %v2011_v61, %v2012_v19 }
 0x53a   : > { %v1978_v34 = vmax.f32 %v1976_v14, %v1977_v31  ;;  %6952 = vmatpush1.bf16.msra.mxu1 %v6951_v25  ;;  %v6953_v46 = vpack.c.bf16 %v2706_v17, %v2702_v30  ;;  %v6955_v47 = vpack.c.bf16 %v2705_v33, %v2701_v36  ;;  %v1998_v52 = vrot.slane %v1997_v8, 2  ;;  %v2081_v31 = vld [vmem:[#allocation10 + $0x30] sm:$0xff]  ;;  %v2084_v17 = vld [vmem:[#allocation10 + $0x48] sm:$0xff]  ;;  %v2086_v36 = vld [vmem:[#allocation10 + $0x58] sm:$0xff] }
 0x53b   : > { %v1985_v45 = vmax.f32 %v1983_v28, %v1984_v40  ;;  %v2029_v41 = vmax.f32 %v2027_v35, %v2028_v10  ;;  %v1992_v51 = vmax.f32 %v1990_v1, %v1991_v7  ;;  %v2020_v48 = vmax.f32 %v2018_v6, %v2019_v39  ;;  %v2107_v63 = vld [vmem:[#allocation2] sm:$0xfe]  ;;  %v9889_v33 = vld [vmem:[#allocation2 + $0x48] sm:$0xff]  ;;  %v2085_v25 = vld [vmem:[#allocation10 + $0x50] sm:$0xff] }
 0x53c   : > { %v1979_v50 = vrot.slane %v1978_v34, 1  ;;  %6954 = vmatprep.subr.bf16.mxu1 %v6953_v46  ;;  %v6957_v20 = vpack.c.bf16 %v2714_v23, %v2710_v22  ;;  %v1999_v42 = vmax.f32 %v1997_v8, %v1998_v52  ;;  %v2007_v56 = vrot.slane %v2006_v38, 1  ;;  %v2079_v35 = vld [vmem:[#allocation10 + $0x20] sm:$0xff]  ;;  %v2090_v7 = vld [vmem:[#allocation10 + $0x78] sm:$0xff]  ;;  %v2096_v52 = vld [vmem:[#allocation10 + $0xa8] sm:$0xff] }
 0x53d   : > { %v1986_v55 = vrot.slane %v1985_v45, 1  ;;  %2071 = vst [vmem:[#allocation2 + $0x40] sm:$0x1] %v2029_v41  ;;  %v1993_v49 = vrot.slane %v1992_v51, 1  ;;  %v6959_v58 = vpack.c.bf16 %v2713_v54, %v2709_v53  ;;  %v2014_v21 = vrot.slane %v2013_v44, 1  ;;  %v2083_v40 = vld [vmem:[#allocation10 + $0x40] sm:$0xff] }
 0x53e   : > { %v1980_v37 = vmax.f32 %v1978_v34, %v1979_v50  ;;  %6956 = vmatpush1.bf16.msra.mxu1 %v6955_v47  ;;  %v2000_v60 = vrot.slane %v1999_v42, 1  ;;  %v2021_v24 = vrot.slane %v2020_v48, 1  ;;  %v2008_v62 = vmax.f32 %v2006_v38, %v2007_v56  ;;  %v2088_v34 = vld [vmem:[#allocation10 + $0x68] sm:$0xff]  ;;  %v2087_v23 = vld [vmem:[#allocation10 + $0x60] sm:$0xff]  ;;  %v2094_v46 = vld [vmem:[#allocation10 + $0x98] sm:$0xff] }
 0x53f   : > { %v1987_v57 = vmax.f32 %v1985_v45, %v1986_v55  ;;  %v1994_v59 = vmax.f32 %v1992_v51, %v1993_v49  ;;  %6958 = vmatprep.subr.bf16.mxu1 %v6957_v20  ;;  %v2015_v3 = vmax.f32 %v2013_v44, %v2014_v21  ;;  %v2145_v15 = vrot.slane %v2107_v63, 1  ;;  %v2089_v44 = vld [vmem:[#allocation10 + $0x70] sm:$0xff]  ;;  %v2092_v45 = vld [vmem:[#allocation10 + $0x88] sm:$0xff]  ;;  %v2091_v50 = vld [vmem:[#allocation10 + $0x80] sm:$0xff] }
 0x540   : > { %v2059_v29 = vsel %vm2058_vm5, %v1980_v37, %v1973_v18  ;;  %v2001_v61 = vmax.f32 %v1999_v42, %v2000_v60  ;;  %v2022_v5 = vmax.f32 %v2020_v48, %v2021_v24  ;;  %v6859_v28 = vpack.c.bf16 %v2077_v11, %v2075_v9  ;;  %v2093_v51 = vld [vmem:[#allocation10 + $0x90] sm:$0xff]  ;;  %v2098_v53 = vld [vmem:[#allocation10 + $0xb8] sm:$0xff]  ;;  %v2095_v55 = vld [vmem:[#allocation10 + $0xa0] sm:$0xff]  ;;  %2498 = vst.msk [vmem:[#allocation3 + $0x41] ss:$8 sm:$0x3] %vm9902_vm6, %v9889_v33 }
 0x541   : > { %v2060_v27 = vsel %vm2046_vm10, %v1987_v57, %v2059_v29  ;;  %v6861_v30 = vpack.c.bf16 %v2082_v13, %v2080_v12  ;;  %v6863_v38 = vpack.c.bf16 %v2081_v31, %v2079_v35  ;;  %v6865_v39 = vpack.c.bf16 %v2086_v36, %v2084_v17  ;;  %v2097_v20 = vld [vmem:[#allocation10 + $0xb0] sm:$0xff]  ;;  %v2100_v37 = vld [vmem:[#allocation10 + $0xc8] sm:$0xff]  ;;  %v2102_v49 = vld [vmem:[#allocation10 + $0xd8] sm:$0xff] }
 0x542   : > { %v2061_v0 = vsel %vm2048_vm11, %v1994_v59, %v2060_v27  ;;  %6960 = vmatpush1.bf16.msra.mxu1 %v6959_v58  ;;  %v6867_v8 = vpack.c.bf16 %v2085_v25, %v2083_v40  ;;  %v6869_v22 = vpack.c.bf16 %v2090_v7, %v2088_v34  ;;  %v6871_v47 = vpack.c.bf16 %v2089_v44, %v2087_v23  ;;  %v2099_v57 = vld [vmem:[#allocation10 + $0xc0] sm:$0xff]  ;;  %v2101_v58 = vld [vmem:[#allocation10 + $0xd0] sm:$0xff]  ;;  %v2104_v21 = vld [vmem:[#allocation10 + $0xe8] sm:$0xff] }
 0x543   : > { %v2062_v4 = vsel %vm2050_vm12, %v2001_v61, %v2061_v0  ;;  %v6873_v41 = vpack.c.bf16 %v2094_v46, %v2092_v45  ;;  %v6875_v54 = vpack.c.bf16 %v2093_v51, %v2091_v50  ;;  %v6877_v48 = vpack.c.bf16 %v2098_v53, %v2096_v52  ;;  %v2106_v59 = vld [vmem:[#allocation10 + $0xf8] sm:$0xff]  ;;  %v2103_v24 = vld [vmem:[#allocation10 + $0xe0] sm:$0xff]  ;;  %v2105_v27 = vld [vmem:[#allocation10 + $0xf0] sm:$0xff] }
 0x544   : > { %v2063_v6 = vsel %vm2052_vm14, %v2008_v62, %v2062_v4  ;;  %v2108_v18 = vld [vmem:[#allocation2 + $0x40] sm:$0x1]  ;;  %v6879_v42 = vpack.c.bf16 %v2097_v20, %v2095_v55  ;;  %v6881_v56 = vpack.c.bf16 %v2102_v49, %v2100_v37  ;;  %v6883_v60 = vpack.c.bf16 %v2101_v58, %v2099_v57  ;;  %v2310_v61 = vld [vmem:[#allocation10 + $0x208] sm:$0xff]  ;;  %v2312_v0 = vld [vmem:[#allocation10 + $0x218] sm:$0xff] }
 0x545   : > { %v2064_v14 = vsel %vm2054_vm15, %v2015_v3, %v2063_v6  ;;  %v2148_v2 = vrot.slane %v2108_v18, 1  ;;  %v6885_v29 = vpack.c.bf16 %v2106_v59, %v2104_v21  ;;  %v6887_v62 = vpack.c.bf16 %v2105_v27, %v2103_v24  ;;  %v2309_v3 = vld [vmem:[#allocation10 + $0x200] sm:$0xff]  ;;  %v2311_v4 = vld [vmem:[#allocation10 + $0x210] sm:$0xff]  ;;  %v2316_v6 = vld [vmem:[#allocation10 + $0x238] sm:$0xff] }
 0x546   : > { %v9884_v16 = vsel %vm2056_vm4, %v2022_v5, %v2064_v14  ;;  %v6889_v63 = vpack.c.bf16 %v2312_v0, %v2310_v61  ;;  %v2314_v5 = vld [vmem:[#allocation10 + $0x228] sm:$0xff]  ;;  %v6891_v9 = vpack.c.bf16 %v2311_v4, %v2309_v3  ;;  %v2313_v14 = vld [vmem:[#allocation10 + $0x220] sm:$0xff]  ;;  %v2320_v18 = vld [vmem:[#allocation10 + $0x258] sm:$0xff] }
 0x547   : > { %2070 = vst [vmem:[#allocation2 + $0x20] sm:$0xff] %v9884_v16  ;;  %v2146_v19 = vrot.slane %v9884_v16, 1  ;;  %v6893_v11 = vpack.c.bf16 %v2316_v6, %v2314_v5  ;;  %v2073_v12 = vld [vmem:[#allocation2] sm:$0xff]  ;;  %v2318_v13 = vld [vmem:[#allocation10 + $0x248] sm:$0xff]  ;;  %v2319_v35 = vld [vmem:[#allocation10 + $0x250] sm:$0xff]  ;;  %v2344_v21 = vrot.slane %v9884_v16, 2 }
 0x548   : > { %v2322_v31 = vld [vmem:[#allocation10 + $0x268] sm:$0xff]  ;;  %v2321_v36 = vld [vmem:[#allocation10 + $0x260] sm:$0xff]  ;;  %v2328_v40 = vld [vmem:[#allocation10 + $0x298] sm:$0xff] }
 0x549   : > { %v2147_v1 = vsel %vm1089_vm2, %v2145_v15, %v2146_v19  ;;  %v2149_v10 = vsel %vm1089_vm2, %v2146_v19, %v2148_v2  ;;  %v2315_v15 = vld [vmem:[#allocation10 + $0x230] sm:$0xff]  ;;  %v2325_v34 = vld [vmem:[#allocation10 + $0x280] sm:$0xff]  ;;  %v2718_v24 = vld [vmem:[#allocation12 + $0x688] sm:$0xff] }
 0x54a   : > { %2217 = vmatmul.mubr.f32.vlgmr.msra.gmra.mrb[4].mxu0 %v2147_v1  ;;  %v6895_v19 = vpack.c.bf16 %v2315_v15, %v2313_v14  ;;  %v2324_v1 = vld [vmem:[#allocation10 + $0x278] sm:$0xff]  ;;  %v2327_v7 = vld [vmem:[#allocation10 + $0x290] sm:$0xff]  ;;  %v2329_v45 = vld [vmem:[#allocation10 + $0x2a0] sm:$0xff] }
 0x54b   : > { %6860 = vmatpush1.bf16.msra.mxu0 %v6859_v28  ;;  %2222 = vmatprep.mubr.f32.mxu0 %v9889_v33  ;;  %v6897_v28 = vpack.c.bf16 %v2320_v18, %v2318_v13  ;;  %v6901_v17 = vpack.c.bf16 %v2324_v1, %v2322_v31  ;;  %v6907_v23 = vpack.c.bf16 %v2327_v7, %v2325_v34  ;;  %v2331_v46 = vld [vmem:[#allocation10 + $0x2b0] sm:$0xff]  ;;  %v2333_v52 = vld [vmem:[#allocation10 + $0x2c0] sm:$0xff]  ;;  %v2722_v27 = vld [vmem:[#allocation12 + $0x6a8] sm:$0xff] }
 0x54c   : > { %6862 = vmatprep.subr.bf16.mxu0 %v6861_v30  ;;  %v2317_v30 = vld [vmem:[#allocation10 + $0x240] sm:$0xff]  ;;  %v6911_v50 = vpack.c.bf16 %v2331_v46, %v2329_v45  ;;  %v2335_v53 = vld [vmem:[#allocation10 + $0x2d0] sm:$0xff]  ;;  %v6961_v61 = vpack.c.bf16 %v2722_v27, %v2718_v24  ;;  %v2726_v3 = vld [vmem:[#allocation12 + $0x6c8] sm:$0xff] }
 0x54d   : > { %v6899_v2 = vpack.c.bf16 %v2319_v35, %v2317_v30  ;;  %v6915_v55 = vpack.c.bf16 %v2335_v53, %v2333_v52  ;;  %v2337_v37 = vld [vmem:[#allocation10 + $0x2e0] sm:$0xff]  ;;  %v2339_v49 = vld [vmem:[#allocation10 + $0x2f0] sm:$0xff]  ;;  %v2730_v4 = vld [vmem:[#allocation12 + $0x6e8] sm:$0xff] }
 0x54e   : > { %2223 = vmatmul.mubr.f32.gmra.mrb[6].mxu0 %v2149_v10  ;;  %v2307_v58 = vld [vmem:[#allocation2 + $0x40] sm:$0x3]  ;;  %6962 = vmatprep.subr.bf16.mxu1 %v6961_v61  ;;  %v2738_v14 = vld [vmem:[#allocation12 + $0x728] sm:$0xff]  ;;  %v2644_v45 = vld [vmem:[#allocation12 + $0x438] sm:$0xff] }
 0x54f   : > { %6864 = vmatpush1.bf16.msra.mxu0 %v6863_v38  ;;  %2293 = vmatprep.mubr.f32.mxu0 %v9889_v33  ;;  %v2323_v38 = vld [vmem:[#allocation10 + $0x270] sm:$0xff]  ;;  %v2717_v0 = vld [vmem:[#allocation12 + $0x680] sm:$0xff]  ;;  %v2762_v34 = vld [vmem:[#allocation12 + $0x7e8] sm:$0xff] }
 0x550   : > { %6866 = vmatprep.subr.bf16.mxu0 %v6865_v39  ;;  %v2326_v39 = vld [vmem:[#allocation10 + $0x288] sm:$0xff]  ;;  %v6903_v25 = vpack.c.bf16 %v2323_v38, %v2321_v36  ;;  %v2725_v5 = vld [vmem:[#allocation12 + $0x6c0] sm:$0xff] }
 0x551   : > { %v6905_v10 = vpack.c.bf16 %v2328_v40, %v2326_v39  ;;  %v2729_v6 = vld [vmem:[#allocation12 + $0x6e0] sm:$0xff]  ;;  %v2660_v40 = vld [vmem:[#allocation12 + $0x4b8] sm:$0xff] }
 0x552   : > { %v2737_v13 = vld [vmem:[#allocation12 + $0x720] sm:$0xff] }
 0x553   : > { %6868 = vmatpush1.bf16.msra.mxu0 %v6867_v8  ;;  %v2330_v8 = vld [vmem:[#allocation10 + $0x2a8] sm:$0xff]  ;;  %v2741_v35 = vld [vmem:[#allocation12 + $0x740] sm:$0xff] }
 0x554   : > { %6870 = vmatprep.subr.bf16.mxu0 %v6869_v22  ;;  %v2332_v22 = vld [vmem:[#allocation10 + $0x2b8] sm:$0xff]  ;;  %v2745_v31 = vld [vmem:[#allocation12 + $0x760] sm:$0xff] }
 0x555   : > { %v6909_v44 = vpack.c.bf16 %v2332_v22, %v2330_v8  ;;  %v6975_v1 = vpack.c.bf16 %v2745_v31, %v2741_v35  ;;  %v2749_v38 = vld [vmem:[#allocation12 + $0x780] sm:$0xff] }
 0x556   : > { %v2753_v39 = vld [vmem:[#allocation12 + $0x7a0] sm:$0xff] }
 0x557   : > { %6872 = vmatpush1.bf16.msra.mxu0 %v6871_v47  ;;  %v2334_v47 = vld [vmem:[#allocation10 + $0x2c8] sm:$0xff]  ;;  %v2757_v7 = vld [vmem:[#allocation12 + $0x7c0] sm:$0xff] }
 0x558   : > { %6874 = vmatprep.subr.bf16.mxu0 %v6873_v41  ;;  %v2336_v41 = vld [vmem:[#allocation10 + $0x2d8] sm:$0xff]  ;;  %v2761_v22 = vld [vmem:[#allocation12 + $0x7e0] sm:$0xff] }
 0x559   : > { %v6913_v51 = vpack.c.bf16 %v2336_v41, %v2334_v47  ;;  %v9910_v47 = vsub.s32 0, %v9774_v43  ;;  %v2431_v41 = vld [vmem:[#allocation21] sm:$0x3] }
 0x55b   : > { %6876 = vmatpush1.bf16.msra.mxu0 %v6875_v54  ;;  %v2338_v54 = vld [vmem:[#allocation10 + $0x2e8] sm:$0xff]  ;;  %v2436_v52 = vrot.slane %v2431_v41, %v9910_v47 }
 0x55c   : > { %6878 = vmatprep.subr.bf16.mxu0 %v6877_v48  ;;  %v2340_v48 = vld [vmem:[#allocation10 + $0x2f8] sm:$0xff] }
 0x55d   : > { %v6917_v20 = vpack.c.bf16 %v2340_v48, %v2338_v54 }
 0x55f   : > { %6880 = vmatpush1.bf16.msra.mxu0 %v6879_v42  ;;  %v2306_v42 = vld [vmem:[#allocation2] sm:$0xfc] }
 0x560   : > { %6882 = vmatprep.subr.bf16.mxu0 %v6881_v56  ;;  %v6919_v56 = vpack.c.bf16 %v2339_v49, %v2337_v37  ;;  %v2343_v57 = vrot.slane %v2306_v42, 2 }
 0x562   : > { %v2345_v59 = vsel %vm1294_vm1, %v2343_v57, %v2344_v21 }
 0x563   : > { %6884 = vmatpush1.bf16.msra.mxu0 %v6883_v60  ;;  %v2346_v60 = vrot.slane %v2307_v58, 2 }
 0x564   : > { %6886 = vmatprep.subr.bf16.mxu0 %v6885_v29 }
 0x565   : > { %v2347_v29 = vsel %vm1294_vm1, %v2344_v21, %v2346_v60 }
 0x567   : > { %6888 = vmatpush1.bf16.msra.mxu0 %v6887_v62  ;;  %v2721_v62 = vld [vmem:[#allocation12 + $0x6a0] sm:$0xff] }
 0x568   : > { %6890 = vmatprep.subr.bf16.mxu0 %v6889_v63  ;;  %v6963_v63 = vpack.c.bf16 %v2721_v62, %v2717_v0 }
 0x56a   : > { %2294 = vmatmul.mubr.f32.vlgmr.msra.gmra.mrb[4].mxu0 %v2073_v12  ;;  %6964 = vmatpush1.bf16.msra.mxu1 %v6963_v63  ;;  %v2733_v12 = vld [vmem:[#allocation12 + $0x700] sm:$0xff] }
 0x56b   : > { %6892 = vmatpush1.bf16.msra.mxu0 %v6891_v9  ;;  %2299 = vmatprep.mubr.f32.mxu0 %v9889_v33  ;;  %v6967_v9 = vpack.c.bf16 %v2729_v6, %v2725_v5  ;;  %v6971_v18 = vpack.c.bf16 %v2737_v13, %v2733_v12  ;;  %v2648_v12 = vld [vmem:[#allocation12 + $0x458] sm:$0xff] }
 0x56c   : > { %6894 = vmatprep.subr.bf16.mxu0 %v6893_v11  ;;  %v2734_v11 = vld [vmem:[#allocation12 + $0x708] sm:$0xff]  ;;  %v2652_v13 = vld [vmem:[#allocation12 + $0x478] sm:$0xff] }
 0x56d   : > { %v6969_v15 = vpack.c.bf16 %v2738_v14, %v2734_v11  ;;  %v2643_v11 = vld [vmem:[#allocation12 + $0x430] sm:$0xff]  ;;  %v6989_v31 = vpack.c.bf16 %v2652_v13, %v2648_v12 }
 0x56e   : > { %2300 = vmatmul.mubr.f32.gmra.mrb[6].mxu0 %v9884_v16  ;;  %v6965_v16 = vpack.c.bf16 %v2730_v4, %v2726_v3  ;;  %v2703_v12 = vld [vmem:[#allocation12 + $0x610] sm:$0xff] }
 0x56f   : > { %6896 = vmatpush1.bf16.msra.mxu0 %v6895_v19  ;;  %2414 = vmatprep.mubr.f32.mxu0 %v9889_v33  ;;  %v2742_v19 = vld [vmem:[#allocation12 + $0x748] sm:$0xff]  ;;  %v2707_v13 = vld [vmem:[#allocation12 + $0x630] sm:$0xff] }
 0x570   : > { %6898 = vmatprep.subr.bf16.mxu0 %v6897_v28  ;;  %6966 = vmatprep.subr.bf16.mxu1 %v6965_v16  ;;  %v2746_v28 = vld [vmem:[#allocation12 + $0x768] sm:$0xff] }
 0x571   : > { %6968 = vmatpush1.bf16.msra.mxu1 %v6967_v9  ;;  %v6973_v30 = vpack.c.bf16 %v2746_v28, %v2742_v19  ;;  %v2639_v9 = vld [vmem:[#allocation12 + $0x410] sm:$0xff] }
 0x572   : > { %6970 = vmatprep.subr.bf16.mxu1 %v6969_v15 }
 0x573   : > { %6900 = vmatpush1.bf16.msra.mxu0 %v6899_v2  ;;  %v2750_v2 = vld [vmem:[#allocation12 + $0x788] sm:$0xff] }
 0x574   : > { %6902 = vmatprep.subr.bf16.mxu0 %v6901_v17  ;;  %v2754_v17 = vld [vmem:[#allocation12 + $0x7a8] sm:$0xff] }
 0x575   : > { %6972 = vmatpush1.bf16.msra.mxu1 %v6971_v18  ;;  %v6977_v36 = vpack.c.bf16 %v2754_v17, %v2750_v2  ;;  %v2647_v2 = vld [vmem:[#allocation12 + $0x450] sm:$0xff] }
 0x576   : > { %6974 = vmatprep.subr.bf16.mxu1 %v6973_v30  ;;  %v6987_v30 = vpack.c.bf16 %v2643_v11, %v2639_v9  ;;  %v2651_v17 = vld [vmem:[#allocation12 + $0x470] sm:$0xff]  ;;  %v2704_v9 = vld [vmem:[#allocation12 + $0x618] sm:$0xff] }
 0x577   : > { %6904 = vmatpush1.bf16.msra.mxu0 %v6903_v25  ;;  %v6979_v25 = vpack.c.bf16 %v2753_v39, %v2749_v38  ;;  %v2656_v39 = vld [vmem:[#allocation12 + $0x498] sm:$0xff] }
 0x578   : > { %6906 = vmatprep.subr.bf16.mxu0 %v6905_v10  ;;  %v2758_v10 = vld [vmem:[#allocation12 + $0x7c8] sm:$0xff]  ;;  %v2708_v11 = vld [vmem:[#allocation12 + $0x638] sm:$0xff] }
 0x579   : > { %6976 = vmatpush1.bf16.msra.mxu1 %v6975_v1  ;;  %v6981_v8 = vpack.c.bf16 %v2762_v34, %v2758_v10  ;;  %v6991_v10 = vpack.c.bf16 %v2651_v17, %v2647_v2  ;;  %v2724_v2 = vld [vmem:[#allocation12 + $0x6b8] sm:$0xff] }
 0x57a   : > { %6978 = vmatprep.subr.bf16.mxu1 %v6977_v36 }
 0x57b   : > { %6908 = vmatpush1.bf16.msra.mxu0 %v6907_v23  ;;  %v6983_v23 = vpack.c.bf16 %v2761_v22, %v2757_v7  ;;  %v6993_v7 = vpack.c.bf16 %v2660_v40, %v2656_v39  ;;  %v2659_v22 = vld [vmem:[#allocation12 + $0x4b0] sm:$0xff]  ;;  %v2728_v40 = vld [vmem:[#allocation12 + $0x6d8] sm:$0xff] }
 0x57c   : > { %6910 = vmatprep.subr.bf16.mxu0 %v6909_v44  ;;  %v2640_v44 = vld [vmem:[#allocation12 + $0x418] sm:$0xff]  ;;  %v2723_v39 = vld [vmem:[#allocation12 + $0x6b0] sm:$0xff] }
 0x57d   : > { %6980 = vmatpush1.bf16.msra.mxu1 %v6979_v25  ;;  %v6985_v46 = vpack.c.bf16 %v2644_v45, %v2640_v44  ;;  %v2664_v44 = vld [vmem:[#allocation12 + $0x4d8] sm:$0xff] }
 0x57e   : > { %6982 = vmatprep.subr.bf16.mxu1 %v6981_v8  ;;  %v2655_v8 = vld [vmem:[#allocation12 + $0x490] sm:$0xff]  ;;  %v2668_v45 = vld [vmem:[#allocation12 + $0x4f8] sm:$0xff] }
 0x57f   : > { %6912 = vmatpush1.bf16.msra.mxu0 %v6911_v50  ;;  %v9913_v50 = vsub.s32 1, %v9774_v43 }
 0x580   : > { %6914 = vmatprep.subr.bf16.mxu0 %v6913_v51  ;;  %v2451_v51 = vld [vmem:[#allocation31] sm:$0x3] }
 0x581   : > { %6984 = vmatpush1.bf16.msra.mxu1 %v6983_v23  ;;  %v2440_v53 = vrot.slane %v2431_v41, %v9913_v50  ;;  %v2456_v54 = vrot.slane %v2451_v51, %v9910_v47  ;;  %v6997_v41 = vpack.c.bf16 %v2668_v45, %v2664_v44  ;;  %v2736_v44 = vld [vmem:[#allocation12 + $0x718] sm:$0xff] }
 0x582   : > { %6986 = vmatprep.subr.bf16.mxu1 %v6985_v46  ;;  %v6995_v46 = vpack.c.bf16 %v2659_v22, %v2655_v8  ;;  %v2727_v8 = vld [vmem:[#allocation12 + $0x6d0] sm:$0xff]  ;;  %v2740_v45 = vld [vmem:[#allocation12 + $0x738] sm:$0xff] }
 0x583   : > { %6916 = vmatpush1.bf16.msra.mxu0 %v6915_v55  ;;  %v2460_v55 = vrot.slane %v2451_v51, %v9913_v50  ;;  %v2663_v51 = vld [vmem:[#allocation12 + $0x4d0] sm:$0xff] }
 0x584   : > { %6918 = vmatprep.subr.bf16.mxu0 %v6917_v20  ;;  %v2731_v22 = vld [vmem:[#allocation12 + $0x6f0] sm:$0xff] }
 0x587   : > { %6920 = vmatpush1.bf16.msra.mxu0 %v6919_v56 }
 0x58a   : > { %2415 = vmatmul.mubr.f32.vlgmr.msra.gmra.mrb[4].mxu0 %v2345_v59 }
 0x58b   : > { %2420 = vmatprep.mubr.f32.mxu0 %v9889_v33 }
 0x58e   : > { %2421 = vmatmul.mubr.f32.gmra.mrb[6].mxu0 %v2347_v29 }
 0x65d   : > { %v2416_v48 = vpop.f32.mrb[4].mxu0 }
 0x65e   : > { %v2443_v20 = vadd.f32 %v2436_v52, %v2416_v48  ;;  %v2418_v37 = vpop.f32.mrb[5].mxu0 }
 0x65f   : > { %v2444_v49 = vadd.f32 %v2440_v53, %v2418_v37  ;;  %v2675_v37 = vld [vmem:[#allocation12 + $0x530] sm:$0xff] }
 0x660   : > { %vm2447_vm8 = vcmp.ge.f32.partialorder %v2443_v20, 0.0  ;;  %v2463_v42 = vmul.f32 %v2456_v54, %v2443_v20 }
 0x661   : > { %vm2448_vm9 = vcmp.ge.f32.partialorder %v2444_v49, 0.0  ;;  %v2464_v56 = vmul.f32 %v2460_v55, %v2444_v49  ;;  %v2422_v57 = vpop.f32.mrb[6].mxu0 }
 0x662   : > { %v2467_v58 = vsel %vm2447_vm8, %v2443_v20, %v2463_v42  ;;  %v2445_v21 = vadd.f32 %v2436_v52, %v2422_v57  ;;  %v2424_v59 = vpop.f32.mrb[7].mxu0  ;;  %v2667_v52 = vld [vmem:[#allocation12 + $0x4f0] sm:$0xff]  ;;  %v2684_v42 = vld [vmem:[#allocation12 + $0x578] sm:$0xff] }
 0x663   : > { %v2475_v60 = vrot.slane %v2467_v58, 7  ;;  %v2468_v29 = vsel %vm2448_vm9, %v2444_v49, %v2464_v56  ;;  %v2446_v24 = vadd.f32 %v2440_v53, %v2424_v59  ;;  %v2672_v53 = vld [vmem:[#allocation12 + $0x518] sm:$0xff]  ;;  %v6999_v48 = vpack.c.bf16 %v2667_v52, %v2663_v51  ;;  %v2671_v20 = vld [vmem:[#allocation12 + $0x510] sm:$0xff] }
 0x664   : > { %v2476_v27 = vrot.slane %v2468_v29, 7  ;;  %vm2449_vm13 = vcmp.ge.f32.partialorder %v2445_v21, 0.0  ;;  %v2465_v61 = vmul.f32 %v2456_v54, %v2445_v21  ;;  %v2676_v54 = vld [vmem:[#allocation12 + $0x538] sm:$0xff]  ;;  %v7003_v56 = vpack.c.bf16 %v2675_v37, %v2671_v20  ;;  %v2679_v58 = vld [vmem:[#allocation12 + $0x550] sm:$0xff] }
 0x665   : > { %2487 = vst [vmem:[#allocation3] sm:$0xfe] %v2475_v60  ;;  %vm2450_vm3 = vcmp.ge.f32.partialorder %v2446_v24, 0.0  ;;  %v2466_v0 = vmul.f32 %v2460_v55, %v2446_v24  ;;  %v7001_v55 = vpack.c.bf16 %v2676_v54, %v2672_v53  ;;  %v2680_v49 = vld [vmem:[#allocation12 + $0x558] sm:$0xff]  ;;  %v2735_v51 = vld [vmem:[#allocation12 + $0x710] sm:$0xff]  ;;  %vm4026_vm9 = vcmp.lt.s32.totalorder %v1837_v32, 512 }
 0x666   : > { %2488 = vst [vmem:[#allocation3 + $0x8] sm:$0xfe] %v2476_v27  ;;  %v2469_v62 = vsel %vm2449_vm13, %v2445_v21, %v2465_v61  ;;  %v7005_v57 = vpack.c.bf16 %v2684_v42, %v2680_v49  ;;  %v2683_v21 = vld [vmem:[#allocation12 + $0x570] sm:$0xff]  ;;  %v2688_v59 = vld [vmem:[#allocation12 + $0x598] sm:$0xff] }
 0x667   : > { %v2477_v63 = vrot.slane %v2469_v62, 7  ;;  %v2470_v3 = vsel %vm2450_vm3, %v2446_v24, %v2466_v0  ;;  %v7007_v29 = vpack.c.bf16 %v2683_v21, %v2679_v58  ;;  %v2691_v61 = vld [vmem:[#allocation12 + $0x5b0] sm:$0xff]  ;;  %v2696_v0 = vld [vmem:[#allocation12 + $0x5d8] sm:$0xff] }
 0x668   : > { %v2479_v4 = vrot.slane %v2470_v3, 7  ;;  %v2700_v62 = vld [vmem:[#allocation12 + $0x5f8] sm:$0xff]  ;;  %v2739_v52 = vld [vmem:[#allocation12 + $0x730] sm:$0xff] }
 0x669   : > { %v9920_v16 = vsel %vm1027_vm0, %v2475_v60, %v2477_v63  ;;  %2491 = vst [vmem:[#allocation3 + $0x40] sm:$0x1] %v2477_v63  ;;  %v2692_v60 = vld [vmem:[#allocation12 + $0x5b8] sm:$0xff]  ;;  %v7013_v3 = vpack.c.bf16 %v2700_v62, %v2696_v0  ;;  %v2743_v20 = vld [vmem:[#allocation12 + $0x750] sm:$0xff]  ;;  %v2505_v0 = vld [vmem:[#allocation12 + $0x8] sm:$0xff] }
 0x66a   : > { %2489 = vst [vmem:[#allocation3 + $0x20] sm:$0xff] %v9920_v16  ;;  %v9924_v5 = vsel %vm1027_vm0, %v2476_v27, %v2479_v4  ;;  %2492 = vst [vmem:[#allocation3 + $0x48] sm:$0x1] %v2479_v4  ;;  %v2772_v28 = vrot.slane %v9920_v16, 1  ;;  %v7009_v24 = vpack.c.bf16 %v2692_v60, %v2688_v59  ;;  %v2687_v27 = vld [vmem:[#allocation12 + $0x590] sm:$0xff]  ;;  %v2744_v53 = vld [vmem:[#allocation12 + $0x758] sm:$0xff] }
 0x66b   : > { %2490 = vst [vmem:[#allocation3 + $0x28] sm:$0xff] %v9924_v5  ;;  %v2775_v19 = vrot.slane %v9924_v5, 1  ;;  %v7011_v63 = vpack.c.bf16 %v2691_v61, %v2687_v27  ;;  %v2695_v4 = vld [vmem:[#allocation12 + $0x5d0] sm:$0xff]  ;;  %v2748_v54 = vld [vmem:[#allocation12 + $0x778] sm:$0xff]  ;;  %v2509_v62 = vld [vmem:[#allocation12 + $0x28] sm:$0xff] }
 0x66c   : > { %v2632_v6 = vld [vmem:[#allocation3] sm:$0xfe]  ;;  %4956 = vst.msk [vmem:[#allocation3 + $0x21] ss:$8 sm:$0x3] %vm9902_vm6, %v9889_v33  ;;  %v2747_v37 = vld [vmem:[#allocation12 + $0x770] sm:$0xff] }
 0x66d   : > { %v2633_v14 = vld [vmem:[#allocation3 + $0x8] sm:$0xfe]  ;;  %v2771_v15 = vrot.slane %v2632_v6, 1  ;;  %v2699_v6 = vld [vmem:[#allocation12 + $0x5f0] sm:$0xff]  ;;  %v2752_v49 = vld [vmem:[#allocation12 + $0x798] sm:$0xff] }
 0x66e   : > { %v2774_v18 = vrot.slane %v2633_v14, 1  ;;  %v7015_v14 = vpack.c.bf16 %v2699_v6, %v2695_v4  ;;  %v2756_v42 = vld [vmem:[#allocation12 + $0x7b8] sm:$0xff]  ;;  %v2751_v58 = vld [vmem:[#allocation12 + $0x790] sm:$0xff]  ;;  %v2504_v4 = vld [vmem:[#allocation12] sm:$0xff] }
 0x66f   : > { %v9934_v33 = vsel %vm1089_vm2, %v2771_v15, %v2772_v28  ;;  %v7017_v15 = vpack.c.bf16 %v2708_v11, %v2704_v9  ;;  %v2755_v21 = vld [vmem:[#allocation12 + $0x7b0] sm:$0xff]  ;;  %v2760_v59 = vld [vmem:[#allocation12 + $0x7d8] sm:$0xff]  ;;  %v2508_v6 = vld [vmem:[#allocation12 + $0x20] sm:$0xff] }
 0x670   : > { %v2776_v35 = vsel %vm1089_vm2, %v2774_v18, %v2775_v19  ;;  %v2634_v1 = vld [vmem:[#allocation3 + $0x40] sm:$0x1]  ;;  %v2712_v18 = vld [vmem:[#allocation12 + $0x658] sm:$0xff]  ;;  %v2759_v27 = vld [vmem:[#allocation12 + $0x7d0] sm:$0xff] }
 0x671   : > { %2849 = vmatprep.mubr.f32.mxu1 %v2776_v35  ;;  %v2635_v36 = vld [vmem:[#allocation3 + $0x48] sm:$0x1]  ;;  %v2777_v38 = vrot.slane %v2634_v1, 1  ;;  %v2720_v1 = vld [vmem:[#allocation12 + $0x698] sm:$0xff]  ;;  %v2763_v61 = vld [vmem:[#allocation12 + $0x7f0] sm:$0xff] }
 0x672   : > { %2850 = vmatmul.mubr.f32.vlgmr.msra.gmra.mrb[4].mxu1 %v9934_v33  ;;  %v2779_v25 = vrot.slane %v2635_v36, 1  ;;  %v7025_v36 = vpack.c.bf16 %v2724_v2, %v2720_v1  ;;  %v2764_v60 = vld [vmem:[#allocation12 + $0x7f8] sm:$0xff]  ;;  %v2513_v9 = vld [vmem:[#allocation12 + $0x48] sm:$0xff] }
 0x673   : > { %6988 = vmatpush1.bf16.msra.mxu1 %v6987_v30  ;;  %v9942_v23 = vsel %vm1089_vm2, %v2772_v28, %v2777_v38  ;;  %v7019_v28 = vpack.c.bf16 %v2707_v13, %v2703_v12  ;;  %v2719_v38 = vld [vmem:[#allocation12 + $0x690] sm:$0xff]  ;;  %v2517_v11 = vld [vmem:[#allocation12 + $0x68] sm:$0xff]  ;;  %v2512_v12 = vld [vmem:[#allocation12 + $0x40] sm:$0xff] }
 0x674   : > { %v9938_v34 = vsel %vm1089_vm2, %v2775_v19, %v2779_v25  ;;  %6990 = vmatprep.subr.bf16.mxu1 %v6989_v31  ;;  %v2716_v19 = vld [vmem:[#allocation12 + $0x678] sm:$0xff]  ;;  %v2715_v31 = vld [vmem:[#allocation12 + $0x670] sm:$0xff]  ;;  %v2516_v13 = vld [vmem:[#allocation12 + $0x60] sm:$0xff] }
 0x675   : > { %2855 = vmatprep.mubr.f32.mxu1 %v9938_v34  ;;  %v7021_v30 = vpack.c.bf16 %v2716_v19, %v2712_v18  ;;  %v2732_v25 = vld [vmem:[#allocation12 + $0x6f8] sm:$0xff]  ;;  %v2521_v18 = vld [vmem:[#allocation12 + $0x88] sm:$0xff] }
 0x676   : > { %2856 = vmatmul.mubr.f32.gmra.mrb[6].mxu1 %v9942_v23  ;;  %v2525_v19 = vld [vmem:[#allocation12 + $0xa8] sm:$0xff]  ;;  %v4235_v32 = vld [vmem:[#allocation13 + $0x5f8] sm:$0xff] }
 0x677   : > { %6992 = vmatpush1.bf16.msra.mxu1 %v6991_v10  ;;  %2926 = vmatprep.mubr.f32.mxu1 %v2776_v35  ;;  %v2711_v35 = vld [vmem:[#allocation12 + $0x650] sm:$0xff]  ;;  %v7027_v10 = vpack.c.bf16 %v2723_v39, %v2719_v38  ;;  %v2529_v1 = vld [vmem:[#allocation12 + $0xc8] sm:$0xff]  ;;  %v2528_v38 = vld [vmem:[#allocation12 + $0xc0] sm:$0xff] }
 0x678   : > { %6994 = vmatprep.subr.bf16.mxu1 %v6993_v7  ;;  %v7023_v17 = vpack.c.bf16 %v2715_v31, %v2711_v35  ;;  %v7029_v7 = vpack.c.bf16 %v2732_v25, %v2728_v40  ;;  %v2520_v35 = vld [vmem:[#allocation12 + $0x80] sm:$0xff]  ;;  %v2533_v2 = vld [vmem:[#allocation12 + $0xe8] sm:$0xff] }
 0x679   : > { %v2524_v31 = vld [vmem:[#allocation12 + $0xa0] sm:$0xff]  ;;  %v2537_v39 = vld [vmem:[#allocation12 + $0x108] sm:$0xff] }
 0x67a   : > { %v2541_v40 = vld [vmem:[#allocation12 + $0x128] sm:$0xff] }
 0x67b   : > { %6996 = vmatpush1.bf16.msra.mxu1 %v6995_v46  ;;  %v7031_v46 = vpack.c.bf16 %v2731_v22, %v2727_v8  ;;  %v2540_v8 = vld [vmem:[#allocation12 + $0x120] sm:$0xff]  ;;  %v2545_v22 = vld [vmem:[#allocation12 + $0x148] sm:$0xff] }
 0x67c   : > { %6998 = vmatprep.subr.bf16.mxu1 %v6997_v41  ;;  %v7033_v41 = vpack.c.bf16 %v2740_v45, %v2736_v44 }
 0x67f   : > { %7000 = vmatpush1.bf16.msra.mxu1 %v6999_v48  ;;  %v7035_v48 = vpack.c.bf16 %v2739_v52, %v2735_v51  ;;  %v2553_v51 = vld [vmem:[#allocation12 + $0x188] sm:$0xff] }
 0x680   : > { %7002 = vmatprep.subr.bf16.mxu1 %v7001_v55  ;;  %v7037_v55 = vpack.c.bf16 %v2748_v54, %v2744_v53  ;;  %v2557_v52 = vld [vmem:[#allocation12 + $0x1a8] sm:$0xff] }
 0x681   : > { %v7073_v54 = vpack.c.bf16 %v2557_v52, %v2553_v51 }
 0x683   : > { %7004 = vmatpush1.bf16.msra.mxu1 %v7003_v56  ;;  %v7039_v56 = vpack.c.bf16 %v2747_v37, %v2743_v20  ;;  %v2561_v20 = vld [vmem:[#allocation12 + $0x1c8] sm:$0xff] }
 0x684   : > { %7006 = vmatprep.subr.bf16.mxu1 %v7005_v57  ;;  %v7041_v57 = vpack.c.bf16 %v2756_v42, %v2752_v49  ;;  %v2565_v37 = vld [vmem:[#allocation12 + $0x1e8] sm:$0xff] }
 0x685   : > { %v7077_v42 = vpack.c.bf16 %v2565_v37, %v2561_v20 }
 0x687   : > { %7008 = vmatpush1.bf16.msra.mxu1 %v7007_v29  ;;  %v7043_v29 = vpack.c.bf16 %v2755_v21, %v2751_v58  ;;  %v2569_v58 = vld [vmem:[#allocation12 + $0x208] sm:$0xff] }
 0x688   : > { %7010 = vmatprep.subr.bf16.mxu1 %v7009_v24  ;;  %v7045_v24 = vpack.c.bf16 %v2764_v60, %v2760_v59  ;;  %v2573_v21 = vld [vmem:[#allocation12 + $0x228] sm:$0xff] }
 0x689   : > { %v7081_v60 = vpack.c.bf16 %v2573_v21, %v2569_v58 }
 0x68b   : > { %7012 = vmatpush1.bf16.msra.mxu1 %v7011_v63  ;;  %v7047_v63 = vpack.c.bf16 %v2763_v61, %v2759_v27  ;;  %v2577_v27 = vld [vmem:[#allocation12 + $0x248] sm:$0xff] }
 0x68c   : > { %7014 = vmatprep.subr.bf16.mxu1 %v7013_v3  ;;  %v7049_v3 = vpack.c.bf16 %v2509_v62, %v2505_v0  ;;  %v2581_v61 = vld [vmem:[#allocation12 + $0x268] sm:$0xff] }
 0x68d   : > { %v7085_v62 = vpack.c.bf16 %v2581_v61, %v2577_v27  ;;  %v2527_v27 = vld [vmem:[#allocation12 + $0xb8] sm:$0xff] }
 0x68f   : > { %7016 = vmatpush1.bf16.msra.mxu1 %v7015_v14  ;;  %v7051_v14 = vpack.c.bf16 %v2508_v6, %v2504_v4  ;;  %v2585_v4 = vld [vmem:[#allocation12 + $0x288] sm:$0xff] }
 0x690   : > { %7018 = vmatprep.subr.bf16.mxu1 %v7017_v15  ;;  %v7053_v15 = vpack.c.bf16 %v2517_v11, %v2513_v9  ;;  %v2589_v6 = vld [vmem:[#allocation12 + $0x2a8] sm:$0xff] }
 0x691   : > { %v7089_v11 = vpack.c.bf16 %v2589_v6, %v2585_v4  ;;  %v2535_v4 = vld [vmem:[#allocation12 + $0xf8] sm:$0xff] }
 0x693   : > { %7020 = vmatpush1.bf16.msra.mxu1 %v7019_v28  ;;  %v7055_v28 = vpack.c.bf16 %v2516_v13, %v2512_v12  ;;  %v2593_v12 = vld [vmem:[#allocation12 + $0x2c8] sm:$0xff] }
 0x694   : > { %7022 = vmatprep.subr.bf16.mxu1 %v7021_v30  ;;  %v7057_v30 = vpack.c.bf16 %v2525_v19, %v2521_v18  ;;  %v2597_v13 = vld [vmem:[#allocation12 + $0x2e8] sm:$0xff] }
 0x695   : > { %v7093_v19 = vpack.c.bf16 %v2597_v13, %v2593_v12  ;;  %v2543_v12 = vld [vmem:[#allocation12 + $0x138] sm:$0xff] }
 0x697   : > { %7024 = vmatpush1.bf16.msra.mxu1 %v7023_v17  ;;  %v9948_v17 = vld [vmem:[#allocation3 + $0x8] sm:$0xff] }
 0x698   : > { %7026 = vmatprep.subr.bf16.mxu1 %v7025_v36  ;;  %v7059_v36 = vpack.c.bf16 %v2524_v31, %v2520_v35  ;;  %v2601_v35 = vld [vmem:[#allocation12 + $0x308] sm:$0xff] }
 0x699   : > { %v2605_v31 = vld [vmem:[#allocation12 + $0x328] sm:$0xff] }
 0x69b   : > { %7028 = vmatpush1.bf16.msra.mxu1 %v7027_v10  ;;  %v7065_v10 = vpack.c.bf16 %v2541_v40, %v2537_v39 }
 0x69c   : > { %7030 = vmatprep.subr.bf16.mxu1 %v7029_v7  ;;  %v2536_v7 = vld [vmem:[#allocation12 + $0x100] sm:$0xff] }
 0x69d   : > { %v7067_v44 = vpack.c.bf16 %v2540_v8, %v2536_v7  ;;  %v2617_v7 = vld [vmem:[#allocation12 + $0x388] sm:$0xff] }
 0x69e   : > { %v2621_v8 = vld [vmem:[#allocation12 + $0x3a8] sm:$0xff] }
 0x69f   : > { %7032 = vmatpush1.bf16.msra.mxu1 %v7031_v46  ;;  %v2544_v46 = vld [vmem:[#allocation12 + $0x140] sm:$0xff] }
 0x6a0   : > { %7034 = vmatprep.subr.bf16.mxu1 %v7033_v41  ;;  %v2548_v41 = vld [vmem:[#allocation12 + $0x160] sm:$0xff] }
 0x6a1   : > { %v7071_v53 = vpack.c.bf16 %v2548_v41, %v2544_v46  ;;  %v2625_v46 = vld [vmem:[#allocation12 + $0x3c8] sm:$0xff] }
 0x6a2   : > { %v2629_v41 = vld [vmem:[#allocation12 + $0x3e8] sm:$0xff] }
 0x6a3   : > { %7036 = vmatpush1.bf16.msra.mxu1 %v7035_v48  ;;  %v2552_v48 = vld [vmem:[#allocation12 + $0x180] sm:$0xff]  ;;  %v7109_v52 = vpack.c.bf16 %v2629_v41, %v2625_v46 }
 0x6a4   : > { %7038 = vmatprep.subr.bf16.mxu1 %v7037_v55  ;;  %v2556_v55 = vld [vmem:[#allocation12 + $0x1a0] sm:$0xff] }
 0x6a5   : > { %v7075_v49 = vpack.c.bf16 %v2556_v55, %v2552_v48  ;;  %v2507_v48 = vld [vmem:[#allocation12 + $0x18] sm:$0xff] }
 0x6a6   : > { %v2511_v55 = vld [vmem:[#allocation12 + $0x38] sm:$0xff] }
 0x6a7   : > { %7040 = vmatpush1.bf16.msra.mxu1 %v7039_v56  ;;  %v2560_v56 = vld [vmem:[#allocation12 + $0x1c0] sm:$0xff]  ;;  %v7113_v37 = vpack.c.bf16 %v2511_v55, %v2507_v48 }
 0x6a8   : > { %7042 = vmatprep.subr.bf16.mxu1 %v7041_v57  ;;  %v2564_v57 = vld [vmem:[#allocation12 + $0x1e0] sm:$0xff] }
 0x6a9   : > { %v7079_v59 = vpack.c.bf16 %v2564_v57, %v2560_v56  ;;  %v2515_v56 = vld [vmem:[#allocation12 + $0x58] sm:$0xff] }
 0x6aa   : > { %v2519_v57 = vld [vmem:[#allocation12 + $0x78] sm:$0xff] }
 0x6ab   : > { %7044 = vmatpush1.bf16.msra.mxu1 %v7043_v29  ;;  %v2568_v29 = vld [vmem:[#allocation12 + $0x200] sm:$0xff]  ;;  %v7117_v21 = vpack.c.bf16 %v2519_v57, %v2515_v56 }
 0x6ac   : > { %7046 = vmatprep.subr.bf16.mxu1 %v7045_v24  ;;  %v2572_v24 = vld [vmem:[#allocation12 + $0x220] sm:$0xff] }
 0x6ad   : > { %v7083_v0 = vpack.c.bf16 %v2572_v24, %v2568_v29  ;;  %v9951_v29 = vld [vmem:[#allocation3] sm:$0xff]  ;;  %v2523_v24 = vld [vmem:[#allocation12 + $0x98] sm:$0xff] }
 0x6af   : > { %7048 = vmatpush1.bf16.msra.mxu1 %v7047_v63  ;;  %v2576_v63 = vld [vmem:[#allocation12 + $0x240] sm:$0xff] }
 0x6b0   : > { %7050 = vmatprep.subr.bf16.mxu1 %v7049_v3  ;;  %v2580_v3 = vld [vmem:[#allocation12 + $0x260] sm:$0xff] }
 0x6b1   : > { %v7087_v9 = vpack.c.bf16 %v2580_v3, %v2576_v63  ;;  %v2526_v63 = vld [vmem:[#allocation12 + $0xb0] sm:$0xff]  ;;  %v2531_v3 = vld [vmem:[#allocation12 + $0xd8] sm:$0xff] }
 0x6b2   : > { %2927 = vmatmul.mubr.f32.vlgmr.msra.gmra.mrb[8].mxu1 %v9934_v33  ;;  %v7061_v33 = vpack.c.bf16 %v2533_v2, %v2529_v1  ;;  %v7097_v2 = vpack.c.bf16 %v2605_v31, %v2601_v35  ;;  %v2551_v35 = vld [vmem:[#allocation12 + $0x178] sm:$0xff] }
 0x6b3   : > { %2932 = vmatprep.mubr.f32.mxu1 %v9938_v34  ;;  %7052 = vmatpush1.bf16.msra.mxu1 %v7051_v14  ;;  %v2532_v34 = vld [vmem:[#allocation12 + $0xe0] sm:$0xff] }
 0x6b4   : > { %7054 = vmatprep.subr.bf16.mxu1 %v7053_v15  ;;  %v7063_v25 = vpack.c.bf16 %v2532_v34, %v2528_v38  ;;  %v2584_v14 = vld [vmem:[#allocation12 + $0x280] sm:$0xff]  ;;  %v2609_v38 = vld [vmem:[#allocation12 + $0x348] sm:$0xff] }
 0x6b5   : > { %v2588_v15 = vld [vmem:[#allocation12 + $0x2a0] sm:$0xff]  ;;  %v2613_v34 = vld [vmem:[#allocation12 + $0x368] sm:$0xff] }
 0x6b6   : > { %2933 = vmatmul.mubr.f32.gmra.mrb[10].mxu1 %v9942_v23  ;;  %v2549_v23 = vld [vmem:[#allocation12 + $0x168] sm:$0xff]  ;;  %v7091_v18 = vpack.c.bf16 %v2588_v15, %v2584_v14  ;;  %v7101_v40 = vpack.c.bf16 %v2613_v34, %v2609_v38  ;;  %v2534_v14 = vld [vmem:[#allocation12 + $0xf0] sm:$0xff]  ;;  %v2539_v15 = vld [vmem:[#allocation12 + $0x118] sm:$0xff] }
 0x6b7   : > { %7056 = vmatpush1.bf16.msra.mxu1 %v7055_v28  ;;  %3003 = vmatprep.mubr.f32.mxu1 %v9948_v17  ;;  %v7069_v45 = vpack.c.bf16 %v2549_v23, %v2545_v22  ;;  %v2592_v28 = vld [vmem:[#allocation12 + $0x2c0] sm:$0xff]  ;;  %v7105_v23 = vpack.c.bf16 %v2621_v8, %v2617_v7 }
 0x6b8   : > { %7058 = vmatprep.subr.bf16.mxu1 %v7057_v30  ;;  %v2596_v30 = vld [vmem:[#allocation12 + $0x2e0] sm:$0xff] }
 0x6b9   : > { %v7095_v1 = vpack.c.bf16 %v2596_v30, %v2592_v28  ;;  %v2542_v28 = vld [vmem:[#allocation12 + $0x130] sm:$0xff]  ;;  %v2547_v30 = vld [vmem:[#allocation12 + $0x158] sm:$0xff] }
 0x6bb   : > { %7060 = vmatpush1.bf16.msra.mxu1 %v7059_v36  ;;  %v2600_v36 = vld [vmem:[#allocation12 + $0x300] sm:$0xff] }
 0x6bc   : > { %7062 = vmatprep.subr.bf16.mxu1 %v7061_v33  ;;  %v2604_v33 = vld [vmem:[#allocation12 + $0x320] sm:$0xff] }
 0x6bd   : > { %v7099_v39 = vpack.c.bf16 %v2604_v33, %v2600_v36  ;;  %v2555_v36 = vld [vmem:[#allocation12 + $0x198] sm:$0xff] }
 0x6be   : > { %v2559_v33 = vld [vmem:[#allocation12 + $0x1b8] sm:$0xff] }
 0x6bf   : > { %7064 = vmatpush1.bf16.msra.mxu1 %v7063_v25  ;;  %v2608_v25 = vld [vmem:[#allocation12 + $0x340] sm:$0xff]  ;;  %v7137_v34 = vpack.c.bf16 %v2559_v33, %v2555_v36 }
 0x6c0   : > { %7066 = vmatprep.subr.bf16.mxu1 %v7065_v10  ;;  %v2612_v10 = vld [vmem:[#allocation12 + $0x360] sm:$0xff] }
 0x6c1   : > { %v7103_v22 = vpack.c.bf16 %v2612_v10, %v2608_v25  ;;  %v2563_v25 = vld [vmem:[#allocation12 + $0x1d8] sm:$0xff] }
 0x6c2   : > { %v2567_v10 = vld [vmem:[#allocation12 + $0x1f8] sm:$0xff] }
 0x6c3   : > { %7068 = vmatpush1.bf16.msra.mxu1 %v7067_v44  ;;  %v2616_v44 = vld [vmem:[#allocation12 + $0x380] sm:$0xff]  ;;  %v7141_v8 = vpack.c.bf16 %v2567_v10, %v2563_v25 }
 0x6c4   : > { %7070 = vmatprep.subr.bf16.mxu1 %v7069_v45  ;;  %v2620_v45 = vld [vmem:[#allocation12 + $0x3a0] sm:$0xff] }
 0x6c5   : > { %v7107_v51 = vpack.c.bf16 %v2620_v45, %v2616_v44  ;;  %v2571_v44 = vld [vmem:[#allocation12 + $0x218] sm:$0xff] }
 0x6c6   : > { %v2575_v45 = vld [vmem:[#allocation12 + $0x238] sm:$0xff] }
 0x6c7   : > { %7072 = vmatpush1.bf16.msra.mxu1 %v7071_v53  ;;  %v2624_v53 = vld [vmem:[#allocation12 + $0x3c0] sm:$0xff]  ;;  %v7145_v41 = vpack.c.bf16 %v2575_v45, %v2571_v44  ;;  %v3094_v45 = vld [vmem:[#allocation3 + $0x8] sm:$0xfc] }
 0x6c8   : > { %7074 = vmatprep.subr.bf16.mxu1 %v7073_v54  ;;  %v2628_v54 = vld [vmem:[#allocation12 + $0x3e0] sm:$0xff] }
 0x6c9   : > { %v7111_v20 = vpack.c.bf16 %v2628_v54, %v2624_v53  ;;  %v2579_v53 = vld [vmem:[#allocation12 + $0x258] sm:$0xff] }
 0x6ca   : > { %v2583_v54 = vld [vmem:[#allocation12 + $0x278] sm:$0xff] }
 0x6cb   : > { %7076 = vmatpush1.bf16.msra.mxu1 %v7075_v49  ;;  %v2506_v49 = vld [vmem:[#allocation12 + $0x10] sm:$0xff]  ;;  %v7149_v55 = vpack.c.bf16 %v2583_v54, %v2579_v53  ;;  %v3119_v53 = vld [vmem:[#allocation12 + $0x8a8] sm:$0xff]  ;;  %v3233_v54 = vrot.slane %v3094_v45, 2 }
 0x6cc   : > { %7078 = vmatprep.subr.bf16.mxu1 %v7077_v42  ;;  %v2510_v42 = vld [vmem:[#allocation12 + $0x30] sm:$0xff] }
 0x6cd   : > { %v7115_v58 = vpack.c.bf16 %v2510_v42, %v2506_v49  ;;  %v2587_v49 = vld [vmem:[#allocation12 + $0x298] sm:$0xff] }
 0x6ce   : > { %v2591_v42 = vld [vmem:[#allocation12 + $0x2b8] sm:$0xff] }
 0x6cf   : > { %7080 = vmatpush1.bf16.msra.mxu1 %v7079_v59  ;;  %v2514_v59 = vld [vmem:[#allocation12 + $0x50] sm:$0xff]  ;;  %v7153_v57 = vpack.c.bf16 %v2591_v42, %v2587_v49  ;;  %v3118_v49 = vld [vmem:[#allocation12 + $0x8a0] sm:$0xff]  ;;  %v3123_v42 = vld [vmem:[#allocation12 + $0x8c8] sm:$0xff] }
 0x6d0   : > { %7082 = vmatprep.subr.bf16.mxu1 %v7081_v60  ;;  %v2518_v60 = vld [vmem:[#allocation12 + $0x70] sm:$0xff] }
 0x6d1   : > { %v7119_v61 = vpack.c.bf16 %v2518_v60, %v2514_v59  ;;  %v2595_v59 = vld [vmem:[#allocation12 + $0x2d8] sm:$0xff] }
 0x6d2   : > { %v2599_v60 = vld [vmem:[#allocation12 + $0x2f8] sm:$0xff] }
 0x6d3   : > { %7084 = vmatpush1.bf16.msra.mxu1 %v7083_v0  ;;  %v7121_v0 = vpack.c.bf16 %v2527_v27, %v2523_v24  ;;  %v7157_v27 = vpack.c.bf16 %v2599_v60, %v2595_v59  ;;  %v3126_v59 = vld [vmem:[#allocation12 + $0x8e0] sm:$0xff]  ;;  %v3131_v60 = vld [vmem:[#allocation12 + $0x908] sm:$0xff] }
 0x6d4   : > { %7086 = vmatprep.subr.bf16.mxu1 %v7085_v62  ;;  %v2522_v62 = vld [vmem:[#allocation12 + $0x90] sm:$0xff] }
 0x6d5   : > { %v7123_v6 = vpack.c.bf16 %v2526_v63, %v2522_v62  ;;  %v2603_v62 = vld [vmem:[#allocation12 + $0x318] sm:$0xff] }
 0x6d6   : > { %v2607_v63 = vld [vmem:[#allocation12 + $0x338] sm:$0xff] }
 0x6d7   : > { %7088 = vmatpush1.bf16.msra.mxu1 %v7087_v9  ;;  %v7125_v9 = vpack.c.bf16 %v2535_v4, %v2531_v3  ;;  %v7161_v4 = vpack.c.bf16 %v2607_v63, %v2603_v62  ;;  %v3134_v62 = vld [vmem:[#allocation12 + $0x920] sm:$0xff]  ;;  %v3139_v63 = vld [vmem:[#allocation12 + $0x948] sm:$0xff] }
 0x6d8   : > { %7090 = vmatprep.subr.bf16.mxu1 %v7089_v11  ;;  %v2530_v11 = vld [vmem:[#allocation12 + $0xd0] sm:$0xff] }
 0x6d9   : > { %v7127_v13 = vpack.c.bf16 %v2534_v14, %v2530_v11  ;;  %v2611_v11 = vld [vmem:[#allocation12 + $0x358] sm:$0xff] }
 0x6da   : > { %v2615_v14 = vld [vmem:[#allocation12 + $0x378] sm:$0xff] }
 0x6db   : > { %7092 = vmatpush1.bf16.msra.mxu1 %v7091_v18  ;;  %v7129_v18 = vpack.c.bf16 %v2543_v12, %v2539_v15  ;;  %v7165_v12 = vpack.c.bf16 %v2615_v14, %v2611_v11  ;;  %v3142_v11 = vld [vmem:[#allocation12 + $0x960] sm:$0xff]  ;;  %v3147_v14 = vld [vmem:[#allocation12 + $0x988] sm:$0xff] }
 0x6dc   : > { %7094 = vmatprep.subr.bf16.mxu1 %v7093_v19  ;;  %v2538_v19 = vld [vmem:[#allocation12 + $0x110] sm:$0xff] }
 0x6dd   : > { %v7131_v31 = vpack.c.bf16 %v2542_v28, %v2538_v19  ;;  %v2619_v19 = vld [vmem:[#allocation12 + $0x398] sm:$0xff] }
 0x6de   : > { %v2623_v28 = vld [vmem:[#allocation12 + $0x3b8] sm:$0xff] }
 0x6df   : > { %7096 = vmatpush1.bf16.msra.mxu1 %v7095_v1  ;;  %v7133_v1 = vpack.c.bf16 %v2551_v35, %v2547_v30  ;;  %v7169_v35 = vpack.c.bf16 %v2623_v28, %v2619_v19  ;;  %v3150_v19 = vld [vmem:[#allocation12 + $0x9a0] sm:$0xff]  ;;  %v3155_v28 = vld [vmem:[#allocation12 + $0x9c8] sm:$0xff] }
 0x6e0   : > { %7098 = vmatprep.subr.bf16.mxu1 %v7097_v2  ;;  %v2550_v2 = vld [vmem:[#allocation12 + $0x170] sm:$0xff] }
 0x6e3   : > { %7100 = vmatpush1.bf16.msra.mxu1 %v7099_v39  ;;  %v2554_v39 = vld [vmem:[#allocation12 + $0x190] sm:$0xff] }
 0x6e4   : > { %7102 = vmatprep.subr.bf16.mxu1 %v7101_v40  ;;  %v2558_v40 = vld [vmem:[#allocation12 + $0x1b0] sm:$0xff] }
 0x6e5   : > { %v7139_v7 = vpack.c.bf16 %v2558_v40, %v2554_v39  ;;  %v3099_v39 = vld [vmem:[#allocation12 + $0x808] sm:$0xff] }
 0x6e6   : > { %v3103_v40 = vld [vmem:[#allocation12 + $0x828] sm:$0xff] }
 0x6e7   : > { %7104 = vmatpush1.bf16.msra.mxu1 %v7103_v22  ;;  %v2562_v22 = vld [vmem:[#allocation12 + $0x1d0] sm:$0xff]  ;;  %v7177_v10 = vpack.c.bf16 %v3103_v40, %v3099_v39  ;;  %v3166_v39 = vld [vmem:[#allocation12 + $0xa20] sm:$0xff]  ;;  %v3171_v40 = vld [vmem:[#allocation12 + $0xa48] sm:$0xff] }
 0x6e8   : > { %7106 = vmatprep.subr.bf16.mxu1 %v7105_v23  ;;  %v2566_v23 = vld [vmem:[#allocation12 + $0x1f0] sm:$0xff] }
 0x6e9   : > { %v7143_v46 = vpack.c.bf16 %v2566_v23, %v2562_v22  ;;  %v3107_v22 = vld [vmem:[#allocation12 + $0x848] sm:$0xff] }
 0x6ea   : > { %v3111_v23 = vld [vmem:[#allocation12 + $0x868] sm:$0xff] }
 0x6eb   : > { %7108 = vmatpush1.bf16.msra.mxu1 %v7107_v51  ;;  %v2570_v51 = vld [vmem:[#allocation12 + $0x210] sm:$0xff] }
 0x6ec   : > { %7110 = vmatprep.subr.bf16.mxu1 %v7109_v52  ;;  %v2574_v52 = vld [vmem:[#allocation12 + $0x230] sm:$0xff] }
 0x6ed   : > { %v7147_v48 = vpack.c.bf16 %v2574_v52, %v2570_v51  ;;  %v3110_v51 = vld [vmem:[#allocation12 + $0x860] sm:$0xff]  ;;  %v3115_v52 = vld [vmem:[#allocation12 + $0x888] sm:$0xff] }
 0x6ef   : > { %7112 = vmatpush1.bf16.msra.mxu1 %v7111_v20  ;;  %v2578_v20 = vld [vmem:[#allocation12 + $0x250] sm:$0xff] }
 0x6f0   : > { %7114 = vmatprep.subr.bf16.mxu1 %v7113_v37  ;;  %v2582_v37 = vld [vmem:[#allocation12 + $0x270] sm:$0xff] }
 0x6f1   : > { %v7151_v56 = vpack.c.bf16 %v2582_v37, %v2578_v20  ;;  %v7185_v20 = vpack.c.bf16 %v3119_v53, %v3115_v52  ;;  %v3114_v37 = vld [vmem:[#allocation12 + $0x880] sm:$0xff]  ;;  %v3187_v52 = vld [vmem:[#allocation12 + $0xac8] sm:$0xff] }
 0x6f2   : > { %3004 = vmatmul.mubr.f32.vlgmr.msra.gmra.mrb[4].mxu1 %v9951_v29  ;;  %v3191_v53 = vld [vmem:[#allocation12 + $0xae8] sm:$0xff] }
 0x6f3   : > { %3009 = vmatprep.mubr.f32.mxu1 %v9924_v5  ;;  %7116 = vmatpush1.bf16.msra.mxu1 %v7115_v58  ;;  %v2586_v58 = vld [vmem:[#allocation12 + $0x290] sm:$0xff] }
 0x6f4   : > { %7118 = vmatprep.subr.bf16.mxu1 %v7117_v21  ;;  %v2590_v21 = vld [vmem:[#allocation12 + $0x2b0] sm:$0xff] }
 0x6f5   : > { %v7155_v24 = vpack.c.bf16 %v2590_v21, %v2586_v58  ;;  %v3122_v21 = vld [vmem:[#allocation12 + $0x8c0] sm:$0xff] }
 0x6f6   : > { %3010 = vmatmul.mubr.f32.gmra.mrb[6].mxu1 %v9920_v16 }
 0x6f7   : > { %7120 = vmatpush1.bf16.msra.mxu1 %v7119_v61  ;;  %3080 = vmatprep.mubr.f32.mxu1 %v9948_v17  ;;  %v2546_v17 = vld [vmem:[#allocation12 + $0x150] sm:$0xff] }
 0x6f8   : > { %7122 = vmatprep.subr.bf16.mxu1 %v7121_v0  ;;  %v7135_v38 = vpack.c.bf16 %v2550_v2, %v2546_v17  ;;  %v2594_v61 = vld [vmem:[#allocation12 + $0x2d0] sm:$0xff]  ;;  %v2627_v17 = vld [vmem:[#allocation12 + $0x3d8] sm:$0xff] }
 0x6f9   : > { %v2598_v0 = vld [vmem:[#allocation12 + $0x2f0] sm:$0xff]  ;;  %v2631_v2 = vld [vmem:[#allocation12 + $0x3f8] sm:$0xff] }
 0x6fa   : > { %v7159_v3 = vpack.c.bf16 %v2598_v0, %v2594_v61  ;;  %v7173_v33 = vpack.c.bf16 %v2631_v2, %v2627_v17  ;;  %v3130_v0 = vld [vmem:[#allocation12 + $0x900] sm:$0xff]  ;;  %v3163_v2 = vld [vmem:[#allocation12 + $0xa08] sm:$0xff] }
 0x6fb   : > { %7124 = vmatpush1.bf16.msra.mxu1 %v7123_v6  ;;  %v2602_v6 = vld [vmem:[#allocation12 + $0x310] sm:$0xff]  ;;  %v3158_v17 = vld [vmem:[#allocation12 + $0x9e0] sm:$0xff] }
 0x6fc   : > { %7126 = vmatprep.subr.bf16.mxu1 %v7125_v9  ;;  %v2606_v9 = vld [vmem:[#allocation12 + $0x330] sm:$0xff] }
 0x6fd   : > { %v7163_v15 = vpack.c.bf16 %v2606_v9, %v2602_v6  ;;  %v3138_v9 = vld [vmem:[#allocation12 + $0x940] sm:$0xff] }
 0x6ff   : > { %7128 = vmatpush1.bf16.msra.mxu1 %v7127_v13  ;;  %v2610_v13 = vld [vmem:[#allocation12 + $0x350] sm:$0xff] }
 0x700   : > { %7130 = vmatprep.subr.bf16.mxu1 %v7129_v18  ;;  %v2614_v18 = vld [vmem:[#allocation12 + $0x370] sm:$0xff] }
 0x701   : > { %v7167_v30 = vpack.c.bf16 %v2614_v18, %v2610_v13  ;;  %v3146_v18 = vld [vmem:[#allocation12 + $0x980] sm:$0xff] }
 0x703   : > { %7132 = vmatpush1.bf16.msra.mxu1 %v7131_v31  ;;  %v2618_v31 = vld [vmem:[#allocation12 + $0x390] sm:$0xff] }
 0x704   : > { %7134 = vmatprep.subr.bf16.mxu1 %v7133_v1  ;;  %v2622_v1 = vld [vmem:[#allocation12 + $0x3b0] sm:$0xff] }
 0x705   : > { %v7171_v36 = vpack.c.bf16 %v2622_v1, %v2618_v31  ;;  %v3154_v1 = vld [vmem:[#allocation12 + $0x9c0] sm:$0xff] }
 0x707   : > { %7136 = vmatpush1.bf16.msra.mxu1 %v7135_v38  ;;  %v2626_v38 = vld [vmem:[#allocation12 + $0x3d0] sm:$0xff] }
 0x708   : > { %7138 = vmatprep.subr.bf16.mxu1 %v7137_v34  ;;  %v2630_v34 = vld [vmem:[#allocation12 + $0x3f0] sm:$0xff] }
 0x709   : > { %v7175_v25 = vpack.c.bf16 %v2630_v34, %v2626_v38  ;;  %v3162_v34 = vld [vmem:[#allocation12 + $0xa00] sm:$0xff] }
 0x70b   : > { %7140 = vmatpush1.bf16.msra.mxu1 %v7139_v7  ;;  %v3098_v7 = vld [vmem:[#allocation12 + $0x800] sm:$0xff] }
 0x70c   : > { %7142 = vmatprep.subr.bf16.mxu1 %v7141_v8  ;;  %v3102_v8 = vld [vmem:[#allocation12 + $0x820] sm:$0xff] }
 0x70d   : > { %v7179_v44 = vpack.c.bf16 %v3102_v8, %v3098_v7  ;;  %v3170_v8 = vld [vmem:[#allocation12 + $0xa40] sm:$0xff] }
 0x70f   : > { %7144 = vmatpush1.bf16.msra.mxu1 %v7143_v46  ;;  %v7181_v46 = vpack.c.bf16 %v3111_v23, %v3107_v22  ;;  %v3174_v22 = vld [vmem:[#allocation12 + $0xa60] sm:$0xff]  ;;  %v3179_v23 = vld [vmem:[#allocation12 + $0xa88] sm:$0xff] }
 0x710   : > { %7146 = vmatprep.subr.bf16.mxu1 %v7145_v41  ;;  %v3106_v41 = vld [vmem:[#allocation12 + $0x840] sm:$0xff]  ;;  %v7215_v45 = vpack.c.bf16 %v3174_v22, %v3170_v8  ;;  %v3112_v8 = vld [vmem:[#allocation12 + $0x870] sm:$0xff] }
 0x713   : > { %7148 = vmatpush1.bf16.msra.mxu1 %v7147_v48  ;;  %v7183_v48 = vpack.c.bf16 %v3110_v51, %v3106_v41  ;;  %v3178_v41 = vld [vmem:[#allocation12 + $0xa80] sm:$0xff] }
 0x714   : > { %7150 = vmatprep.subr.bf16.mxu1 %v7149_v55  ;;  %v3234_v55 = vrot.slane %v9924_v5, 2  ;;  %v3182_v51 = vld [vmem:[#allocation12 + $0xaa0] sm:$0xff] }
 0x717   : > { %7152 = vmatpush1.bf16.msra.mxu1 %v7151_v56  ;;  %v3127_v56 = vld [vmem:[#allocation12 + $0x8e8] sm:$0xff] }
 0x718   : > { %7154 = vmatprep.subr.bf16.mxu1 %v7153_v57  ;;  %v9964_v57 = vsel %vm1294_vm1, %v3233_v54, %v3234_v55  ;;  %v7189_v58 = vpack.c.bf16 %v3127_v56, %v3123_v42  ;;  %v7219_v54 = vpack.c.bf16 %v3182_v51, %v3178_v41  ;;  %v3199_v42 = vld [vmem:[#allocation12 + $0xb28] sm:$0xff]  ;;  %v3116_v51 = vld [vmem:[#allocation12 + $0x890] sm:$0xff] }
 0x71b   : > { %7156 = vmatpush1.bf16.msra.mxu1 %v7155_v24  ;;  %v3135_v24 = vld [vmem:[#allocation12 + $0x928] sm:$0xff] }
 0x71c   : > { %7158 = vmatprep.subr.bf16.mxu1 %v7157_v27  ;;  %v7191_v27 = vpack.c.bf16 %v3126_v59, %v3122_v21  ;;  %v7193_v61 = vpack.c.bf16 %v3135_v24, %v3131_v60  ;;  %v3198_v21 = vld [vmem:[#allocation12 + $0xb20] sm:$0xff]  ;;  %v3203_v59 = vld [vmem:[#allocation12 + $0xb48] sm:$0xff] }
 0x71d   : > { %v3207_v60 = vld [vmem:[#allocation12 + $0xb68] sm:$0xff] }
 0x71f   : > { %7160 = vmatpush1.bf16.msra.mxu1 %v7159_v3  ;;  %v3143_v3 = vld [vmem:[#allocation12 + $0x968] sm:$0xff] }
 0x720   : > { %7162 = vmatprep.subr.bf16.mxu1 %v7161_v4  ;;  %v7195_v4 = vpack.c.bf16 %v3134_v62, %v3130_v0  ;;  %v7197_v6 = vpack.c.bf16 %v3143_v3, %v3139_v63  ;;  %v3206_v0 = vld [vmem:[#allocation12 + $0xb60] sm:$0xff]  ;;  %v3211_v62 = vld [vmem:[#allocation12 + $0xb88] sm:$0xff] }
 0x721   : > { %v3215_v63 = vld [vmem:[#allocation12 + $0xba8] sm:$0xff] }
 0x723   : > { %7164 = vmatpush1.bf16.msra.mxu1 %v7163_v15  ;;  %v3151_v15 = vld [vmem:[#allocation12 + $0x9a8] sm:$0xff] }
 0x724   : > { %7166 = vmatprep.subr.bf16.mxu1 %v7165_v12  ;;  %v7199_v12 = vpack.c.bf16 %v3142_v11, %v3138_v9  ;;  %v7201_v13 = vpack.c.bf16 %v3151_v15, %v3147_v14  ;;  %v3214_v9 = vld [vmem:[#allocation12 + $0xba0] sm:$0xff]  ;;  %v3219_v11 = vld [vmem:[#allocation12 + $0xbc8] sm:$0xff] }
 0x725   : > { %v3223_v14 = vld [vmem:[#allocation12 + $0xbe8] sm:$0xff] }
 0x727   : > { %7168 = vmatpush1.bf16.msra.mxu1 %v7167_v30  ;;  %v3159_v30 = vld [vmem:[#allocation12 + $0x9e8] sm:$0xff] }
 0x728   : > { %7170 = vmatprep.subr.bf16.mxu1 %v7169_v35  ;;  %v7203_v35 = vpack.c.bf16 %v3150_v19, %v3146_v18  ;;  %v7205_v31 = vpack.c.bf16 %v3159_v30, %v3155_v28  ;;  %v3222_v18 = vld [vmem:[#allocation12 + $0xbe0] sm:$0xff]  ;;  %v3101_v19 = vld [vmem:[#allocation12 + $0x818] sm:$0xff] }
 0x729   : > { %v3105_v28 = vld [vmem:[#allocation12 + $0x838] sm:$0xff]  ;;  %v3093_v30 = vld [vmem:[#allocation3] sm:$0xfc] }
 0x72b   : > { %7172 = vmatpush1.bf16.msra.mxu1 %v7171_v36  ;;  %v3167_v36 = vld [vmem:[#allocation12 + $0xa28] sm:$0xff] }
 0x72c   : > { %7174 = vmatprep.subr.bf16.mxu1 %v7173_v33  ;;  %v7207_v33 = vpack.c.bf16 %v3158_v17, %v3154_v1  ;;  %v7209_v38 = vpack.c.bf16 %v3167_v36, %v3163_v2  ;;  %v7241_v1 = vpack.c.bf16 %v3105_v28, %v3101_v19  ;;  %v3100_v17 = vld [vmem:[#allocation12 + $0x810] sm:$0xff]  ;;  %v3230_v36 = vrot.slane %v3093_v30, 2  ;;  %v3169_v19 = vld [vmem:[#allocation12 + $0xa38] sm:$0xff] }
 0x72d   : > { %v3104_v2 = vld [vmem:[#allocation12 + $0x830] sm:$0xff] }
 0x72f   : > { %7176 = vmatpush1.bf16.msra.mxu1 %v7175_v25  ;;  %v3175_v25 = vld [vmem:[#allocation12 + $0xa68] sm:$0xff] }
 0x730   : > { %7178 = vmatprep.subr.bf16.mxu1 %v7177_v10  ;;  %v7211_v10 = vpack.c.bf16 %v3166_v39, %v3162_v34  ;;  %v7213_v7 = vpack.c.bf16 %v3175_v25, %v3171_v40  ;;  %v3095_v39 = vld [vmem:[#allocation3 + $0x40] sm:$0x3]  ;;  %v3231_v40 = vrot.slane %v9920_v16, 2  ;;  %v7243_v25 = vpack.c.bf16 %v3104_v2, %v3100_v17  ;;  %v3177_v17 = vld [vmem:[#allocation12 + $0xa78] sm:$0xff] }
 0x732   : > { %3081 = vmatmul.mubr.f32.vlgmr.msra.gmra.mrb[8].mxu1 %v9951_v29  ;;  %v7187_v29 = vpack.c.bf16 %v3118_v49, %v3114_v37  ;;  %v3190_v37 = vld [vmem:[#allocation12 + $0xae0] sm:$0xff]  ;;  %v3195_v49 = vld [vmem:[#allocation12 + $0xb08] sm:$0xff]  ;;  %v9969_v22 = vsel %vm1294_vm1, %v3230_v36, %v3231_v40 }
 0x733   : > { %3086 = vmatprep.mubr.f32.mxu1 %v9924_v5  ;;  %7180 = vmatpush1.bf16.msra.mxu1 %v7179_v44  ;;  %v3183_v44 = vld [vmem:[#allocation12 + $0xaa8] sm:$0xff] }
 0x734   : > { %7182 = vmatprep.subr.bf16.mxu1 %v7181_v46  ;;  %v7217_v46 = vpack.c.bf16 %v3183_v44, %v3179_v23  ;;  %v3236_v23 = vrot.slane %v3095_v39, 2  ;;  %v3117_v44 = vld [vmem:[#allocation12 + $0x898] sm:$0xff] }
 0x735   : > { %v3185_v39 = vld [vmem:[#allocation12 + $0xab8] sm:$0xff] }
 0x736   : > { %3087 = vmatmul.mubr.f32.gmra.mrb[10].mxu1 %v9920_v16 }
 0x737   : > { %7184 = vmatpush1.bf16.msra.mxu1 %v7183_v48  ;;  %3308 = vmatprep.mubr.f32.mxu1 %v9964_v57  ;;  %v7221_v48 = vpack.c.bf16 %v3191_v53, %v3187_v52  ;;  %v3120_v52 = vld [vmem:[#allocation12 + $0x8b0] sm:$0xff]  ;;  %v9979_v53 = vsel %vm1294_vm1, %v3231_v40, %v3236_v23  ;;  %v3193_v23 = vld [vmem:[#allocation12 + $0xaf8] sm:$0xff] }
 0x738   : > { %7186 = vmatprep.subr.bf16.mxu1 %v7185_v20  ;;  %v3186_v20 = vld [vmem:[#allocation12 + $0xac0] sm:$0xff]  ;;  %v7251_v5 = vpack.c.bf16 %v3120_v52, %v3116_v51  ;;  %v3197_v51 = vld [vmem:[#allocation12 + $0xb18] sm:$0xff] }
 0x739   : > { %v7223_v56 = vpack.c.bf16 %v3190_v37, %v3186_v20  ;;  %v3124_v20 = vld [vmem:[#allocation12 + $0x8d0] sm:$0xff]  ;;  %v3201_v52 = vld [vmem:[#allocation12 + $0xb38] sm:$0xff] }
 0x73a   : > { %v3128_v37 = vld [vmem:[#allocation12 + $0x8f0] sm:$0xff] }
 0x73b   : > { %7188 = vmatpush1.bf16.msra.mxu1 %v7187_v29  ;;  %v7225_v29 = vpack.c.bf16 %v3199_v42, %v3195_v49  ;;  %v3133_v49 = vld [vmem:[#allocation12 + $0x918] sm:$0xff] }
 0x73c   : > { %7190 = vmatprep.subr.bf16.mxu1 %v7189_v58  ;;  %v3194_v58 = vld [vmem:[#allocation12 + $0xb00] sm:$0xff]  ;;  %v3137_v42 = vld [vmem:[#allocation12 + $0x938] sm:$0xff] }
 0x73d   : > { %v7227_v24 = vpack.c.bf16 %v3198_v21, %v3194_v58  ;;  %v3132_v58 = vld [vmem:[#allocation12 + $0x910] sm:$0xff] }
 0x73e   : > { %v3136_v21 = vld [vmem:[#allocation12 + $0x930] sm:$0xff] }
 0x73f   : > { %7192 = vmatpush1.bf16.msra.mxu1 %v7191_v27  ;;  %v7229_v27 = vpack.c.bf16 %v3207_v60, %v3203_v59  ;;  %v3141_v59 = vld [vmem:[#allocation12 + $0x958] sm:$0xff] }
 0x740   : > { %7194 = vmatprep.subr.bf16.mxu1 %v7193_v61  ;;  %v3202_v61 = vld [vmem:[#allocation12 + $0xb40] sm:$0xff]  ;;  %v3145_v60 = vld [vmem:[#allocation12 + $0x978] sm:$0xff] }
 0x741   : > { %v7231_v3 = vpack.c.bf16 %v3206_v0, %v3202_v61  ;;  %v3144_v61 = vld [vmem:[#allocation12 + $0x970] sm:$0xff]  ;;  %v3149_v0 = vld [vmem:[#allocation12 + $0x998] sm:$0xff] }
 0x743   : > { %7196 = vmatpush1.bf16.msra.mxu1 %v7195_v4  ;;  %v7233_v4 = vpack.c.bf16 %v3215_v63, %v3211_v62  ;;  %v3153_v62 = vld [vmem:[#allocation12 + $0x9b8] sm:$0xff] }
 0x744   : > { %7198 = vmatprep.subr.bf16.mxu1 %v7197_v6  ;;  %v3210_v6 = vld [vmem:[#allocation12 + $0xb80] sm:$0xff] }
 0x745   : > { %v7235_v15 = vpack.c.bf16 %v3214_v9, %v3210_v6  ;;  %v3152_v6 = vld [vmem:[#allocation12 + $0x9b0] sm:$0xff]  ;;  %v3157_v9 = vld [vmem:[#allocation12 + $0x9d8] sm:$0xff] }
 0x747   : > { %7200 = vmatpush1.bf16.msra.mxu1 %v7199_v12  ;;  %v7237_v12 = vpack.c.bf16 %v3223_v14, %v3219_v11  ;;  %v3161_v11 = vld [vmem:[#allocation12 + $0x9f8] sm:$0xff] }
 0x748   : > { %7202 = vmatprep.subr.bf16.mxu1 %v7201_v13  ;;  %v3218_v13 = vld [vmem:[#allocation12 + $0xbc0] sm:$0xff] }
 0x74b   : > { %7204 = vmatpush1.bf16.msra.mxu1 %v7203_v35  ;;  %v7239_v35 = vpack.c.bf16 %v3222_v18, %v3218_v13  ;;  %v3160_v13 = vld [vmem:[#allocation12 + $0x9f0] sm:$0xff]  ;;  %v3165_v18 = vld [vmem:[#allocation12 + $0xa18] sm:$0xff] }
 0x74c   : > { %7206 = vmatprep.subr.bf16.mxu1 %v7205_v31  ;;  %v3096_v31 = vld [vmem:[#allocation3 + $0x48] sm:$0x3]  ;;  %v7273_v30 = vpack.c.bf16 %v3169_v19, %v3165_v18 }
 0x74d   : > { %v3238_v34 = vrot.slane %v3096_v31, 2  ;;  %v3168_v31 = vld [vmem:[#allocation12 + $0xa30] sm:$0xff] }
 0x74f   : > { %7208 = vmatpush1.bf16.msra.mxu1 %v7207_v33  ;;  %v3109_v33 = vld [vmem:[#allocation12 + $0x858] sm:$0xff] }
 0x750   : > { %7210 = vmatprep.subr.bf16.mxu1 %v7209_v38  ;;  %v3113_v38 = vld [vmem:[#allocation12 + $0x878] sm:$0xff] }
 0x753   : > { %7212 = vmatpush1.bf16.msra.mxu1 %v7211_v10  ;;  %v7245_v10 = vpack.c.bf16 %v3113_v38, %v3109_v33  ;;  %v3172_v33 = vld [vmem:[#allocation12 + $0xa50] sm:$0xff] }
 0x754   : > { %7214 = vmatprep.subr.bf16.mxu1 %v7213_v7  ;;  %v3108_v7 = vld [vmem:[#allocation12 + $0x850] sm:$0xff] }
 0x755   : > { %v7247_v16 = vpack.c.bf16 %v3112_v8, %v3108_v7  ;;  %v3176_v38 = vld [vmem:[#allocation12 + $0xa70] sm:$0xff]  ;;  %v3189_v8 = vld [vmem:[#allocation12 + $0xad8] sm:$0xff] }
 0x756   : > { %v7279_v40 = vpack.c.bf16 %v3176_v38, %v3172_v33  ;;  %v3184_v7 = vld [vmem:[#allocation12 + $0xab0] sm:$0xff]  ;;  %v4184_v38 = vld [vmem:[#allocation13 + $0x460] sm:$0xff] }
 0x757   : > { %7216 = vmatpush1.bf16.msra.mxu1 %v7215_v45  ;;  %v3121_v45 = vld [vmem:[#allocation12 + $0x8b8] sm:$0xff] }
 0x758   : > { %7218 = vmatprep.subr.bf16.mxu1 %v7217_v46  ;;  %v9975_v46 = vsel %vm1294_vm1, %v3234_v55, %v3238_v34  ;;  %v7249_v41 = vpack.c.bf16 %v3121_v45, %v3117_v44  ;;  %v3181_v34 = vld [vmem:[#allocation12 + $0xa98] sm:$0xff]  ;;  %v7285_v45 = vpack.c.bf16 %v3193_v23, %v3189_v8  ;;  %v4190_v8 = vld [vmem:[#allocation13 + $0x490] sm:$0xff] }
 0x75b   : > { %7220 = vmatpush1.bf16.msra.mxu1 %v7219_v54  ;;  %v3125_v54 = vld [vmem:[#allocation12 + $0x8d8] sm:$0xff] }
 0x75c   : > { %7222 = vmatprep.subr.bf16.mxu1 %v7221_v48  ;;  %v3129_v48 = vld [vmem:[#allocation12 + $0x8f8] sm:$0xff] }
 0x75d   : > { %v7253_v55 = vpack.c.bf16 %v3129_v48, %v3125_v54  ;;  %v7289_v48 = vpack.c.bf16 %v3201_v52, %v3197_v51  ;;  %v4192_v51 = vld [vmem:[#allocation13 + $0x4a0] sm:$0xff]  ;;  %v4194_v52 = vld [vmem:[#allocation13 + $0x4b0] sm:$0xff] }
 0x75f   : > { %7224 = vmatpush1.bf16.msra.mxu1 %v7223_v56  ;;  %v7255_v56 = vpack.c.bf16 %v3128_v37, %v3124_v20  ;;  %v3205_v20 = vld [vmem:[#allocation12 + $0xb58] sm:$0xff] }
 0x760   : > { %7226 = vmatprep.subr.bf16.mxu1 %v7225_v29  ;;  %v7257_v29 = vpack.c.bf16 %v3137_v42, %v3133_v49  ;;  %v3209_v37 = vld [vmem:[#allocation12 + $0xb78] sm:$0xff] }
 0x761   : > { %v7293_v42 = vpack.c.bf16 %v3209_v37, %v3205_v20  ;;  %v4199_v20 = vld [vmem:[#allocation13 + $0x4d8] sm:$0xff] }
 0x763   : > { %7228 = vmatpush1.bf16.msra.mxu1 %v7227_v24  ;;  %v7259_v24 = vpack.c.bf16 %v3136_v21, %v3132_v58  ;;  %v3213_v58 = vld [vmem:[#allocation12 + $0xb98] sm:$0xff] }
 0x764   : > { %7230 = vmatprep.subr.bf16.mxu1 %v7229_v27  ;;  %v7261_v27 = vpack.c.bf16 %v3145_v60, %v3141_v59  ;;  %v3217_v21 = vld [vmem:[#allocation12 + $0xbb8] sm:$0xff] }
 0x765   : > { %v7297_v60 = vpack.c.bf16 %v3217_v21, %v3213_v58 }
 0x767   : > { %7232 = vmatpush1.bf16.msra.mxu1 %v7231_v3  ;;  %v7265_v3 = vpack.c.bf16 %v3153_v62, %v3149_v0 }
 0x768   : > { %7234 = vmatprep.subr.bf16.mxu1 %v7233_v4  ;;  %v3148_v4 = vld [vmem:[#allocation12 + $0x990] sm:$0xff] }
 0x769   : > { %v7267_v14 = vpack.c.bf16 %v3152_v6, %v3148_v4  ;;  %v4173_v6 = vld [vmem:[#allocation13 + $0x408] sm:$0xff] }
 0x76b   : > { %7236 = vmatpush1.bf16.msra.mxu1 %v7235_v15  ;;  %v7269_v15 = vpack.c.bf16 %v3161_v11, %v3157_v9  ;;  %v4175_v9 = vld [vmem:[#allocation13 + $0x418] sm:$0xff]  ;;  %v4172_v11 = vld [vmem:[#allocation13 + $0x400] sm:$0xff] }
 0x76c   : > { %7238 = vmatprep.subr.bf16.mxu1 %v7237_v12  ;;  %v3156_v12 = vld [vmem:[#allocation12 + $0x9d0] sm:$0xff] }
 0x76d   : > { %v7271_v28 = vpack.c.bf16 %v3160_v13, %v3156_v12  ;;  %v4177_v12 = vld [vmem:[#allocation13 + $0x428] sm:$0xff]  ;;  %v4179_v13 = vld [vmem:[#allocation13 + $0x438] sm:$0xff] }
 0x76e   : > { %v7309_v19 = vpack.c.bf16 %v4179_v13, %v4177_v12  ;;  %v4205_v12 = vld [vmem:[#allocation13 + $0x508] sm:$0xff]  ;;  %v4207_v13 = vld [vmem:[#allocation13 + $0x518] sm:$0xff] }
 0x76f   : > { %7240 = vmatpush1.bf16.msra.mxu1 %v7239_v35  ;;  %v3164_v35 = vld [vmem:[#allocation12 + $0xa10] sm:$0xff] }
 0x770   : > { %7242 = vmatprep.subr.bf16.mxu1 %v7241_v1  ;;  %v3173_v1 = vld [vmem:[#allocation12 + $0xa58] sm:$0xff]  ;;  %v7275_v2 = vpack.c.bf16 %v3168_v31, %v3164_v35  ;;  %v4181_v35 = vld [vmem:[#allocation13 + $0x448] sm:$0xff] }
 0x771   : > { %v7277_v36 = vpack.c.bf16 %v3177_v17, %v3173_v1  ;;  %v4183_v31 = vld [vmem:[#allocation13 + $0x458] sm:$0xff]  ;;  %v4180_v1 = vld [vmem:[#allocation13 + $0x440] sm:$0xff]  ;;  %v4185_v17 = vld [vmem:[#allocation13 + $0x468] sm:$0xff] }
 0x772   : > { %3309 = vmatmul.mubr.f32.vlgmr.msra.gmra.mrb[4].mxu1 %v9969_v22 }
 0x773   : > { %3314 = vmatprep.mubr.f32.mxu1 %v9975_v46  ;;  %7244 = vmatpush1.bf16.msra.mxu1 %v7243_v25  ;;  %v7281_v25 = vpack.c.bf16 %v3185_v39, %v3181_v34  ;;  %v4186_v34 = vld [vmem:[#allocation13 + $0x470] sm:$0xff] }
 0x774   : > { %7246 = vmatprep.subr.bf16.mxu1 %v7245_v10  ;;  %v3180_v10 = vld [vmem:[#allocation12 + $0xa90] sm:$0xff]  ;;  %v7319_v39 = vpack.c.bf16 %v4186_v34, %v4184_v38  ;;  %v4208_v34 = vld [vmem:[#allocation13 + $0x520] sm:$0xff] }
 0x775   : > { %v7283_v44 = vpack.c.bf16 %v3184_v7, %v3180_v10  ;;  %v4188_v7 = vld [vmem:[#allocation13 + $0x480] sm:$0xff] }
 0x776   : > { %3315 = vmatmul.mubr.f32.gmra.mrb[6].mxu1 %v9979_v53  ;;  %v7323_v23 = vpack.c.bf16 %v4190_v8, %v4188_v7  ;;  %v4213_v7 = vld [vmem:[#allocation13 + $0x548] sm:$0xff]  ;;  %v4215_v8 = vld [vmem:[#allocation13 + $0x558] sm:$0xff] }
 0x777   : > { %7248 = vmatpush1.bf16.msra.mxu1 %v7247_v16  ;;  %3385 = vmatprep.mubr.f32.mxu1 %v9964_v57  ;;  %v3140_v57 = vld [vmem:[#allocation12 + $0x950] sm:$0xff] }
 0x778   : > { %7250 = vmatprep.subr.bf16.mxu1 %v7249_v41  ;;  %v7263_v63 = vpack.c.bf16 %v3144_v61, %v3140_v57  ;;  %v3188_v16 = vld [vmem:[#allocation12 + $0xad0] sm:$0xff]  ;;  %v3221_v57 = vld [vmem:[#allocation12 + $0xbd8] sm:$0xff] }
 0x779   : > { %v3192_v41 = vld [vmem:[#allocation12 + $0xaf0] sm:$0xff]  ;;  %v3225_v61 = vld [vmem:[#allocation12 + $0xbf8] sm:$0xff] }
 0x77a   : > { %v7287_v54 = vpack.c.bf16 %v3192_v41, %v3188_v16  ;;  %v7301_v62 = vpack.c.bf16 %v3225_v61, %v3221_v57  ;;  %v9986_v41 = vld [vmem:[#allocation22] sm:$0xf]  ;;  %v4203_v57 = vld [vmem:[#allocation13 + $0x4f8] sm:$0xff] }
 0x77b   : > { %7252 = vmatpush1.bf16.msra.mxu1 %v7251_v5  ;;  %v3196_v5 = vld [vmem:[#allocation12 + $0xb10] sm:$0xff]  ;;  %v3415_v37 = vrot.slane %v9986_v41, %v9913_v50 }
 0x77c   : > { %7254 = vmatprep.subr.bf16.mxu1 %v7253_v55  ;;  %v3200_v55 = vld [vmem:[#allocation12 + $0xb30] sm:$0xff] }
 0x77d   : > { %v7291_v49 = vpack.c.bf16 %v3200_v55, %v3196_v5  ;;  %v3411_v5 = vrot.slane %v9986_v41, %v9910_v47  ;;  %v4197_v55 = vld [vmem:[#allocation13 + $0x4c8] sm:$0xff] }
 0x77f   : > { %7256 = vmatpush1.bf16.msra.mxu1 %v7255_v56  ;;  %v3204_v56 = vld [vmem:[#allocation12 + $0xb50] sm:$0xff] }
 0x780   : > { %7258 = vmatprep.subr.bf16.mxu1 %v7257_v29  ;;  %v3208_v29 = vld [vmem:[#allocation12 + $0xb70] sm:$0xff] }
 0x781   : > { %v7295_v59 = vpack.c.bf16 %v3208_v29, %v3204_v56  ;;  %v4198_v56 = vld [vmem:[#allocation13 + $0x4d0] sm:$0xff] }
 0x783   : > { %7260 = vmatpush1.bf16.msra.mxu1 %v7259_v24  ;;  %v3212_v24 = vld [vmem:[#allocation12 + $0xb90] sm:$0xff] }
 0x784   : > { %7262 = vmatprep.subr.bf16.mxu1 %v7261_v27  ;;  %v3216_v27 = vld [vmem:[#allocation12 + $0xbb0] sm:$0xff] }
 0x785   : > { %v7299_v0 = vpack.c.bf16 %v3216_v27, %v3212_v24  ;;  %v4201_v27 = vld [vmem:[#allocation13 + $0x4e8] sm:$0xff] }
 0x787   : > { %7264 = vmatpush1.bf16.msra.mxu1 %v7263_v63  ;;  %v3220_v63 = vld [vmem:[#allocation12 + $0xbd0] sm:$0xff] }
 0x788   : > { %7266 = vmatprep.subr.bf16.mxu1 %v7265_v3  ;;  %v3224_v3 = vld [vmem:[#allocation12 + $0xbf0] sm:$0xff] }
 0x789   : > { %v7303_v4 = vpack.c.bf16 %v3224_v3, %v3220_v63  ;;  %v4202_v63 = vld [vmem:[#allocation13 + $0x4f0] sm:$0xff] }
 0x78b   : > { %7268 = vmatpush1.bf16.msra.mxu1 %v7267_v14  ;;  %v7305_v14 = vpack.c.bf16 %v4175_v9, %v4173_v6 }
 0x78c   : > { %7270 = vmatprep.subr.bf16.mxu1 %v7269_v15  ;;  %v4174_v15 = vld [vmem:[#allocation13 + $0x410] sm:$0xff] }
 0x78d   : > { %v7307_v18 = vpack.c.bf16 %v4174_v15, %v4172_v11  ;;  %7306 = vmatprep.subr.bf16.mxu0 %v7305_v14 }
 0x78f   : > { %7272 = vmatpush1.bf16.msra.mxu1 %v7271_v28  ;;  %v4176_v28 = vld [vmem:[#allocation13 + $0x420] sm:$0xff]  ;;  %7308 = vmatpush1.bf16.msra.mxu0 %v7307_v18 }
 0x790   : > { %7274 = vmatprep.subr.bf16.mxu1 %v7273_v30  ;;  %v4178_v30 = vld [vmem:[#allocation13 + $0x430] sm:$0xff]  ;;  %7310 = vmatprep.subr.bf16.mxu0 %v7309_v19 }
 0x793   : > { %7276 = vmatpush1.bf16.msra.mxu1 %v7275_v2  ;;  %v4187_v2 = vld [vmem:[#allocation13 + $0x478] sm:$0xff] }
 0x794   : > { %7278 = vmatprep.subr.bf16.mxu1 %v7277_v36  ;;  %v7317_v33 = vpack.c.bf16 %v4187_v2, %v4185_v17  ;;  %v4209_v2 = vld [vmem:[#allocation13 + $0x528] sm:$0xff] }
 0x797   : > { %7280 = vmatpush1.bf16.msra.mxu1 %v7279_v40  ;;  %v4189_v40 = vld [vmem:[#allocation13 + $0x488] sm:$0xff] }
 0x798   : > { %7282 = vmatprep.subr.bf16.mxu1 %v7281_v25  ;;  %v4191_v25 = vld [vmem:[#allocation13 + $0x498] sm:$0xff] }
 0x799   : > { %v7321_v10 = vpack.c.bf16 %v4191_v25, %v4189_v40 }
 0x79b   : > { %7284 = vmatpush1.bf16.msra.mxu1 %v7283_v44  ;;  %v4193_v44 = vld [vmem:[#allocation13 + $0x4a8] sm:$0xff] }
 0x79c   : > { %7286 = vmatprep.subr.bf16.mxu1 %v7285_v45  ;;  %v4195_v45 = vld [vmem:[#allocation13 + $0x4b8] sm:$0xff] }
 0x79d   : > { %v7325_v16 = vpack.c.bf16 %v4195_v45, %v4193_v44  ;;  %v4212_v44 = vld [vmem:[#allocation13 + $0x540] sm:$0xff]  ;;  %v4214_v45 = vld [vmem:[#allocation13 + $0x550] sm:$0xff] }
 0x79f   : > { %7288 = vmatpush1.bf16.msra.mxu1 %v7287_v54  ;;  %v7327_v54 = vpack.c.bf16 %v4194_v52, %v4192_v51  ;;  %v4217_v51 = vld [vmem:[#allocation13 + $0x568] sm:$0xff]  ;;  %v4219_v52 = vld [vmem:[#allocation13 + $0x578] sm:$0xff] }
 0x7a0   : > { %7290 = vmatprep.subr.bf16.mxu1 %v7289_v48  ;;  %v9988_v48 = vld [vmem:[#allocation33] sm:$0xf] }
 0x7a1   : > { %v3449_v29 = vrot.slane %v9988_v48, %v9910_v47 }
 0x7a3   : > { %7292 = vmatpush1.bf16.msra.mxu1 %v7291_v49  ;;  %v7329_v49 = vpack.c.bf16 %v4199_v20, %v4197_v55  ;;  %v4218_v55 = vld [vmem:[#allocation13 + $0x570] sm:$0xff] }
 0x7a4   : > { %7294 = vmatprep.subr.bf16.mxu1 %v7293_v42  ;;  %v4196_v42 = vld [vmem:[#allocation13 + $0x4c0] sm:$0xff] }
 0x7a5   : > { %v7331_v58 = vpack.c.bf16 %v4198_v56, %v4196_v42  ;;  %v4220_v56 = vld [vmem:[#allocation13 + $0x580] sm:$0xff] }
 0x7a7   : > { %7296 = vmatpush1.bf16.msra.mxu1 %v7295_v59  ;;  %v3453_v59 = vrot.slane %v9988_v48, %v9913_v50 }
 0x7a8   : > { %7298 = vmatprep.subr.bf16.mxu1 %v7297_v60 }
 0x7ab   : > { %7300 = vmatpush1.bf16.msra.mxu1 %v7299_v0  ;;  %v7333_v0 = vpack.c.bf16 %v4203_v57, %v4201_v27  ;;  %v4224_v27 = vld [vmem:[#allocation13 + $0x5a0] sm:$0xff]  ;;  %v4226_v57 = vld [vmem:[#allocation13 + $0x5b0] sm:$0xff] }
 0x7ac   : > { %7302 = vmatprep.subr.bf16.mxu1 %v7301_v62  ;;  %v4200_v62 = vld [vmem:[#allocation13 + $0x4e0] sm:$0xff] }
 0x7af   : > { %7304 = vmatpush1.bf16.msra.mxu1 %v7303_v4  ;;  %v7335_v4 = vpack.c.bf16 %v4202_v63, %v4200_v62  ;;  %v4231_v62 = vld [vmem:[#allocation13 + $0x5d8] sm:$0xff]  ;;  %v4228_v63 = vld [vmem:[#allocation13 + $0x5c0] sm:$0xff] }
 0x7b2   : > { %3386 = vmatmul.mubr.f32.vlgmr.msra.gmra.mrb[8].mxu1 %v9969_v22  ;;  %v7311_v22 = vpack.c.bf16 %v4178_v30, %v4176_v28  ;;  %v7337_v28 = vpack.c.bf16 %v4207_v13, %v4205_v12  ;;  %v4204_v30 = vld [vmem:[#allocation13 + $0x500] sm:$0xff]  ;;  %v4234_v12 = vld [vmem:[#allocation13 + $0x5f0] sm:$0xff] }
 0x7b3   : > { %3391 = vmatprep.mubr.f32.mxu1 %v9975_v46  ;;  %v7313_v46 = vpack.c.bf16 %v4183_v31, %v4181_v35  ;;  %v4206_v35 = vld [vmem:[#allocation13 + $0x510] sm:$0xff] }
 0x7b4   : > { %7312 = vmatpush1.bf16.msra.mxu0 %v7311_v22 }
 0x7b5   : > { %7314 = vmatprep.subr.bf16.mxu0 %v7313_v46 }
 0x7b6   : > { %3392 = vmatmul.mubr.f32.gmra.mrb[10].mxu1 %v9979_v53  ;;  %v4182_v53 = vld [vmem:[#allocation13 + $0x450] sm:$0xff] }
 0x7b7   : > { %v7315_v36 = vpack.c.bf16 %v4182_v53, %v4180_v1  ;;  %v7339_v53 = vpack.c.bf16 %v4206_v35, %v4204_v30  ;;  %v3418_v35 = vsub.s32 2, %v9774_v43 }
 0x7b9   : > { %7316 = vmatpush1.bf16.msra.mxu0 %v7315_v36  ;;  %v4211_v36 = vld [vmem:[#allocation13 + $0x538] sm:$0xff] }
 0x7ba   : > { %7318 = vmatprep.subr.bf16.mxu0 %v7317_v33  ;;  %v7341_v38 = vpack.c.bf16 %v4211_v36, %v4209_v2  ;;  %v3457_v2 = vrot.slane %v9988_v48, %v3418_v35 }
 0x7bd   : > { %7320 = vmatpush1.bf16.msra.mxu0 %v7319_v39  ;;  %v4210_v39 = vld [vmem:[#allocation13 + $0x530] sm:$0xff] }
 0x7be   : > { %7322 = vmatprep.subr.bf16.mxu0 %v7321_v10  ;;  %v7343_v10 = vpack.c.bf16 %v4210_v39, %v4208_v34 }
 0x7c1   : > { %7324 = vmatpush1.bf16.msra.mxu0 %v7323_v23  ;;  %v7345_v23 = vpack.c.bf16 %v4215_v8, %v4213_v7 }
 0x7c2   : > { %7326 = vmatprep.subr.bf16.mxu0 %v7325_v16  ;;  %v7347_v16 = vpack.c.bf16 %v4214_v45, %v4212_v44 }
 0x7c5   : > { %7328 = vmatpush1.bf16.msra.mxu0 %v7327_v54  ;;  %v7349_v54 = vpack.c.bf16 %v4219_v52, %v4217_v51 }
 0x7c6   : > { %7330 = vmatprep.subr.bf16.mxu0 %v7329_v49  ;;  %v4223_v49 = vld [vmem:[#allocation13 + $0x598] sm:$0xff] }
 0x7c9   : > { %7332 = vmatpush1.bf16.msra.mxu0 %v7331_v58 }
 0x7ca   : > { %7334 = vmatprep.subr.bf16.mxu0 %v7333_v0  ;;  %v7359_v0 = vpack.c.bf16 %v4226_v57, %v4224_v27 }
 0x7cd   : > { %7336 = vmatpush1.bf16.msra.mxu0 %v7335_v4 }
 0x7ce   : > { %7338 = vmatprep.subr.bf16.mxu0 %v7337_v28  ;;  %v4239_v28 = vld [vmem:[#allocation13 + $0x618] sm:$0xff] }
 0x7d1   : > { %7340 = vmatpush1.bf16.msra.mxu0 %v7339_v53 }
 0x7d2   : > { %7342 = vmatprep.subr.bf16.mxu0 %v7341_v38 }
 0x7d5   : > { %7344 = vmatpush1.bf16.msra.mxu0 %v7343_v10 }
 0x7d6   : > { %7346 = vmatprep.subr.bf16.mxu0 %v7345_v23 }
 0x7d9   : > { %7348 = vmatpush1.bf16.msra.mxu0 %v7347_v16 }
 0x7da   : > { %7350 = vmatprep.subr.bf16.mxu0 %v7349_v54 }
 0x845   : > { %v3310_v21 = vpop.f32.mrb[4].mxu1 }
 0x846   : > { %v3428_v60 = vadd.f32 %v3411_v5, %v3310_v21  ;;  %v3312_v24 = vpop.f32.mrb[5].mxu1  ;;  %v10015_v21 = vld [vmem:[#allocation2 + $0x48] sm:$0xff] }
 0x847   : > { %v3429_v61 = vadd.f32 %v3415_v37, %v3312_v24  ;;  %4029 = vst.msk [vmem:[#allocation2 + $0x21] ss:$8 sm:$0xf] %vm4026_vm9, %v10015_v21 }
 0x848   : > { %vm3436_vm0 = vcmp.ge.f32.partialorder %v3428_v60, 0.0  ;;  %v3466_v3 = vmul.f32 %v3449_v29, %v3428_v60 }
 0x849   : > { %vm3437_vm5 = vcmp.ge.f32.partialorder %v3429_v61, 0.0  ;;  %v3467_v6 = vmul.f32 %v3453_v59, %v3429_v61  ;;  %v3316_v9 = vpop.f32.mrb[6].mxu1 }
 0x84a   : > { %v9998_v11 = vsel %vm3436_vm0, %v3428_v60, %v3466_v3  ;;  %v3432_v14 = vadd.f32 %v3411_v5, %v3316_v9  ;;  %v3318_v15 = vpop.f32.mrb[7].mxu1  ;;  %v4216_v5 = vld [vmem:[#allocation13 + $0x560] sm:$0xff]  ;;  %v4227_v60 = vld [vmem:[#allocation13 + $0x5b8] sm:$0xff]  ;;  %v4230_v3 = vld [vmem:[#allocation13 + $0x5d0] sm:$0xff] }
 0x84b   : > { %v10000_v18 = vsel %vm3437_vm5, %v3429_v61, %v3467_v6  ;;  %v3433_v19 = vadd.f32 %v3415_v37, %v3318_v15  ;;  %v7351_v20 = vpack.c.bf16 %v4218_v55, %v4216_v5  ;;  %v4221_v37 = vld [vmem:[#allocation13 + $0x588] sm:$0xff]  ;;  %v7363_v9 = vpack.c.bf16 %v4230_v3, %v4228_v63  ;;  %v4232_v15 = vld [vmem:[#allocation13 + $0x5e0] sm:$0xff] }
 0x84c   : > { %v3490_v31 = vcombine.low %v9998_v11, %v10000_v18  ;;  %v3491_v22 = vcombine.high %v9998_v11, %v10000_v18  ;;  %vm3440_vm6 = vcmp.ge.f32.partialorder %v3432_v14, 0.0  ;;  %v3470_v46 = vmul.f32 %v3449_v29, %v3432_v14  ;;  %v4222_v29 = vld [vmem:[#allocation13 + $0x590] sm:$0xff]  ;;  %v4229_v61 = vld [vmem:[#allocation13 + $0x5c8] sm:$0xff] }
 0x84d   : > { %vm3441_vm8 = vcmp.ge.f32.partialorder %v3433_v19, 0.0  ;;  %v3471_v1 = vmul.f32 %v3453_v59, %v3433_v19  ;;  %7352 = vmatpush1.bf16.msra.mxu0 %v7351_v20  ;;  %v7353_v42 = vpack.c.bf16 %v4223_v49, %v4221_v37  ;;  %v7355_v58 = vpack.c.bf16 %v4222_v29, %v4220_v56  ;;  %v4225_v59 = vld [vmem:[#allocation13 + $0x5a8] sm:$0xff] }
 0x84e   : > { %v10006_v17 = vsel %vm3440_vm6, %v3432_v14, %v3470_v46  ;;  %v7357_v24 = vpack.c.bf16 %v4227_v60, %v4225_v59  ;;  %v7361_v4 = vpack.c.bf16 %v4231_v62, %v4229_v61  ;;  %v4233_v6 = vld [vmem:[#allocation13 + $0x5e8] sm:$0xff]  ;;  %v7367_v13 = vpack.c.bf16 %v4234_v12, %v4232_v15 }
 0x84f   : > { %v10008_v33 = vsel %vm3441_vm8, %v3433_v19, %v3471_v1  ;;  %7354 = vmatprep.subr.bf16.mxu0 %v7353_v42  ;;  %v7365_v14 = vpack.c.bf16 %v4235_v32, %v4233_v6  ;;  %v4237_v19 = vld [vmem:[#allocation13 + $0x608] sm:$0xff]  ;;  %v3422_v46 = vsub.s32 3, %v9774_v43  ;;  %v3419_v1 = vrot.slane %v9986_v41, %v3418_v35 }
 0x850   : > { %v3526_v40 = vcombine.low %v10006_v17, %v10008_v33  ;;  %v3527_v25 = vcombine.high %v10006_v17, %v10008_v33  ;;  %v7369_v30 = vpack.c.bf16 %v4239_v28, %v4237_v19  ;;  %v3507_v55 = vrot.slane %v3491_v22, %v9784_v26 }
 0x851   : > { %7356 = vmatpush1.bf16.msra.mxu0 %v7355_v58  ;;  %v3423_v53 = vrot.slane %v9986_v41, %v3422_v46  ;;  %v3461_v38 = vrot.slane %v9988_v48, %v3422_v46  ;;  %v3500_v48 = vrot.slane %v3490_v31, %v9784_v26 }
 0x852   : > { %7358 = vmatprep.subr.bf16.mxu0 %v7357_v24 }
 0x855   : > { %7360 = vmatpush1.bf16.msra.mxu0 %v7359_v0 }
 0x856   : > { %7362 = vmatprep.subr.bf16.mxu0 %v7361_v4 }
 0x859   : > { %7364 = vmatpush1.bf16.msra.mxu0 %v7363_v9 }
 0x85a   : > { %7366 = vmatprep.subr.bf16.mxu0 %v7365_v14 }
 0x85d   : > { %7368 = vmatpush1.bf16.msra.mxu0 %v7367_v13 }
 0x85e   : > { %7370 = vmatprep.subr.bf16.mxu0 %v7369_v30 }
 0x885   : > { %v3387_v36 = vpop.f32.mrb[8].mxu1 }
 0x886   : > { %v3430_v34 = vadd.f32 %v3419_v1, %v3387_v36  ;;  %v3389_v39 = vpop.f32.mrb[9].mxu1 }
 0x887   : > { %v3431_v10 = vadd.f32 %v3423_v53, %v3389_v39 }
 0x888   : > { %vm3438_vm13 = vcmp.ge.f32.partialorder %v3430_v34, 0.0  ;;  %v3468_v7 = vmul.f32 %v3457_v2, %v3430_v34 }
 0x889   : > { %vm3439_vm3 = vcmp.ge.f32.partialorder %v3431_v10, 0.0  ;;  %v3469_v8 = vmul.f32 %v3461_v38, %v3431_v10  ;;  %v3393_v23 = vpop.f32.mrb[10].mxu1 }
 0x88a   : > { %v3476_v44 = vsel %vm3438_vm13, %v3430_v34, %v3468_v7  ;;  %v3434_v45 = vadd.f32 %v3419_v1, %v3393_v23  ;;  %v3395_v43 = vpop.f32.mrb[11].mxu1 }
 0x88b   : > { %v3477_v16 = vsel %vm3439_vm3, %v3431_v10, %v3469_v8  ;;  %v3435_v51 = vadd.f32 %v3423_v53, %v3395_v43 }
 0x88c   : > { %v3492_v52 = vcombine.low %v3476_v44, %v3477_v16  ;;  %v3493_v41 = vcombine.high %v3476_v44, %v3477_v16  ;;  %vm3442_vm0 = vcmp.ge.f32.partialorder %v3434_v45, 0.0  ;;  %v3472_v54 = vmul.f32 %v3457_v2, %v3434_v45 }
 0x88d   : > { %vm3443_vm5 = vcmp.ge.f32.partialorder %v3435_v51, 0.0  ;;  %v3473_v5 = vmul.f32 %v3461_v38, %v3435_v51 }
 0x88e   : > { %v3514_v20 = vrot.slane %v3492_v52, %v9784_v26  ;;  %v3521_v37 = vrot.slane %v3493_v41, %v9784_v26  ;;  %v10034_v49 = vsel %vm3442_vm0, %v3434_v45, %v3472_v54 }
 0x88f   : > { %v10036_v42 = vsel %vm3443_vm5, %v3435_v51, %v3473_v5 }
 0x890   : > { %v3522_v56 = vcombine.low %v3500_v48, %v3514_v20  ;;  %v3523_v29 = vcombine.high %v3500_v48, %v3514_v20  ;;  %v3524_v58 = vcombine.low %v3507_v55, %v3521_v37  ;;  %v3525_v59 = vcombine.high %v3507_v55, %v3521_v37 }
 0x891   : > { %v6007_v60 = vcombine.low %v3514_v20, %v3514_v20  ;;  %v6008_v24 = vcombine.high %v3514_v20, %v3514_v20  ;;  %v6009_v31 = vcombine.low %v3521_v37, %v3521_v37  ;;  %v6010_v27 = vcombine.high %v3521_v37, %v3521_v37 }
 0x892   : > { %v3569_v57 = vrot.slane %v3522_v56, %v9784_v26  ;;  %v3586_v11 = vrot.slane %v3523_v29, %v9784_v26  ;;  %v10041_v18 = vrot.slane %v3524_v58, %v9784_v26  ;;  %v10044_v22 = vrot.slane %v3525_v59, %v9784_v26 }
 0x893   : > { %v3576_v61 = vrot.slane %v6007_v60, %v9784_v26  ;;  %v3593_v0 = vrot.slane %v6008_v24, %v9784_v26  ;;  %v10049_v62 = vrot.slane %v6009_v31, %v9784_v26  ;;  %v10052_v63 = vrot.slane %v6010_v27, %v9784_v26 }
 0x894   : > { %v3577_v3 = vcombine.high %v3569_v57, %v3569_v57  ;;  %v3594_v4 = vcombine.high %v3586_v11, %v3586_v11  ;;  %v3611_v6 = vcombine.high %v10041_v18, %v10041_v18  ;;  %v3628_v32 = vcombine.high %v10044_v22, %v10044_v22 }
 0x895   : > { %v3578_v9 = vcombine.high %v3576_v61, %v3576_v61  ;;  %v3595_v14 = vcombine.high %v3593_v0, %v3593_v0  ;;  %v3612_v15 = vcombine.high %v10049_v62, %v10049_v62  ;;  %v3629_v12 = vcombine.high %v10052_v63, %v10052_v63 }
 0x896   : > { %v3730_v13 = vsel %vm1917_vm7, %v3569_v57, -inf  ;;  %v3737_v19 = vsel %vm1917_vm7, %v3577_v3, -inf  ;;  %v3744_v28 = vsel %vm1917_vm7, %v3576_v61, -inf  ;;  %v3758_v30 = vsel %vm1917_vm7, %v3586_v11, -inf }
 0x897   : > { %v3731_v35 = vrot.slane %v3730_v13, 4  ;;  %v3738_v46 = vrot.slane %v3737_v19, 4  ;;  %v3745_v1 = vrot.slane %v3744_v28, 4  ;;  %v3751_v53 = vsel %vm1917_vm7, %v3578_v9, -inf }
 0x898   : > { %v3752_v2 = vrot.slane %v3751_v53, 4  ;;  %v3759_v36 = vrot.slane %v3758_v30, 4  ;;  %v3765_v38 = vsel %vm1917_vm7, %v3594_v4, -inf  ;;  %v3772_v34 = vsel %vm1917_vm7, %v3593_v0, -inf }
 0x899   : > { %v3732_v39 = vmax.f32 %v3730_v13, %v3731_v35  ;;  %v3739_v10 = vmax.f32 %v3737_v19, %v3738_v46  ;;  %v3746_v7 = vmax.f32 %v3744_v28, %v3745_v1  ;;  %v3766_v8 = vrot.slane %v3765_v38, 4 }
 0x89a   : > { %v3753_v23 = vmax.f32 %v3751_v53, %v3752_v2  ;;  %v3760_v44 = vmax.f32 %v3758_v30, %v3759_v36  ;;  %v3773_v45 = vrot.slane %v3772_v34, 4  ;;  %v3779_v43 = vsel %vm1917_vm7, %v3595_v14, -inf }
 0x89b   : > { %v3733_v16 = vrot.slane %v3732_v39, 2  ;;  %v3740_v51 = vrot.slane %v3739_v10, 2  ;;  %v3747_v52 = vrot.slane %v3746_v7, 2  ;;  %v3767_v41 = vmax.f32 %v3765_v38, %v3766_v8 }
 0x89c   : > { %v3754_v54 = vrot.slane %v3753_v23, 2  ;;  %v3761_v5 = vrot.slane %v3760_v44, 2  ;;  %v3774_v48 = vmax.f32 %v3772_v34, %v3773_v45  ;;  %v3780_v55 = vrot.slane %v3779_v43, 4 }
 0x89d   : > { %v3734_v20 = vmax.f32 %v3732_v39, %v3733_v16  ;;  %v3741_v37 = vmax.f32 %v3739_v10, %v3740_v51  ;;  %v3748_v56 = vmax.f32 %v3746_v7, %v3747_v52  ;;  %v3768_v29 = vrot.slane %v3767_v41, 2 }
 0x89e   : > { %v3755_v58 = vmax.f32 %v3753_v23, %v3754_v54  ;;  %v3762_v59 = vmax.f32 %v3760_v44, %v3761_v5  ;;  %v3775_v60 = vrot.slane %v3774_v48, 2  ;;  %v3781_v24 = vmax.f32 %v3779_v43, %v3780_v55 }
 0x89f   : > { %v3735_v31 = vrot.slane %v3734_v20, 1  ;;  %v3742_v27 = vrot.slane %v3741_v37, 1  ;;  %v3749_v57 = vrot.slane %v3748_v56, 1  ;;  %v3769_v11 = vmax.f32 %v3767_v41, %v3768_v29 }
 0x8a0   : > { %v3756_v61 = vrot.slane %v3755_v58, 1  ;;  %v3763_v0 = vrot.slane %v3762_v59, 1  ;;  %v3776_v3 = vmax.f32 %v3774_v48, %v3775_v60  ;;  %v3782_v4 = vrot.slane %v3781_v24, 2 }
 0x8a1   : > { %v10070_v9 = vmax.f32 %v3734_v20, %v3735_v31  ;;  %v10072_v14 = vmax.f32 %v3741_v37, %v3742_v27  ;;  %v10074_v13 = vmax.f32 %v3748_v56, %v3749_v57  ;;  %v3770_v19 = vrot.slane %v3769_v11, 1 }
 0x8a2   : > { %v10076_v28 = vmax.f32 %v3755_v58, %v3756_v61  ;;  %v3764_v30 = vmax.f32 %v3762_v59, %v3763_v0  ;;  %v3777_v35 = vrot.slane %v3776_v3, 1  ;;  %v3783_v46 = vmax.f32 %v3781_v24, %v3782_v4 }
 0x8a3   : > { %v3771_v1 = vmax.f32 %v3769_v11, %v3770_v19  ;;  %v3786_v53 = vsel %vm1917_vm7, %v10041_v18, -inf  ;;  %v3793_v2 = vsel %vm1917_vm7, %v3611_v6, -inf  ;;  %v3800_v36 = vsel %vm1917_vm7, %v10049_v62, -inf }
 0x8a4   : > { %v3778_v38 = vmax.f32 %v3776_v3, %v3777_v35  ;;  %v3784_v34 = vrot.slane %v3783_v46, 1  ;;  %v3787_v39 = vrot.slane %v3786_v53, 4  ;;  %v3794_v10 = vrot.slane %v3793_v2, 4 }
 0x8a5   : > { %v3801_v7 = vrot.slane %v3800_v36, 4  ;;  %v3807_v8 = vsel %vm1917_vm7, %v3612_v15, -inf  ;;  %v3814_v23 = vsel %vm1917_vm7, %v10044_v22, -inf  ;;  %v3821_v18 = vsel %vm1917_vm7, %v3628_v32, -inf }
 0x8a6   : > { %v3785_v6 = vmax.f32 %v3783_v46, %v3784_v34  ;;  %v3788_v44 = vmax.f32 %v3786_v53, %v3787_v39  ;;  %v3795_v45 = vmax.f32 %v3793_v2, %v3794_v10  ;;  %v3808_v43 = vrot.slane %v3807_v8, 4 }
 0x8a7   : > { %v3802_v16 = vmax.f32 %v3800_v36, %v3801_v7  ;;  %v3815_v51 = vrot.slane %v3814_v23, 4  ;;  %v3822_v52 = vrot.slane %v3821_v18, 4  ;;  %v3828_v62 = vsel %vm1917_vm7, %v10052_v63, -inf }
 0x8a8   : > { %v3789_v41 = vrot.slane %v3788_v44, 2  ;;  %v3796_v15 = vrot.slane %v3795_v45, 2  ;;  %v3809_v54 = vmax.f32 %v3807_v8, %v3808_v43  ;;  %v3829_v5 = vrot.slane %v3828_v62, 4 }
 0x8a9   : > { %v3803_v48 = vrot.slane %v3802_v16, 2  ;;  %v3816_v55 = vmax.f32 %v3814_v23, %v3815_v51  ;;  %v3823_v20 = vmax.f32 %v3821_v18, %v3822_v52  ;;  %v3835_v22 = vsel %vm1917_vm7, %v3629_v12, -inf }
 0x8aa   : > { %v3790_v32 = vmax.f32 %v3788_v44, %v3789_v41  ;;  %v3797_v37 = vmax.f32 %v3795_v45, %v3796_v15  ;;  %v3810_v56 = vrot.slane %v3809_v54, 2  ;;  %v3830_v29 = vmax.f32 %v3828_v62, %v3829_v5 }
 0x8ab   : > { %v3804_v58 = vmax.f32 %v3802_v16, %v3803_v48  ;;  %v3817_v59 = vrot.slane %v3816_v55, 2  ;;  %v3824_v60 = vrot.slane %v3823_v20, 2  ;;  %v3836_v24 = vrot.slane %v3835_v22, 4 }
 0x8ac   : > { %v3791_v31 = vrot.slane %v3790_v32, 1  ;;  %v3798_v27 = vrot.slane %v3797_v37, 1  ;;  %v3811_v57 = vmax.f32 %v3809_v54, %v3810_v56  ;;  %v3831_v11 = vrot.slane %v3830_v29, 2 }
 0x8ad   : > { %v3805_v61 = vrot.slane %v3804_v58, 1  ;;  %v3818_v0 = vmax.f32 %v3816_v55, %v3817_v59  ;;  %v3825_v3 = vmax.f32 %v3823_v20, %v3824_v60  ;;  %v3837_v4 = vmax.f32 %v3835_v22, %v3836_v24 }
 0x8ae   : > { %v3792_v19 = vmax.f32 %v3790_v32, %v3791_v31  ;;  %v3799_v63 = vmax.f32 %v3797_v37, %v3798_v27  ;;  %v3812_v35 = vrot.slane %v3811_v57, 1  ;;  %v3832_v12 = vmax.f32 %v3830_v29, %v3831_v11 }
 0x8af   : > { %v3806_v46 = vmax.f32 %v3804_v58, %v3805_v61  ;;  %v3819_v53 = vrot.slane %v3818_v0, 1  ;;  %v3826_v2 = vrot.slane %v3825_v3, 1  ;;  %v3838_v36 = vrot.slane %v3837_v4, 2 }
 0x8b0   : > { %v3813_v34 = vmax.f32 %v3811_v57, %v3812_v35  ;;  %v3833_v39 = vrot.slane %v3832_v12, 1  ;;  %v3986_v10 = vsel %vm2046_vm10, %v3764_v30, %v10070_v9  ;;  %v3992_v7 = vsel %vm2046_vm10, %v3771_v1, %v10072_v14 }
 0x8b1   : > { %v3820_v8 = vmax.f32 %v3818_v0, %v3819_v53  ;;  %v3827_v23 = vmax.f32 %v3825_v3, %v3826_v2  ;;  %v3839_v18 = vmax.f32 %v3837_v4, %v3838_v36  ;;  %v3987_v44 = vsel %vm2048_vm11, %v3792_v19, %v3986_v10 }
 0x8b2   : > { %v3834_v45 = vmax.f32 %v3832_v12, %v3833_v39  ;;  %v3993_v43 = vsel %vm2048_vm11, %v3799_v63, %v3992_v7  ;;  %v3998_v16 = vsel %vm2046_vm10, %v3778_v38, %v10074_v13  ;;  %v4004_v51 = vsel %vm2046_vm10, %v3785_v6, %v10076_v28 }
 0x8b3   : > { %v3840_v52 = vrot.slane %v3839_v18, 1  ;;  %v10110_v9 = vsel %vm2050_vm12, %v3820_v8, %v3987_v44  ;;  %v10113_v14 = vsel %vm2050_vm12, %v3827_v23, %v3993_v43  ;;  %v3999_v30 = vsel %vm2048_vm11, %v3806_v46, %v3998_v16 }
 0x8b4   : > { %v10117_v1 = vsel %vm2050_vm12, %v3834_v45, %v3999_v30  ;;  %v4005_v62 = vsel %vm2048_vm11, %v3813_v34, %v4004_v51  ;;  %v3528_v13 = vcombine.low %v10034_v49, %v10036_v42  ;;  %v3529_v28 = vcombine.high %v10034_v49, %v10036_v42 }
 0x8b5   : > { %v3841_v38 = vmax.f32 %v3839_v18, %v3840_v52  ;;  %v3536_v6 = vrot.slane %v3526_v40, %v9784_v26  ;;  %v3543_v41 = vrot.slane %v3527_v25, %v9784_v26 }
 0x8b6   : > { %v3550_v15 = vrot.slane %v3528_v13, %v9784_v26  ;;  %v3557_v54 = vrot.slane %v3529_v28, %v9784_v26 }
 0x8b7   : > { %v10135_v5 = vsel %vm2050_vm12, %v3841_v38, %v4005_v62 }
 0x8b8   : > { %v3558_v48 = vcombine.low %v3536_v6, %v3550_v15  ;;  %v3559_v49 = vcombine.high %v3536_v6, %v3550_v15  ;;  %v3560_v42 = vcombine.low %v3543_v41, %v3557_v54  ;;  %v3561_v55 = vcombine.high %v3543_v41, %v3557_v54 }
 0x8b9   : > { %v6011_v20 = vcombine.low %v3550_v15, %v3550_v15  ;;  %v6012_v22 = vcombine.high %v3550_v15, %v3550_v15  ;;  %v6013_v32 = vcombine.low %v3557_v54, %v3557_v54  ;;  %v6014_v40 = vcombine.high %v3557_v54, %v3557_v54 }
 0x8ba   : > { %v3637_v37 = vrot.slane %v3558_v48, %v9784_v26  ;;  %v3654_v17 = vrot.slane %v3559_v49, %v9784_v26  ;;  %v10140_v33 = vrot.slane %v3560_v42, %v9784_v26  ;;  %v10143_v25 = vrot.slane %v3561_v55, %v9784_v26 }
 0x8bb   : > { %v3644_v56 = vrot.slane %v6011_v20, %v9784_v26  ;;  %v3661_v29 = vrot.slane %v6012_v22, %v9784_v26  ;;  %v10148_v58 = vrot.slane %v6013_v32, %v9784_v26  ;;  %v10151_v59 = vrot.slane %v6014_v40, %v9784_v26 }
 0x8bc   : > { %v3645_v60 = vcombine.high %v3637_v37, %v3637_v37  ;;  %v3662_v24 = vcombine.high %v3654_v17, %v3654_v17  ;;  %v3679_v31 = vcombine.high %v10140_v33, %v10140_v33  ;;  %v3696_v27 = vcombine.high %v10143_v25, %v10143_v25 }
 0x8bd   : > { %v3646_v57 = vcombine.high %v3644_v56, %v3644_v56  ;;  %v3663_v11 = vcombine.high %v3661_v29, %v3661_v29  ;;  %v3680_v61 = vcombine.high %v10148_v58, %v10148_v58  ;;  %v3697_v0 = vcombine.high %v10151_v59, %v10151_v59 }
 0x8be   : > { %v3842_v3 = vsel %vm1917_vm7, %v3637_v37, -inf  ;;  %v3849_v4 = vsel %vm1917_vm7, %v3645_v60, -inf  ;;  %v3856_v19 = vsel %vm1917_vm7, %v3644_v56, -inf  ;;  %v3870_v63 = vsel %vm1917_vm7, %v3654_v17, -inf }
 0x8bf   : > { %v3843_v35 = vrot.slane %v3842_v3, 4  ;;  %v3850_v12 = vrot.slane %v3849_v4, 4  ;;  %v3857_v46 = vrot.slane %v3856_v19, 4  ;;  %v3863_v53 = vsel %vm1917_vm7, %v3646_v57, -inf }
 0x8c0   : > { %v3864_v2 = vrot.slane %v3863_v53, 4  ;;  %v3871_v36 = vrot.slane %v3870_v63, 4  ;;  %v3877_v34 = vsel %vm1917_vm7, %v3662_v24, -inf  ;;  %v3884_v39 = vsel %vm1917_vm7, %v3661_v29, -inf }
 0x8c1   : > { %v3844_v10 = vmax.f32 %v3842_v3, %v3843_v35  ;;  %v3851_v7 = vmax.f32 %v3849_v4, %v3850_v12  ;;  %v3858_v8 = vmax.f32 %v3856_v19, %v3857_v46  ;;  %v3878_v23 = vrot.slane %v3877_v34, 4 }
 0x8c2   : > { %v3865_v18 = vmax.f32 %v3863_v53, %v3864_v2  ;;  %v3872_v44 = vmax.f32 %v3870_v63, %v3871_v36  ;;  %v3885_v45 = vrot.slane %v3884_v39, 4  ;;  %v3891_v43 = vsel %vm1917_vm7, %v3663_v11, -inf }
 0x8c3   : > { %v3845_v16 = vrot.slane %v3844_v10, 2  ;;  %v3852_v51 = vrot.slane %v3851_v7, 2  ;;  %v3859_v52 = vrot.slane %v3858_v8, 2  ;;  %v3879_v30 = vmax.f32 %v3877_v34, %v3878_v23 }
 0x8c4   : > { %v3866_v62 = vrot.slane %v3865_v18, 2  ;;  %v3873_v13 = vrot.slane %v3872_v44, 2  ;;  %v3886_v28 = vmax.f32 %v3884_v39, %v3885_v45  ;;  %v3892_v38 = vrot.slane %v3891_v43, 4 }
 0x8c5   : > { %v3846_v6 = vmax.f32 %v3844_v10, %v3845_v16  ;;  %v3853_v41 = vmax.f32 %v3851_v7, %v3852_v51  ;;  %v3860_v15 = vmax.f32 %v3858_v8, %v3859_v52  ;;  %v3880_v54 = vrot.slane %v3879_v30, 2 }
 0x8c6   : > { %v3867_v48 = vmax.f32 %v3865_v18, %v3866_v62  ;;  %v3874_v49 = vmax.f32 %v3872_v44, %v3873_v13  ;;  %v3887_v42 = vrot.slane %v3886_v28, 2  ;;  %v3893_v55 = vmax.f32 %v3891_v43, %v3892_v38 }
 0x8c7   : > { %v3847_v20 = vrot.slane %v3846_v6, 1  ;;  %v3854_v22 = vrot.slane %v3853_v41, 1  ;;  %v3861_v32 = vrot.slane %v3860_v15, 1  ;;  %v3881_v40 = vmax.f32 %v3879_v30, %v3880_v54 }
 0x8c8   : > { %v3868_v37 = vrot.slane %v3867_v48, 1  ;;  %v3875_v17 = vrot.slane %v3874_v49, 1  ;;  %v3888_v56 = vmax.f32 %v3886_v28, %v3887_v42  ;;  %v3894_v29 = vrot.slane %v3893_v55, 2 }
 0x8c9   : > { %v10169_v60 = vmax.f32 %v3846_v6, %v3847_v20  ;;  %v10171_v24 = vmax.f32 %v3853_v41, %v3854_v22  ;;  %v10173_v57 = vmax.f32 %v3860_v15, %v3861_v32  ;;  %v3882_v11 = vrot.slane %v3881_v40, 1 }
 0x8ca   : > { %v10175_v3 = vmax.f32 %v3867_v48, %v3868_v37  ;;  %v10177_v4 = vmax.f32 %v3874_v49, %v3875_v17  ;;  %v3889_v19 = vrot.slane %v3888_v56, 1  ;;  %v3895_v63 = vmax.f32 %v3893_v55, %v3894_v29 }
 0x8cb   : > { %v10179_v35 = vmax.f32 %v3881_v40, %v3882_v11  ;;  %v3898_v12 = vsel %vm1917_vm7, %v10140_v33, -inf  ;;  %v3905_v46 = vsel %vm1917_vm7, %v3679_v31, -inf  ;;  %v3912_v53 = vsel %vm1917_vm7, %v10148_v58, -inf }
 0x8cc   : > { %v10186_v2 = vmax.f32 %v3888_v56, %v3889_v19  ;;  %v3896_v36 = vrot.slane %v3895_v63, 1  ;;  %v3899_v34 = vrot.slane %v3898_v12, 4  ;;  %v3906_v39 = vrot.slane %v3905_v46, 4 }
 0x8cd   : > { %v3913_v10 = vrot.slane %v3912_v53, 4  ;;  %v3919_v7 = vsel %vm1917_vm7, %v3680_v61, -inf  ;;  %v3926_v8 = vsel %vm1917_vm7, %v10143_v25, -inf  ;;  %v3933_v33 = vsel %vm1917_vm7, %v3696_v27, -inf }
 0x8ce   : > { %v3897_v31 = vmax.f32 %v3895_v63, %v3896_v36  ;;  %v3900_v23 = vmax.f32 %v3898_v12, %v3899_v34  ;;  %v3907_v18 = vmax.f32 %v3905_v46, %v3906_v39  ;;  %v3920_v44 = vrot.slane %v3919_v7, 4 }
 0x8cf   : > { %v3914_v45 = vmax.f32 %v3912_v53, %v3913_v10  ;;  %v3927_v43 = vrot.slane %v3926_v8, 4  ;;  %v3934_v16 = vrot.slane %v3933_v33, 4  ;;  %v3940_v58 = vsel %vm1917_vm7, %v10151_v59, -inf }
 0x8d0   : > { %v3901_v51 = vrot.slane %v3900_v23, 2  ;;  %v3908_v61 = vrot.slane %v3907_v18, 2  ;;  %v3921_v52 = vmax.f32 %v3919_v7, %v3920_v44  ;;  %v3941_v30 = vrot.slane %v3940_v58, 4 }
 0x8d1   : > { %v3915_v62 = vrot.slane %v3914_v45, 2  ;;  %v3928_v13 = vmax.f32 %v3926_v8, %v3927_v43  ;;  %v3935_v28 = vmax.f32 %v3933_v33, %v3934_v16  ;;  %v3947_v25 = vsel %vm1917_vm7, %v3697_v0, -inf }
 0x8d2   : > { %v3902_v27 = vmax.f32 %v3900_v23, %v3901_v51  ;;  %v3909_v38 = vmax.f32 %v3907_v18, %v3908_v61  ;;  %v3922_v6 = vrot.slane %v3921_v52, 2  ;;  %v3942_v41 = vmax.f32 %v3940_v58, %v3941_v30  ;;  %v4241_v51 = vld [vmem:[#allocation13 + $0x628] sm:$0xff]  ;;  %v4243_v61 = vld [vmem:[#allocation13 + $0x638] sm:$0xff] }
 0x8d3   : > { %v3916_v15 = vmax.f32 %v3914_v45, %v3915_v62  ;;  %v3929_v54 = vrot.slane %v3928_v13, 2  ;;  %v3936_v48 = vrot.slane %v3935_v28, 2  ;;  %v3948_v49 = vrot.slane %v3947_v25, 4  ;;  %v4238_v45 = vld [vmem:[#allocation13 + $0x610] sm:$0xff] }
 0x8d4   : > { %v3903_v42 = vrot.slane %v3902_v27, 1  ;;  %v3910_v55 = vrot.slane %v3909_v38, 1  ;;  %v3923_v20 = vmax.f32 %v3921_v52, %v3922_v6  ;;  %v3943_v22 = vrot.slane %v3942_v41, 2  ;;  %v4240_v6 = vld [vmem:[#allocation13 + $0x620] sm:$0xff] }
 0x8d5   : > { %v3917_v32 = vrot.slane %v3916_v15, 1  ;;  %v3930_v40 = vmax.f32 %v3928_v13, %v3929_v54  ;;  %v3937_v37 = vmax.f32 %v3935_v28, %v3936_v48  ;;  %v3949_v17 = vmax.f32 %v3947_v25, %v3948_v49  ;;  %v4245_v48 = vld [vmem:[#allocation13 + $0x648] sm:$0xff]  ;;  %v4247_v49 = vld [vmem:[#allocation13 + $0x658] sm:$0xff] }
 0x8d6   : > { %v3904_v56 = vmax.f32 %v3902_v27, %v3903_v42  ;;  %v3911_v59 = vmax.f32 %v3909_v38, %v3910_v55  ;;  %v3924_v29 = vrot.slane %v3923_v20, 1  ;;  %v3944_v0 = vmax.f32 %v3942_v41, %v3943_v22  ;;  %v4242_v41 = vld [vmem:[#allocation13 + $0x630] sm:$0xff] }
 0x8d7   : > { %v3918_v11 = vmax.f32 %v3916_v15, %v3917_v32  ;;  %v3931_v19 = vrot.slane %v3930_v40, 1  ;;  %v3938_v63 = vrot.slane %v3937_v37, 1  ;;  %v3950_v12 = vrot.slane %v3949_v17, 2  ;;  %v4246_v32 = vld [vmem:[#allocation13 + $0x650] sm:$0xff] }
 0x8d8   : > { %v3925_v46 = vmax.f32 %v3923_v20, %v3924_v29  ;;  %v3945_v53 = vrot.slane %v3944_v0, 1  ;;  %v3989_v36 = vsel %vm2052_vm14, %v10169_v60, %v10110_v9  ;;  %v3995_v34 = vsel %vm2052_vm14, %v10171_v24, %v10113_v14  ;;  %v4244_v20 = vld [vmem:[#allocation13 + $0x640] sm:$0xff] }
 0x8d9   : > { %v3932_v39 = vmax.f32 %v3930_v40, %v3931_v19  ;;  %v3939_v10 = vmax.f32 %v3937_v37, %v3938_v63  ;;  %v3951_v7 = vmax.f32 %v3949_v17, %v3950_v12  ;;  %v3990_v8 = vsel %vm2054_vm15, %v10177_v4, %v3989_v36  ;;  %v4249_v17 = vld [vmem:[#allocation13 + $0x668] sm:$0xff]  ;;  %v4255_v63 = vld [vmem:[#allocation13 + $0x698] sm:$0xff]  ;;  %v4254_v36 = vld [vmem:[#allocation13 + $0x690] sm:$0xff] }
 0x8da   : > { %v3946_v33 = vmax.f32 %v3944_v0, %v3945_v53  ;;  %v3991_v23 = vsel %vm2056_vm4, %v3904_v56, %v3990_v8  ;;  %v3996_v18 = vsel %vm2054_vm15, %v10179_v35, %v3995_v34  ;;  %v4001_v9 = vsel %vm2052_vm14, %v10173_v57, %v10117_v1  ;;  %v4251_v56 = vld [vmem:[#allocation13 + $0x678] sm:$0xff]  ;;  %v4248_v0 = vld [vmem:[#allocation13 + $0x660] sm:$0xff]  ;;  %v4253_v19 = vld [vmem:[#allocation13 + $0x688] sm:$0xff] }
 0x8db   : > { %v3952_v60 = vrot.slane %v3951_v7, 1  ;;  %v3997_v44 = vsel %vm2056_vm4, %v3911_v59, %v3996_v18  ;;  %v4002_v14 = vsel %vm2054_vm15, %v10186_v2, %v4001_v9  ;;  %v4007_v24 = vsel %vm2052_vm14, %v10175_v3, %v10135_v5  ;;  %4022 = vst [vmem:[#allocation2 + $0x20] sm:$0x1] %v3932_v39  ;;  %4023 = vst [vmem:[#allocation2 + $0x28] sm:$0x1] %v3939_v10  ;;  %v4236_v2 = vld [vmem:[#allocation13 + $0x600] sm:$0xff] }
 0x8dc   : > { %4018 = vst [vmem:[#allocation2] sm:$0xfe] %v3991_v23  ;;  %v4003_v4 = vsel %vm2056_vm4, %v3918_v11, %v4002_v14  ;;  %v4008_v35 = vsel %vm2054_vm15, %v3897_v31, %v4007_v24  ;;  %4019 = vst [vmem:[#allocation2 + $0x8] sm:$0xfe] %v3997_v44  ;;  %v7371_v62 = vpack.c.bf16 %v4238_v45, %v4236_v2  ;;  %v4250_v11 = vld [vmem:[#allocation13 + $0x670] sm:$0xff]  ;;  %v4252_v53 = vld [vmem:[#allocation13 + $0x680] sm:$0xff] }
 0x8dd   : > { %4024 = vst [vmem:[#allocation2 + $0x30] sm:$0x1] %v3946_v33  ;;  %v3953_v1 = vmax.f32 %v3951_v7, %v3952_v60  ;;  %v4009_v57 = vsel %vm2056_vm4, %v3925_v46, %v4008_v35  ;;  %4020 = vst [vmem:[#allocation2 + $0x10] sm:$0xfe] %v4003_v4  ;;  %v7373_v38 = vpack.c.bf16 %v4243_v61, %v4241_v51  ;;  %v4257_v34 = vld [vmem:[#allocation13 + $0x6a8] sm:$0xff]  ;;  %v4259_v39 = vld [vmem:[#allocation13 + $0x6b8] sm:$0xff] }
 0x8de   : > { %4021 = vst [vmem:[#allocation2 + $0x18] sm:$0xfe] %v4009_v57  ;;  %v7375_v55 = vpack.c.bf16 %v4242_v41, %v4240_v6  ;;  %v7377_v22 = vpack.c.bf16 %v4247_v49, %v4245_v48  ;;  %v7379_v59 = vpack.c.bf16 %v4246_v32, %v4244_v20  ;;  %v7381_v29 = vpack.c.bf16 %v4251_v56, %v4249_v17  ;;  %v4256_v7 = vld [vmem:[#allocation13 + $0x6a0] sm:$0xff]  ;;  %v4258_v8 = vld [vmem:[#allocation13 + $0x6b0] sm:$0xff]  ;;  %v4261_v33 = vld [vmem:[#allocation13 + $0x6c8] sm:$0xff] }
 0x8df   : > { %4025 = vst [vmem:[#allocation2 + $0x38] sm:$0x1] %v3953_v1  ;;  %v7383_v12 = vpack.c.bf16 %v4250_v11, %v4248_v0  ;;  %v7385_v46 = vpack.c.bf16 %v4255_v63, %v4253_v19  ;;  %v7387_v10 = vpack.c.bf16 %v4254_v36, %v4252_v53  ;;  %v4263_v23 = vld [vmem:[#allocation13 + $0x6d8] sm:$0xff]  ;;  %v7391_v18 = vpack.c.bf16 %v4258_v8, %v4256_v7  ;;  %v4260_v60 = vld [vmem:[#allocation13 + $0x6c0] sm:$0xff]  ;;  %v4262_v44 = vld [vmem:[#allocation13 + $0x6d0] sm:$0xff] }
 0x8e0   : > { %v7393_v9 = vpack.c.bf16 %v4263_v23, %v4261_v33  ;;  %v4265_v14 = vld [vmem:[#allocation13 + $0x6e8] sm:$0xff]  ;;  %v4267_v24 = vld [vmem:[#allocation13 + $0x6f8] sm:$0xff]  ;;  %v7395_v4 = vpack.c.bf16 %v4262_v44, %v4260_v60  ;;  %v4264_v1 = vld [vmem:[#allocation13 + $0x6e0] sm:$0xff] }
 0x8e1   : > { %v7397_v35 = vpack.c.bf16 %v4267_v24, %v4265_v14  ;;  %v4266_v57 = vld [vmem:[#allocation13 + $0x6f0] sm:$0xff]  ;;  %v4269_v2 = vld [vmem:[#allocation13 + $0x708] sm:$0xff]  ;;  %v4271_v45 = vld [vmem:[#allocation13 + $0x718] sm:$0xff] }
 0x8e2   : > { %v4168_v43 = vld [vmem:[#allocation2 + $0x28] sm:$0x1]  ;;  %v4167_v5 = vld [vmem:[#allocation2 + $0x20] sm:$0x1]  ;;  %v4275_v51 = vld [vmem:[#allocation13 + $0x738] sm:$0xff] }
 0x8e3   : > { %v4163_v16 = vld [vmem:[#allocation2] sm:$0xfe]  ;;  %v4164_v3 = vld [vmem:[#allocation2 + $0x8] sm:$0xfe]  ;;  %v4312_v30 = vrot.slane %v4168_v43, 1  ;;  %v4309_v31 = vrot.slane %v4167_v5, 1  ;;  %v7399_v43 = vpack.c.bf16 %v4266_v57, %v4264_v1 }
 0x8e4   : > { %v4308_v58 = vrot.slane %v4163_v16, 1  ;;  %v4311_v52 = vrot.slane %v4164_v3, 1  ;;  %v10230_v40 = vld [vmem:[#allocation2] sm:$0xff]  ;;  %v7401_v16 = vpack.c.bf16 %v4271_v45, %v4269_v2  ;;  %v4270_v3 = vld [vmem:[#allocation13 + $0x710] sm:$0xff]  ;;  %v4281_v6 = vld [vmem:[#allocation13 + $0x768] sm:$0xff] }
 0x8e5   : > { %v4166_v13 = vld [vmem:[#allocation2 + $0x18] sm:$0xfe]  ;;  %v10232_v37 = vld [vmem:[#allocation2] sm:$0xfc]  ;;  %v4282_v49 = vld [vmem:[#allocation13 + $0x770] sm:$0xff] }
 0x8e6   : > { %v4313_v28 = vsel %vm1089_vm2, %v4311_v52, %v4312_v30  ;;  %v4170_v25 = vld [vmem:[#allocation2 + $0x38] sm:$0x1]  ;;  %v4317_v27 = vrot.slane %v4166_v13, 1  ;;  %v4310_v15 = vsel %vm1089_vm2, %v4308_v58, %v4309_v31  ;;  %5378 = vst [vmem:[#allocation2 + $0x5] sm:$0x1] %v10015_v21  ;;  %v7389_v21 = vpack.c.bf16 %v4259_v39, %v4257_v34  ;;  %v4268_v5 = vld [vmem:[#allocation13 + $0x700] sm:$0xff] }
 0x8e7   : > { %4388 = vmatprep.mubr.f32.mxu0 %v4313_v28  ;;  %v4318_v54 = vrot.slane %v4170_v25, 1  ;;  %v4273_v58 = vld [vmem:[#allocation13 + $0x728] sm:$0xff]  ;;  %v7403_v61 = vpack.c.bf16 %v4270_v3, %v4268_v5  ;;  %v4272_v30 = vld [vmem:[#allocation13 + $0x720] sm:$0xff]  ;;  %v4274_v31 = vld [vmem:[#allocation13 + $0x730] sm:$0xff] }
 0x8e8   : > { %4389 = vmatmul.mubr.f32.vlgmr.msra.gmra.mrb[8].mxu0 %v4310_v15  ;;  %v7405_v52 = vpack.c.bf16 %v4275_v51, %v4273_v58  ;;  %v4279_v13 = vld [vmem:[#allocation13 + $0x758] sm:$0xff]  ;;  %v7407_v28 = vpack.c.bf16 %v4274_v31, %v4272_v30  ;;  %v4280_v48 = vld [vmem:[#allocation13 + $0x760] sm:$0xff]  ;;  %v4286_v17 = vld [vmem:[#allocation13 + $0x790] sm:$0xff] }
 0x8e9   : > { %7372 = vmatpush1.bf16.msra.mxu0 %v7371_v62  ;;  %v4319_v42 = vsel %vm1089_vm2, %v4317_v27, %v4318_v54  ;;  %v4277_v62 = vld [vmem:[#allocation13 + $0x748] sm:$0xff]  ;;  %v4276_v27 = vld [vmem:[#allocation13 + $0x740] sm:$0xff]  ;;  %v4283_v41 = vld [vmem:[#allocation13 + $0x778] sm:$0xff]  ;;  %v7415_v20 = vpack.c.bf16 %v4282_v49, %v4280_v48 }
 0x8ea   : > { %4459 = vmatprep.mubr.f32.mxu0 %v4319_v42  ;;  %7374 = vmatprep.subr.bf16.mxu0 %v7373_v38  ;;  %v7409_v25 = vpack.c.bf16 %v4279_v13, %v4277_v62  ;;  %v4278_v38 = vld [vmem:[#allocation13 + $0x750] sm:$0xff]  ;;  %v7413_v54 = vpack.c.bf16 %v4283_v41, %v4281_v6  ;;  %v4285_v42 = vld [vmem:[#allocation13 + $0x788] sm:$0xff]  ;;  %v4284_v32 = vld [vmem:[#allocation13 + $0x780] sm:$0xff] }
 0x8eb   : > { %v7411_v15 = vpack.c.bf16 %v4278_v38, %v4276_v27  ;;  %v4289_v56 = vld [vmem:[#allocation13 + $0x7a8] sm:$0xff]  ;;  %v4288_v11 = vld [vmem:[#allocation13 + $0x7a0] sm:$0xff]  ;;  %v4290_v19 = vld [vmem:[#allocation13 + $0x7b0] sm:$0xff] }
 0x8ec   : > { %v4293_v63 = vld [vmem:[#allocation13 + $0x7c8] sm:$0xff]  ;;  %v4292_v36 = vld [vmem:[#allocation13 + $0x7c0] sm:$0xff]  ;;  %v4294_v34 = vld [vmem:[#allocation13 + $0x7d0] sm:$0xff] }
 0x8ed   : > { %7376 = vmatpush1.bf16.msra.mxu0 %v7375_v55  ;;  %v4287_v55 = vld [vmem:[#allocation13 + $0x798] sm:$0xff]  ;;  %v4297_v39 = vld [vmem:[#allocation13 + $0x7e8] sm:$0xff]  ;;  %v4296_v8 = vld [vmem:[#allocation13 + $0x7e0] sm:$0xff] }
 0x8ee   : > { %7378 = vmatprep.subr.bf16.mxu0 %v7377_v22  ;;  %v7417_v22 = vpack.c.bf16 %v4287_v55, %v4285_v42  ;;  %v4298_v33 = vld [vmem:[#allocation13 + $0x7f0] sm:$0xff]  ;;  %v4036_v23 = vld [vmem:[#allocation13 + $0x8] sm:$0xff]  ;;  %v4035_v24 = vld [vmem:[#allocation13] sm:$0xff] }
 0x8ef   : > { %v7431_v60 = vpack.c.bf16 %v4298_v33, %v4296_v8  ;;  %v4169_v44 = vld [vmem:[#allocation2 + $0x30] sm:$0x1]  ;;  %v4040_v1 = vld [vmem:[#allocation13 + $0x28] sm:$0xff]  ;;  %v4042_v57 = vld [vmem:[#allocation13 + $0x38] sm:$0xff] }
 0x8f0   : > { %v4315_v2 = vrot.slane %v4169_v44, 1  ;;  %v4041_v5 = vld [vmem:[#allocation13 + $0x30] sm:$0xff]  ;;  %v4044_v58 = vld [vmem:[#allocation13 + $0x48] sm:$0xff]  ;;  %v4046_v51 = vld [vmem:[#allocation13 + $0x58] sm:$0xff] }
 0x8f1   : > { %7380 = vmatpush1.bf16.msra.mxu0 %v7379_v59  ;;  %v4291_v59 = vld [vmem:[#allocation13 + $0x7b8] sm:$0xff]  ;;  %v7441_v30 = vpack.c.bf16 %v4046_v51, %v4044_v58  ;;  %v4043_v31 = vld [vmem:[#allocation13 + $0x40] sm:$0xff]  ;;  %v4045_v62 = vld [vmem:[#allocation13 + $0x50] sm:$0xff] }
 0x8f2   : > { %7382 = vmatprep.subr.bf16.mxu0 %v7381_v29  ;;  %v7419_v29 = vpack.c.bf16 %v4286_v17, %v4284_v32  ;;  %v7421_v0 = vpack.c.bf16 %v4291_v59, %v4289_v56  ;;  %v4048_v13 = vld [vmem:[#allocation13 + $0x68] sm:$0xff]  ;;  %v4047_v38 = vld [vmem:[#allocation13 + $0x60] sm:$0xff]  ;;  %v4049_v6 = vld [vmem:[#allocation13 + $0x70] sm:$0xff] }
 0x8f3   : > { %v4052_v41 = vld [vmem:[#allocation13 + $0x88] sm:$0xff]  ;;  %v4051_v49 = vld [vmem:[#allocation13 + $0x80] sm:$0xff]  ;;  %v4053_v42 = vld [vmem:[#allocation13 + $0x90] sm:$0xff] }
 0x8f4   : > { %v4056_v55 = vld [vmem:[#allocation13 + $0xa8] sm:$0xff]  ;;  %v4055_v17 = vld [vmem:[#allocation13 + $0xa0] sm:$0xff]  ;;  %v4057_v56 = vld [vmem:[#allocation13 + $0xb0] sm:$0xff] }
 0x8f5   : > { %7384 = vmatpush1.bf16.msra.mxu0 %v7383_v12  ;;  %v4295_v12 = vld [vmem:[#allocation13 + $0x7d8] sm:$0xff]  ;;  %v4060_v59 = vld [vmem:[#allocation13 + $0xc8] sm:$0xff]  ;;  %v4067_v33 = vld [vmem:[#allocation13 + $0x100] sm:$0xff] }
 0x8f6   : > { %7386 = vmatprep.subr.bf16.mxu0 %v7385_v46  ;;  %v7423_v46 = vpack.c.bf16 %v4290_v19, %v4288_v11  ;;  %v7425_v53 = vpack.c.bf16 %v4295_v12, %v4293_v63  ;;  %v4059_v19 = vld [vmem:[#allocation13 + $0xc0] sm:$0xff]  ;;  %v4061_v63 = vld [vmem:[#allocation13 + $0xd0] sm:$0xff]  ;;  %v4064_v12 = vld [vmem:[#allocation13 + $0xe8] sm:$0xff] }
 0x8f7   : > { %v4079_v58 = vld [vmem:[#allocation13 + $0x160] sm:$0xff]  ;;  %v4081_v51 = vld [vmem:[#allocation13 + $0x170] sm:$0xff] }
 0x8f9   : > { %7388 = vmatpush1.bf16.msra.mxu0 %v7387_v10  ;;  %v4299_v10 = vld [vmem:[#allocation13 + $0x7f8] sm:$0xff] }
 0x8fa   : > { %7390 = vmatprep.subr.bf16.mxu0 %v7389_v21  ;;  %v7427_v21 = vpack.c.bf16 %v4294_v34, %v4292_v36  ;;  %v7429_v7 = vpack.c.bf16 %v4299_v10, %v4297_v39  ;;  %v4063_v34 = vld [vmem:[#allocation13 + $0xe0] sm:$0xff]  ;;  %v4065_v39 = vld [vmem:[#allocation13 + $0xf0] sm:$0xff]  ;;  %v4068_v10 = vld [vmem:[#allocation13 + $0x108] sm:$0xff] }
 0x8fd   : > { %7392 = vmatpush1.bf16.msra.mxu0 %v7391_v18  ;;  %v4038_v18 = vld [vmem:[#allocation13 + $0x18] sm:$0xff] }
 0x8fe   : > { %7394 = vmatprep.subr.bf16.mxu0 %v7393_v9  ;;  %v4165_v9 = vld [vmem:[#allocation2 + $0x10] sm:$0xfe]  ;;  %v7433_v14 = vpack.c.bf16 %v4038_v18, %v4036_v23  ;;  %v4072_v18 = vld [vmem:[#allocation13 + $0x128] sm:$0xff] }
 0x8ff   : > { %v4069_v23 = vld [vmem:[#allocation13 + $0x110] sm:$0xff] }
 0x901   : > { %7396 = vmatpush1.bf16.msra.mxu0 %v7395_v4  ;;  %v4037_v4 = vld [vmem:[#allocation13 + $0x10] sm:$0xff] }
 0x902   : > { %7398 = vmatprep.subr.bf16.mxu0 %v7397_v35  ;;  %v4314_v35 = vrot.slane %v4165_v9, 1  ;;  %v7435_v45 = vpack.c.bf16 %v4037_v4, %v4035_v24  ;;  %v4074_v9 = vld [vmem:[#allocation13 + $0x138] sm:$0xff]  ;;  %v4073_v24 = vld [vmem:[#allocation13 + $0x130] sm:$0xff]  ;;  %v4076_v4 = vld [vmem:[#allocation13 + $0x148] sm:$0xff] }
 0x903   : > { %v7469_v44 = vpack.c.bf16 %v4074_v9, %v4072_v18  ;;  %v4107_v18 = vld [vmem:[#allocation13 + $0x240] sm:$0xff]  ;;  %v4109_v9 = vld [vmem:[#allocation13 + $0x250] sm:$0xff] }
 0x904   : > { %v4316_v3 = vsel %vm1089_vm2, %v4314_v35, %v4315_v2  ;;  %v4078_v35 = vld [vmem:[#allocation13 + $0x158] sm:$0xff]  ;;  %v4075_v2 = vld [vmem:[#allocation13 + $0x140] sm:$0xff] }
 0x905   : > { %7400 = vmatpush1.bf16.msra.mxu0 %v7399_v43  ;;  %v7437_v43 = vpack.c.bf16 %v4042_v57, %v4040_v1  ;;  %v7473_v57 = vpack.c.bf16 %v4078_v35, %v4076_v4  ;;  %v4111_v4 = vld [vmem:[#allocation13 + $0x260] sm:$0xff]  ;;  %v4113_v35 = vld [vmem:[#allocation13 + $0x270] sm:$0xff] }
 0x906   : > { %7402 = vmatprep.subr.bf16.mxu0 %v7401_v16  ;;  %v4039_v16 = vld [vmem:[#allocation13 + $0x20] sm:$0xff] }
 0x909   : > { %7404 = vmatpush1.bf16.msra.mxu0 %v7403_v61  ;;  %v4032_v61 = vld [vmem:[#allocation2 + $0x8] sm:$0xff] }
 0x90a   : > { %7406 = vmatprep.subr.bf16.mxu0 %v7405_v52  ;;  %v7439_v52 = vpack.c.bf16 %v4041_v5, %v4039_v16  ;;  %v4082_v16 = vld [vmem:[#allocation13 + $0x178] sm:$0xff] }
 0x90d   : > { %7408 = vmatpush1.bf16.msra.mxu0 %v7407_v28  ;;  %v4050_v28 = vld [vmem:[#allocation13 + $0x78] sm:$0xff] }
 0x90e   : > { %7410 = vmatprep.subr.bf16.mxu0 %v7409_v25  ;;  %v7443_v25 = vpack.c.bf16 %v4045_v62, %v4043_v31  ;;  %v7445_v27 = vpack.c.bf16 %v4050_v28, %v4048_v13  ;;  %v4083_v62 = vld [vmem:[#allocation13 + $0x180] sm:$0xff]  ;;  %v4085_v13 = vld [vmem:[#allocation13 + $0x190] sm:$0xff]  ;;  %v4088_v28 = vld [vmem:[#allocation13 + $0x1a8] sm:$0xff] }
 0x911   : > { %7412 = vmatpush1.bf16.msra.mxu0 %v7411_v15  ;;  %v4054_v15 = vld [vmem:[#allocation13 + $0x98] sm:$0xff] }
 0x912   : > { %7414 = vmatprep.subr.bf16.mxu0 %v7413_v54  ;;  %v7447_v54 = vpack.c.bf16 %v4049_v6, %v4047_v38  ;;  %v7449_v48 = vpack.c.bf16 %v4054_v15, %v4052_v41  ;;  %v4087_v6 = vld [vmem:[#allocation13 + $0x1a0] sm:$0xff]  ;;  %v4089_v41 = vld [vmem:[#allocation13 + $0x1b0] sm:$0xff]  ;;  %v4092_v15 = vld [vmem:[#allocation13 + $0x1c8] sm:$0xff] }
 0x915   : > { %7416 = vmatpush1.bf16.msra.mxu0 %v7415_v20  ;;  %v4058_v20 = vld [vmem:[#allocation13 + $0xb8] sm:$0xff] }
 0x916   : > { %7418 = vmatprep.subr.bf16.mxu0 %v7417_v22  ;;  %v7451_v22 = vpack.c.bf16 %v4053_v42, %v4051_v49  ;;  %v7453_v32 = vpack.c.bf16 %v4058_v20, %v4056_v55  ;;  %v4091_v42 = vld [vmem:[#allocation13 + $0x1c0] sm:$0xff]  ;;  %v4093_v55 = vld [vmem:[#allocation13 + $0x1d0] sm:$0xff]  ;;  %v4096_v20 = vld [vmem:[#allocation13 + $0x1e8] sm:$0xff] }
 0x919   : > { %7420 = vmatpush1.bf16.msra.mxu0 %v7419_v29  ;;  %v4062_v29 = vld [vmem:[#allocation13 + $0xd8] sm:$0xff] }
 0x91a   : > { %7422 = vmatprep.subr.bf16.mxu0 %v7421_v0  ;;  %v7455_v0 = vpack.c.bf16 %v4057_v56, %v4055_v17  ;;  %v7457_v11 = vpack.c.bf16 %v4062_v29, %v4060_v59  ;;  %v4095_v56 = vld [vmem:[#allocation13 + $0x1e0] sm:$0xff]  ;;  %v4097_v59 = vld [vmem:[#allocation13 + $0x1f0] sm:$0xff]  ;;  %v4100_v29 = vld [vmem:[#allocation13 + $0x208] sm:$0xff] }
 0x91d   : > { %7424 = vmatpush1.bf16.msra.mxu0 %v7423_v46  ;;  %v4066_v46 = vld [vmem:[#allocation13 + $0xf8] sm:$0xff] }
 0x91e   : > { %7426 = vmatprep.subr.bf16.mxu0 %v7425_v53  ;;  %v7459_v53 = vpack.c.bf16 %v4061_v63, %v4059_v19  ;;  %v7461_v36 = vpack.c.bf16 %v4066_v46, %v4064_v12  ;;  %v4099_v63 = vld [vmem:[#allocation13 + $0x200] sm:$0xff]  ;;  %v4101_v12 = vld [vmem:[#allocation13 + $0x210] sm:$0xff]  ;;  %v4104_v46 = vld [vmem:[#allocation13 + $0x228] sm:$0xff] }
 0x921   : > { %7428 = vmatpush1.bf16.msra.mxu0 %v7427_v21  ;;  %v4070_v21 = vld [vmem:[#allocation13 + $0x118] sm:$0xff] }
 0x922   : > { %7430 = vmatprep.subr.bf16.mxu0 %v7429_v7  ;;  %v7463_v7 = vpack.c.bf16 %v4065_v39, %v4063_v34  ;;  %v7465_v8 = vpack.c.bf16 %v4070_v21, %v4068_v10  ;;  %v4103_v39 = vld [vmem:[#allocation13 + $0x220] sm:$0xff]  ;;  %v4105_v10 = vld [vmem:[#allocation13 + $0x230] sm:$0xff]  ;;  %v4108_v21 = vld [vmem:[#allocation13 + $0x248] sm:$0xff] }
 0x925   : > { %7432 = vmatpush1.bf16.msra.mxu0 %v7431_v60  ;;  %v7467_v60 = vpack.c.bf16 %v4069_v23, %v4067_v33  ;;  %v7503_v33 = vpack.c.bf16 %v4105_v10, %v4103_v39  ;;  %v4143_v10 = vld [vmem:[#allocation13 + $0x360] sm:$0xff] }
 0x926   : > { %7434 = vmatprep.subr.bf16.mxu0 %v7433_v14  ;;  %v4071_v14 = vld [vmem:[#allocation13 + $0x120] sm:$0xff] }
 0x927   : > { %v7471_v1 = vpack.c.bf16 %v4073_v24, %v4071_v14  ;;  %v7507_v14 = vpack.c.bf16 %v4109_v9, %v4107_v18  ;;  %v4147_v18 = vld [vmem:[#allocation13 + $0x380] sm:$0xff]  ;;  %v4149_v9 = vld [vmem:[#allocation13 + $0x390] sm:$0xff] }
 0x928   : > { %4460 = vmatmul.mubr.f32.vlgmr.msra.gmra.mrb[8].mxu0 %v4316_v3 }
 0x929   : > { %7436 = vmatpush1.bf16.msra.mxu0 %v7435_v45  ;;  %4530 = vmatprep.mubr.f32.mxu0 %v4032_v61  ;;  %v4077_v45 = vld [vmem:[#allocation13 + $0x150] sm:$0xff]  ;;  %v4084_v61 = vld [vmem:[#allocation13 + $0x188] sm:$0xff] }
 0x92a   : > { %7438 = vmatprep.subr.bf16.mxu0 %v7437_v43  ;;  %v4080_v43 = vld [vmem:[#allocation13 + $0x168] sm:$0xff]  ;;  %v7475_v5 = vpack.c.bf16 %v4077_v45, %v4075_v2  ;;  %v4115_v45 = vld [vmem:[#allocation13 + $0x280] sm:$0xff] }
 0x92b   : > { %v7477_v3 = vpack.c.bf16 %v4082_v16, %v4080_v43  ;;  %v4117_v43 = vld [vmem:[#allocation13 + $0x290] sm:$0xff]  ;;  %v4120_v16 = vld [vmem:[#allocation13 + $0x2a8] sm:$0xff] }
 0x92d   : > { %7440 = vmatpush1.bf16.msra.mxu0 %v7439_v52  ;;  %v4086_v52 = vld [vmem:[#allocation13 + $0x198] sm:$0xff] }
 0x92e   : > { %7442 = vmatprep.subr.bf16.mxu0 %v7441_v30  ;;  %v7479_v30 = vpack.c.bf16 %v4081_v51, %v4079_v58  ;;  %v7481_v31 = vpack.c.bf16 %v4086_v52, %v4084_v61  ;;  %v4119_v51 = vld [vmem:[#allocation13 + $0x2a0] sm:$0xff]  ;;  %v4121_v61 = vld [vmem:[#allocation13 + $0x2b0] sm:$0xff]  ;;  %v4124_v52 = vld [vmem:[#allocation13 + $0x2c8] sm:$0xff] }
 0x931   : > { %7444 = vmatpush1.bf16.msra.mxu0 %v7443_v25  ;;  %v4090_v25 = vld [vmem:[#allocation13 + $0x1b8] sm:$0xff] }
 0x932   : > { %7446 = vmatprep.subr.bf16.mxu0 %v7445_v27  ;;  %v7483_v27 = vpack.c.bf16 %v4085_v13, %v4083_v62  ;;  %v7485_v38 = vpack.c.bf16 %v4090_v25, %v4088_v28  ;;  %v4123_v13 = vld [vmem:[#allocation13 + $0x2c0] sm:$0xff]  ;;  %v4125_v28 = vld [vmem:[#allocation13 + $0x2d0] sm:$0xff]  ;;  %v4128_v25 = vld [vmem:[#allocation13 + $0x2e8] sm:$0xff] }
 0x935   : > { %7448 = vmatpush1.bf16.msra.mxu0 %v7447_v54  ;;  %v4094_v54 = vld [vmem:[#allocation13 + $0x1d8] sm:$0xff] }
 0x936   : > { %7450 = vmatprep.subr.bf16.mxu0 %v7449_v48  ;;  %v7487_v48 = vpack.c.bf16 %v4089_v41, %v4087_v6  ;;  %v7489_v49 = vpack.c.bf16 %v4094_v54, %v4092_v15  ;;  %v4127_v41 = vld [vmem:[#allocation13 + $0x2e0] sm:$0xff]  ;;  %v4129_v15 = vld [vmem:[#allocation13 + $0x2f0] sm:$0xff]  ;;  %v4132_v54 = vld [vmem:[#allocation13 + $0x308] sm:$0xff] }
 0x939   : > { %7452 = vmatpush1.bf16.msra.mxu0 %v7451_v22  ;;  %v4098_v22 = vld [vmem:[#allocation13 + $0x1f8] sm:$0xff] }
 0x93a   : > { %7454 = vmatprep.subr.bf16.mxu0 %v7453_v32  ;;  %v7491_v32 = vpack.c.bf16 %v4093_v55, %v4091_v42  ;;  %v7493_v17 = vpack.c.bf16 %v4098_v22, %v4096_v20  ;;  %v4131_v55 = vld [vmem:[#allocation13 + $0x300] sm:$0xff]  ;;  %v4133_v20 = vld [vmem:[#allocation13 + $0x310] sm:$0xff]  ;;  %v4136_v22 = vld [vmem:[#allocation13 + $0x328] sm:$0xff] }
 0x93d   : > { %7456 = vmatpush1.bf16.msra.mxu0 %v7455_v0  ;;  %v4102_v0 = vld [vmem:[#allocation13 + $0x218] sm:$0xff] }
 0x93e   : > { %7458 = vmatprep.subr.bf16.mxu0 %v7457_v11  ;;  %v7495_v11 = vpack.c.bf16 %v4097_v59, %v4095_v56  ;;  %v7497_v19 = vpack.c.bf16 %v4102_v0, %v4100_v29  ;;  %v4135_v59 = vld [vmem:[#allocation13 + $0x320] sm:$0xff]  ;;  %v4137_v29 = vld [vmem:[#allocation13 + $0x330] sm:$0xff]  ;;  %v4140_v0 = vld [vmem:[#allocation13 + $0x348] sm:$0xff] }
 0x941   : > { %7460 = vmatpush1.bf16.msra.mxu0 %v7459_v53  ;;  %v4106_v53 = vld [vmem:[#allocation13 + $0x238] sm:$0xff] }
 0x942   : > { %7462 = vmatprep.subr.bf16.mxu0 %v7461_v36  ;;  %v7499_v36 = vpack.c.bf16 %v4101_v12, %v4099_v63  ;;  %v7501_v34 = vpack.c.bf16 %v4106_v53, %v4104_v46  ;;  %v4139_v12 = vld [vmem:[#allocation13 + $0x340] sm:$0xff]  ;;  %v4141_v46 = vld [vmem:[#allocation13 + $0x350] sm:$0xff]  ;;  %v4144_v53 = vld [vmem:[#allocation13 + $0x368] sm:$0xff] }
 0x945   : > { %7464 = vmatpush1.bf16.msra.mxu0 %v7463_v7  ;;  %v4110_v7 = vld [vmem:[#allocation13 + $0x258] sm:$0xff] }
 0x946   : > { %7466 = vmatprep.subr.bf16.mxu0 %v7465_v8  ;;  %v4034_v8 = vld [vmem:[#allocation2 + $0x18] sm:$0xff]  ;;  %v7505_v23 = vpack.c.bf16 %v4110_v7, %v4108_v21  ;;  %v4145_v21 = vld [vmem:[#allocation13 + $0x370] sm:$0xff]  ;;  %v4148_v7 = vld [vmem:[#allocation13 + $0x388] sm:$0xff] }
 0x949   : > { %7468 = vmatpush1.bf16.msra.mxu0 %v7467_v60  ;;  %v4112_v60 = vld [vmem:[#allocation13 + $0x268] sm:$0xff] }
 0x94a   : > { %7470 = vmatprep.subr.bf16.mxu0 %v7469_v44  ;;  %v4114_v44 = vld [vmem:[#allocation13 + $0x278] sm:$0xff] }
 0x94b   : > { %v7509_v24 = vpack.c.bf16 %v4114_v44, %v4112_v60  ;;  %v4152_v60 = vld [vmem:[#allocation13 + $0x3a8] sm:$0xff]  ;;  %v4154_v44 = vld [vmem:[#allocation13 + $0x3b8] sm:$0xff] }
 0x94d   : > { %7472 = vmatpush1.bf16.msra.mxu0 %v7471_v1  ;;  %v4116_v1 = vld [vmem:[#allocation13 + $0x288] sm:$0xff] }
 0x94e   : > { %7474 = vmatprep.subr.bf16.mxu0 %v7473_v57  ;;  %v4118_v57 = vld [vmem:[#allocation13 + $0x298] sm:$0xff] }
 0x94f   : > { %v7513_v2 = vpack.c.bf16 %v4118_v57, %v4116_v1  ;;  %v4156_v1 = vld [vmem:[#allocation13 + $0x3c8] sm:$0xff]  ;;  %v4158_v57 = vld [vmem:[#allocation13 + $0x3d8] sm:$0xff] }
 0x951   : > { %7476 = vmatpush1.bf16.msra.mxu0 %v7475_v5  ;;  %v4122_v5 = vld [vmem:[#allocation13 + $0x2b8] sm:$0xff] }
 0x952   : > { %7478 = vmatprep.subr.bf16.mxu0 %v7477_v3  ;;  %v7515_v3 = vpack.c.bf16 %v4117_v43, %v4115_v45  ;;  %v7517_v58 = vpack.c.bf16 %v4122_v5, %v4120_v16  ;;  %v4155_v45 = vld [vmem:[#allocation13 + $0x3c0] sm:$0xff]  ;;  %v4157_v43 = vld [vmem:[#allocation13 + $0x3d0] sm:$0xff]  ;;  %v4160_v16 = vld [vmem:[#allocation13 + $0x3e8] sm:$0xff] }
 0x953   : > { %v4162_v5 = vld [vmem:[#allocation13 + $0x3f8] sm:$0xff] }
 0x955   : > { %7480 = vmatpush1.bf16.msra.mxu0 %v7479_v30  ;;  %v4126_v30 = vld [vmem:[#allocation13 + $0x2d8] sm:$0xff] }
 0x956   : > { %7482 = vmatprep.subr.bf16.mxu0 %v7481_v31  ;;  %v7519_v31 = vpack.c.bf16 %v4121_v61, %v4119_v51  ;;  %v7521_v62 = vpack.c.bf16 %v4126_v30, %v4124_v52  ;;  %v4159_v51 = vld [vmem:[#allocation13 + $0x3e0] sm:$0xff]  ;;  %v4161_v61 = vld [vmem:[#allocation13 + $0x3f0] sm:$0xff]  ;;  %v4618_v52 = vld [vmem:[#allocation13 + $0x808] sm:$0xff] }
 0x957   : > { %v4620_v30 = vld [vmem:[#allocation13 + $0x818] sm:$0xff] }
 0x959   : > { %7484 = vmatpush1.bf16.msra.mxu0 %v7483_v27  ;;  %v4130_v27 = vld [vmem:[#allocation13 + $0x2f8] sm:$0xff] }
 0x95a   : > { %7486 = vmatprep.subr.bf16.mxu0 %v7485_v38  ;;  %v7523_v38 = vpack.c.bf16 %v4125_v28, %v4123_v13  ;;  %v7525_v6 = vpack.c.bf16 %v4130_v27, %v4128_v25  ;;  %v7561_v13 = vpack.c.bf16 %v4620_v30, %v4618_v52  ;;  %v4617_v28 = vld [vmem:[#allocation13 + $0x800] sm:$0xff]  ;;  %v4619_v25 = vld [vmem:[#allocation13 + $0x810] sm:$0xff]  ;;  %v4613_v27 = vld [vmem:[#allocation2 + $0x28] sm:$0x3] }
 0x95b   : > { %v4642_v52 = vld [vmem:[#allocation13 + $0x8c8] sm:$0xff]  ;;  %v4644_v30 = vld [vmem:[#allocation13 + $0x8d8] sm:$0xff] }
 0x95d   : > { %7488 = vmatpush1.bf16.msra.mxu0 %v7487_v48  ;;  %v4134_v48 = vld [vmem:[#allocation13 + $0x318] sm:$0xff] }
 0x95e   : > { %7490 = vmatprep.subr.bf16.mxu0 %v7489_v49  ;;  %v7527_v49 = vpack.c.bf16 %v4129_v15, %v4127_v41  ;;  %v7529_v42 = vpack.c.bf16 %v4134_v48, %v4132_v54  ;;  %v7563_v15 = vpack.c.bf16 %v4619_v25, %v4617_v28  ;;  %v4757_v54 = vrot.slane %v4613_v27, 2  ;;  %v4643_v28 = vld [vmem:[#allocation13 + $0x8d0] sm:$0xff]  ;;  %v4646_v25 = vld [vmem:[#allocation13 + $0x8e8] sm:$0xff]  ;;  %v4648_v27 = vld [vmem:[#allocation13 + $0x8f8] sm:$0xff] }
 0x961   : > { %7492 = vmatpush1.bf16.msra.mxu0 %v7491_v32  ;;  %v4138_v32 = vld [vmem:[#allocation13 + $0x338] sm:$0xff] }
 0x962   : > { %7494 = vmatprep.subr.bf16.mxu0 %v7493_v17  ;;  %v7531_v17 = vpack.c.bf16 %v4133_v20, %v4131_v55  ;;  %v7533_v56 = vpack.c.bf16 %v4138_v32, %v4136_v22  ;;  %v4033_v55 = vld [vmem:[#allocation2 + $0x10] sm:$0xff]  ;;  %v4626_v20 = vld [vmem:[#allocation13 + $0x848] sm:$0xff]  ;;  %v4628_v22 = vld [vmem:[#allocation13 + $0x858] sm:$0xff] }
 0x965   : > { %7496 = vmatpush1.bf16.msra.mxu0 %v7495_v11  ;;  %v4142_v11 = vld [vmem:[#allocation13 + $0x358] sm:$0xff] }
 0x966   : > { %7498 = vmatprep.subr.bf16.mxu0 %v7497_v19  ;;  %v7535_v19 = vpack.c.bf16 %v4137_v29, %v4135_v59  ;;  %v7537_v63 = vpack.c.bf16 %v4142_v11, %v4140_v0  ;;  %v5013_v59 = vld [vmem:[#allocation15 + $0x180] sm:$0xff]  ;;  %v5014_v29 = vld [vmem:[#allocation15 + $0x188] sm:$0xff] }
 0x967   : > { %v4997_v0 = vld [vmem:[#allocation15 + $0x100] sm:$0xff] }
 0x968   : > { %4531 = vmatmul.mubr.f32.vlgmr.msra.gmra.mrb[8].mxu0 %v10230_v40  ;;  %v7511_v40 = vpack.c.bf16 %v4113_v35, %v4111_v4  ;;  %v4151_v4 = vld [vmem:[#allocation13 + $0x3a0] sm:$0xff]  ;;  %v4153_v35 = vld [vmem:[#allocation13 + $0x3b0] sm:$0xff] }
 0x969   : > { %7500 = vmatpush1.bf16.msra.mxu0 %v7499_v36  ;;  %4601 = vmatprep.mubr.f32.mxu0 %v4034_v8  ;;  %v4146_v36 = vld [vmem:[#allocation13 + $0x378] sm:$0xff] }
 0x96a   : > { %7502 = vmatprep.subr.bf16.mxu0 %v7501_v34  ;;  %v7539_v34 = vpack.c.bf16 %v4141_v46, %v4139_v12  ;;  %v7541_v39 = vpack.c.bf16 %v4146_v36, %v4144_v53  ;;  %v4150_v8 = vld [vmem:[#allocation13 + $0x398] sm:$0xff]  ;;  %v5015_v12 = vld [vmem:[#allocation15 + $0x190] sm:$0xff]  ;;  %v7569_v53 = vpack.c.bf16 %v4628_v22, %v4626_v20  ;;  %v4654_v22 = vld [vmem:[#allocation13 + $0x928] sm:$0xff] }
 0x96b   : > { %v5016_v46 = vld [vmem:[#allocation15 + $0x198] sm:$0xff]  ;;  %v4651_v20 = vld [vmem:[#allocation13 + $0x910] sm:$0xff] }
 0x96d   : > { %7504 = vmatpush1.bf16.msra.mxu0 %v7503_v33  ;;  %v7543_v33 = vpack.c.bf16 %v4145_v21, %v4143_v10  ;;  %v5000_v10 = vld [vmem:[#allocation15 + $0x118] sm:$0xff]  ;;  %v5017_v21 = vld [vmem:[#allocation15 + $0x1a0] sm:$0xff] }
 0x96e   : > { %7506 = vmatprep.subr.bf16.mxu0 %v7505_v23  ;;  %v7545_v23 = vpack.c.bf16 %v4150_v8, %v4148_v7  ;;  %v4630_v7 = vld [vmem:[#allocation13 + $0x868] sm:$0xff]  ;;  %v4632_v8 = vld [vmem:[#allocation13 + $0x878] sm:$0xff] }
 0x971   : > { %7508 = vmatpush1.bf16.msra.mxu0 %v7507_v14  ;;  %v7547_v14 = vpack.c.bf16 %v4149_v9, %v4147_v18 }
 0x972   : > { %7510 = vmatprep.subr.bf16.mxu0 %v7509_v24  ;;  %v7549_v24 = vpack.c.bf16 %v4154_v44, %v4152_v60  ;;  %v5001_v60 = vld [vmem:[#allocation15 + $0x120] sm:$0xff]  ;;  %v5002_v44 = vld [vmem:[#allocation15 + $0x128] sm:$0xff] }
 0x975   : > { %7512 = vmatpush1.bf16.msra.mxu0 %v7511_v40  ;;  %v7551_v40 = vpack.c.bf16 %v4153_v35, %v4151_v4  ;;  %v4631_v4 = vld [vmem:[#allocation13 + $0x870] sm:$0xff]  ;;  %v4634_v35 = vld [vmem:[#allocation13 + $0x888] sm:$0xff] }
 0x976   : > { %7514 = vmatprep.subr.bf16.mxu0 %v7513_v2  ;;  %v7553_v2 = vpack.c.bf16 %v4158_v57, %v4156_v1  ;;  %v4636_v1 = vld [vmem:[#allocation13 + $0x898] sm:$0xff]  ;;  %v7699_v57 = vpack.c.bf16 %v5002_v44, %v5001_v60  ;;  %v4670_v60 = vld [vmem:[#allocation13 + $0x9a8] sm:$0xff] }
 0x977   : > { %v4672_v44 = vld [vmem:[#allocation13 + $0x9b8] sm:$0xff] }
 0x979   : > { %7516 = vmatpush1.bf16.msra.mxu0 %v7515_v3  ;;  %v7555_v3 = vpack.c.bf16 %v4157_v43, %v4155_v45  ;;  %v4633_v45 = vld [vmem:[#allocation13 + $0x880] sm:$0xff]  ;;  %v4635_v43 = vld [vmem:[#allocation13 + $0x890] sm:$0xff] }
 0x97a   : > { %7518 = vmatprep.subr.bf16.mxu0 %v7517_v58  ;;  %v7557_v58 = vpack.c.bf16 %v4162_v5, %v4160_v16  ;;  %v4638_v16 = vld [vmem:[#allocation13 + $0x8a8] sm:$0xff]  ;;  %v4640_v5 = vld [vmem:[#allocation13 + $0x8b8] sm:$0xff] }
 0x97d   : > { %7520 = vmatpush1.bf16.msra.mxu0 %v7519_v31  ;;  %v7559_v31 = vpack.c.bf16 %v4161_v61, %v4159_v51  ;;  %v4637_v51 = vld [vmem:[#allocation13 + $0x8a0] sm:$0xff]  ;;  %v4639_v61 = vld [vmem:[#allocation13 + $0x8b0] sm:$0xff] }
 0x97e   : > { %7522 = vmatprep.subr.bf16.mxu0 %v7521_v62  ;;  %v4609_v62 = vld [vmem:[#allocation2 + $0x8] sm:$0xfc] }
 0x97f   : > { %v4756_v41 = vrot.slane %v4609_v62, 2  ;;  %v7585_v62 = vpack.c.bf16 %v4644_v30, %v4642_v52  ;;  %v4682_v52 = vld [vmem:[#allocation13 + $0xa08] sm:$0xff]  ;;  %v4684_v30 = vld [vmem:[#allocation13 + $0xa18] sm:$0xff] }
 0x981   : > { %7524 = vmatpush1.bf16.msra.mxu0 %v7523_v38  ;;  %v4622_v38 = vld [vmem:[#allocation13 + $0x828] sm:$0xff]  ;;  %v4758_v32 = vsel %vm1294_vm1, %v4756_v41, %v4757_v54  ;;  %v4645_v41 = vld [vmem:[#allocation13 + $0x8e0] sm:$0xff] }
 0x982   : > { %7526 = vmatprep.subr.bf16.mxu0 %v7525_v6  ;;  %v4624_v6 = vld [vmem:[#allocation13 + $0x838] sm:$0xff]  ;;  %v4650_v54 = vld [vmem:[#allocation13 + $0x908] sm:$0xff] }
 0x983   : > { %v7565_v48 = vpack.c.bf16 %v4624_v6, %v4622_v38  ;;  %v7589_v6 = vpack.c.bf16 %v4648_v27, %v4646_v25  ;;  %v4681_v25 = vld [vmem:[#allocation13 + $0xa00] sm:$0xff]  ;;  %v4683_v27 = vld [vmem:[#allocation13 + $0xa10] sm:$0xff] }
 0x985   : > { %7528 = vmatpush1.bf16.msra.mxu0 %v7527_v49  ;;  %v4621_v49 = vld [vmem:[#allocation13 + $0x820] sm:$0xff] }
 0x986   : > { %7530 = vmatprep.subr.bf16.mxu0 %v7529_v42  ;;  %v4623_v42 = vld [vmem:[#allocation13 + $0x830] sm:$0xff] }
 0x987   : > { %v7567_v11 = vpack.c.bf16 %v4623_v42, %v4621_v49 }
 0x989   : > { %7532 = vmatpush1.bf16.msra.mxu0 %v7531_v17  ;;  %v4625_v17 = vld [vmem:[#allocation13 + $0x840] sm:$0xff] }
 0x98a   : > { %7534 = vmatprep.subr.bf16.mxu0 %v7533_v56  ;;  %v4627_v56 = vld [vmem:[#allocation13 + $0x850] sm:$0xff] }
 0x98b   : > { %v7571_v18 = vpack.c.bf16 %v4627_v56, %v4625_v17 }
 0x98d   : > { %7536 = vmatpush1.bf16.msra.mxu0 %v7535_v19  ;;  %v7689_v19 = vpack.c.bf16 %v5014_v29, %v5013_v59  ;;  %v4653_v59 = vld [vmem:[#allocation13 + $0x920] sm:$0xff]  ;;  %v4655_v29 = vld [vmem:[#allocation13 + $0x930] sm:$0xff] }
 0x98e   : > { %7538 = vmatprep.subr.bf16.mxu0 %v7537_v63  ;;  %v4998_v63 = vld [vmem:[#allocation15 + $0x108] sm:$0xff] }
 0x98f   : > { %v7691_v36 = vpack.c.bf16 %v4998_v63, %v4997_v0  ;;  %7690 = vmatprep.subr.bf16.mxu1 %v7689_v19  ;;  %v4658_v0 = vld [vmem:[#allocation13 + $0x948] sm:$0xff]  ;;  %v7599_v19 = vpack.c.bf16 %v4655_v29, %v4653_v59 }
 0x991   : > { %7540 = vmatpush1.bf16.msra.mxu0 %v7539_v34  ;;  %v7693_v34 = vpack.c.bf16 %v5016_v46, %v5015_v12  ;;  %7692 = vmatpush3.bf16.msra.mxu1 %v7691_v36  ;;  %v4657_v12 = vld [vmem:[#allocation13 + $0x940] sm:$0xff]  ;;  %v4659_v46 = vld [vmem:[#allocation13 + $0x950] sm:$0xff]  ;;  %v4664_v36 = vld [vmem:[#allocation13 + $0x978] sm:$0xff] }
 0x992   : > { %7542 = vmatprep.subr.bf16.mxu0 %v7541_v39  ;;  %v4999_v39 = vld [vmem:[#allocation15 + $0x110] sm:$0xff] }
 0x993   : > { %7694 = vmatprep.subr.bf16.mxu1 %v7693_v34  ;;  %v7603_v34 = vpack.c.bf16 %v4659_v46, %v4657_v12 }
 0x995   : > { %7544 = vmatpush1.bf16.msra.mxu0 %v7543_v33  ;;  %v5018_v33 = vld [vmem:[#allocation15 + $0x1a8] sm:$0xff] }
 0x996   : > { %7546 = vmatprep.subr.bf16.mxu0 %v7545_v23  ;;  %v7695_v23 = vpack.c.bf16 %v5000_v10, %v4999_v39  ;;  %v7697_v9 = vpack.c.bf16 %v5018_v33, %v5017_v21  ;;  %v4661_v10 = vld [vmem:[#allocation13 + $0x960] sm:$0xff]  ;;  %v4663_v21 = vld [vmem:[#allocation13 + $0x970] sm:$0xff] }
 0x997   : > { %v7607_v33 = vpack.c.bf16 %v4663_v21, %v4661_v10 }
 0x998   : > { %7696 = vmatpush3.bf16.msra.mxu1 %v7695_v23 }
 0x999   : > { %7548 = vmatpush1.bf16.msra.mxu0 %v7547_v14  ;;  %v7573_v14 = vpack.c.bf16 %v4632_v8, %v4630_v7  ;;  %7698 = vmatprep.subr.bf16.mxu1 %v7697_v9  ;;  %v4666_v7 = vld [vmem:[#allocation13 + $0x988] sm:$0xff]  ;;  %v4668_v8 = vld [vmem:[#allocation13 + $0x998] sm:$0xff]  ;;  %v4667_v9 = vld [vmem:[#allocation13 + $0x990] sm:$0xff] }
 0x99a   : > { %7550 = vmatprep.subr.bf16.mxu0 %v7549_v24  ;;  %v4629_v24 = vld [vmem:[#allocation13 + $0x860] sm:$0xff]  ;;  %v7609_v23 = vpack.c.bf16 %v4668_v8, %v4666_v7  ;;  %v4699_v8 = vld [vmem:[#allocation13 + $0xa90] sm:$0xff] }
 0x99b   : > { %v4697_v7 = vld [vmem:[#allocation13 + $0xa80] sm:$0xff] }
 0x99c   : > { %7700 = vmatpush3.bf16.msra.mxu1 %v7699_v57  ;;  %v4676_v57 = vld [vmem:[#allocation13 + $0x9d8] sm:$0xff] }
 0x99d   : > { %7552 = vmatpush1.bf16.msra.mxu0 %v7551_v40  ;;  %v7575_v40 = vpack.c.bf16 %v4631_v4, %v4629_v24  ;;  %v7613_v24 = vpack.c.bf16 %v4672_v44, %v4670_v60  ;;  %v4669_v4 = vld [vmem:[#allocation13 + $0x9a0] sm:$0xff]  ;;  %v4703_v44 = vld [vmem:[#allocation13 + $0xab0] sm:$0xff] }
 0x99e   : > { %7554 = vmatprep.subr.bf16.mxu0 %v7553_v2  ;;  %v7577_v2 = vpack.c.bf16 %v4636_v1, %v4634_v35  ;;  %v4671_v35 = vld [vmem:[#allocation13 + $0x9b0] sm:$0xff]  ;;  %v4674_v1 = vld [vmem:[#allocation13 + $0x9c8] sm:$0xff]  ;;  %v4701_v60 = vld [vmem:[#allocation13 + $0xaa0] sm:$0xff] }
 0x9a1   : > { %7556 = vmatpush1.bf16.msra.mxu0 %v7555_v3  ;;  %v7579_v3 = vpack.c.bf16 %v4635_v43, %v4633_v45  ;;  %v4673_v45 = vld [vmem:[#allocation13 + $0x9c0] sm:$0xff]  ;;  %v4675_v43 = vld [vmem:[#allocation13 + $0x9d0] sm:$0xff] }
 0x9a2   : > { %7558 = vmatprep.subr.bf16.mxu0 %v7557_v58  ;;  %v7581_v58 = vpack.c.bf16 %v4640_v5, %v4638_v16  ;;  %v4678_v16 = vld [vmem:[#allocation13 + $0x9e8] sm:$0xff]  ;;  %v4680_v5 = vld [vmem:[#allocation13 + $0x9f8] sm:$0xff] }
 0x9a5   : > { %7560 = vmatpush1.bf16.msra.mxu0 %v7559_v31  ;;  %v7583_v31 = vpack.c.bf16 %v4639_v61, %v4637_v51  ;;  %v4677_v51 = vld [vmem:[#allocation13 + $0x9e0] sm:$0xff]  ;;  %v4679_v61 = vld [vmem:[#allocation13 + $0x9f0] sm:$0xff] }
 0x9a6   : > { %7562 = vmatprep.subr.bf16.mxu0 %v7561_v13  ;;  %v4641_v13 = vld [vmem:[#allocation13 + $0x8c0] sm:$0xff] }
 0x9a7   : > { %v7587_v38 = vpack.c.bf16 %v4643_v28, %v4641_v13  ;;  %v4612_v13 = vld [vmem:[#allocation2 + $0x20] sm:$0x3]  ;;  %v7625_v28 = vpack.c.bf16 %v4684_v30, %v4682_v52  ;;  %v4715_v30 = vld [vmem:[#allocation13 + $0xb10] sm:$0xff] }
 0x9a8   : > { %4602 = vmatmul.mubr.f32.vlgmr.msra.gmra.mrb[8].mxu0 %v4033_v55  ;;  %v4649_v55 = vld [vmem:[#allocation13 + $0x900] sm:$0xff] }
 0x9a9   : > { %7564 = vmatpush1.bf16.msra.mxu0 %v7563_v15  ;;  %4833 = vmatprep.mubr.f32.mxu0 %v4758_v32  ;;  %v4647_v15 = vld [vmem:[#allocation13 + $0x8f0] sm:$0xff]  ;;  %v4656_v32 = vld [vmem:[#allocation13 + $0x938] sm:$0xff]  ;;  %v7595_v17 = vpack.c.bf16 %v4651_v20, %v4649_v55  ;;  %v4685_v20 = vld [vmem:[#allocation13 + $0xa20] sm:$0xff] }
 0x9aa   : > { %7566 = vmatprep.subr.bf16.mxu0 %v7565_v48  ;;  %v4652_v48 = vld [vmem:[#allocation13 + $0x918] sm:$0xff]  ;;  %v7591_v49 = vpack.c.bf16 %v4647_v15, %v4645_v41  ;;  %v7597_v56 = vpack.c.bf16 %v4656_v32, %v4654_v22  ;;  %v4686_v41 = vld [vmem:[#allocation13 + $0xa28] sm:$0xff]  ;;  %v4687_v22 = vld [vmem:[#allocation13 + $0xa30] sm:$0xff] }
 0x9ab   : > { %v7593_v42 = vpack.c.bf16 %v4652_v48, %v4650_v54  ;;  %v4688_v15 = vld [vmem:[#allocation13 + $0xa38] sm:$0xff]  ;;  %v4754_v48 = vrot.slane %v4612_v13, 2  ;;  %v4713_v52 = vld [vmem:[#allocation13 + $0xb00] sm:$0xff] }
 0x9ac   : > { %v7629_v55 = vpack.c.bf16 %v4688_v15, %v4686_v41  ;;  %v7659_v13 = vpack.c.bf16 %v4715_v30, %v4713_v52  ;;  %v5023_v52 = vld [vmem:[#allocation15 + $0x1d0] sm:$0xff]  ;;  %v5024_v30 = vld [vmem:[#allocation15 + $0x1d8] sm:$0xff] }
 0x9ad   : > { %7568 = vmatpush1.bf16.msra.mxu0 %v7567_v11  ;;  %v4660_v11 = vld [vmem:[#allocation13 + $0x958] sm:$0xff] }
 0x9ae   : > { %7570 = vmatprep.subr.bf16.mxu0 %v7569_v53  ;;  %v7601_v63 = vpack.c.bf16 %v4660_v11, %v4658_v0  ;;  %v4662_v53 = vld [vmem:[#allocation13 + $0x968] sm:$0xff]  ;;  %v4689_v0 = vld [vmem:[#allocation13 + $0xa40] sm:$0xff]  ;;  %v4691_v11 = vld [vmem:[#allocation13 + $0xa50] sm:$0xff] }
 0x9af   : > { %v7605_v39 = vpack.c.bf16 %v4664_v36, %v4662_v53  ;;  %v7635_v12 = vpack.c.bf16 %v4691_v11, %v4689_v0  ;;  %v4693_v53 = vld [vmem:[#allocation13 + $0xa60] sm:$0xff]  ;;  %v4695_v36 = vld [vmem:[#allocation13 + $0xa70] sm:$0xff]  ;;  %v4734_v11 = vld [vmem:[#allocation13 + $0xba8] sm:$0xff] }
 0x9b0   : > { %v7639_v10 = vpack.c.bf16 %v4695_v36, %v4693_v53  ;;  %v4731_v0 = vld [vmem:[#allocation13 + $0xb90] sm:$0xff]  ;;  %v4738_v36 = vld [vmem:[#allocation13 + $0xbc8] sm:$0xff] }
 0x9b1   : > { %7572 = vmatpush1.bf16.msra.mxu0 %v7571_v18  ;;  %v4665_v18 = vld [vmem:[#allocation13 + $0x980] sm:$0xff]  ;;  %v4735_v53 = vld [vmem:[#allocation13 + $0xbb0] sm:$0xff] }
 0x9b2   : > { %7574 = vmatprep.subr.bf16.mxu0 %v7573_v14  ;;  %v7611_v14 = vpack.c.bf16 %v4667_v9, %v4665_v18  ;;  %v7643_v18 = vpack.c.bf16 %v4699_v8, %v4697_v7  ;;  %v4739_v7 = vld [vmem:[#allocation13 + $0xbd0] sm:$0xff]  ;;  %v4742_v8 = vld [vmem:[#allocation13 + $0xbe8] sm:$0xff] }
 0x9b5   : > { %7576 = vmatpush1.bf16.msra.mxu0 %v7575_v40  ;;  %v7615_v40 = vpack.c.bf16 %v4671_v35, %v4669_v4  ;;  %v7647_v4 = vpack.c.bf16 %v4703_v44, %v4701_v60  ;;  %v4743_v60 = vld [vmem:[#allocation13 + $0xbf0] sm:$0xff] }
 0x9b6   : > { %7578 = vmatprep.subr.bf16.mxu0 %v7577_v2  ;;  %v7617_v2 = vpack.c.bf16 %v4676_v57, %v4674_v1  ;;  %v4705_v1 = vld [vmem:[#allocation13 + $0xac0] sm:$0xff]  ;;  %v4707_v57 = vld [vmem:[#allocation13 + $0xad0] sm:$0xff] }
 0x9b7   : > { %v4610_v44 = vld [vmem:[#allocation2 + $0x10] sm:$0xfc] }
 0x9b9   : > { %7580 = vmatpush1.bf16.msra.mxu0 %v7579_v3  ;;  %v7619_v3 = vpack.c.bf16 %v4675_v43, %v4673_v45  ;;  %v7651_v45 = vpack.c.bf16 %v4707_v57, %v4705_v1  ;;  %v5019_v57 = vld [vmem:[#allocation15 + $0x1b0] sm:$0xff] }
 0x9ba   : > { %7582 = vmatprep.subr.bf16.mxu0 %v7581_v58  ;;  %v7621_v58 = vpack.c.bf16 %v4680_v5, %v4678_v16  ;;  %v4709_v16 = vld [vmem:[#allocation13 + $0xae0] sm:$0xff]  ;;  %v4711_v5 = vld [vmem:[#allocation13 + $0xaf0] sm:$0xff] }
 0x9bd   : > { %7584 = vmatpush1.bf16.msra.mxu0 %v7583_v31  ;;  %v7623_v31 = vpack.c.bf16 %v4679_v61, %v4677_v51  ;;  %v7655_v51 = vpack.c.bf16 %v4711_v5, %v4709_v16  ;;  %v5021_v16 = vld [vmem:[#allocation15 + $0x1c0] sm:$0xff] }
 0x9be   : > { %7586 = vmatprep.subr.bf16.mxu0 %v7585_v62  ;;  %v4611_v62 = vld [vmem:[#allocation2 + $0x18] sm:$0xfc] }
 0x9bf   : > { %v4762_v54 = vrot.slane %v4611_v62, 2  ;;  %v4720_v62 = vld [vmem:[#allocation13 + $0xb38] sm:$0xff] }
 0x9c1   : > { %7588 = vmatpush1.bf16.msra.mxu0 %v7587_v38  ;;  %v4753_v38 = vrot.slane %v10232_v37, 2  ;;  %v7631_v37 = vpack.c.bf16 %v4687_v22, %v4685_v20  ;;  %v4725_v22 = vld [vmem:[#allocation13 + $0xb60] sm:$0xff] }
 0x9c2   : > { %7590 = vmatprep.subr.bf16.mxu0 %v7589_v6  ;;  %v4615_v6 = vld [vmem:[#allocation2 + $0x38] sm:$0x3] }
 0x9c3   : > { %v4755_v32 = vsel %vm1294_vm1, %v4753_v38, %v4754_v48  ;;  %v4722_v38 = vld [vmem:[#allocation13 + $0xb48] sm:$0xff]  ;;  %v4723_v48 = vld [vmem:[#allocation13 + $0xb50] sm:$0xff] }
 0x9c5   : > { %7592 = vmatpush1.bf16.msra.mxu0 %v7591_v49  ;;  %v7627_v49 = vpack.c.bf16 %v4683_v27, %v4681_v25  ;;  %v4717_v25 = vld [vmem:[#allocation13 + $0xb20] sm:$0xff]  ;;  %v4719_v27 = vld [vmem:[#allocation13 + $0xb30] sm:$0xff] }
 0x9c6   : > { %7594 = vmatprep.subr.bf16.mxu0 %v7593_v42  ;;  %v4763_v42 = vrot.slane %v4615_v6, 2  ;;  %v4724_v6 = vld [vmem:[#allocation13 + $0xb58] sm:$0xff]  ;;  %v7663_v41 = vpack.c.bf16 %v4719_v27, %v4717_v25  ;;  %v5025_v25 = vld [vmem:[#allocation15 + $0x1e0] sm:$0xff]  ;;  %v5026_v27 = vld [vmem:[#allocation15 + $0x1e8] sm:$0xff] }
 0x9c7   : > { %v7665_v15 = vpack.c.bf16 %v4724_v6, %v4722_v38  ;;  %v7713_v6 = vpack.c.bf16 %v5026_v27, %v5025_v25  ;;  %v4984_v25 = vld [vmem:[#allocation15 + $0xc0] sm:$0xff]  ;;  %v4985_v27 = vld [vmem:[#allocation15 + $0xc8] sm:$0xff] }
 0x9c8   : > { %v4764_v59 = vsel %vm1294_vm1, %v4762_v54, %v4763_v42  ;;  %v4721_v54 = vld [vmem:[#allocation13 + $0xb40] sm:$0xff]  ;;  %v4728_v42 = vld [vmem:[#allocation13 + $0xb78] sm:$0xff] }
 0x9c9   : > { %7596 = vmatpush1.bf16.msra.mxu0 %v7595_v17  ;;  %v4690_v17 = vld [vmem:[#allocation13 + $0xa48] sm:$0xff] }
 0x9ca   : > { %7598 = vmatprep.subr.bf16.mxu0 %v7597_v56  ;;  %v4692_v56 = vld [vmem:[#allocation13 + $0xa58] sm:$0xff] }
 0x9cb   : > { %v7633_v29 = vpack.c.bf16 %v4692_v56, %v4690_v17  ;;  %v4730_v17 = vld [vmem:[#allocation13 + $0xb88] sm:$0xff]  ;;  %v4732_v56 = vld [vmem:[#allocation13 + $0xb98] sm:$0xff] }
 0x9cd   : > { %7600 = vmatpush1.bf16.msra.mxu0 %v7599_v19  ;;  %v4694_v19 = vld [vmem:[#allocation13 + $0xa68] sm:$0xff] }
 0x9ce   : > { %7602 = vmatprep.subr.bf16.mxu0 %v7601_v63  ;;  %v4696_v63 = vld [vmem:[#allocation13 + $0xa78] sm:$0xff] }
 0x9cf   : > { %v7637_v46 = vpack.c.bf16 %v4696_v63, %v4694_v19  ;;  %v4736_v19 = vld [vmem:[#allocation13 + $0xbb8] sm:$0xff] }
 0x9d1   : > { %7604 = vmatpush1.bf16.msra.mxu0 %v7603_v34  ;;  %v4698_v34 = vld [vmem:[#allocation13 + $0xa88] sm:$0xff] }
 0x9d2   : > { %7606 = vmatprep.subr.bf16.mxu0 %v7605_v39  ;;  %v4700_v39 = vld [vmem:[#allocation13 + $0xa98] sm:$0xff] }
 0x9d3   : > { %v7641_v21 = vpack.c.bf16 %v4700_v39, %v4698_v34  ;;  %v4740_v34 = vld [vmem:[#allocation13 + $0xbd8] sm:$0xff] }
 0x9d5   : > { %7608 = vmatpush1.bf16.msra.mxu0 %v7607_v33  ;;  %v4702_v33 = vld [vmem:[#allocation13 + $0xaa8] sm:$0xff] }
 0x9d6   : > { %7610 = vmatprep.subr.bf16.mxu0 %v7609_v23  ;;  %v4704_v23 = vld [vmem:[#allocation13 + $0xab8] sm:$0xff] }
 0x9d7   : > { %v7645_v9 = vpack.c.bf16 %v4704_v23, %v4702_v33  ;;  %v4744_v33 = vld [vmem:[#allocation13 + $0xbf8] sm:$0xff] }
 0x9d9   : > { %7612 = vmatpush1.bf16.msra.mxu0 %v7611_v14  ;;  %v4706_v14 = vld [vmem:[#allocation13 + $0xac8] sm:$0xff] }
 0x9da   : > { %7614 = vmatprep.subr.bf16.mxu0 %v7613_v24  ;;  %v4708_v24 = vld [vmem:[#allocation13 + $0xad8] sm:$0xff] }
 0x9db   : > { %v7649_v35 = vpack.c.bf16 %v4708_v24, %v4706_v14  ;;  %v4614_v24 = vld [vmem:[#allocation2 + $0x30] sm:$0x3] }
 0x9dd   : > { %7616 = vmatpush1.bf16.msra.mxu0 %v7615_v40  ;;  %v4710_v40 = vld [vmem:[#allocation13 + $0xae8] sm:$0xff] }
 0x9de   : > { %7618 = vmatprep.subr.bf16.mxu0 %v7617_v2  ;;  %v4712_v2 = vld [vmem:[#allocation13 + $0xaf8] sm:$0xff] }
 0x9df   : > { %v7653_v43 = vpack.c.bf16 %v4712_v2, %v4710_v40  ;;  %v5020_v40 = vld [vmem:[#allocation15 + $0x1b8] sm:$0xff] }
 0x9e0   : > { %v7701_v2 = vpack.c.bf16 %v5020_v40, %v5019_v57  ;;  %v4962_v40 = vld [vmem:[#allocation15 + $0x10] sm:$0xff] }
 0x9e1   : > { %7620 = vmatpush1.bf16.msra.mxu0 %v7619_v3  ;;  %v4714_v3 = vld [vmem:[#allocation13 + $0xb08] sm:$0xff] }
 0x9e2   : > { %7622 = vmatprep.subr.bf16.mxu0 %v7621_v58  ;;  %v4716_v58 = vld [vmem:[#allocation13 + $0xb18] sm:$0xff]  ;;  %7702 = vmatprep.subr.bf16.mxu1 %v7701_v2 }
 0x9e3   : > { %v7657_v61 = vpack.c.bf16 %v4716_v58, %v4714_v3  ;;  %v5022_v3 = vld [vmem:[#allocation15 + $0x1c8] sm:$0xff]  ;;  %v5005_v58 = vld [vmem:[#allocation15 + $0x140] sm:$0xff]  ;;  %v4963_v2 = vld [vmem:[#allocation15 + $0x18] sm:$0xff] }
 0x9e5   : > { %7624 = vmatpush1.bf16.msra.mxu0 %v7623_v31  ;;  %v4718_v31 = vld [vmem:[#allocation13 + $0xb28] sm:$0xff] }
 0x9e6   : > { %7626 = vmatprep.subr.bf16.mxu0 %v7625_v28  ;;  %v7661_v28 = vpack.c.bf16 %v4720_v62, %v4718_v31  ;;  %v7709_v62 = vpack.c.bf16 %v5024_v30, %v5023_v52  ;;  %v4982_v52 = vld [vmem:[#allocation15 + $0xb0] sm:$0xff]  ;;  %v4983_v30 = vld [vmem:[#allocation15 + $0xb8] sm:$0xff] }
 0x9e8   : > { %4834 = vmatmul.mubr.f32.vlgmr.msra.gmra.mrb[8].mxu0 %v4755_v32  ;;  %v4727_v32 = vld [vmem:[#allocation13 + $0xb70] sm:$0xff] }
 0x9e9   : > { %7628 = vmatpush1.bf16.msra.mxu0 %v7627_v49  ;;  %4904 = vmatprep.mubr.f32.mxu0 %v4764_v59  ;;  %v4726_v49 = vld [vmem:[#allocation13 + $0xb68] sm:$0xff]  ;;  %v7671_v59 = vpack.c.bf16 %v4727_v32, %v4725_v22  ;;  %v4976_v22 = vld [vmem:[#allocation15 + $0x80] sm:$0xff] }
 0x9ea   : > { %7630 = vmatprep.subr.bf16.mxu0 %v7629_v55  ;;  %v7667_v55 = vpack.c.bf16 %v4723_v48, %v4721_v54  ;;  %v7669_v20 = vpack.c.bf16 %v4728_v42, %v4726_v49  ;;  %v5027_v54 = vld [vmem:[#allocation15 + $0x1f0] sm:$0xff]  ;;  %v5028_v48 = vld [vmem:[#allocation15 + $0x1f8] sm:$0xff]  ;;  %v4977_v32 = vld [vmem:[#allocation15 + $0x88] sm:$0xff] }
 0x9eb   : > { %v7717_v42 = vpack.c.bf16 %v5028_v48, %v5027_v54  ;;  %v4986_v54 = vld [vmem:[#allocation15 + $0xd0] sm:$0xff]  ;;  %v4987_v48 = vld [vmem:[#allocation15 + $0xd8] sm:$0xff] }
 0x9ed   : > { %7632 = vmatpush1.bf16.msra.mxu0 %v7631_v37  ;;  %v7673_v37 = vpack.c.bf16 %v4732_v56, %v4730_v17  ;;  %v7721_v56 = vpack.c.bf16 %v4977_v32, %v4976_v22  ;;  %v4988_v22 = vld [vmem:[#allocation15 + $0xe0] sm:$0xff]  ;;  %v4989_v32 = vld [vmem:[#allocation15 + $0xe8] sm:$0xff] }
 0x9ee   : > { %7634 = vmatprep.subr.bf16.mxu0 %v7633_v29  ;;  %v4729_v29 = vld [vmem:[#allocation13 + $0xb80] sm:$0xff] }
 0x9ef   : > { %v7675_v63 = vpack.c.bf16 %v4731_v0, %v4729_v29 }
 0x9f1   : > { %7636 = vmatpush1.bf16.msra.mxu0 %v7635_v12  ;;  %v7677_v12 = vpack.c.bf16 %v4736_v19, %v4734_v11 }
 0x9f2   : > { %7638 = vmatprep.subr.bf16.mxu0 %v7637_v46  ;;  %v4733_v46 = vld [vmem:[#allocation13 + $0xba0] sm:$0xff] }
 0x9f3   : > { %v7679_v39 = vpack.c.bf16 %v4735_v53, %v4733_v46 }
 0x9f5   : > { %7640 = vmatpush1.bf16.msra.mxu0 %v7639_v10  ;;  %v7681_v10 = vpack.c.bf16 %v4740_v34, %v4738_v36 }
 0x9f6   : > { %7642 = vmatprep.subr.bf16.mxu0 %v7641_v21  ;;  %v4737_v21 = vld [vmem:[#allocation13 + $0xbc0] sm:$0xff] }
 0x9f7   : > { %v7683_v23 = vpack.c.bf16 %v4739_v7, %v4737_v21 }
 0x9f9   : > { %7644 = vmatpush1.bf16.msra.mxu0 %v7643_v18  ;;  %v7685_v18 = vpack.c.bf16 %v4744_v33, %v4742_v8  ;;  %v4960_v8 = vld [vmem:[#allocation15] sm:$0xff]  ;;  %v4978_v33 = vld [vmem:[#allocation15 + $0x90] sm:$0xff] }
 0x9fa   : > { %7646 = vmatprep.subr.bf16.mxu0 %v7645_v9  ;;  %v4741_v9 = vld [vmem:[#allocation13 + $0xbe0] sm:$0xff] }
 0x9fb   : > { %v7687_v14 = vpack.c.bf16 %v4743_v60, %v4741_v9 }
 0x9fd   : > { %7648 = vmatpush1.bf16.msra.mxu0 %v7647_v4  ;;  %v4759_v4 = vrot.slane %v4610_v44, 2 }
 0x9fe   : > { %7650 = vmatprep.subr.bf16.mxu0 %v7649_v35  ;;  %v4760_v35 = vrot.slane %v4614_v24, 2 }
 0xa00   : > { %v4761_v1 = vsel %vm1294_vm1, %v4759_v4, %v4760_v35 }
 0xa01   : > { %7652 = vmatpush1.bf16.msra.mxu0 %v7651_v45  ;;  %v5003_v45 = vld [vmem:[#allocation15 + $0x130] sm:$0xff] }
 0xa02   : > { %7654 = vmatprep.subr.bf16.mxu0 %v7653_v43  ;;  %v5004_v43 = vld [vmem:[#allocation15 + $0x138] sm:$0xff] }
 0xa03   : > { %v7703_v5 = vpack.c.bf16 %v5004_v43, %v5003_v45  ;;  %v4980_v43 = vld [vmem:[#allocation15 + $0xa0] sm:$0xff] }
 0xa05   : > { %7656 = vmatpush1.bf16.msra.mxu0 %v7655_v51  ;;  %v5006_v51 = vld [vmem:[#allocation15 + $0x148] sm:$0xff]  ;;  %7704 = vmatpush3.bf16.msra.mxu1 %v7703_v5 }
 0xa06   : > { %7658 = vmatprep.subr.bf16.mxu0 %v7657_v61  ;;  %v7705_v61 = vpack.c.bf16 %v5022_v3, %v5021_v16  ;;  %v7707_v31 = vpack.c.bf16 %v5006_v51, %v5005_v58  ;;  %v4981_v16 = vld [vmem:[#allocation15 + $0xa8] sm:$0xff]  ;;  %v7727_v3 = vpack.c.bf16 %v4963_v2, %v4962_v40  ;;  %v4964_v51 = vld [vmem:[#allocation15 + $0x20] sm:$0xff]  ;;  %v5208_v2 = vld [vmem:[#allocation15 + $0x2b0] sm:$0xff] }
 0xa07   : > { %v7729_v58 = vpack.c.bf16 %v4981_v16, %v4980_v43  ;;  %v5191_v40 = vld [vmem:[#allocation15 + $0x228] sm:$0xff] }
 0xa08   : > { %7706 = vmatprep.subr.bf16.mxu1 %v7705_v61  ;;  %v4965_v61 = vld [vmem:[#allocation15 + $0x28] sm:$0xff] }
 0xa09   : > { %7660 = vmatpush1.bf16.msra.mxu0 %v7659_v13  ;;  %v5007_v13 = vld [vmem:[#allocation15 + $0x150] sm:$0xff]  ;;  %7708 = vmatpush3.bf16.msra.mxu1 %v7707_v31  ;;  %v7731_v31 = vpack.c.bf16 %v4965_v61, %v4964_v51  ;;  %v5211_v51 = vld [vmem:[#allocation15 + $0x2c8] sm:$0xff] }
 0xa0a   : > { %7662 = vmatprep.subr.bf16.mxu0 %v7661_v28  ;;  %v5008_v28 = vld [vmem:[#allocation15 + $0x158] sm:$0xff]  ;;  %7710 = vmatprep.subr.bf16.mxu1 %v7709_v62  ;;  %v7733_v62 = vpack.c.bf16 %v4983_v30, %v4982_v52  ;;  %v5194_v30 = vld [vmem:[#allocation15 + $0x240] sm:$0xff] }
 0xa0b   : > { %v7711_v38 = vpack.c.bf16 %v5008_v28, %v5007_v13  ;;  %v4966_v13 = vld [vmem:[#allocation15 + $0x30] sm:$0xff]  ;;  %v4967_v28 = vld [vmem:[#allocation15 + $0x38] sm:$0xff] }
 0xa0d   : > { %7664 = vmatpush1.bf16.msra.mxu0 %v7663_v41  ;;  %v5009_v41 = vld [vmem:[#allocation15 + $0x160] sm:$0xff]  ;;  %7712 = vmatpush3.bf16.msra.mxu1 %v7711_v38  ;;  %v7735_v38 = vpack.c.bf16 %v4967_v28, %v4966_v13  ;;  %v5213_v13 = vld [vmem:[#allocation15 + $0x2d8] sm:$0xff] }
 0xa0e   : > { %7666 = vmatprep.subr.bf16.mxu0 %v7665_v15  ;;  %v5010_v15 = vld [vmem:[#allocation15 + $0x168] sm:$0xff]  ;;  %7714 = vmatprep.subr.bf16.mxu1 %v7713_v6  ;;  %v7737_v6 = vpack.c.bf16 %v4985_v27, %v4984_v25  ;;  %v5196_v27 = vld [vmem:[#allocation15 + $0x250] sm:$0xff] }
 0xa0f   : > { %v7715_v49 = vpack.c.bf16 %v5010_v15, %v5009_v41  ;;  %v4968_v41 = vld [vmem:[#allocation15 + $0x40] sm:$0xff]  ;;  %v4969_v15 = vld [vmem:[#allocation15 + $0x48] sm:$0xff] }
 0xa11   : > { %7668 = vmatpush1.bf16.msra.mxu0 %v7667_v55  ;;  %v5011_v55 = vld [vmem:[#allocation15 + $0x170] sm:$0xff]  ;;  %7716 = vmatpush3.bf16.msra.mxu1 %v7715_v49  ;;  %v7739_v49 = vpack.c.bf16 %v4969_v15, %v4968_v41  ;;  %v5215_v41 = vld [vmem:[#allocation15 + $0x2e8] sm:$0xff] }
 0xa12   : > { %7670 = vmatprep.subr.bf16.mxu0 %v7669_v20  ;;  %v5012_v20 = vld [vmem:[#allocation15 + $0x178] sm:$0xff]  ;;  %7718 = vmatprep.subr.bf16.mxu1 %v7717_v42  ;;  %v7741_v42 = vpack.c.bf16 %v4987_v48, %v4986_v54  ;;  %v5198_v48 = vld [vmem:[#allocation15 + $0x260] sm:$0xff] }
 0xa13   : > { %v7719_v17 = vpack.c.bf16 %v5012_v20, %v5011_v55  ;;  %v4970_v55 = vld [vmem:[#allocation15 + $0x50] sm:$0xff]  ;;  %v4971_v20 = vld [vmem:[#allocation15 + $0x58] sm:$0xff] }
 0xa15   : > { %7672 = vmatpush1.bf16.msra.mxu0 %v7671_v59  ;;  %7720 = vmatpush3.bf16.msra.mxu1 %v7719_v17  ;;  %v4913_v59 = vld [vmem:[#allocation24] sm:$0x3]  ;;  %v7743_v17 = vpack.c.bf16 %v4971_v20, %v4970_v55  ;;  %v5217_v55 = vld [vmem:[#allocation15 + $0x2f8] sm:$0xff] }
 0xa16   : > { %7674 = vmatprep.subr.bf16.mxu0 %v7673_v37  ;;  %7722 = vmatprep.subr.bf16.mxu1 %v7721_v56  ;;  %v4929_v37 = vld [vmem:[#allocation34] sm:$0x3]  ;;  %v4918_v29 = vrot.slane %v4913_v59, %v9910_v47  ;;  %v4922_v0 = vrot.slane %v4913_v59, %v9913_v50  ;;  %v7745_v56 = vpack.c.bf16 %v4989_v32, %v4988_v22  ;;  %v4972_v59 = vld [vmem:[#allocation15 + $0x60] sm:$0xff]  ;;  %v5200_v32 = vld [vmem:[#allocation15 + $0x270] sm:$0xff] }
 0xa17   : > { %v4934_v11 = vrot.slane %v4929_v37, %v9910_v47  ;;  %v4961_v47 = vld [vmem:[#allocation15 + $0x8] sm:$0xff] }
 0xa18   : > { %v7723_v35 = vpack.c.bf16 %v4961_v47, %v4960_v8  ;;  %v5204_v8 = vld [vmem:[#allocation15 + $0x290] sm:$0xff]  ;;  %v5205_v47 = vld [vmem:[#allocation15 + $0x298] sm:$0xff] }
 0xa19   : > { %7676 = vmatpush1.bf16.msra.mxu0 %v7675_v63  ;;  %v4938_v63 = vrot.slane %v4929_v37, %v9913_v50  ;;  %v4973_v37 = vld [vmem:[#allocation15 + $0x68] sm:$0xff] }
 0xa1a   : > { %7678 = vmatprep.subr.bf16.mxu0 %v7677_v12 }
 0xa1d   : > { %7680 = vmatpush1.bf16.msra.mxu0 %v7679_v39 }
 0xa1e   : > { %7682 = vmatprep.subr.bf16.mxu0 %v7681_v10 }
 0xa21   : > { %7684 = vmatpush1.bf16.msra.mxu0 %v7683_v23 }
 0xa22   : > { %7686 = vmatprep.subr.bf16.mxu0 %v7685_v18  ;;  %v4979_v18 = vld [vmem:[#allocation15 + $0x98] sm:$0xff] }
 0xa23   : > { %v7725_v57 = vpack.c.bf16 %v4979_v18, %v4978_v33  ;;  %v7757_v18 = vpack.c.bf16 %v5205_v47, %v5204_v8  ;;  %v5401_v8 = vld [vmem:[#allocation16 + $0x98] sm:$0xff] }
 0xa25   : > { %7688 = vmatpush1.bf16.msra.mxu0 %v7687_v14 }
 0xa28   : > { %4905 = vmatmul.mubr.f32.vlgmr.msra.gmra.mrb[8].mxu0 %v4761_v1 }
 0xafb   : > { %v4906_v19 = vpop.f32.mrb[8].mxu0 }
 0xafc   : > { %v4925_v12 = vadd.f32 %v4918_v29, %v4906_v19  ;;  %v4908_v46 = vpop.f32.mrb[9].mxu0  ;;  %v4990_v29 = vld [vmem:[#allocation15 + $0xf0] sm:$0xff] }
 0xafd   : > { %v4926_v53 = vadd.f32 %v4922_v0, %v4908_v46  ;;  %v4991_v0 = vld [vmem:[#allocation15 + $0xf8] sm:$0xff]  ;;  %v5202_v46 = vld [vmem:[#allocation15 + $0x280] sm:$0xff] }
 0xafe   : > { %vm4927_vm14 = vcmp.ge.f32.partialorder %v4925_v12, 0.0  ;;  %v4941_v36 = vmul.f32 %v4934_v11, %v4925_v12  ;;  %v7747_v11 = vpack.c.bf16 %v4973_v37, %v4972_v59  ;;  %v7749_v19 = vpack.c.bf16 %v4991_v0, %v4990_v29 }
 0xaff   : > { %vm4928_vm15 = vcmp.ge.f32.partialorder %v4926_v53, 0.0  ;;  %v4942_v34 = vmul.f32 %v4938_v63, %v4926_v53  ;;  %v4974_v63 = vld [vmem:[#allocation15 + $0x70] sm:$0xff] }
 0xb00   : > { %v4943_v39 = vsel %vm4927_vm14, %v4925_v12, %v4941_v36  ;;  %v4975_v12 = vld [vmem:[#allocation15 + $0x78] sm:$0xff] }
 0xb01   : > { %v4947_v10 = vrot.slane %v4943_v39, 7  ;;  %v4944_v21 = vsel %vm4928_vm15, %v4926_v53, %v4942_v34  ;;  %v5203_v53 = vld [vmem:[#allocation15 + $0x288] sm:$0xff]  ;;  %v7751_v36 = vpack.c.bf16 %v4975_v12, %v4974_v63 }
 0xb02   : > { %v4948_v7 = vrot.slane %v4944_v21, 7  ;;  %v5186_v21 = vld [vmem:[#allocation15 + $0x200] sm:$0xff]  ;;  %v5381_v63 = vld [vmem:[#allocation16 + $0x8] sm:$0xff] }
 0xb03   : > { %4953 = vst [vmem:[#allocation3 + $0x20] sm:$0x1] %v4947_v10  ;;  %4951 = vst [vmem:[#allocation3] sm:$0xfe] %v4947_v10  ;;  %v7753_v10 = vpack.c.bf16 %v5203_v53, %v5202_v46  ;;  %v5398_v46 = vld [vmem:[#allocation16 + $0x80] sm:$0xff]  ;;  %v5399_v53 = vld [vmem:[#allocation16 + $0x88] sm:$0xff] }
 0xb04   : > { %4952 = vst [vmem:[#allocation3 + $0x8] sm:$0xfe] %v4948_v7  ;;  %4954 = vst [vmem:[#allocation3 + $0x28] sm:$0x1] %v4948_v7  ;;  %v5187_v7 = vld [vmem:[#allocation15 + $0x208] sm:$0xff] }
 0xb0a   : > { %v4992_v23 = vld [vmem:[#allocation3] sm:$0xfe]  ;;  %v4994_v50 = vld [vmem:[#allocation3 + $0x20] sm:$0x1] }
 0xb0b   : > { %v4993_v9 = vld [vmem:[#allocation3 + $0x8] sm:$0xfe]  ;;  %v4995_v60 = vld [vmem:[#allocation3 + $0x28] sm:$0x1]  ;;  %v5033_v44 = vrot.slane %v4992_v23, 1  ;;  %v5034_v14 = vrot.slane %v4994_v50, 1  ;;  %v7755_v50 = vpack.c.bf16 %v5187_v7, %v5186_v21 }
 0xb0c   : > { %v5036_v24 = vrot.slane %v4993_v9, 1  ;;  %v5037_v4 = vrot.slane %v4995_v60, 1  ;;  %v4959_v5 = vld [vmem:[#allocation3 + $0x8] sm:$0xff]  ;;  %v5188_v9 = vld [vmem:[#allocation15 + $0x210] sm:$0xff]  ;;  %v5189_v60 = vld [vmem:[#allocation15 + $0x218] sm:$0xff] }
 0xb0d   : > { %v5035_v45 = vsel %vm1089_vm2, %v5033_v44, %v5034_v14  ;;  %v5182_v34 = vld [vmem:[#allocation3 + $0x8] sm:$0xfc]  ;;  %v5184_v39 = vld [vmem:[#allocation3 + $0x28] sm:$0x3]  ;;  %v4958_v44 = vld [vmem:[#allocation3] sm:$0xff] }
 0xb0e   : > { %v5038_v1 = vsel %vm1089_vm2, %v5036_v24, %v5037_v4  ;;  %v5225_v33 = vrot.slane %v5182_v34, 2  ;;  %v5226_v23 = vrot.slane %v5184_v39, 2  ;;  %v5206_v14 = vld [vmem:[#allocation15 + $0x2a0] sm:$0xff]  ;;  %v5207_v24 = vld [vmem:[#allocation15 + $0x2a8] sm:$0xff]  ;;  %v7786_v34 = vpack.c.bf16 %v5399_v53, %v5398_v46  ;;  %v5382_v39 = vld [vmem:[#allocation16 + $0x10] sm:$0xff] }
 0xb0f   : > { %5105 = vmatprep.mubr.f32.mxu1 %v5038_v1  ;;  %v7761_v1 = vpack.c.bf16 %v5207_v24, %v5206_v14  ;;  %v5183_v59 = vld [vmem:[#allocation3 + $0x20] sm:$0x3]  ;;  %v5400_v7 = vld [vmem:[#allocation16 + $0x90] sm:$0xff]  ;;  %v5387_v14 = vld [vmem:[#allocation16 + $0x38] sm:$0xff] }
 0xb10   : > { %5106 = vmatmul.mubr.f32.vlgmr.msra.gmra.mrb[12].mxu1 %v5035_v45  ;;  %v5227_v4 = vsel %vm1294_vm1, %v5225_v33, %v5226_v23  ;;  %v5209_v45 = vld [vmem:[#allocation15 + $0x2b8] sm:$0xff]  ;;  %v5223_v0 = vrot.slane %v5183_v59, 2  ;;  %v7789_v47 = vpack.c.bf16 %v5401_v8, %v5400_v7  ;;  %v5384_v33 = vld [vmem:[#allocation16 + $0x20] sm:$0xff]  ;;  %v5385_v23 = vld [vmem:[#allocation16 + $0x28] sm:$0xff] }
 0xb11   : > { %7724 = vmatpush3.bf16.msra.mxu1 %v7723_v35  ;;  %5175 = vmatprep.mubr.f32.mxu1 %v4959_v5  ;;  %v7759_v35 = vpack.c.bf16 %v5189_v60, %v5188_v9  ;;  %v7765_v16 = vpack.c.bf16 %v5209_v45, %v5208_v2  ;;  %v5192_v5 = vld [vmem:[#allocation15 + $0x230] sm:$0xff]  ;;  %v5403_v9 = vld [vmem:[#allocation16 + $0xa8] sm:$0xff]  ;;  %v5406_v2 = vld [vmem:[#allocation16 + $0xc0] sm:$0xff] }
 0xb12   : > { %7726 = vmatprep.subr.bf16.mxu1 %v7725_v57  ;;  %v5190_v57 = vld [vmem:[#allocation15 + $0x220] sm:$0xff]  ;;  %v5407_v45 = vld [vmem:[#allocation16 + $0xc8] sm:$0xff] }
 0xb13   : > { %v7763_v43 = vpack.c.bf16 %v5191_v40, %v5190_v57  ;;  %v5389_v40 = vld [vmem:[#allocation16 + $0x48] sm:$0xff] }
 0xb15   : > { %7728 = vmatpush3.bf16.msra.mxu1 %v7727_v3  ;;  %v5193_v3 = vld [vmem:[#allocation15 + $0x238] sm:$0xff] }
 0xb16   : > { %7730 = vmatprep.subr.bf16.mxu1 %v7729_v58  ;;  %v5210_v58 = vld [vmem:[#allocation15 + $0x2c0] sm:$0xff]  ;;  %v7767_v61 = vpack.c.bf16 %v5193_v3, %v5192_v5  ;;  %v7798_v5 = vpack.c.bf16 %v5407_v45, %v5406_v2  ;;  %v5390_v3 = vld [vmem:[#allocation16 + $0x50] sm:$0xff] }
 0xb17   : > { %v7769_v52 = vpack.c.bf16 %v5211_v51, %v5210_v58  ;;  %v5391_v58 = vld [vmem:[#allocation16 + $0x58] sm:$0xff]  ;;  %v5408_v51 = vld [vmem:[#allocation16 + $0xd0] sm:$0xff] }
 0xb19   : > { %7732 = vmatpush3.bf16.msra.mxu1 %v7731_v31  ;;  %v5195_v31 = vld [vmem:[#allocation15 + $0x248] sm:$0xff] }
 0xb1a   : > { %7734 = vmatprep.subr.bf16.mxu1 %v7733_v62  ;;  %v5212_v62 = vld [vmem:[#allocation15 + $0x2d0] sm:$0xff]  ;;  %v7771_v28 = vpack.c.bf16 %v5195_v31, %v5194_v30  ;;  %v5392_v31 = vld [vmem:[#allocation16 + $0x60] sm:$0xff] }
 0xb1b   : > { %v7773_v25 = vpack.c.bf16 %v5213_v13, %v5212_v62  ;;  %v5393_v62 = vld [vmem:[#allocation16 + $0x68] sm:$0xff]  ;;  %v5410_v13 = vld [vmem:[#allocation16 + $0xe0] sm:$0xff] }
 0xb1d   : > { %7736 = vmatpush3.bf16.msra.mxu1 %v7735_v38  ;;  %v5197_v38 = vld [vmem:[#allocation15 + $0x258] sm:$0xff] }
 0xb1e   : > { %7738 = vmatprep.subr.bf16.mxu1 %v7737_v6  ;;  %v5214_v6 = vld [vmem:[#allocation15 + $0x2e0] sm:$0xff]  ;;  %v7775_v15 = vpack.c.bf16 %v5197_v38, %v5196_v27  ;;  %v5394_v38 = vld [vmem:[#allocation16 + $0x70] sm:$0xff] }
 0xb1f   : > { %v7777_v54 = vpack.c.bf16 %v5215_v41, %v5214_v6  ;;  %v5395_v6 = vld [vmem:[#allocation16 + $0x78] sm:$0xff]  ;;  %v5412_v41 = vld [vmem:[#allocation16 + $0xf0] sm:$0xff] }
 0xb21   : > { %7740 = vmatpush3.bf16.msra.mxu1 %v7739_v49  ;;  %v5199_v49 = vld [vmem:[#allocation15 + $0x268] sm:$0xff] }
 0xb22   : > { %7742 = vmatprep.subr.bf16.mxu1 %v7741_v42  ;;  %v5216_v42 = vld [vmem:[#allocation15 + $0x2f0] sm:$0xff]  ;;  %v7779_v20 = vpack.c.bf16 %v5199_v49, %v5198_v48 }
 0xb23   : > { %v7781_v22 = vpack.c.bf16 %v5217_v55, %v5216_v42 }
 0xb25   : > { %7744 = vmatpush3.bf16.msra.mxu1 %v7743_v17  ;;  %v5201_v17 = vld [vmem:[#allocation15 + $0x278] sm:$0xff] }
 0xb26   : > { %7746 = vmatprep.subr.bf16.mxu1 %v7745_v56  ;;  %v5181_v56 = vld [vmem:[#allocation3] sm:$0xfc]  ;;  %v7783_v37 = vpack.c.bf16 %v5201_v17, %v5200_v32 }
 0xb27   : > { %v5222_v29 = vrot.slane %v5181_v56, 2 }
 0xb29   : > { %7748 = vmatpush3.bf16.msra.mxu1 %v7747_v11  ;;  %v5224_v11 = vsel %vm1294_vm1, %v5222_v29, %v5223_v0  ;;  %vm8938_vm1 = vmmov 0   ;;  %v6015_v29 = vld [vmem:[#allocation25] ss:$0 sm:$0xff] }
 0xb2a   : > { %7750 = vmatprep.subr.bf16.mxu1 %v7749_v19  ;;  %v5380_v19 = vld [vmem:[#allocation16] sm:$0xff] }
 0xb2b   : > { %v7810_v12 = vpack.c.bf16 %v5381_v63, %v5380_v19 }
 0xb2d   : > { %7752 = vmatpush3.bf16.msra.mxu1 %v7751_v36  ;;  %v8937_v36 = vmov 0.0|0.0  }
 0xb2e   : > { %7754 = vmatprep.subr.bf16.mxu1 %v7753_v10  ;;  %7785 = vmatprep.subr.bf16.mxu0 %v8937_v36  ;;  %v5383_v10 = vld [vmem:[#allocation16 + $0x18] sm:$0xff] }
 0xb2f   : > { %7787 = vmatpush3.bf16.msra.mxu0 %v7786_v34  ;;  %v7813_v21 = vpack.c.bf16 %v5383_v10, %v5382_v39 }
 0xb30   : > { %5176 = vmatmul.mubr.f32.vlgmr.msra.gmra.mrb[14].mxu1 %v4958_v44  ;;  %7788 = vmatprep.subr.bf16.mxu0 %v8937_v36  ;;  %v5386_v44 = vld [vmem:[#allocation16 + $0x30] sm:$0xff] }
 0xb31   : > { %7756 = vmatpush3.bf16.msra.mxu1 %v7755_v50  ;;  %5294 = vmatprep.mubr.f32.mxu1 %v5227_v4  ;;  %v7816_v50 = vpack.c.bf16 %v5385_v23, %v5384_v33  ;;  %v7819_v24 = vpack.c.bf16 %v5387_v14, %v5386_v44  ;;  %v5404_v4 = vld [vmem:[#allocation16 + $0xb0] sm:$0xff] }
 0xb32   : > { %7758 = vmatprep.subr.bf16.mxu1 %v7757_v18  ;;  %v5402_v18 = vld [vmem:[#allocation16 + $0xa0] sm:$0xff] }
 0xb33   : > { %7790 = vmatpush3.bf16.msra.mxu0 %v7789_v47  ;;  %v7792_v60 = vpack.c.bf16 %v5403_v9, %v5402_v18 }
 0xb34   : > { %7791 = vmatprep.subr.bf16.mxu0 %v8937_v36 }
 0xb35   : > { %7760 = vmatpush3.bf16.msra.mxu1 %v7759_v35  ;;  %v5405_v35 = vld [vmem:[#allocation16 + $0xb8] sm:$0xff] }
 0xb36   : > { %7762 = vmatprep.subr.bf16.mxu1 %v7761_v1  ;;  %v5388_v1 = vld [vmem:[#allocation16 + $0x40] sm:$0xff]  ;;  %v7795_v57 = vpack.c.bf16 %v5405_v35, %v5404_v4 }
 0xb37   : > { %7793 = vmatpush3.bf16.msra.mxu0 %v7792_v60 }
 0xb38   : > { %7794 = vmatprep.subr.bf16.mxu0 %v8937_v36 }
 0xb39   : > { %7764 = vmatpush3.bf16.msra.mxu1 %v7763_v43  ;;  %v10258_v43 = vld [vmem:[#allocation2 + $0x48] sm:$0xff] }
 0xb3a   : > { %7766 = vmatprep.subr.bf16.mxu1 %v7765_v16  ;;  %6560 = vmatprep.mubr.msk.f32.mxu0 %vm8938_vm1, %v10258_v43  ;;  %v7822_v16 = vpack.c.bf16 %v5389_v40, %v5388_v1 }
 0xb3b   : > { %7796 = vmatpush3.bf16.msra.mxu0 %v7795_v57 }
 0xb3c   : > { %7797 = vmatprep.subr.bf16.mxu0 %v8937_v36 }
 0xb3d   : > { %7768 = vmatpush3.bf16.msra.mxu1 %v7767_v61  ;;  %v5409_v61 = vld [vmem:[#allocation16 + $0xd8] sm:$0xff] }
 0xb3e   : > { %7770 = vmatprep.subr.bf16.mxu1 %v7769_v52  ;;  %v7825_v52 = vpack.c.bf16 %v5391_v58, %v5390_v3  ;;  %v7801_v30 = vpack.c.bf16 %v5409_v61, %v5408_v51 }
 0xb3f   : > { %7799 = vmatpush3.bf16.msra.mxu0 %v7798_v5 }
 0xb40   : > { %7800 = vmatprep.subr.bf16.mxu0 %v8937_v36 }
 0xb41   : > { %7772 = vmatpush3.bf16.msra.mxu1 %v7771_v28  ;;  %v5411_v28 = vld [vmem:[#allocation16 + $0xe8] sm:$0xff] }
 0xb42   : > { %7774 = vmatprep.subr.bf16.mxu1 %v7773_v25  ;;  %v7828_v25 = vpack.c.bf16 %v5393_v62, %v5392_v31  ;;  %v7804_v27 = vpack.c.bf16 %v5411_v28, %v5410_v13  ;;  %v5559_v13 = vld [vmem:[#allocation16 + $0x100] sm:$0xff]  ;;  %v5560_v28 = vld [vmem:[#allocation16 + $0x108] sm:$0xff] }
 0xb43   : > { %7802 = vmatpush3.bf16.msra.mxu0 %v7801_v30 }
 0xb44   : > { %7803 = vmatprep.subr.bf16.mxu0 %v8937_v36 }
 0xb45   : > { %7776 = vmatpush3.bf16.msra.mxu1 %v7775_v15  ;;  %v5413_v15 = vld [vmem:[#allocation16 + $0xf8] sm:$0xff] }
 0xb46   : > { %7778 = vmatprep.subr.bf16.mxu1 %v7777_v54  ;;  %v7831_v54 = vpack.c.bf16 %v5395_v6, %v5394_v38  ;;  %v7807_v48 = vpack.c.bf16 %v5413_v15, %v5412_v41  ;;  %v7834_v38 = vpack.c.bf16 %v5560_v28, %v5559_v13  ;;  %v5561_v41 = vld [vmem:[#allocation16 + $0x110] sm:$0xff]  ;;  %v5562_v15 = vld [vmem:[#allocation16 + $0x118] sm:$0xff] }
 0xb47   : > { %7805 = vmatpush3.bf16.msra.mxu0 %v7804_v27 }
 0xb48   : > { %7806 = vmatprep.subr.bf16.mxu0 %v8937_v36 }
 0xb49   : > { %7780 = vmatpush3.bf16.msra.mxu1 %v7779_v20 }
 0xb4a   : > { %7782 = vmatprep.subr.bf16.mxu1 %v7781_v22 }
 0xb4b   : > { %7808 = vmatpush3.bf16.msra.mxu0 %v7807_v48  ;;  %v5563_v48 = vld [vmem:[#allocation16 + $0x120] sm:$0xff] }
 0xb4c   : > { %7833 = vmatprep.subr.bf16.mxu0 %v8937_v36 }
 0xb4d   : > { %7784 = vmatpush3.bf16.msra.mxu1 %v7783_v37 }
 0xb4e   : > { %7809 = vmatprep.subr.bf16.mxu1 %v8937_v36 }
 0xb50   : > { %5295 = vmatmul.mubr.f32.vlgmr.msra.gmra.mrb[16].mxu1 %v5224_v11  ;;  %v6016_v11 = vld [vmem:[#allocation36] ss:$0 sm:$0xff] }
 0xb51   : > { %7811 = vmatpush3.bf16.msra.mxu1 %v7810_v12  ;;  %6595 = vmatprep.mubr.msk.f32.mxu1 %vm8938_vm1, %v10258_v43 }
 0xb52   : > { %7812 = vmatprep.subr.bf16.mxu1 %v8937_v36 }
 0xb55   : > { %7814 = vmatpush3.bf16.msra.mxu1 %v7813_v21 }
 0xb56   : > { %7815 = vmatprep.subr.bf16.mxu1 %v8937_v36 }
 0xb59   : > { %7817 = vmatpush3.bf16.msra.mxu1 %v7816_v50 }
 0xb5a   : > { %7818 = vmatprep.subr.bf16.mxu1 %v8937_v36 }
 0xb5d   : > { %7820 = vmatpush3.bf16.msra.mxu1 %v7819_v24 }
 0xb5e   : > { %7821 = vmatprep.subr.bf16.mxu1 %v8937_v36 }
 0xb61   : > { %7823 = vmatpush3.bf16.msra.mxu1 %v7822_v16 }
 0xb62   : > { %7824 = vmatprep.subr.bf16.mxu1 %v8937_v36 }
 0xb65   : > { %7826 = vmatpush3.bf16.msra.mxu1 %v7825_v52 }
 0xb66   : > { %7827 = vmatprep.subr.bf16.mxu1 %v8937_v36 }
 0xb69   : > { %7829 = vmatpush3.bf16.msra.mxu1 %v7828_v25 }
 0xb6a   : > { %7830 = vmatprep.subr.bf16.mxu1 %v8937_v36 }
 0xb6d   : > { %7832 = vmatpush3.bf16.msra.mxu1 %v7831_v54  ;;  %v7837_v54 = vpack.c.bf16 %v5562_v15, %v5561_v41 }
 0xbe3   : > { %v6176_v49 = vpop.f32.mrb[12].mxu1 }
 0xbe4   : > { %v6177_v42 = vpop.f32.mrb[13].mxu1 }
 0xbe5   : > { %v6178_v55 = vadd.f32 %v6177_v42, %v6176_v49  ;;  %v5564_v49 = vld [vmem:[#allocation16 + $0x128] sm:$0xff] }
 0xbe6   : > { %v7840_v42 = vpack.c.bf16 %v5564_v49, %v5563_v48 }
 0xc03   : > { %v6211_v20 = vpop.f32.mrb[14].mxu1 }
 0xc04   : > { %v6212_v22 = vpop.f32.mrb[15].mxu1 }
 0xc05   : > { %v6213_v32 = vadd.f32 %v6212_v22, %v6211_v20  ;;  %v5566_v20 = vld [vmem:[#allocation16 + $0x138] sm:$0xff] }
 0xc07   : > { %v5178_v17 = vadd.f32 %v6213_v32, %v6178_v55  ;;  %v5565_v55 = vld [vmem:[#allocation16 + $0x130] sm:$0xff]  ;;  %v5567_v32 = vld [vmem:[#allocation16 + $0x140] sm:$0xff] }
 0xc08   : > { %v7843_v22 = vpack.c.bf16 %v5566_v20, %v5565_v55 }
 0xc23   : > { %v6246_v56 = vpop.f32.mrb[16].mxu1 }
 0xc24   : > { %v6247_v59 = vpop.f32.mrb[17].mxu1 }
 0xc25   : > { %v6248_v37 = vadd.f32 %v6247_v59, %v6246_v56  ;;  %v5570_v59 = vld [vmem:[#allocation16 + $0x158] sm:$0xff] }
 0xc27   : > { %v5300_v0 = vadd.f32 %v6248_v37, %v5178_v17  ;;  %v5568_v17 = vld [vmem:[#allocation16 + $0x148] sm:$0xff] }
 0xc28   : > { %v7846_v56 = vpack.c.bf16 %v5568_v17, %v5567_v32 }
 0xc29   : > { %v5308_v19 = vadd.f32 %v6015_v29, %v5300_v0  ;;  %v5571_v29 = vld [vmem:[#allocation16 + $0x160] sm:$0xff]  ;;  %v5572_v0 = vld [vmem:[#allocation16 + $0x168] sm:$0xff] }
 0xc2b   : > { %vm5309_vm2 = vcmp.ge.f32.partialorder %v5308_v19, 0.0  ;;  %v5317_v63 = vmul.f32 %v6016_v11, %v5308_v19  ;;  %v7852_v11 = vpack.c.bf16 %v5572_v0, %v5571_v29 }
 0xc2d   : > { %v5318_v12 = vsel %vm5309_vm2, %v5308_v19, %v5317_v63  ;;  %v5573_v19 = vld [vmem:[#allocation16 + $0x170] sm:$0xff]  ;;  %v5574_v63 = vld [vmem:[#allocation16 + $0x178] sm:$0xff] }
 0xc2e   : > { %v5320_v46 = vcombine.high %v5318_v12, %v5318_v12  ;;  %v5327_v53 = vrot.slane %v5318_v12, %v9784_v26  ;;  %v7855_v12 = vpack.c.bf16 %v5574_v63, %v5573_v19 }
 0xc30   : > { %v5334_v34 = vrot.slane %v5320_v46, %v9784_v26  ;;  %v5335_v39 = vcombine.high %v5327_v53, %v5327_v53  ;;  %v5341_v10 = vsel %vm1917_vm7, %v5327_v53, -inf }
 0xc31   : > { %v5342_v21 = vrot.slane %v5341_v10, 4 }
 0xc32   : > { %v5336_v7 = vcombine.high %v5334_v34, %v5334_v34  ;;  %v5348_v8 = vsel %vm1917_vm7, %v5335_v39, -inf  ;;  %v5355_v47 = vsel %vm1917_vm7, %v5334_v34, -inf }
 0xc33   : > { %v5343_v33 = vmax.f32 %v5341_v10, %v5342_v21  ;;  %v5349_v23 = vrot.slane %v5348_v8, 4  ;;  %v5356_v50 = vrot.slane %v5355_v47, 4 }
 0xc34   : > { %v5362_v18 = vsel %vm1917_vm7, %v5336_v7, -inf }
 0xc35   : > { %v5344_v9 = vrot.slane %v5343_v33, 2  ;;  %v5350_v60 = vmax.f32 %v5348_v8, %v5349_v23  ;;  %v5357_v44 = vmax.f32 %v5355_v47, %v5356_v50  ;;  %v5363_v14 = vrot.slane %v5362_v18, 4  ;;  %v6017_v47 = vld [vmem:[#allocation27] ss:$0 sm:$0xff]  ;;  %v6018_v50 = vld [vmem:[#allocation37] ss:$0 sm:$0xff] }
 0xc37   : > { %v5345_v24 = vmax.f32 %v5343_v33, %v5344_v9  ;;  %v5351_v26 = vrot.slane %v5350_v60, 2  ;;  %v5358_v4 = vrot.slane %v5357_v44, 2  ;;  %v5364_v35 = vmax.f32 %v5362_v18, %v5363_v14 }
 0xc39   : > { %v5346_v1 = vrot.slane %v5345_v24, 1  ;;  %v5352_v57 = vmax.f32 %v5350_v60, %v5351_v26  ;;  %v5359_v40 = vmax.f32 %v5357_v44, %v5358_v4  ;;  %v5365_v2 = vrot.slane %v5364_v35, 2 }
 0xc3b   : > { %v5353_v45 = vrot.slane %v5352_v57, 1  ;;  %v5360_v16 = vrot.slane %v5359_v40, 1  ;;  %v5366_v5 = vmax.f32 %v5364_v35, %v5365_v2  ;;  %v5347_v3 = vmax.f32 %v5345_v24, %v5346_v1 }
 0xc3d   : > { %v5354_v58 = vmax.f32 %v5352_v57, %v5353_v45  ;;  %v5361_v51 = vmax.f32 %v5359_v40, %v5360_v16  ;;  %v5367_v61 = vrot.slane %v5366_v5, 1 }
 0xc3f   : > { %v5368_v52 = vmax.f32 %v5366_v5, %v5367_v61  ;;  %v5373_v30 = vsel %vm2046_vm10, %v5354_v58, %v5347_v3 }
 0xc40   : > { %v5374_v31 = vsel %vm2048_vm11, %v5361_v51, %v5373_v30 }
 0xc41   : > { %v5375_v62 = vsel %vm2050_vm12, %v5368_v52, %v5374_v31 }
 0xc42   : > { %5377 = vst [vmem:[#allocation2] sm:$0x1e] %v5375_v62 }
 0xc49   : > { %v5379_v25 = vld [vmem:[#allocation2] sm:$0xf] }
 0xc4a   : > { %v5396_v27 = vld [vmem:[#allocation2] sm:$0x1e]  ;;  %6596 = vmatmul.mubr.f32.vlgmr.msra.gmra.mrb[18].mxu1 %v5379_v25 }
 0xc4b   : > { %v5415_v6 = vrot.slane %v5396_v27, 1  ;;  %v5557_v46 = vld [vmem:[#allocation2] sm:$0x3c] }
 0xc4c   : > { %v5576_v53 = vrot.slane %v5557_v46, 2 }
 0xc4d   : > { %6561 = vmatmul.mubr.f32.vlgmr.msra.gmra.mrb[10].mxu0 %v5415_v6 }
 0xc4e   : > { %7835 = vmatpush3.bf16.msra.mxu0 %v7834_v38  ;;  %6630 = vmatprep.mubr.msk.f32.mxu0 %vm8938_vm1, %v10258_v43  ;;  %v5569_v43 = vld [vmem:[#allocation16 + $0x150] sm:$0xff] }
 0xc4f   : > { %7836 = vmatprep.subr.bf16.mxu0 %v8937_v36  ;;  %v7849_v37 = vpack.c.bf16 %v5570_v59, %v5569_v43 }
 0xc52   : > { %7838 = vmatpush3.bf16.msra.mxu0 %v7837_v54 }
 0xc53   : > { %7839 = vmatprep.subr.bf16.mxu0 %v8937_v36 }
 0xc56   : > { %7841 = vmatpush3.bf16.msra.mxu0 %v7840_v42 }
 0xc57   : > { %7842 = vmatprep.subr.bf16.mxu0 %v8937_v36 }
 0xc5a   : > { %7844 = vmatpush3.bf16.msra.mxu0 %v7843_v22 }
 0xc5b   : > { %7845 = vmatprep.subr.bf16.mxu0 %v8937_v36 }
 0xc5e   : > { %7847 = vmatpush3.bf16.msra.mxu0 %v7846_v56 }
 0xc5f   : > { %7848 = vmatprep.subr.bf16.mxu0 %v8937_v36 }
 0xc62   : > { %7850 = vmatpush3.bf16.msra.mxu0 %v7849_v37 }
 0xc63   : > { %7851 = vmatprep.subr.bf16.mxu0 %v8937_v36 }
 0xc66   : > { %7853 = vmatpush3.bf16.msra.mxu0 %v7852_v11 }
 0xc67   : > { %7854 = vmatprep.subr.bf16.mxu0 %v8937_v36 }
 0xc6a   : > { %7856 = vmatpush3.bf16.msra.mxu0 %v7855_v12 }
 0xc6d   : > { %6631 = vmatmul.mubr.f32.vlgmr.msra.gmra.mrb[12].mxu0 %v5576_v53 }
 0xd1d   : > { %v5553_v34 = vpop.f32.mrb[18].mxu1 }
 0xd1e   : > { %v6597_v39 = vpop.f32.mrb[19].mxu1 }
 0xd20   : > { %v5483_v10 = vpop.f32.mrb[10].mxu0 }
 0xd21   : > { %v5554_v21 = vadd.f32 %v5553_v34, %v5483_v10  ;;  %v6562_v7 = vpop.f32.mrb[11].mxu0 }
 0xd40   : > { %v5644_v8 = vpop.f32.mrb[12].mxu0 }
 0xd41   : > { %v5648_v33 = vadd.f32 %v5644_v8, %v5554_v21  ;;  %v6632_v23 = vpop.f32.mrb[13].mxu0 }
 0xd43   : > { %v5656_v18 = vadd.f32 %v6017_v47, %v5648_v33 }
 0xd45   : > { %vm5657_vm7 = vcmp.ge.f32.partialorder %v5656_v18, 0.0  ;;  %v5665_v36 = vmul.f32 %v6018_v50, %v5656_v18 }
 0xd47   : > { %v5666_v9 = vsel %vm5657_vm7, %v5656_v18, %v5665_v36 }
 0xd48   : > { %5667 = vst [vmem:[%s978_s28] sm:$0xf] %v5666_v9 }
 0xd49   : > { %8808 = shalt.err (!%p8805_p9)
}
 0xd4a   : > { %s8809_s2 = scalar_lea.hbm %s10296_s3, 64  ;;  %s8813_s28 = scalar_lea.hbm %s10476_s6, 128 }
 0xd4b   : > { %p8810_p4 = scmp.ne.s32.totalorder %s10296_s3, %s8809_s2  ;;  %p8814_p5 = scmp.lt.u32.totalorder %s10296_s3, %s10476_s6 }
 0xd4c   : > { %p8815_p2 = scmp.lt.u32.totalorder %s8813_s28, %s8809_s2  ;;  %p8817_p10 = scmp.lt.u32.totalorder %s8809_s2, %s10296_s3 }
 0xd4d   : > { %p8811_p3 = pnand %p8810_p4, %p10477_p1 }
 0xd4e   : > { %p8816_p7 = por %p8815_p2, %p8814_p5 }
 0xd4f   : > { %p8812_p0 = pneg %p8811_p3 }
 0xd50   : > { %p8818_p11 = por %p8817_p10, %p8816_p7 }
 0xd52   : > { %p8819_p12 = pnand %p8818_p11, %p8812_p0 }
 0xd54   : > { %8822 = shalt.err (!%p8819_p12)
}
 0xd55   : > { %7993 = dma.vmem_to_hbm [thread:$0]  (%p10477_p1), %s10298_s4, 64, %s10296_s3, %s5669_s5  }
 0xd56 PF: > { %s10478_s25 = sld [smem:[#allocation53_spill]]  ;;  %s10479_s24 = sld [smem:[#allocation56_spill]] }
 0xd57   : > { %p10480_p13 = scmp.ne.s32.totalorder %s10446_s0, 0 }
 0xd5c   : > { %s5694_s10 = sand.u32 1, %s10478_s25   ;;  %p10481_p8 = scmp.ge.s32.totalorder %s10479_s24, 2 }
 0xd5d   : > { %s5695_s7 = scalar_lea.sflag [#allocation6], %s5694_s10 }
 0xd5e   : > { %p8064_p6 = pnand %p10481_p8, %p10480_p13 }
 0xd60   : > { %8888 = dma.done.wait (!%p8064_p6), %s5695_s7, 64  }
 0xd61   : > { %8890 = vsyncadd (!%p8064_p6), %s5695_s7, 4294967232  ;;  %s10482_s3 = sld [smem:[#allocation54_spill]]  ;;  %s10483_s28 = sld [smem:[#allocation55_spill]] }
 0xd62   : > { %p46_p9 = scmp.ge.s32.totalorder %s9540_s30, 4  }
 0xd64   :  { %48 = sbr.rel (!%p46_p9) target bundleno = 34 (0x22), region = 254 }
 0xd6b   :  { %5700 = vsyncpa [#allocation5], 1 }
 0xd6c   :  { %5702 = vsyncpa [#allocation5 + $0x1], 1 }
 0xd6d   :  { %5703 = vsyncpa [#allocation8], 1 }
 0xd6e   :  { %5704 = vsyncpa [#allocation11], 1 }
 0xd6f   :  { %5705 = vsyncpa [#allocation14], 1 }
 0xd70   :  { %5706 = vsyncpa [#allocation17], 1 }
 0xd71   :  { %5707 = vsyncpa [#allocation20], 1 }
 0xd72   :  { %5708 = vsyncpa [#allocation23], 1 }
 0xd73   :  { %5709 = vsyncpa [#allocation26], 1 }
 0xd74   :  { %5710 = vsyncpa [#allocation29], 1 }
 0xd75   :  { %5711 = vsyncpa [#allocation32], 1 }
 0xd76   :  { %5712 = vsyncpa [#allocation35], 1 }
 0xd77   :  { %5713 = vsyncpa [#allocation38], 1 }
 0xd78   :  { %5714 = vsyncpa [#allocation6], 1 }
 0xd79   :  { %5716 = vsyncpa [#allocation6 + $0x1], 1 }

</bundles_post_ra>
